<compile_context>
chip_gen: v5e
topology: v5e:2x2
jax: 0.10.0
libtpu: 0.0.40
codegen_flags: <defaults>
</compile_context>

<pallas_src>
import jax
import jax.numpy as jnp
import numpy as np
from jax import lax
from jax.experimental import pallas as pl
from jax.experimental.pallas import tpu as pltpu

KS = 7          # kernel size (ks undefined in snippet; pw=3 => ks=7)
PW = 3          # padding
NHIDDEN = 128   # hidden channels of mlp_shared
EPS = 1e-5      # nn.InstanceNorm2d default eps


def _make_spade_kernel(H, W, C):
    """Returns the per-batch-element SPADE kernel (H, W, C baked in)."""
    HW = H * W
    Wp = W + 2 * PW

    def kernel(x_ref, cols_ref, w1_ref, b1_ref, w2t_ref, b2_ref,
               out_ref, wpad_ref, wcols_ref):
        # x_ref:     (1, C, HW)        f32   input to be instance-normalized
        # cols_ref:  (1, HW, KS*KS*L)  bf16  im2col of upsampled+padded segmap
        # w1_ref:    (KS*KS*L, NH)     bf16  mlp_shared weight (flattened)
        # b1_ref:    (1, NH)           f32
        # w2t_ref:   (KS, 2C, KS*NH)   bf16  gamma|beta weight, lane-dense
        # b2_ref:    (2C, 1)           f32
        # out_ref:   (1, C, HW)        f32
        # wpad_ref:  (H, W+2PW, NH)    f32   W-padded activations
        # wcols_ref: ((H+2PW)*W, KS*NH) bf16 row-im2col of padded activations

        # ---------- mlp_shared: single im2col matmul + bias + ReLU ----------
        acc1 = jnp.dot(cols_ref[0], w1_ref[...],
                       preferred_element_type=jnp.float32)        # (HW, NH) f32
        actv = jnp.maximum(acc1 + b1_ref[...], 0.0)

        # ------- W-padded activation scratch (zero only the borders) -------
        zcol = jnp.zeros((H, PW, NHIDDEN), jnp.float32)
        wpad_ref[:, 0:PW, :] = zcol
        wpad_ref[:, PW + W:Wp, :] = zcol
        wpad_ref[:, PW:PW + W, :] = actv.reshape(H, W, NHIDDEN)

        # --- row-im2col: wcols[yp*W + x, dx*NH + k] = actv_pad[yp, x+dx, k] ---
        zrow = jnp.zeros((PW * W, KS * NHIDDEN), jnp.bfloat16)
        wcols_ref[0:PW * W, :] = zrow
        wcols_ref[PW * W + HW:(H + 2 * PW) * W, :] = zrow
        for dx in range(KS):
            slab = wpad_ref[:, dx:dx + W, :].astype(jnp.bfloat16)  # (H, W, NH)
            wcols_ref[PW * W:PW * W + HW,
                      dx * NHIDDEN:(dx + 1) * NHIDDEN] = slab.reshape(HW, NHIDDEN)

        # -------- mlp_gamma/mlp_beta fused: 7 matmuls, K = KS*NHIDDEN --------
        # gb[o, p] = sum_dy w2t[dy] (2C, K) contracted with slab (HW, K)  (A@B^T)
        gb = jnp.zeros((2 * C, HW), jnp.float32)
        for dy in range(KS):
            slab = wcols_ref[dy * W:dy * W + HW, :]                # aligned rows
            gb = gb + lax.dot_general(
                w2t_ref[dy], slab,
                dimension_numbers=(((1,), (1,)), ((), ())),
                preferred_element_type=jnp.float32)                # (2C, HW)
        gb = gb + b2_ref[...]
        gamma = gb[:C, :]
        beta = gb[C:, :]

        # -------- InstanceNorm2d(affine=False): per-channel lane stats --------
        xv = x_ref[0]                                              # (C, HW) f32
        mean = jnp.mean(xv, axis=1, keepdims=True)
        var = jnp.mean((xv - mean) ** 2, axis=1, keepdims=True)    # biased var
        normed = (xv - mean) * lax.rsqrt(var + EPS)

        out_ref[0] = (normed * (1.0 + gamma) + beta).astype(out_ref.dtype)

    return kernel


def spade_forward(x_nchw, segmap_nchw, params):
    """SPADE forward. Inputs/outputs in PyTorch NCHW; kernel runs (C, H*W)."""
    N, C, H, W = x_nchw.shape
    L = segmap_nchw.shape[1]
    h, w = segmap_nchw.shape[2], segmap_nchw.shape[3]
    HW = H * W
    KKL = KS * KS * L

    # F.interpolate(segmap, size=(H, W), mode='nearest'): src = floor(dst*in/out)
    ih = (jnp.arange(H) * h) // H
    iw = (jnp.arange(W) * w) // W
    seg_up = segmap_nchw[:, :, ih, :][:, :, :, iw].astype(jnp.float32)

    # im2col of the zero-padded, upsampled segmap -> lane-dense columns (bf16)
    seg_pad = jnp.pad(seg_up, ((0, 0), (0, 0), (PW, PW), (PW, PW)))
    yy = jnp.arange(H)[:, None] + jnp.arange(KS)[None, :]          # (H, KS)
    xx = jnp.arange(W)[:, None] + jnp.arange(KS)[None, :]          # (W, KS)
    patches = seg_pad[:, :, yy, :][:, :, :, :, xx]                 # (N,L,H,KS,W,KS)
    seg_cols = jnp.transpose(patches, (0, 2, 4, 3, 5, 1)).reshape(N, HW, KKL)
    seg_cols = seg_cols.astype(jnp.bfloat16)

    w_shared, b_shared, w_gamma, b_gamma, w_beta, b_beta = params
    # mlp_shared weight, flattened to match the (dy, dx, l) column ordering
    w1 = w_shared.reshape(KKL, NHIDDEN).astype(jnp.bfloat16)
    b1 = b_shared.reshape(1, NHIDDEN).astype(jnp.float32)
    # gamma|beta weights fused and pre-transposed lane-dense:
    #   w2t[dy, o, dx*NH + k] = w_gb[dy, dx, k, o]
    w_gb = jnp.concatenate([w_gamma, w_beta], axis=-1)             # (KS,KS,NH,2C)
    w2t = jnp.transpose(w_gb, (0, 3, 1, 2)).reshape(KS, 2 * C, KS * NHIDDEN)
    w2t = w2t.astype(jnp.bfloat16)
    b2 = jnp.concatenate([b_gamma, b_beta]).reshape(2 * C, 1).astype(jnp.float32)

    x_in = x_nchw.reshape(N, C, HW).astype(jnp.float32)

    kernel = _make_spade_kernel(H, W, C)

    flops = 2 * N * HW * KS * KS * (L * NHIDDEN + NHIDDEN * 2 * C)
    bytes_accessed = (x_in.size * 4 + seg_cols.size * 2 + w1.size * 2
                      + w2t.size * 2 + b1.size * 4 + b2.size * 4 + N * C * HW * 4)

    out = pl.pallas_call(
        kernel,
        out_shape=jax.ShapeDtypeStruct((N, C, HW), jnp.float32),
        grid_spec=pltpu.PrefetchScalarGridSpec(
            num_scalar_prefetch=0,
            grid=(N,),
            in_specs=[
                pl.BlockSpec((1, C, HW), lambda n: (n, 0, 0)),
                pl.BlockSpec((1, HW, KKL), lambda n: (n, 0, 0)),
                pl.BlockSpec((KKL, NHIDDEN), lambda n: (0, 0)),
                pl.BlockSpec((1, NHIDDEN), lambda n: (0, 0)),
                pl.BlockSpec((KS, 2 * C, KS * NHIDDEN), lambda n: (0, 0, 0)),
                pl.BlockSpec((2 * C, 1), lambda n: (0, 0)),
            ],
            out_specs=pl.BlockSpec((1, C, HW), lambda n: (n, 0, 0)),
            scratch_shapes=[
                pltpu.VMEM((H, W + 2 * PW, NHIDDEN), jnp.float32),
                pltpu.VMEM(((H + 2 * PW) * W, KS * NHIDDEN), jnp.bfloat16),
            ],
        ),
        compiler_params=pltpu.CompilerParams(dimension_semantics=("parallel",)),
        cost_estimate=pl.CostEstimate(flops=flops, transcendentals=N * C,
                                      bytes_accessed=bytes_accessed),
    )(x_in, seg_cols, w1, b1, w2t, b2)

    return out.reshape(N, C, H, W)                                  # NCHW


def spade_reference(x, segmap, params):
    """Pure-JAX f32 reference (mirrors the PyTorch forward) for validation."""
    w_s, b_s, w_g, b_g, w_b, b_b = params
    N, C, H, W = x.shape
    h, w = segmap.shape[2], segmap.shape[3]
    ih = (jnp.arange(H) * h) // H
    iw = (jnp.arange(W) * w) // W
    seg_up = segmap[:, :, ih, :][:, :, :, iw]

    mean = jnp.mean(x, axis=(2, 3), keepdims=True)
    var = jnp.mean((x - mean) ** 2, axis=(2, 3), keepdims=True)
    normed = (x - mean) / jnp.sqrt(var + EPS)

    def conv(inp, w_hwio, b):
        out = lax.conv_general_dilated(
            inp, w_hwio, window_strides=(1, 1),
            padding=[(PW, PW), (PW, PW)],
            dimension_numbers=('NCHW', 'HWIO', 'NCHW'))
        return out + b[None, :, None, None]

    actv = jnp.maximum(conv(seg_up, w_s, b_s), 0.0)
    gamma = conv(actv, w_g, b_g)
    beta = conv(actv, w_b, b_b)
    return normed * (1 + gamma) + beta


if __name__ == "__main__":
    N, norm_nc, label_nc = 2, 4, 3
    H = W = 16
    hs = ws = 8

    key = jax.random.PRNGKey(0)
    ks = jax.random.split(key, 8)
    x = jax.random.normal(ks[0], (N, norm_nc, H, W), jnp.float32)
    segmap = jax.random.normal(ks[1], (N, label_nc, hs, ws), jnp.float32)

    scale = 0.05  # deterministic synthetic weights (no checkpoint)
    w_shared = scale * jax.random.normal(ks[2], (KS, KS, label_nc, NHIDDEN), jnp.float32)
    b_shared = scale * jax.random.normal(ks[3], (NHIDDEN,), jnp.float32)
    w_gamma = scale * jax.random.normal(ks[4], (KS, KS, NHIDDEN, norm_nc), jnp.float32)
    b_gamma = scale * jax.random.normal(ks[5], (norm_nc,), jnp.float32)
    w_beta = scale * jax.random.normal(ks[6], (KS, KS, NHIDDEN, norm_nc), jnp.float32)
    b_beta = scale * jax.random.normal(ks[7], (norm_nc,), jnp.float32)
    # TODO(synk): spectral_norm is imported but unused in the reference module; not applied here.
    params = (w_shared, b_shared, w_gamma, b_gamma, w_beta, b_beta)

    out = spade_forward(x, segmap, params)
    out = jax.block_until_ready(out)

    ref = spade_reference(x, segmap, params)
    # bf16 matmul operands (f32 accumulate) vs. an all-f32 reference -> looser tol.
    np.testing.assert_allclose(np.asarray(out), np.asarray(ref), rtol=2e-2, atol=5e-2)
    print("KERNEL_OK")
</pallas_src>

<mosaic_0001>
module attributes {stable_mosaic.version = 11 : i64} {
  func.func @kernel(%arg0: i32, %arg1: memref<1x4x256xf32, #tpu.memory_space<vmem>>, %arg2: memref<1x256x147xbf16, #tpu.memory_space<vmem>>, %arg3: memref<147x128xbf16, #tpu.memory_space<vmem>>, %arg4: memref<1x128xf32, #tpu.memory_space<vmem>>, %arg5: memref<7x8x896xbf16, #tpu.memory_space<vmem>>, %arg6: memref<8x1xf32, #tpu.memory_space<vmem>>, %arg7: memref<1x4x256xf32, #tpu.memory_space<vmem>>, %arg8: memref<16x22x128xf32, #tpu.memory_space<vmem>>, %arg9: memref<352x896xbf16, #tpu.memory_space<vmem>>) attributes {dimension_semantics = [#tpu.dimension_semantics<parallel>], iteration_bounds = array<i64: 2>, scalar_prefetch = 0 : i64, scratch_operands = 2 : i64, tpu.core_type = #tpu.core_type<tc>, window_params = [{transform_indices = @transform_0, window_bounds = array<i64: 1, 4, 256>}, {transform_indices = @transform_1, window_bounds = array<i64: 1, 256, 147>}, {pipeline_mode = #tpu.pipeline_mode<synchronous>, transform_indices = @transform_2, window_bounds = array<i64: 147, 128>}, {pipeline_mode = #tpu.pipeline_mode<synchronous>, transform_indices = @transform_3, window_bounds = array<i64: 1, 128>}, {pipeline_mode = #tpu.pipeline_mode<synchronous>, transform_indices = @transform_4, window_bounds = array<i64: 7, 8, 896>}, {pipeline_mode = #tpu.pipeline_mode<synchronous>, transform_indices = @transform_5, window_bounds = array<i64: 8, 1>}, {transform_indices = @transform_6, window_bounds = array<i64: 1, 4, 256>}]} {
    %c0 = arith.constant 0 : index
    %c0_0 = arith.constant 0 : index
    %c0_1 = arith.constant 0 : index
    %0 = vector.load %arg2[%c0, %c0_0, %c0_1] : memref<1x256x147xbf16, #tpu.memory_space<vmem>>, vector<1x256x147xbf16>
    %1 = vector.shape_cast %0 : vector<1x256x147xbf16> to vector<256x147xbf16>
    %c0_2 = arith.constant 0 : index
    %c0_3 = arith.constant 0 : index
    %2 = vector.load %arg3[%c0_2, %c0_3] : memref<147x128xbf16, #tpu.memory_space<vmem>>, vector<147x128xbf16>
    %cst = arith.constant dense<0.000000e+00> : vector<256x128xf32>
    %3 = tpu.matmul %1, %2, %cst {dimension_numbers = #tpu.dot_dimension_numbers<[1], [0], [0], [1], [0, 0, 1, 1], [], []>} : vector<256x147xbf16>, vector<147x128xbf16>, vector<256x128xf32> -> vector<256x128xf32>
    %c0_4 = arith.constant 0 : index
    %c0_5 = arith.constant 0 : index
    %4 = vector.load %arg4[%c0_4, %c0_5] : memref<1x128xf32, #tpu.memory_space<vmem>>, vector<1x128xf32>
    %5 = vector.broadcast %4 : vector<1x128xf32> to vector<256x128xf32>
    %6 = arith.addf %3, %5 : vector<256x128xf32>
    %cst_6 = arith.constant 0.000000e+00 : f32
    %7 = vector.broadcast %cst_6 : f32 to vector<256x128xf32>
    %8 = arith.maximumf %6, %7 : vector<256x128xf32>
    %cst_7 = arith.constant 0.000000e+00 : f32
    %9 = vector.broadcast %cst_7 : f32 to vector<16x3x128xf32>
    %c0_8 = arith.constant 0 : index
    %c0_9 = arith.constant 0 : index
    %c0_10 = arith.constant 0 : index
    %10 = vector.load %arg8[%c0_8, %c0_9, %c0_10] : memref<16x22x128xf32, #tpu.memory_space<vmem>>, vector<16x3x128xf32>
    tpu.vector_store %arg8[%c0_8, %c0_9, %c0_10], %9 {strides = array<i32>} : memref<16x22x128xf32, #tpu.memory_space<vmem>>, vector<16x3x128xf32>,
    %c0_11 = arith.constant 0 : index
    %c19 = arith.constant 19 : index
    %c0_12 = arith.constant 0 : index
    %11 = vector.load %arg8[%c0_11, %c19, %c0_12] : memref<16x22x128xf32, #tpu.memory_space<vmem>>, vector<16x3x128xf32>
    tpu.vector_store %arg8[%c0_11, %c19, %c0_12], %9 {strides = array<i32>} : memref<16x22x128xf32, #tpu.memory_space<vmem>>, vector<16x3x128xf32>,
    %12 = vector.shape_cast %8 : vector<256x128xf32> to vector<16x16x128xf32>
    %c0_13 = arith.constant 0 : index
    %c3 = arith.constant 3 : index
    %c0_14 = arith.constant 0 : index
    %13 = vector.load %arg8[%c0_13, %c3, %c0_14] : memref<16x22x128xf32, #tpu.memory_space<vmem>>, vector<16x16x128xf32>
    tpu.vector_store %arg8[%c0_13, %c3, %c0_14], %12 {strides = array<i32>} : memref<16x22x128xf32, #tpu.memory_space<vmem>>, vector<16x16x128xf32>,
    %cst_15 = arith.constant 0.000000e+00 : bf16
    %14 = vector.broadcast %cst_15 : bf16 to vector<48x896xbf16>
    %c0_16 = arith.constant 0 : index
    %c0_17 = arith.constant 0 : index
    %15 = vector.load %arg9[%c0_16, %c0_17] : memref<352x896xbf16, #tpu.memory_space<vmem>>, vector<48x896xbf16>
    tpu.vector_store %arg9[%c0_16, %c0_17], %14 {strides = array<i32>} : memref<352x896xbf16, #tpu.memory_space<vmem>>, vector<48x896xbf16>,
    %c304 = arith.constant 304 : index
    %c0_18 = arith.constant 0 : index
    %16 = vector.load %arg9[%c304, %c0_18] : memref<352x896xbf16, #tpu.memory_space<vmem>>, vector<48x896xbf16>
    tpu.vector_store %arg9[%c304, %c0_18], %14 {strides = array<i32>} : memref<352x896xbf16, #tpu.memory_space<vmem>>, vector<48x896xbf16>,
    %c0_19 = arith.constant 0 : index
    %c0_20 = arith.constant 0 : index
    %c0_21 = arith.constant 0 : index
    %17 = vector.load %arg8[%c0_19, %c0_20, %c0_21] : memref<16x22x128xf32, #tpu.memory_space<vmem>>, vector<16x16x128xf32>
    %18 = arith.truncf %17 : vector<16x16x128xf32> to vector<16x16x128xbf16>
    %19 = vector.shape_cast %18 : vector<16x16x128xbf16> to vector<256x128xbf16>
    %c48 = arith.constant 48 : index
    %c0_22 = arith.constant 0 : index
    %20 = vector.load %arg9[%c48, %c0_22] : memref<352x896xbf16, #tpu.memory_space<vmem>>, vector<256x128xbf16>
    tpu.vector_store %arg9[%c48, %c0_22], %19 {strides = array<i32>} : memref<352x896xbf16, #tpu.memory_space<vmem>>, vector<256x128xbf16>,
    %c0_23 = arith.constant 0 : index
    %c1 = arith.constant 1 : index
    %c0_24 = arith.constant 0 : index
    %21 = vector.load %arg8[%c0_23, %c1, %c0_24] : memref<16x22x128xf32, #tpu.memory_space<vmem>>, vector<16x16x128xf32>
    %22 = arith.truncf %21 : vector<16x16x128xf32> to vector<16x16x128xbf16>
    %23 = vector.shape_cast %22 : vector<16x16x128xbf16> to vector<256x128xbf16>
    %c48_25 = arith.constant 48 : index
    %c128 = arith.constant 128 : index
    %24 = vector.load %arg9[%c48_25, %c128] : memref<352x896xbf16, #tpu.memory_space<vmem>>, vector<256x128xbf16>
    tpu.vector_store %arg9[%c48_25, %c128], %23 {strides = array<i32>} : memref<352x896xbf16, #tpu.memory_space<vmem>>, vector<256x128xbf16>,
    %c0_26 = arith.constant 0 : index
    %c2 = arith.constant 2 : index
    %c0_27 = arith.constant 0 : index
    %25 = vector.load %arg8[%c0_26, %c2, %c0_27] : memref<16x22x128xf32, #tpu.memory_space<vmem>>, vector<16x16x128xf32>
    %26 = arith.truncf %25 : vector<16x16x128xf32> to vector<16x16x128xbf16>
    %27 = vector.shape_cast %26 : vector<16x16x128xbf16> to vector<256x128xbf16>
    %c48_28 = arith.constant 48 : index
    %c256 = arith.constant 256 : index
    %28 = vector.load %arg9[%c48_28, %c256] : memref<352x896xbf16, #tpu.memory_space<vmem>>, vector<256x128xbf16>
    tpu.vector_store %arg9[%c48_28, %c256], %27 {strides = array<i32>} : memref<352x896xbf16, #tpu.memory_space<vmem>>, vector<256x128xbf16>,
    %c0_29 = arith.constant 0 : index
    %c3_30 = arith.constant 3 : index
    %c0_31 = arith.constant 0 : index
    %29 = vector.load %arg8[%c0_29, %c3_30, %c0_31] : memref<16x22x128xf32, #tpu.memory_space<vmem>>, vector<16x16x128xf32>
    %30 = arith.truncf %29 : vector<16x16x128xf32> to vector<16x16x128xbf16>
    %31 = vector.shape_cast %30 : vector<16x16x128xbf16> to vector<256x128xbf16>
    %c48_32 = arith.constant 48 : index
    %c384 = arith.constant 384 : index
    %32 = vector.load %arg9[%c48_32, %c384] : memref<352x896xbf16, #tpu.memory_space<vmem>>, vector<256x128xbf16>
    tpu.vector_store %arg9[%c48_32, %c384], %31 {strides = array<i32>} : memref<352x896xbf16, #tpu.memory_space<vmem>>, vector<256x128xbf16>,
    %c0_33 = arith.constant 0 : index
    %c4 = arith.constant 4 : index
    %c0_34 = arith.constant 0 : index
    %33 = vector.load %arg8[%c0_33, %c4, %c0_34] : memref<16x22x128xf32, #tpu.memory_space<vmem>>, vector<16x16x128xf32>
    %34 = arith.truncf %33 : vector<16x16x128xf32> to vector<16x16x128xbf16>
    %35 = vector.shape_cast %34 : vector<16x16x128xbf16> to vector<256x128xbf16>
    %c48_35 = arith.constant 48 : index
    %c512 = arith.constant 512 : index
    %36 = vector.load %arg9[%c48_35, %c512] : memref<352x896xbf16, #tpu.memory_space<vmem>>, vector<256x128xbf16>
    tpu.vector_store %arg9[%c48_35, %c512], %35 {strides = array<i32>} : memref<352x896xbf16, #tpu.memory_space<vmem>>, vector<256x128xbf16>,
    %c0_36 = arith.constant 0 : index
    %c5 = arith.constant 5 : index
    %c0_37 = arith.constant 0 : index
    %37 = vector.load %arg8[%c0_36, %c5, %c0_37] : memref<16x22x128xf32, #tpu.memory_space<vmem>>, vector<16x16x128xf32>
    %38 = arith.truncf %37 : vector<16x16x128xf32> to vector<16x16x128xbf16>
    %39 = vector.shape_cast %38 : vector<16x16x128xbf16> to vector<256x128xbf16>
    %c48_38 = arith.constant 48 : index
    %c640 = arith.constant 640 : index
    %40 = vector.load %arg9[%c48_38, %c640] : memref<352x896xbf16, #tpu.memory_space<vmem>>, vector<256x128xbf16>
    tpu.vector_store %arg9[%c48_38, %c640], %39 {strides = array<i32>} : memref<352x896xbf16, #tpu.memory_space<vmem>>, vector<256x128xbf16>,
    %c0_39 = arith.constant 0 : index
    %c6 = arith.constant 6 : index
    %c0_40 = arith.constant 0 : index
    %41 = vector.load %arg8[%c0_39, %c6, %c0_40] : memref<16x22x128xf32, #tpu.memory_space<vmem>>, vector<16x16x128xf32>
    %42 = arith.truncf %41 : vector<16x16x128xf32> to vector<16x16x128xbf16>
    %43 = vector.shape_cast %42 : vector<16x16x128xbf16> to vector<256x128xbf16>
    %c48_41 = arith.constant 48 : index
    %c768 = arith.constant 768 : index
    %44 = vector.load %arg9[%c48_41, %c768] : memref<352x896xbf16, #tpu.memory_space<vmem>>, vector<256x128xbf16>
    tpu.vector_store %arg9[%c48_41, %c768], %43 {strides = array<i32>} : memref<352x896xbf16, #tpu.memory_space<vmem>>, vector<256x128xbf16>,
    %cst_42 = arith.constant 0.000000e+00 : f32
    %45 = vector.broadcast %cst_42 : f32 to vector<8x256xf32>
    %c0_43 = arith.constant 0 : index
    %c0_44 = arith.constant 0 : index
    %46 = vector.load %arg9[%c0_43, %c0_44] : memref<352x896xbf16, #tpu.memory_space<vmem>>, vector<256x896xbf16>
    %c0_45 = arith.constant 0 : index
    %c0_46 = arith.constant 0 : index
    %c0_47 = arith.constant 0 : index
    %47 = vector.load %arg5[%c0_45, %c0_46, %c0_47] : memref<7x8x896xbf16, #tpu.memory_space<vmem>>, vector<1x8x896xbf16>
    %48 = vector.shape_cast %47 : vector<1x8x896xbf16> to vector<8x896xbf16>
    %cst_48 = arith.constant dense<0.000000e+00> : vector<8x256xf32>
    %49 = tpu.matmul %48, %46, %cst_48 {dimension_numbers = #tpu.dot_dimension_numbers<[1], [1], [0], [0], [0, 0, 1, 0], [], []>} : vector<8x896xbf16>, vector<256x896xbf16>, vector<8x256xf32> -> vector<8x256xf32>
    %50 = arith.addf %45, %49 : vector<8x256xf32>
    %c16 = arith.constant 16 : index
    %c0_49 = arith.constant 0 : index
    %51 = vector.load %arg9[%c16, %c0_49] : memref<352x896xbf16, #tpu.memory_space<vmem>>, vector<256x896xbf16>
    %c1_50 = arith.constant 1 : index
    %c0_51 = arith.constant 0 : index
    %c0_52 = arith.constant 0 : index
    %52 = vector.load %arg5[%c1_50, %c0_51, %c0_52] : memref<7x8x896xbf16, #tpu.memory_space<vmem>>, vector<1x8x896xbf16>
    %53 = vector.shape_cast %52 : vector<1x8x896xbf16> to vector<8x896xbf16>
    %cst_53 = arith.constant dense<0.000000e+00> : vector<8x256xf32>
    %54 = tpu.matmul %53, %51, %cst_53 {dimension_numbers = #tpu.dot_dimension_numbers<[1], [1], [0], [0], [0, 0, 1, 0], [], []>} : vector<8x896xbf16>, vector<256x896xbf16>, vector<8x256xf32> -> vector<8x256xf32>
    %55 = arith.addf %50, %54 : vector<8x256xf32>
    %c32 = arith.constant 32 : index
    %c0_54 = arith.constant 0 : index
    %56 = vector.load %arg9[%c32, %c0_54] : memref<352x896xbf16, #tpu.memory_space<vmem>>, vector<256x896xbf16>
    %c2_55 = arith.constant 2 : index
    %c0_56 = arith.constant 0 : index
    %c0_57 = arith.constant 0 : index
    %57 = vector.load %arg5[%c2_55, %c0_56, %c0_57] : memref<7x8x896xbf16, #tpu.memory_space<vmem>>, vector<1x8x896xbf16>
    %58 = vector.shape_cast %57 : vector<1x8x896xbf16> to vector<8x896xbf16>
    %cst_58 = arith.constant dense<0.000000e+00> : vector<8x256xf32>
    %59 = tpu.matmul %58, %56, %cst_58 {dimension_numbers = #tpu.dot_dimension_numbers<[1], [1], [0], [0], [0, 0, 1, 0], [], []>} : vector<8x896xbf16>, vector<256x896xbf16>, vector<8x256xf32> -> vector<8x256xf32>
    %60 = arith.addf %55, %59 : vector<8x256xf32>
    %c48_59 = arith.constant 48 : index
    %c0_60 = arith.constant 0 : index
    %61 = vector.load %arg9[%c48_59, %c0_60] : memref<352x896xbf16, #tpu.memory_space<vmem>>, vector<256x896xbf16>
    %c3_61 = arith.constant 3 : index
    %c0_62 = arith.constant 0 : index
    %c0_63 = arith.constant 0 : index
    %62 = vector.load %arg5[%c3_61, %c0_62, %c0_63] : memref<7x8x896xbf16, #tpu.memory_space<vmem>>, vector<1x8x896xbf16>
    %63 = vector.shape_cast %62 : vector<1x8x896xbf16> to vector<8x896xbf16>
    %cst_64 = arith.constant dense<0.000000e+00> : vector<8x256xf32>
    %64 = tpu.matmul %63, %61, %cst_64 {dimension_numbers = #tpu.dot_dimension_numbers<[1], [1], [0], [0], [0, 0, 1, 0], [], []>} : vector<8x896xbf16>, vector<256x896xbf16>, vector<8x256xf32> -> vector<8x256xf32>
    %65 = arith.addf %60, %64 : vector<8x256xf32>
    %c64 = arith.constant 64 : index
    %c0_65 = arith.constant 0 : index
    %66 = vector.load %arg9[%c64, %c0_65] : memref<352x896xbf16, #tpu.memory_space<vmem>>, vector<256x896xbf16>
    %c4_66 = arith.constant 4 : index
    %c0_67 = arith.constant 0 : index
    %c0_68 = arith.constant 0 : index
    %67 = vector.load %arg5[%c4_66, %c0_67, %c0_68] : memref<7x8x896xbf16, #tpu.memory_space<vmem>>, vector<1x8x896xbf16>
    %68 = vector.shape_cast %67 : vector<1x8x896xbf16> to vector<8x896xbf16>
    %cst_69 = arith.constant dense<0.000000e+00> : vector<8x256xf32>
    %69 = tpu.matmul %68, %66, %cst_69 {dimension_numbers = #tpu.dot_dimension_numbers<[1], [1], [0], [0], [0, 0, 1, 0], [], []>} : vector<8x896xbf16>, vector<256x896xbf16>, vector<8x256xf32> -> vector<8x256xf32>
    %70 = arith.addf %65, %69 : vector<8x256xf32>
    %c80 = arith.constant 80 : index
    %c0_70 = arith.constant 0 : index
    %71 = vector.load %arg9[%c80, %c0_70] : memref<352x896xbf16, #tpu.memory_space<vmem>>, vector<256x896xbf16>
    %c5_71 = arith.constant 5 : index
    %c0_72 = arith.constant 0 : index
    %c0_73 = arith.constant 0 : index
    %72 = vector.load %arg5[%c5_71, %c0_72, %c0_73] : memref<7x8x896xbf16, #tpu.memory_space<vmem>>, vector<1x8x896xbf16>
    %73 = vector.shape_cast %72 : vector<1x8x896xbf16> to vector<8x896xbf16>
    %cst_74 = arith.constant dense<0.000000e+00> : vector<8x256xf32>
    %74 = tpu.matmul %73, %71, %cst_74 {dimension_numbers = #tpu.dot_dimension_numbers<[1], [1], [0], [0], [0, 0, 1, 0], [], []>} : vector<8x896xbf16>, vector<256x896xbf16>, vector<8x256xf32> -> vector<8x256xf32>
    %75 = arith.addf %70, %74 : vector<8x256xf32>
    %c96 = arith.constant 96 : index
    %c0_75 = arith.constant 0 : index
    %76 = vector.load %arg9[%c96, %c0_75] : memref<352x896xbf16, #tpu.memory_space<vmem>>, vector<256x896xbf16>
    %c6_76 = arith.constant 6 : index
    %c0_77 = arith.constant 0 : index
    %c0_78 = arith.constant 0 : index
    %77 = vector.load %arg5[%c6_76, %c0_77, %c0_78] : memref<7x8x896xbf16, #tpu.memory_space<vmem>>, vector<1x8x896xbf16>
    %78 = vector.shape_cast %77 : vector<1x8x896xbf16> to vector<8x896xbf16>
    %cst_79 = arith.constant dense<0.000000e+00> : vector<8x256xf32>
    %79 = tpu.matmul %78, %76, %cst_79 {dimension_numbers = #tpu.dot_dimension_numbers<[1], [1], [0], [0], [0, 0, 1, 0], [], []>} : vector<8x896xbf16>, vector<256x896xbf16>, vector<8x256xf32> -> vector<8x256xf32>
    %80 = arith.addf %75, %79 : vector<8x256xf32>
    %c0_80 = arith.constant 0 : index
    %c0_81 = arith.constant 0 : index
    %81 = vector.load %arg6[%c0_80, %c0_81] : memref<8x1xf32, #tpu.memory_space<vmem>>, vector<8x1xf32>
    %82 = vector.broadcast %81 : vector<8x1xf32> to vector<8x256xf32>
    %83 = arith.addf %80, %82 : vector<8x256xf32>
    %84 = vector.extract_strided_slice %83 {offsets = [0, 0], sizes = [4, 256], strides = [1, 1]} : vector<8x256xf32> to vector<4x256xf32>
    %85 = vector.extract_strided_slice %83 {offsets = [4, 0], sizes = [4, 256], strides = [1, 1]} : vector<8x256xf32> to vector<4x256xf32>
    %c0_82 = arith.constant 0 : index
    %c0_83 = arith.constant 0 : index
    %c0_84 = arith.constant 0 : index
    %86 = vector.load %arg1[%c0_82, %c0_83, %c0_84] : memref<1x4x256xf32, #tpu.memory_space<vmem>>, vector<1x4x256xf32>
    %87 = vector.shape_cast %86 : vector<1x4x256xf32> to vector<4x256xf32>
    %cst_85 = arith.constant dense<0.000000e+00> : vector<4xf32>
    %88 = vector.multi_reduction <add>, %87, %cst_85 [1] : vector<4x256xf32> to vector<4xf32>
    %89 = vector.shape_cast %88 : vector<4xf32> to vector<4x1xf32>
    %cst_86 = arith.constant 2.560000e+02 : f32
    %90 = vector.broadcast %cst_86 : f32 to vector<4x1xf32>
    %91 = arith.divf %89, %90 : vector<4x1xf32>
    %92 = vector.broadcast %91 : vector<4x1xf32> to vector<4x256xf32>
    %93 = arith.subf %87, %92 : vector<4x256xf32>
    %94 = arith.mulf %93, %93 : vector<4x256xf32>
    %cst_87 = arith.constant dense<0.000000e+00> : vector<4xf32>
    %95 = vector.multi_reduction <add>, %94, %cst_87 [1] : vector<4x256xf32> to vector<4xf32>
    %96 = vector.shape_cast %95 : vector<4xf32> to vector<4x1xf32>
    %cst_88 = arith.constant 2.560000e+02 : f32
    %97 = vector.broadcast %cst_88 : f32 to vector<4x1xf32>
    %98 = arith.divf %96, %97 : vector<4x1xf32>
    %99 = vector.broadcast %91 : vector<4x1xf32> to vector<4x256xf32>
    %100 = arith.subf %87, %99 : vector<4x256xf32>
    %cst_89 = arith.constant 9.99999974E-6 : f32
    %101 = vector.broadcast %cst_89 : f32 to vector<4x1xf32>
    %102 = arith.addf %98, %101 : vector<4x1xf32>
    %103 = math.rsqrt %102 : vector<4x1xf32>
    %104 = vector.broadcast %103 : vector<4x1xf32> to vector<4x256xf32>
    %105 = arith.mulf %100, %104 : vector<4x256xf32>
    %cst_90 = arith.constant 1.000000e+00 : f32
    %106 = vector.broadcast %cst_90 : f32 to vector<4x256xf32>
    %107 = arith.addf %106, %84 : vector<4x256xf32>
    %108 = arith.mulf %105, %107 : vector<4x256xf32>
    %109 = arith.addf %108, %85 : vector<4x256xf32>
    %c0_91 = arith.constant 0 : index
    %c0_92 = arith.constant 0 : index
    %c0_93 = arith.constant 0 : index
    %110 = vector.load %arg7[%c0_91, %c0_92, %c0_93] : memref<1x4x256xf32, #tpu.memory_space<vmem>>, vector<1x4x256xf32>
    %111 = vector.shape_cast %110 : vector<1x4x256xf32> to vector<4x256xf32>
    %112 = vector.shape_cast %109 : vector<4x256xf32> to vector<1x4x256xf32>
    tpu.vector_store %arg7[%c0_91, %c0_92, %c0_93], %112 {strides = array<i32>} : memref<1x4x256xf32, #tpu.memory_space<vmem>>, vector<1x4x256xf32>,
    return
  }
  func.func @transform_0(%arg0: i32) -> (i32, i32, i32) {
    %c0_i32 = arith.constant 0 : i32
    %c0_i32_0 = arith.constant 0 : i32
    %c0_i32_1 = arith.constant 0 : i32
    return %arg0, %c0_i32, %c0_i32_0 : i32, i32, i32
  }
  func.func @transform_1(%arg0: i32) -> (i32, i32, i32) {
    %c0_i32 = arith.constant 0 : i32
    %c0_i32_0 = arith.constant 0 : i32
    %c0_i32_1 = arith.constant 0 : i32
    return %arg0, %c0_i32, %c0_i32_0 : i32, i32, i32
  }
  func.func @transform_2(%arg0: i32) -> (i32, i32) {
    %c0_i32 = arith.constant 0 : i32
    %c0_i32_0 = arith.constant 0 : i32
    %c0_i32_1 = arith.constant 0 : i32
    return %c0_i32, %c0_i32_0 : i32, i32
  }
  func.func @transform_3(%arg0: i32) -> (i32, i32) {
    %c0_i32 = arith.constant 0 : i32
    %c0_i32_0 = arith.constant 0 : i32
    %c0_i32_1 = arith.constant 0 : i32
    return %c0_i32, %c0_i32_0 : i32, i32
  }
  func.func @transform_4(%arg0: i32) -> (i32, i32, i32) {
    %c0_i32 = arith.constant 0 : i32
    %c0_i32_0 = arith.constant 0 : i32
    %c0_i32_1 = arith.constant 0 : i32
    %c0_i32_2 = arith.constant 0 : i32
    return %c0_i32, %c0_i32_0, %c0_i32_1 : i32, i32, i32
  }
  func.func @transform_5(%arg0: i32) -> (i32, i32) {
    %c0_i32 = arith.constant 0 : i32
    %c0_i32_0 = arith.constant 0 : i32
    %c0_i32_1 = arith.constant 0 : i32
    return %c0_i32, %c0_i32_0 : i32, i32
  }
  func.func @transform_6(%arg0: i32) -> (i32, i32, i32) {
    %c0_i32 = arith.constant 0 : i32
    %c0_i32_0 = arith.constant 0 : i32
    %c0_i32_1 = arith.constant 0 : i32
    return %arg0, %c0_i32, %c0_i32_0 : i32, i32, i32
  }
}

</mosaic_0001>

<bundles_post_ra>
// kernel: tpu_custom_call.1
= control target key start
LH: loop header
LB: loop body
LE: loop exit
PB: predicated region body
PF: predicated region fallthrough
CT: control target
= control target key end

     0   :  { %11 = vsyncpa [#allocation5], 0  ;;  %s12471_s0 = inlined_call_operand.vmem [shape: f32[2,4,256], index: 0, kind: input, shape index: {}]   ;;  %s12472_s1 = inlined_call_operand.vmem [shape: bf16[2,256,147], index: 1, kind: input, shape index: {}]   ;;  %s12473_s2 = inlined_call_operand.vmem [shape: bf16[147,128], index: 2, kind: input, shape index: {}]   ;;  %s12474_s3 = inlined_call_operand.vmem [shape: f32[1,128], index: 3, kind: input, shape index: {}]   ;;  %s12475_s4 = inlined_call_operand.vmem [shape: bf16[7,8,896], index: 4, kind: input, shape index: {}]   ;;  %s12476_s5 = inlined_call_operand.vmem [shape: f32[8,1], index: 5, kind: input, shape index: {}]   ;;  %s12477_s6 = inlined_call_operand.hbm [shape: f32[2,4,256], index: 6, kind: output, shape index: {}]  }
   0x1   :  { %13 = vsyncpa [#allocation5 + $0x1], 0  ;;  %s11324_s21 = smov 0   ;;  %s11326_s22 = smov 0  }
   0x2   :  { %s11328_s23 = smov 0   ;;  %s11330_s24 = smov 0  }
   0x3 LB: > { %s11345_s25 = sadd.s32 4294967295, %s11282_s24   ;;  %s7510_s26 = sadd.s32 4294967294, %s11282_s24   ;;  %s11282_s24 = sphi %s11330_s24, %s12624_s24   ;;  %s11278_s23 = sphi %s11328_s23, %s12623_s23   ;;  %s11274_s22 = sphi %s11326_s22, %s12622_s22   ;;  %s11270_s21 = sphi %s11324_s21, %s12621_s21  }
   0x4   : > { %s11349_s27 = sadd.s32 1, %s11282_s24   ;;  %s162_s28 = sadd.s32 1, %s11278_s23 }
   0x5   : > { %s159_s29 = ssub.s32 %s11282_s24, %s11349_s27  ;;  %p172_p0 = scmp.ne.s32.totalorder %s11278_s23, %s11274_s22 }
   0x6   : > { %p160_p1 = scmp.eq.s32.totalorder %s159_s29, 0  ;;  %p173_p2 = scmp.eq.s32.totalorder %s11345_s25, 1 }
   0x7   : > { %p178_p3 = scmp.ne.s32.totalorder %s11274_s22, %s11270_s21  ;;  %p179_p4 = scmp.eq.s32.totalorder %s7510_s26, 1 }
   0x8   : > { %s11360_s30 = scalar_select %p160_p1, %s11278_s23, %s162_s28  }
   0x9   : > { %p11362_p5 = por %p173_p2, %p172_p0  ;;  %p11366_p6 = por %p179_p4, %p178_p3 }
   0xa   : > { %p7513_p7 = scmp.ge.s32.totalorder %s11282_s24, 1  ;;  %p225_p8 = scmp.lt.s32.totalorder %s11282_s24, 3 }
   0xc   : > { %p226_p9 = pnand %p7513_p7, %p225_p8 }
   0xe   : > { %229 = sbr.rel (%p226_p9) target bundleno = 2184 (0x888), region = 44 }
  0x13   : > { %v10485_v0 = vld [vmem:[%s12473_s2 + $0x38] sm:$0xff]  ;;  %vm576_vm0 = vcmask 1040384   ;;  %vm577_vm1 = vcmask 1041408   ;;  %v321_v1 = vld [vmem:[%s12473_s2 + $0x48] sm:$0x3]  ;;  %v11284_v2 = vmov 65535  }
  0x14   : > { %v578_v3 = vsel %vm576_vm0, 4294967295, %v11284_v2  ;;  %p260_p10 = scmp.lt.s32.totalorder %s11345_s25, 1  ;;  %583 = vmatpush.bf16.msra.mxu0 %v10485_v0  ;;  %v10484_v4 = vld [vmem:[%s12473_s2 + $0x30] sm:$0xff]  ;;  %v507_v5 = vunpack.c.l.b16 %v321_v1  ;;  %v10483_v8 = vld [vmem:[%s12473_s2 + $0x28] sm:$0xff]  ;;  %v10486_v10 = vld [vmem:[%s12473_s2 + $0x40] sm:$0xff]  ;;  %vm527_vm2 = vcmask 154624  }
  0x15   : > { %v579_v6 = vsel %vm577_vm1, %v578_v3, 0  ;;  %v10482_v13 = vld [vmem:[%s12473_s2 + $0x20] sm:$0xff]  ;;  %v10481_v15 = vld [vmem:[%s12473_s2 + $0x18] sm:$0xff]  ;;  %v10480_v16 = vld [vmem:[%s12473_s2 + $0x10] sm:$0xff]  ;;  %v11285_v61 = vmov 0.0   ;;  %vm7353_vm3 = vcmask 1043456  }
  0x16   : > { %s11383_s15 = scalar_select %p260_p10, %s11345_s25, 1  ;;  %v517_v7 = vpack.c.b16 %v507_v5, %v507_v5  ;;  %v10479_v17 = vld [vmem:[%s12473_s2 + $0x8] sm:$0xff]  ;;  %v10478_v20 = vld [vmem:[%s12473_s2] sm:$0xff]  ;;  %809 = vst [vmem:[#allocation2 + $0x13] sm:$0x7] %v11285_v61 }
  0x17   : > { %793 = vst [vmem:[#allocation2] sm:$0x7] %v11285_v61  ;;  %s11166_s18 = sshll.u32 %s11345_s25, 3 }
  0x18   : > { %s10445_s16 = sshll.u32 %s11383_s15, 8  ;;  %584 = vmatpush.bf16.msra.mxu0 %v10484_v4  ;;  %v581_v9 = vand.u32 %v579_v6, %v517_v7  ;;  %794 = vst [vmem:[#allocation2 + $0x18] sm:$0x7] %v11285_v61  ;;  %s10444_s14 = sshll.u32 %s11383_s15, 3 }
  0x19   : > { %s11392_s26 = scalar_lea.vmem %s12472_s1, %s10445_s16  ;;  %795 = vst [vmem:[#allocation2 + $0x30] sm:$0x7] %v11285_v61  ;;  %s264_s17 = scalar_lea.vmem %s12471_s0, %s10444_s14 }
  0x1a   : > { %678 = vmatpush.bf16.msra.mxu1 %v581_v9  ;;  %v10446_v11 = vld [vmem:[%s11392_s26 + $0x4] sm:$0xf]  ;;  %v7523_v12 = vld [vmem:[%s11392_s26 + $0x8] sm:$0xf0]  ;;  %v10448_v18 = vld [vmem:[%s11392_s26 + $0x14] sm:$0xf]  ;;  %s7434_s28 = scalar_lea.hbm %s12477_s6, %s11166_s18 }
  0x1b   : > { %v7526_v14 = vor.u32 %v10446_v11, %v7523_v12  ;;  %v7531_v19 = vld [vmem:[%s11392_s26 + $0x18] sm:$0xf0]  ;;  %v7521_v21 = vld [vmem:[%s11392_s26] sm:$0xf]  ;;  %v10447_v22 = vld [vmem:[%s11392_s26 + $0x4] sm:$0xf0] }
  0x1c   : > { %585 = vmatpush.bf16.msra.mxu0 %v10483_v8  ;;  %v7534_v23 = vor.u32 %v10448_v18, %v7531_v19  ;;  %v7522_v24 = vor.u32 %v10447_v22, %v7521_v21  ;;  %v10450_v25 = vld [vmem:[%s11392_s26 + $0x24] sm:$0xf]  ;;  %v7539_v26 = vld [vmem:[%s11392_s26 + $0x28] sm:$0xf0]  ;;  %v7529_v27 = vld [vmem:[%s11392_s26 + $0x10] sm:$0xf] }
  0x1d   : > { %v10449_v28 = vld [vmem:[%s11392_s26 + $0x14] sm:$0xf0]  ;;  %v7542_v29 = vor.u32 %v10450_v25, %v7539_v26  ;;  %v10452_v31 = vld [vmem:[%s11392_s26 + $0x34] sm:$0xf]  ;;  %v7547_v32 = vld [vmem:[%s11392_s26 + $0x38] sm:$0xf0] }
  0x1e   : > { %679 = vmatpush.bf16.msra.mxu1 %v10486_v10  ;;  %v7530_v30 = vor.u32 %v10449_v28, %v7529_v27  ;;  %v7537_v33 = vld [vmem:[%s11392_s26 + $0x20] sm:$0xf]  ;;  %v10451_v34 = vld [vmem:[%s11392_s26 + $0x24] sm:$0xf0]  ;;  %v7550_v35 = vor.u32 %v10452_v31, %v7547_v32  ;;  %v10454_v37 = vld [vmem:[%s11392_s26 + $0x44] sm:$0xf] }
  0x1f   : > { %v7538_v36 = vor.u32 %v10451_v34, %v7537_v33  ;;  %v7555_v38 = vld [vmem:[%s11392_s26 + $0x48] sm:$0xf0]  ;;  %v7545_v39 = vld [vmem:[%s11392_s26 + $0x30] sm:$0xf]  ;;  %v10453_v40 = vld [vmem:[%s11392_s26 + $0x34] sm:$0xf0] }
  0x20   : > { %586 = vmatpush.bf16.msra.mxu0 %v10482_v13  ;;  %v7558_v41 = vor.u32 %v10454_v37, %v7555_v38  ;;  %v7546_v42 = vor.u32 %v10453_v40, %v7545_v39  ;;  %v10456_v43 = vld [vmem:[%s11392_s26 + $0x54] sm:$0xf]  ;;  %v7563_v44 = vld [vmem:[%s11392_s26 + $0x58] sm:$0xf0]  ;;  %v7553_v45 = vld [vmem:[%s11392_s26 + $0x40] sm:$0xf] }
  0x21   : > { %7683 = vmatmul.msk.bf16.vlgmr.msra.gmra.mxu1 %vm527_vm2, %v7526_v14  ;;  %v10455_v46 = vld [vmem:[%s11392_s26 + $0x44] sm:$0xf0]  ;;  %v7566_v47 = vor.u32 %v10456_v43, %v7563_v44  ;;  %v10458_v49 = vld [vmem:[%s11392_s26 + $0x64] sm:$0xf]  ;;  %v7571_v50 = vld [vmem:[%s11392_s26 + $0x68] sm:$0xf0] }
  0x22   : > { %v7554_v48 = vor.u32 %v10455_v46, %v7553_v45  ;;  %v7561_v51 = vld [vmem:[%s11392_s26 + $0x50] sm:$0xf]  ;;  %v10457_v52 = vld [vmem:[%s11392_s26 + $0x54] sm:$0xf0]  ;;  %v7574_v53 = vor.u32 %v10458_v49, %v7571_v50  ;;  %v10460_v55 = vld [vmem:[%s11392_s26 + $0x74] sm:$0xf] }
  0x23   : > { %v7562_v54 = vor.u32 %v10457_v52, %v7561_v51  ;;  %v7579_v56 = vld [vmem:[%s11392_s26 + $0x78] sm:$0xf0]  ;;  %v7569_v57 = vld [vmem:[%s11392_s26 + $0x60] sm:$0xf]  ;;  %v10459_v58 = vld [vmem:[%s11392_s26 + $0x64] sm:$0xf0] }
  0x24   : > { %587 = vmatpush.bf16.msra.mxu0 %v10481_v15  ;;  %v7582_v59 = vor.u32 %v10460_v55, %v7579_v56  ;;  %v7570_v60 = vor.u32 %v10459_v58, %v7569_v57  ;;  %v10462_v62 = vld [vmem:[%s11392_s26 + $0x84] sm:$0xf]  ;;  %v7587_v63 = vld [vmem:[%s11392_s26 + $0x88] sm:$0xf0]  ;;  %796 = vst [vmem:[#allocation2 + $0x48] sm:$0x7] %v11285_v61 }
  0x25   : > { %v7577_v0 = vld [vmem:[%s11392_s26 + $0x70] sm:$0xf]  ;;  %v10461_v1 = vld [vmem:[%s11392_s26 + $0x74] sm:$0xf0]  ;;  %797 = vst [vmem:[#allocation2 + $0x60] sm:$0x7] %v11285_v61  ;;  %v7590_v2 = vor.u32 %v10462_v62, %v7587_v63 }
  0x26   : > { %798 = vst [vmem:[#allocation2 + $0x78] sm:$0x7] %v11285_v61  ;;  %v7578_v4 = vor.u32 %v10461_v1, %v7577_v0  ;;  %v10464_v6 = vld [vmem:[%s11392_s26 + $0x94] sm:$0xf]  ;;  %v7595_v7 = vld [vmem:[%s11392_s26 + $0x98] sm:$0xf0] }
  0x27   : > { %799 = vst [vmem:[#allocation2 + $0x90] sm:$0x7] %v11285_v61  ;;  %v7585_v8 = vld [vmem:[%s11392_s26 + $0x80] sm:$0xf]  ;;  %v10463_v9 = vld [vmem:[%s11392_s26 + $0x84] sm:$0xf0]  ;;  %v7598_v11 = vor.u32 %v10464_v6, %v7595_v7 }
  0x28   : > { %588 = vmatpush.bf16.msra.mxu0 %v10480_v16  ;;  %800 = vst [vmem:[#allocation2 + $0xa8] sm:$0x7] %v11285_v61  ;;  %v11462_v10 = vld [vmem:[%s12474_s3] ss:$0 sm:$0xff]  ;;  %v7586_v13 = vor.u32 %v10463_v9, %v7585_v8  ;;  %v10466_v21 = vld [vmem:[%s11392_s26 + $0xa4] sm:$0xf] }
  0x29   : > { %801 = vst [vmem:[#allocation2 + $0xc0] sm:$0x7] %v11285_v61  ;;  %v7603_v22 = vld [vmem:[%s11392_s26 + $0xa8] sm:$0xf0]  ;;  %v10465_v25 = vld [vmem:[%s11392_s26 + $0x94] sm:$0xf0] }
  0x2a   : > { %802 = vst [vmem:[#allocation2 + $0xd8] sm:$0x7] %v11285_v61  ;;  %v7606_v27 = vor.u32 %v10466_v21, %v7603_v22  ;;  %v7611_v55 = vld [vmem:[%s11392_s26 + $0xb8] sm:$0xf0]  ;;  %v7601_v57 = vld [vmem:[%s11392_s26 + $0xa0] sm:$0xf] }
  0x2b   : > { %803 = vst [vmem:[#allocation2 + $0xf0] sm:$0x7] %v11285_v61  ;;  %v10467_v58 = vld [vmem:[%s11392_s26 + $0xa4] sm:$0xf0]  ;;  %s7438_s10 = sshll.u32 %s7434_s28, 4  ;;  %s11240_s16 = scalar_lea.hbm %s12477_s6, 16  ;;  %s7439_s10 = int_to_ptr.hbm [resolvable:$true] %s7438_s10 }
  0x2c   : > { %589 = vmatpush.bf16.msra.mxu0 %v10479_v17  ;;  %804 = vst [vmem:[#allocation2 + $0x108] sm:$0x7] %v11285_v61  ;;  %s11234_s11 = sshra.s32 %s7439_s10, 4  ;;  %s11235_s11 = int_to_ptr.hbm [resolvable:$true] %s11234_s11 }
  0x2d   : > { %805 = vst [vmem:[#allocation2 + $0x120] sm:$0x7] %v11285_v61  ;;  %s11236_s12 = scalar_lea.hbm %s11235_s11, 8  ;;  %p11241_p0 = scmp.lt.s32.totalorder %s11235_s11, %s12477_s6 }
  0x2e   : > { %806 = vst [vmem:[#allocation2 + $0x138] sm:$0x7] %v11285_v61  ;;  %p11237_p11 = scmp.ne.s32.totalorder %s11235_s11, %s11236_s12  ;;  %p11242_p1 = scmp.lt.s32.totalorder %s11240_s16, %s11236_s12 }
  0x2f   : > { %807 = vst [vmem:[#allocation2 + $0x150] sm:$0x7] %v11285_v61 }
  0x30   : > { %590 = vmatpush.bf16.msra.mxu0 %v10478_v20  ;;  %808 = vst [vmem:[#allocation2 + $0x168] sm:$0x7] %v11285_v61  ;;  %p11238_p12 = pnand %p11237_p11, %p11362_p5  ;;  %p11243_p2 = por %p11242_p1, %p11241_p0 }
  0x31   : > { %7684 = vmatmul.msk.bf16.gmra.mxu1 %vm527_vm2, %v7534_v23  ;;  %810 = vst [vmem:[#allocation2 + $0x2b] sm:$0x7] %v11285_v61 }
  0x32   : > { %811 = vst [vmem:[#allocation2 + $0x43] sm:$0x7] %v11285_v61  ;;  %p11239_p13 = pneg %p11238_p12 }
  0x33   : > { %591 = vmatmul.bf16.vlgmr.msra.gmra.mxu0 %v7522_v24  ;;  %812 = vst [vmem:[#allocation2 + $0x5b] sm:$0x7] %v11285_v61  ;;  %v7593_v24 = vld [vmem:[%s11392_s26 + $0x90] sm:$0xf] }
  0x34   : > { %813 = vst [vmem:[#allocation2 + $0x73] sm:$0x7] %v11285_v61  ;;  %v7594_v31 = vor.u32 %v10465_v25, %v7593_v24  ;;  %p11244_p3 = pnand %p11243_p2, %p11239_p13 }
  0x35   : > { %814 = vst [vmem:[#allocation2 + $0x8b] sm:$0x7] %v11285_v61 }
  0x36   : > { %815 = vst [vmem:[#allocation2 + $0xa3] sm:$0x7] %v11285_v61 }
  0x37   : > { %816 = vst [vmem:[#allocation2 + $0xbb] sm:$0x7] %v11285_v61 }
  0x38   : > { %817 = vst [vmem:[#allocation2 + $0xd3] sm:$0x7] %v11285_v61 }
  0x39   : > { %818 = vst [vmem:[#allocation2 + $0xeb] sm:$0x7] %v11285_v61 }
  0x3a   : > { %819 = vst [vmem:[#allocation2 + $0x103] sm:$0x7] %v11285_v61 }
  0x3b   : > { %820 = vst [vmem:[#allocation2 + $0x11b] sm:$0x7] %v11285_v61 }
  0x3c   : > { %821 = vst [vmem:[#allocation2 + $0x133] sm:$0x7] %v11285_v61 }
  0x3d   : > { %822 = vst [vmem:[#allocation2 + $0x14b] sm:$0x7] %v11285_v61 }
  0x3e   : > { %823 = vst [vmem:[#allocation2 + $0x163] sm:$0x7] %v11285_v61 }
  0x3f   : > { %824 = vst [vmem:[#allocation2 + $0x17b] sm:$0x7] %v11285_v61 }
  0x41   : > { %7685 = vmatmul.msk.bf16.gmra.mxu1 %vm527_vm2, %v7542_v29 }
  0x43   : > { %596 = vmatmul.bf16.gmra.mxu0 %v7530_v30 }
  0x51   : > { %7686 = vmatmul.msk.bf16.gmra.mxu1 %vm527_vm2, %v7550_v35 }
  0x53   : > { %601 = vmatmul.bf16.gmra.mxu0 %v7538_v36 }
  0x61   : > { %7687 = vmatmul.msk.bf16.gmra.mxu1 %vm527_vm2, %v7558_v41 }
  0x63   : > { %606 = vmatmul.bf16.gmra.mxu0 %v7546_v42 }
  0x71   : > { %7688 = vmatmul.msk.bf16.gmra.mxu1 %vm527_vm2, %v7566_v47 }
  0x73   : > { %611 = vmatmul.bf16.gmra.mxu0 %v7554_v48 }
  0x81   : > { %7689 = vmatmul.msk.bf16.gmra.mxu1 %vm527_vm2, %v7574_v53 }
  0x83   : > { %616 = vmatmul.bf16.gmra.mxu0 %v7562_v54  ;;  %v10468_v54 = vld [vmem:[%s11392_s26 + $0xb4] sm:$0xf] }
  0x84   : > { %v7614_v62 = vor.u32 %v10468_v54, %v7611_v55 }
  0x91   : > { %7690 = vmatmul.msk.bf16.gmra.mxu1 %vm527_vm2, %v7582_v59 }
  0x93   : > { %621 = vmatmul.bf16.gmra.mxu0 %v7570_v60 }
  0x9e   : > { %v681_v3 = vpop.f32.mrf.mxu1 }
  0xa1   : > { %7691 = vmatmul.msk.bf16.gmra.mxu1 %vm527_vm2, %v7590_v2  ;;  %v7602_v2 = vor.u32 %v10467_v58, %v7601_v57 }
  0xa3   : > { %626 = vmatmul.bf16.gmra.mxu0 %v7578_v4 }
  0xa6   : > { %v683_v5 = vpop.f32.mrf.mxu1 }
  0xae   : > { %v686_v12 = vpop.f32.mrf.mxu1 }
  0xb0   : > { %v592_v14 = vpop.f32.mrf.mxu0 }
  0xb1   : > { %v593_v15 = vadd.f32 %v11462_v10, %v592_v14  ;;  %7692 = vmatmul.msk.bf16.gmra.mxu1 %vm527_vm2, %v7598_v11 }
  0xb3   : > { %v682_v16 = vadd.f32 %v681_v3, %v593_v15  ;;  %631 = vmatmul.bf16.gmra.mxu0 %v7586_v13 }
  0xb5   : > { %v761_v17 = vmax.f32 %v682_v16, 0.0 }
  0xb6   : > { %v688_v18 = vpop.f32.mrf.mxu1 }
  0xb7   : > { %825 = vst [vmem:[#allocation2 + $0x3] sm:$0xff] %v761_v17 }
  0xb8   : > { %v594_v19 = vpop.f32.mrf.mxu0 }
  0xb9   : > { %v595_v20 = vadd.f32 %v11462_v10, %v594_v19 }
  0xbb   : > { %v684_v23 = vadd.f32 %v683_v5, %v595_v20 }
  0xbd   : > { %v762_v26 = vmax.f32 %v684_v23, 0.0 }
  0xbe   : > { %v691_v28 = vpop.f32.mrf.mxu1  ;;  %v905_v29 = vld [vmem:[#allocation2] sm:$0xff] }
  0xbf   : > { %v1001_v30 = vld [vmem:[#allocation2 + $0x1] sm:$0xff]  ;;  %826 = vst [vmem:[#allocation2 + $0xb] sm:$0xff] %v762_v26  ;;  %v937_v32 = vpack.c.bf16 %v905_v29, %v905_v29 }
  0xc0   : > { %v1033_v33 = vpack.c.bf16 %v1001_v30, %v1001_v30  ;;  %v597_v34 = vpop.f32.mrf.mxu0  ;;  %v7609_v30 = vld [vmem:[%s11392_s26 + $0xb0] sm:$0xf] }
  0xc1   : > { %v598_v35 = vadd.f32 %v11462_v10, %v597_v34  ;;  %7693 = vmatmul.msk.bf16.gmra.mxu1 %vm527_vm2, %v7606_v27  ;;  %969 = vst [vmem:[#allocation3 + $0xa8] sm:$0xf] %v937_v32  ;;  %v10470_v27 = vld [vmem:[%s11392_s26 + $0xc4] sm:$0xf] }
  0xc2   : > { %1065 = vst [vmem:[#allocation3 + $0xac] sm:$0xf] %v1033_v33 }
  0xc3   : > { %v687_v36 = vadd.f32 %v686_v12, %v598_v35  ;;  %636 = vmatmul.bf16.gmra.mxu0 %v7594_v31  ;;  %v10469_v31 = vld [vmem:[%s11392_s26 + $0xb4] sm:$0xf0] }
  0xc5   : > { %v763_v37 = vmax.f32 %v687_v36, 0.0 }
  0xc6   : > { %v1289_v38 = vld [vmem:[#allocation2 + $0x4] sm:$0xff]  ;;  %v1290_v39 = vld [vmem:[#allocation2 + $0xc] sm:$0xff]  ;;  %v11473_v41 = vpop.f32.mrf.mxu1 }
  0xc7   : > { %v1385_v40 = vld [vmem:[#allocation2 + $0x5] sm:$0xff]  ;;  %v1321_v42 = vpack.c.bf16 %v1289_v38, %v1289_v38  ;;  %v1322_v43 = vpack.c.bf16 %v1290_v39, %v1290_v39  ;;  %v1386_v44 = vld [vmem:[#allocation2 + $0xd] sm:$0xff]  ;;  %827 = vst [vmem:[#allocation2 + $0x1b] sm:$0xff] %v763_v37  ;;  %v7610_v39 = vor.u32 %v10469_v31, %v7609_v30 }
  0xc8   : > { %v1417_v45 = vpack.c.bf16 %v1385_v40, %v1385_v40  ;;  %v1481_v46 = vld [vmem:[#allocation2 + $0x6] sm:$0xff]  ;;  %v1482_v47 = vld [vmem:[#allocation2 + $0xe] sm:$0xff]  ;;  %v1418_v48 = vpack.c.bf16 %v1386_v44, %v1386_v44  ;;  %v599_v49 = vpop.f32.mrf.mxu0 }
  0xc9   : > { %v1513_v50 = vpack.c.bf16 %v1481_v46, %v1481_v46  ;;  %1353 = vst [vmem:[#allocation3 + $0xb8] sm:$0xf] %v1321_v42  ;;  %v600_v51 = vadd.f32 %v11462_v10, %v599_v49  ;;  %v906_v52 = vld [vmem:[#allocation2 + $0x8] sm:$0xff]  ;;  %v1514_v53 = vpack.c.bf16 %v1482_v47, %v1482_v47 }
  0xca   : > { %1354 = vst [vmem:[#allocation3 + $0xd4] sm:$0xf] %v1322_v43  ;;  %v938_v59 = vpack.c.bf16 %v906_v52, %v906_v52  ;;  %v1002_v60 = vld [vmem:[#allocation2 + $0x9] sm:$0xff] }
  0xcb   : > { %1449 = vst [vmem:[#allocation3 + $0xbc] sm:$0xf] %v1417_v45  ;;  %v689_v56 = vadd.f32 %v688_v18, %v600_v51  ;;  %v1034_v5 = vpack.c.bf16 %v1002_v60, %v1002_v60 }
  0xcc   : > { %1450 = vst [vmem:[#allocation3 + $0xd8] sm:$0xf] %v1418_v48 }
  0xcd   : > { %1545 = vst [vmem:[#allocation3 + $0xc0] sm:$0xf] %v1513_v50  ;;  %v764_v61 = vmax.f32 %v689_v56, 0.0 }
  0xce   : > { %1546 = vst [vmem:[#allocation3 + $0xdc] sm:$0xf] %v1514_v53  ;;  %v11480_v63 = vpop.f32.mrf.mxu1  ;;  %v907_v0 = vld [vmem:[#allocation2 + $0x18] sm:$0xff] }
  0xcf   : > { %v1003_v1 = vld [vmem:[#allocation2 + $0x19] sm:$0xff]  ;;  %828 = vst [vmem:[#allocation2 + $0x23] sm:$0xff] %v764_v61  ;;  %v939_v3 = vpack.c.bf16 %v907_v0, %v907_v0  ;;  %v7627_v0 = vld [vmem:[%s11392_s26 + $0xd8] sm:$0xf0] }
  0xd0   : > { %v1035_v4 = vpack.c.bf16 %v1003_v1, %v1003_v1  ;;  %v602_v6 = vpop.f32.mrf.mxu0  ;;  %970 = vst [vmem:[#allocation3 + $0xc4] sm:$0xf] %v938_v59 }
  0xd1   : > { %v603_v7 = vadd.f32 %v11462_v10, %v602_v6  ;;  %7694 = vmatmul.msk.bf16.gmra.mxu1 %vm527_vm2, %v7614_v62  ;;  %971 = vst [vmem:[#allocation3 + $0xe0] sm:$0xf] %v939_v3  ;;  %v10471_v3 = vld [vmem:[%s11392_s26 + $0xc4] sm:$0xf0] }
  0xd2   : > { %1067 = vst [vmem:[#allocation3 + $0xe4] sm:$0xf] %v1035_v4 }
  0xd3   : > { %v692_v8 = vadd.f32 %v691_v28, %v603_v7  ;;  %641 = vmatmul.bf16.gmra.mxu0 %v7602_v2  ;;  %1066 = vst [vmem:[#allocation3 + $0xc8] sm:$0xf] %v1034_v5  ;;  %v7619_v28 = vld [vmem:[%s11392_s26 + $0xc8] sm:$0xf0]  ;;  %v7617_v2 = vld [vmem:[%s11392_s26 + $0xc0] sm:$0xf] }
  0xd4   : > { %v7622_v35 = vor.u32 %v10470_v27, %v7619_v28 }
  0xd5   : > { %v765_v9 = vmax.f32 %v692_v8, 0.0 }
  0xd6   : > { %v1291_v11 = vld [vmem:[#allocation2 + $0x1c] sm:$0xff]  ;;  %v1292_v12 = vld [vmem:[#allocation2 + $0x24] sm:$0xff]  ;;  %v11484_v14 = vpop.f32.mrf.mxu1 }
  0xd7   : > { %v1387_v13 = vld [vmem:[#allocation2 + $0x1d] sm:$0xff]  ;;  %v1323_v15 = vpack.c.bf16 %v1291_v11, %v1291_v11  ;;  %v1324_v16 = vpack.c.bf16 %v1292_v12, %v1292_v12  ;;  %v1388_v17 = vld [vmem:[#allocation2 + $0x25] sm:$0xff]  ;;  %829 = vst [vmem:[#allocation2 + $0x33] sm:$0xff] %v765_v9  ;;  %v7618_v11 = vor.u32 %v10471_v3, %v7617_v2 }
  0xd8   : > { %v1419_v18 = vpack.c.bf16 %v1387_v13, %v1387_v13  ;;  %v1483_v19 = vld [vmem:[#allocation2 + $0x1e] sm:$0xff]  ;;  %v1484_v20 = vld [vmem:[#allocation2 + $0x26] sm:$0xff]  ;;  %v1420_v21 = vpack.c.bf16 %v1388_v17, %v1388_v17  ;;  %v604_v22 = vpop.f32.mrf.mxu0 }
  0xd9   : > { %v1515_v23 = vpack.c.bf16 %v1483_v19, %v1483_v19  ;;  %1355 = vst [vmem:[#allocation3 + $0xf0] sm:$0xf] %v1323_v15  ;;  %v605_v24 = vadd.f32 %v11462_v10, %v604_v22  ;;  %v908_v25 = vld [vmem:[#allocation2 + $0x20] sm:$0xff]  ;;  %v1516_v26 = vpack.c.bf16 %v1484_v20, %v1484_v20 }
  0xda   : > { %1356 = vst [vmem:[#allocation3 + $0x10c] sm:$0xf] %v1324_v16  ;;  %v940_v32 = vpack.c.bf16 %v908_v25, %v908_v25  ;;  %v1004_v33 = vld [vmem:[#allocation2 + $0x21] sm:$0xff] }
  0xdb   : > { %1451 = vst [vmem:[#allocation3 + $0xf4] sm:$0xf] %v1419_v18  ;;  %v694_v29 = vadd.f32 %v11473_v41, %v605_v24  ;;  %v1036_v43 = vpack.c.bf16 %v1004_v33, %v1004_v33 }
  0xdc   : > { %1452 = vst [vmem:[#allocation3 + $0x110] sm:$0xf] %v1420_v21 }
  0xdd   : > { %1547 = vst [vmem:[#allocation3 + $0xf8] sm:$0xf] %v1515_v23  ;;  %v766_v34 = vmax.f32 %v694_v29, 0.0 }
  0xde   : > { %1548 = vst [vmem:[#allocation3 + $0x114] sm:$0xf] %v1516_v26  ;;  %v11492_v36 = vpop.f32.mrf.mxu1  ;;  %v909_v37 = vld [vmem:[#allocation2 + $0x30] sm:$0xff] }
  0xdf   : > { %v1005_v38 = vld [vmem:[#allocation2 + $0x31] sm:$0xff]  ;;  %830 = vst [vmem:[#allocation2 + $0x3b] sm:$0xff] %v766_v34  ;;  %v941_v40 = vpack.c.bf16 %v909_v37, %v909_v37 }
  0xe0   : > { %v1037_v42 = vpack.c.bf16 %v1005_v38, %v1005_v38  ;;  %v607_v44 = vpop.f32.mrf.mxu0  ;;  %972 = vst [vmem:[#allocation3 + $0xfc] sm:$0xf] %v940_v32  ;;  %v10473_v38 = vld [vmem:[%s11392_s26 + $0xd4] sm:$0xf0] }
  0xe1   : > { %v608_v41 = vadd.f32 %v11462_v10, %v607_v44  ;;  %7695 = vmatmul.msk.bf16.gmra.mxu1 %vm527_vm2, %v7622_v35  ;;  %973 = vst [vmem:[#allocation3 + $0x118] sm:$0xf] %v941_v40 }
  0xe2   : > { %1069 = vst [vmem:[#allocation3 + $0x11c] sm:$0xf] %v1037_v42 }
  0xe3   : > { %v697_v45 = vadd.f32 %v11480_v63, %v608_v41  ;;  %646 = vmatmul.bf16.gmra.mxu0 %v7610_v39  ;;  %1068 = vst [vmem:[#allocation3 + $0x100] sm:$0xf] %v1036_v43  ;;  %v10472_v63 = vld [vmem:[%s11392_s26 + $0xd4] sm:$0xf] }
  0xe4   : > { %v7630_v7 = vor.u32 %v10472_v63, %v7627_v0 }
  0xe5   : > { %v767_v46 = vmax.f32 %v697_v45, 0.0 }
  0xe6   : > { %v1293_v47 = vld [vmem:[#allocation2 + $0x34] sm:$0xff]  ;;  %v1294_v48 = vld [vmem:[#allocation2 + $0x3c] sm:$0xff]  ;;  %v703_v58 = vpop.f32.mrf.mxu1 }
  0xe7   : > { %v1389_v49 = vld [vmem:[#allocation2 + $0x35] sm:$0xff]  ;;  %v1325_v50 = vpack.c.bf16 %v1293_v47, %v1293_v47  ;;  %v1326_v51 = vpack.c.bf16 %v1294_v48, %v1294_v48  ;;  %v1390_v52 = vld [vmem:[#allocation2 + $0x3d] sm:$0xff]  ;;  %831 = vst [vmem:[#allocation2 + $0x4b] sm:$0xff] %v767_v46 }
  0xe8   : > { %v1421_v53 = vpack.c.bf16 %v1389_v49, %v1389_v49  ;;  %v1485_v54 = vld [vmem:[#allocation2 + $0x36] sm:$0xff]  ;;  %v1486_v55 = vld [vmem:[#allocation2 + $0x3e] sm:$0xff]  ;;  %v1422_v56 = vpack.c.bf16 %v1390_v52, %v1390_v52  ;;  %v609_v57 = vpop.f32.mrf.mxu0 }
  0xe9   : > { %v1517_v59 = vpack.c.bf16 %v1485_v54, %v1485_v54  ;;  %1357 = vst [vmem:[#allocation3 + $0x128] sm:$0xf] %v1325_v50  ;;  %v610_v60 = vadd.f32 %v11462_v10, %v609_v57  ;;  %v910_v61 = vld [vmem:[#allocation2 + $0x38] sm:$0xff]  ;;  %v1518_v62 = vpack.c.bf16 %v1486_v55, %v1486_v55 }
  0xea   : > { %1358 = vst [vmem:[#allocation3 + $0x144] sm:$0xf] %v1326_v51  ;;  %v942_v4 = vpack.c.bf16 %v910_v61, %v910_v61  ;;  %v1006_v5 = vld [vmem:[#allocation2 + $0x39] sm:$0xff] }
  0xeb   : > { %1453 = vst [vmem:[#allocation3 + $0x12c] sm:$0xf] %v1421_v53  ;;  %v699_v1 = vadd.f32 %v11484_v14, %v610_v60  ;;  %v1038_v15 = vpack.c.bf16 %v1006_v5, %v1006_v5 }
  0xec   : > { %1454 = vst [vmem:[#allocation3 + $0x148] sm:$0xf] %v1422_v56 }
  0xed   : > { %1549 = vst [vmem:[#allocation3 + $0x130] sm:$0xf] %v1517_v59  ;;  %v768_v6 = vmax.f32 %v699_v1, 0.0 }
  0xee   : > { %1550 = vst [vmem:[#allocation3 + $0x14c] sm:$0xf] %v1518_v62  ;;  %v911_v8 = vld [vmem:[#allocation2 + $0x48] sm:$0xff]  ;;  %v706_v17 = vpop.f32.mrf.mxu1 }
  0xef   : > { %v1007_v9 = vld [vmem:[#allocation2 + $0x49] sm:$0xff]  ;;  %832 = vst [vmem:[#allocation2 + $0x53] sm:$0xff] %v768_v6  ;;  %v943_v12 = vpack.c.bf16 %v911_v8, %v911_v8 }
  0xf0   : > { %v1039_v13 = vpack.c.bf16 %v1007_v9, %v1007_v9  ;;  %v612_v16 = vpop.f32.mrf.mxu0  ;;  %974 = vst [vmem:[#allocation3 + $0x134] sm:$0xf] %v942_v4 }
  0xf1   : > { %v613_v14 = vadd.f32 %v11462_v10, %v612_v16  ;;  %7696 = vmatmul.msk.bf16.gmra.mxu1 %vm527_vm2, %v7630_v7  ;;  %975 = vst [vmem:[#allocation3 + $0x150] sm:$0xf] %v943_v12 }
  0xf2   : > { %1071 = vst [vmem:[#allocation3 + $0x154] sm:$0xf] %v1039_v13 }
  0xf3   : > { %v702_v18 = vadd.f32 %v11492_v36, %v613_v14  ;;  %651 = vmatmul.bf16.gmra.mxu0 %v7618_v11  ;;  %1070 = vst [vmem:[#allocation3 + $0x138] sm:$0xf] %v1038_v15  ;;  %v7625_v36 = vld [vmem:[%s11392_s26 + $0xd0] sm:$0xf] }
  0xf4   : > { %v7626_v45 = vor.u32 %v10473_v38, %v7625_v36 }
  0xf5   : > { %v769_v19 = vmax.f32 %v702_v18, 0.0 }
  0xf6   : > { %v1295_v20 = vld [vmem:[#allocation2 + $0x4c] sm:$0xff]  ;;  %v1296_v21 = vld [vmem:[#allocation2 + $0x54] sm:$0xff]  ;;  %v708_v37 = vpop.f32.mrf.mxu1 }
  0xf7   : > { %v1391_v22 = vld [vmem:[#allocation2 + $0x4d] sm:$0xff]  ;;  %v1327_v23 = vpack.c.bf16 %v1295_v20, %v1295_v20  ;;  %v1328_v24 = vpack.c.bf16 %v1296_v21, %v1296_v21  ;;  %v1392_v25 = vld [vmem:[#allocation2 + $0x55] sm:$0xff]  ;;  %833 = vst [vmem:[#allocation2 + $0x63] sm:$0xff] %v769_v19 }
  0xf8   : > { %v1423_v26 = vpack.c.bf16 %v1391_v22, %v1391_v22  ;;  %v1487_v27 = vld [vmem:[#allocation2 + $0x4e] sm:$0xff]  ;;  %v1488_v28 = vld [vmem:[#allocation2 + $0x56] sm:$0xff]  ;;  %v1424_v29 = vpack.c.bf16 %v1392_v25, %v1392_v25  ;;  %v614_v30 = vpop.f32.mrf.mxu0 }
  0xf9   : > { %v1519_v31 = vpack.c.bf16 %v1487_v27, %v1487_v27  ;;  %1359 = vst [vmem:[#allocation3 + $0x160] sm:$0xf] %v1327_v23  ;;  %v615_v32 = vadd.f32 %v11462_v10, %v614_v30  ;;  %v912_v33 = vld [vmem:[#allocation2 + $0x50] sm:$0xff]  ;;  %v1520_v34 = vpack.c.bf16 %v1488_v28, %v1488_v28 }
  0xfa   : > { %1360 = vst [vmem:[#allocation3 + $0x17c] sm:$0xf] %v1328_v24  ;;  %v944_v39 = vpack.c.bf16 %v912_v33, %v912_v33  ;;  %v1008_v40 = vld [vmem:[#allocation2 + $0x51] sm:$0xff] }
  0xfb   : > { %1455 = vst [vmem:[#allocation3 + $0x164] sm:$0xf] %v1423_v26  ;;  %v704_v35 = vadd.f32 %v703_v58, %v615_v32  ;;  %v1040_v48 = vpack.c.bf16 %v1008_v40, %v1008_v40 }
  0xfc   : > { %1456 = vst [vmem:[#allocation3 + $0x180] sm:$0xf] %v1424_v29 }
  0xfd   : > { %1551 = vst [vmem:[#allocation3 + $0x168] sm:$0xf] %v1519_v31  ;;  %v770_v42 = vmax.f32 %v704_v35, 0.0 }
  0xfe   : > { %1552 = vst [vmem:[#allocation3 + $0x184] sm:$0xf] %v1520_v34  ;;  %v913_v43 = vld [vmem:[#allocation2 + $0x60] sm:$0xff]  ;;  %v711_v55 = vpop.f32.mrf.mxu1 }
  0xff   : > { %v1009_v44 = vld [vmem:[#allocation2 + $0x61] sm:$0xff]  ;;  %834 = vst [vmem:[#allocation2 + $0x6b] sm:$0xff] %v770_v42  ;;  %v945_v46 = vpack.c.bf16 %v913_v43, %v913_v43 }
 0x100   : > { %v1105_v41 = vld [vmem:[#allocation2 + $0x62] sm:$0xff]  ;;  %v1041_v47 = vpack.c.bf16 %v1009_v44, %v1009_v44  ;;  %v617_v50 = vpop.f32.mrf.mxu0  ;;  %976 = vst [vmem:[#allocation3 + $0x16c] sm:$0xf] %v944_v39 }
 0x101   : > { %v1201_v49 = vld [vmem:[#allocation2 + $0x63] sm:$0xff]  ;;  %v1137_v51 = vpack.c.bf16 %v1105_v41, %v1105_v41  ;;  %v618_v52 = vadd.f32 %v11462_v10, %v617_v50  ;;  %977 = vst [vmem:[#allocation3 + $0x188] sm:$0xf] %v945_v46 }
 0x102   : > { %v1233_v53 = vpack.c.bf16 %v1201_v49, %v1201_v49  ;;  %1073 = vst [vmem:[#allocation3 + $0x18c] sm:$0xf] %v1041_v47 }
 0x103   : > { %v707_v54 = vadd.f32 %v706_v17, %v618_v52  ;;  %656 = vmatmul.bf16.gmra.mxu0 %v7626_v45  ;;  %1072 = vst [vmem:[#allocation3 + $0x170] sm:$0xf] %v1040_v48 }
 0x104   : > { %1169 = vst [vmem:[#allocation3 + $0x190] sm:$0xf] %v1137_v51 }
 0x105   : > { %v771_v56 = vmax.f32 %v707_v54, 0.0  ;;  %1265 = vst [vmem:[#allocation3 + $0x194] sm:$0xf] %v1233_v53 }
 0x106   : > { %v1297_v57 = vld [vmem:[#allocation2 + $0x64] sm:$0xff]  ;;  %v1298_v58 = vld [vmem:[#allocation2 + $0x6c] sm:$0xff]  ;;  %v713_v13 = vpop.f32.mrf.mxu1 }
 0x107   : > { %v1393_v59 = vld [vmem:[#allocation2 + $0x65] sm:$0xff]  ;;  %v1329_v60 = vpack.c.bf16 %v1297_v57, %v1297_v57  ;;  %v1330_v61 = vpack.c.bf16 %v1298_v58, %v1298_v58  ;;  %v1394_v62 = vld [vmem:[#allocation2 + $0x6d] sm:$0xff]  ;;  %835 = vst [vmem:[#allocation2 + $0x7b] sm:$0xff] %v771_v56  ;;  %v1235_v23 = vpack.c.bf16 %v771_v56, %v771_v56 }
 0x108   : > { %v1425_v63 = vpack.c.bf16 %v1393_v59, %v1393_v59  ;;  %v1489_v0 = vld [vmem:[#allocation2 + $0x66] sm:$0xff]  ;;  %v1490_v1 = vld [vmem:[#allocation2 + $0x6e] sm:$0xff]  ;;  %v1426_v2 = vpack.c.bf16 %v1394_v62, %v1394_v62  ;;  %v619_v3 = vpop.f32.mrf.mxu0 }
 0x109   : > { %v1521_v4 = vpack.c.bf16 %v1489_v0, %v1489_v0  ;;  %1361 = vst [vmem:[#allocation3 + $0x198] sm:$0xf] %v1329_v60  ;;  %v620_v5 = vadd.f32 %v11462_v10, %v619_v3  ;;  %v914_v6 = vld [vmem:[#allocation2 + $0x68] sm:$0xff]  ;;  %v1522_v7 = vpack.c.bf16 %v1490_v1, %v1490_v1 }
 0x10a   : > { %1362 = vst [vmem:[#allocation3 + $0x1b4] sm:$0xf] %v1330_v61  ;;  %v946_v9 = vpack.c.bf16 %v914_v6, %v914_v6  ;;  %v1010_v11 = vld [vmem:[#allocation2 + $0x69] sm:$0xff] }
 0x10b   : > { %1457 = vst [vmem:[#allocation3 + $0x19c] sm:$0xf] %v1425_v63  ;;  %v709_v8 = vadd.f32 %v708_v37, %v620_v5  ;;  %v1042_v19 = vpack.c.bf16 %v1010_v11, %v1010_v11  ;;  %v1106_v24 = vld [vmem:[#allocation2 + $0x6a] sm:$0xff] }
 0x10c   : > { %1458 = vst [vmem:[#allocation3 + $0x1b8] sm:$0xf] %v1426_v2  ;;  %v1138_v27 = vpack.c.bf16 %v1106_v24, %v1106_v24 }
 0x10d   : > { %1553 = vst [vmem:[#allocation3 + $0x1a0] sm:$0xf] %v1521_v4  ;;  %v772_v12 = vmax.f32 %v709_v8, 0.0 }
 0x10e   : > { %1554 = vst [vmem:[#allocation3 + $0x1bc] sm:$0xf] %v1522_v7  ;;  %v915_v15 = vld [vmem:[#allocation2 + $0x78] sm:$0xff]  ;;  %v716_v40 = vpop.f32.mrf.mxu1 }
 0x10f   : > { %v1011_v16 = vld [vmem:[#allocation2 + $0x79] sm:$0xff]  ;;  %836 = vst [vmem:[#allocation2 + $0x83] sm:$0xff] %v772_v12  ;;  %v947_v17 = vpack.c.bf16 %v915_v15, %v915_v15  ;;  %v1236_v25 = vpack.c.bf16 %v772_v12, %v772_v12 }
 0x110   : > { %v1107_v14 = vld [vmem:[#allocation2 + $0x7a] sm:$0xff]  ;;  %v1043_v18 = vpack.c.bf16 %v1011_v16, %v1011_v16  ;;  %v622_v20 = vpop.f32.mrf.mxu0  ;;  %978 = vst [vmem:[#allocation3 + $0x1a4] sm:$0xf] %v946_v9 }
 0x111   : > { %v1139_v21 = vpack.c.bf16 %v1107_v14, %v1107_v14  ;;  %v623_v22 = vadd.f32 %v11462_v10, %v622_v20  ;;  %979 = vst [vmem:[#allocation3 + $0x1c0] sm:$0xf] %v947_v17 }
 0x112   : > { %1075 = vst [vmem:[#allocation3 + $0x1c4] sm:$0xf] %v1043_v18 }
 0x113   : > { %v712_v26 = vadd.f32 %v711_v55, %v623_v22  ;;  %1074 = vst [vmem:[#allocation3 + $0x1a8] sm:$0xf] %v1042_v19 }
 0x114   : > { %1171 = vst [vmem:[#allocation3 + $0x1c8] sm:$0xf] %v1139_v21 }
 0x115   : > { %v773_v28 = vmax.f32 %v712_v26, 0.0  ;;  %1267 = vst [vmem:[#allocation3 + $0x1cc] sm:$0xf] %v1235_v23 }
 0x116   : > { %v1299_v29 = vld [vmem:[#allocation2 + $0x7c] sm:$0xff]  ;;  %v1300_v30 = vld [vmem:[#allocation2 + $0x84] sm:$0xff]  ;;  %1268 = vst [vmem:[#allocation3 + $0x1e8] sm:$0xf] %v1236_v25  ;;  %v718_v61 = vpop.f32.mrf.mxu1 }
 0x117   : > { %v1395_v31 = vld [vmem:[#allocation2 + $0x7d] sm:$0xff]  ;;  %v1331_v32 = vpack.c.bf16 %v1299_v29, %v1299_v29  ;;  %v1332_v33 = vpack.c.bf16 %v1300_v30, %v1300_v30  ;;  %v1396_v34 = vld [vmem:[#allocation2 + $0x85] sm:$0xff]  ;;  %837 = vst [vmem:[#allocation2 + $0x93] sm:$0xff] %v773_v28  ;;  %v1237_v41 = vpack.c.bf16 %v773_v28, %v773_v28 }
 0x118   : > { %v1427_v35 = vpack.c.bf16 %v1395_v31, %v1395_v31  ;;  %v1491_v36 = vld [vmem:[#allocation2 + $0x7e] sm:$0xff]  ;;  %v1492_v37 = vld [vmem:[#allocation2 + $0x86] sm:$0xff]  ;;  %v1428_v38 = vpack.c.bf16 %v1396_v34, %v1396_v34  ;;  %v624_v39 = vpop.f32.mrf.mxu0  ;;  %1170 = vst [vmem:[#allocation3 + $0x1ac] sm:$0xf] %v1138_v27 }
 0x119   : > { %1363 = vst [vmem:[#allocation3 + $0x1d0] sm:$0xf] %v1331_v32  ;;  %v1523_v42 = vpack.c.bf16 %v1491_v36, %v1491_v36  ;;  %v625_v43 = vadd.f32 %v11462_v10, %v624_v39  ;;  %v1524_v44 = vpack.c.bf16 %v1492_v37, %v1492_v37  ;;  %v916_v47 = vld [vmem:[#allocation2 + $0x80] sm:$0xff] }
 0x11a   : > { %1364 = vst [vmem:[#allocation3 + $0x1ec] sm:$0xf] %v1332_v33  ;;  %v1012_v54 = vld [vmem:[#allocation2 + $0x81] sm:$0xff]  ;;  %v948_v58 = vpack.c.bf16 %v916_v47, %v916_v47 }
 0x11b   : > { %1459 = vst [vmem:[#allocation3 + $0x1d4] sm:$0xf] %v1427_v35  ;;  %v714_v45 = vadd.f32 %v713_v13, %v625_v43  ;;  %v1108_v59 = vld [vmem:[#allocation2 + $0x82] sm:$0xff]  ;;  %v1044_v60 = vpack.c.bf16 %v1012_v54, %v1012_v54  ;;  %v10536_v43 = vld [vmem:[#allocation3 + $0x18c] sm:$0xf] }
 0x11c   : > { %1460 = vst [vmem:[#allocation3 + $0x1f0] sm:$0xf] %v1428_v38  ;;  %v1140_v63 = vpack.c.bf16 %v1108_v59, %v1108_v59  ;;  %v7901_v18 = vld [vmem:[#allocation3 + $0x1c0] sm:$0xf]  ;;  %v10543_v22 = vld [vmem:[#allocation3 + $0x1c4] sm:$0xf] }
 0x11d   : > { %1555 = vst [vmem:[#allocation3 + $0x1d8] sm:$0xf] %v1523_v42  ;;  %v774_v46 = vmax.f32 %v714_v45, 0.0  ;;  %v10539_v37 = vld [vmem:[#allocation3 + $0x1a0] sm:$0xf0] }
 0x11e   : > { %1556 = vst [vmem:[#allocation3 + $0x1f4] sm:$0xf] %v1524_v44  ;;  %v917_v48 = vld [vmem:[#allocation2 + $0x90] sm:$0xff]  ;;  %v721_v23 = vpop.f32.mrf.mxu1  ;;  %v7875_v38 = vld [vmem:[#allocation3 + $0x1a4] sm:$0xf0] }
 0x11f   : > { %v1013_v49 = vld [vmem:[#allocation2 + $0x91] sm:$0xff]  ;;  %v949_v51 = vpack.c.bf16 %v917_v48, %v917_v48  ;;  %1269 = vst [vmem:[#allocation3 + $0x204] sm:$0xf] %v1237_v41  ;;  %v1238_v55 = vpack.c.bf16 %v774_v46, %v774_v46  ;;  %v11524_v41 = vor.u32 %v10536_v43, %v7875_v38  ;;  %v10515_v38 = vld [vmem:[#allocation3 + $0xe4] sm:$0xf] }
 0x120   : > { %v1109_v50 = vld [vmem:[#allocation2 + $0x92] sm:$0xff]  ;;  %v1045_v52 = vpack.c.bf16 %v1013_v49, %v1013_v49  ;;  %838 = vst [vmem:[#allocation2 + $0x9b] sm:$0xff] %v774_v46  ;;  %v627_v56 = vpop.f32.mrf.mxu0  ;;  %v11286_v46 = vmov 0   ;;  %v10532_v49 = vld [vmem:[#allocation3 + $0x168] sm:$0xf0] }
 0x121   : > { %v1141_v53 = vpack.c.bf16 %v1109_v50, %v1109_v50  ;;  %981 = vst [vmem:[#allocation3 + $0x1f8] sm:$0xf] %v949_v51  ;;  %v628_v57 = vadd.f32 %v11462_v10, %v627_v56  ;;  %11211 = vset.pattern.permute.xlu1 %v11286_v46  ;;  %11212 = vset.pattern.permute.xlu0 %v11286_v46  ;;  %v7845_v51 = vld [vmem:[#allocation3 + $0x150] sm:$0xf] }
 0x122   : > { %1077 = vst [vmem:[#allocation3 + $0x1fc] sm:$0xf] %v1045_v52  ;;  %v7847_v54 = vld [vmem:[#allocation3 + $0x16c] sm:$0xf0]  ;;  %v11535_v59 = vor.u32 %v10532_v49, %v7845_v51 }
 0x123   : > { %1173 = vst [vmem:[#allocation3 + $0x200] sm:$0xf] %v1141_v53  ;;  %v717_v62 = vadd.f32 %v716_v40, %v628_v57  ;;  %v7873_v40 = vld [vmem:[#allocation3 + $0x188] sm:$0xf]  ;;  %v10529_v53 = vld [vmem:[#allocation3 + $0x154] sm:$0xf] }
 0x124   : > { %1270 = vst [vmem:[#allocation3 + $0x220] sm:$0xf] %v1238_v55  ;;  %v11522_v42 = vor.u32 %v10539_v37, %v7873_v40 }
 0x125   : > { %v775_v0 = vmax.f32 %v717_v62, 0.0  ;;  %980 = vst [vmem:[#allocation3 + $0x1dc] sm:$0xf] %v948_v58 }
 0x126   : > { %1076 = vst [vmem:[#allocation3 + $0x1e0] sm:$0xf] %v1044_v60  ;;  %v723_v45 = vpop.f32.mrf.mxu1 }
 0x127   : > { %v918_v1 = vld [vmem:[#allocation2 + $0x98] sm:$0xff]  ;;  %839 = vst [vmem:[#allocation2 + $0xab] sm:$0xff] %v775_v0  ;;  %v1239_v2 = vpack.c.bf16 %v775_v0, %v775_v0 }
 0x128   : > { %v950_v3 = vpack.c.bf16 %v918_v1, %v918_v1  ;;  %v1301_v4 = vld [vmem:[#allocation2 + $0x94] sm:$0xff]  ;;  %v1302_v5 = vld [vmem:[#allocation2 + $0x9c] sm:$0xff]  ;;  %v629_v7 = vpop.f32.mrf.mxu0  ;;  %1172 = vst [vmem:[#allocation3 + $0x1e4] sm:$0xf] %v1140_v63 }
 0x129   : > { %v1397_v6 = vld [vmem:[#allocation2 + $0x95] sm:$0xff]  ;;  %v1333_v8 = vpack.c.bf16 %v1301_v4, %v1301_v4  ;;  %v1334_v9 = vpack.c.bf16 %v1302_v5, %v1302_v5  ;;  %v1398_v11 = vld [vmem:[#allocation2 + $0x9d] sm:$0xff]  ;;  %1271 = vst [vmem:[#allocation3 + $0x23c] sm:$0xf] %v1239_v2  ;;  %v630_v16 = vadd.f32 %v11462_v10, %v629_v7  ;;  %v11539_v5 = vor.u32 %v10529_v53, %v7847_v54 }
 0x12a   : > { %v1429_v12 = vpack.c.bf16 %v1397_v6, %v1397_v6  ;;  %v1493_v13 = vld [vmem:[#allocation2 + $0x96] sm:$0xff]  ;;  %v1494_v15 = vld [vmem:[#allocation2 + $0x9e] sm:$0xff]  ;;  %982 = vst [vmem:[#allocation3 + $0x214] sm:$0xf] %v950_v3  ;;  %v1430_v14 = vpack.c.bf16 %v1398_v11, %v1398_v11 }
 0x12b   : > { %1365 = vst [vmem:[#allocation3 + $0x208] sm:$0xf] %v1333_v8  ;;  %v1525_v17 = vpack.c.bf16 %v1493_v13, %v1493_v13  ;;  %v719_v19 = vadd.f32 %v718_v61, %v630_v16  ;;  %v1526_v20 = vpack.c.bf16 %v1494_v15, %v1494_v15 }
 0x12c   : > { %1366 = vst [vmem:[#allocation3 + $0x224] sm:$0xf] %v1334_v9  ;;  %v10546_v21 = vld [vmem:[#allocation3 + $0x1d8] sm:$0xf0] }
 0x12d   : > { %1461 = vst [vmem:[#allocation3 + $0x20c] sm:$0xf] %v1429_v12  ;;  %v11515_v24 = vor.u32 %v10546_v21, %v7901_v18  ;;  %v7903_v25 = vld [vmem:[#allocation3 + $0x1dc] sm:$0xf0]  ;;  %v776_v26 = vmax.f32 %v719_v19, 0.0 }
 0x12e   : > { %1462 = vst [vmem:[#allocation3 + $0x228] sm:$0xf] %v1430_v14  ;;  %v919_v27 = vld [vmem:[#allocation2 + $0xa8] sm:$0xff]  ;;  %v11517_v30 = vor.u32 %v10543_v22, %v7903_v25  ;;  %v726_v12 = vpop.f32.mrf.mxu1  ;;  %v7819_v19 = vld [vmem:[#allocation3 + $0x134] sm:$0xf0] }
 0x12f   : > { %12527 = vst [vmem:[#allocation7_spill] sm:$0xff] %v11515_v24  ;;  %v1015_v28 = vld [vmem:[#allocation2 + $0xa9] sm:$0xff]  ;;  %v951_v31 = vpack.c.bf16 %v919_v27, %v919_v27  ;;  %2323 = vmatpush.bf16.xpose.msra.mxu2 %v11515_v24  ;;  %v1240_v35 = vpack.c.bf16 %v776_v26, %v776_v26  ;;  %v7817_v21 = vld [vmem:[#allocation3 + $0x118] sm:$0xf]  ;;  %v10522_v25 = vld [vmem:[#allocation3 + $0x11c] sm:$0xf] }
 0x130   : > { %v1111_v29 = vld [vmem:[#allocation2 + $0xaa] sm:$0xff]  ;;  %12528 = vst [vmem:[#allocation8_spill] sm:$0xff] %v11517_v30  ;;  %v1047_v32 = vpack.c.bf16 %v1015_v28, %v1015_v28  ;;  %2336 = vmatpush.bf16.xpose.msra.mxu3 %v11517_v30  ;;  %v632_v34 = vpop.f32.mrf.mxu0  ;;  %v11546_v27 = vor.u32 %v10522_v25, %v7819_v19  ;;  %v10510_v30 = vld [vmem:[#allocation3 + $0xbc] sm:$0xf] }
 0x131   : > { %1557 = vst [vmem:[#allocation3 + $0x210] sm:$0xf] %v1525_v17  ;;  %v1143_v33 = vpack.c.bf16 %v1111_v29, %v1111_v29  ;;  %v633_v36 = vadd.f32 %v11462_v10, %v632_v34  ;;  %v10525_v17 = vld [vmem:[#allocation3 + $0x130] sm:$0xf0]  ;;  %v7791_v34 = vld [vmem:[#allocation3 + $0xfc] sm:$0xf0] }
 0x132   : > { %1558 = vst [vmem:[#allocation3 + $0x22c] sm:$0xf] %v1526_v20  ;;  %v11555_v40 = vor.u32 %v10515_v38, %v7791_v34 }
 0x133   : > { %983 = vst [vmem:[#allocation3 + $0x230] sm:$0xf] %v951_v31  ;;  %v722_v39 = vadd.f32 %v721_v23, %v633_v36  ;;  %v11544_v23 = vor.u32 %v10525_v17, %v7817_v21  ;;  %v7789_v36 = vld [vmem:[#allocation3 + $0xe0] sm:$0xf] }
 0x134   : > { %1079 = vst [vmem:[#allocation3 + $0x234] sm:$0xf] %v1047_v32  ;;  %v10518_v32 = vld [vmem:[#allocation3 + $0xf8] sm:$0xf0] }
 0x135   : > { %1175 = vst [vmem:[#allocation3 + $0x238] sm:$0xf] %v1143_v33  ;;  %v777_v44 = vmax.f32 %v722_v39, 0.0  ;;  %v11552_v37 = vor.u32 %v10518_v32, %v7789_v36 }
 0x136   : > { %840 = vst [vmem:[#allocation2 + $0xb3] sm:$0xff] %v776_v26  ;;  %v728_v33 = vpop.f32.mrf.mxu1 }
 0x137   : > { %1272 = vst [vmem:[#allocation3 + $0x258] sm:$0xf] %v1240_v35  ;;  %2324 = vmatpush.bf16.xpose.msra.mxu2 %v11522_v42  ;;  %v1241_v47 = vpack.c.bf16 %v777_v44, %v777_v44 }
 0x138   : > { %873 = vst [vmem:[#allocation3 + $0x70] sm:$0xff] %v11286_v46  ;;  %2337 = vmatpush.bf16.xpose.msra.mxu3 %v11524_v41  ;;  %v634_v48 = vpop.f32.mrf.mxu0  ;;  %v7953_v24 = vld [vmem:[#allocation3 + $0x210] sm:$0xf] }
 0x139   : > { %841 = vst [vmem:[#allocation2 + $0xc3] sm:$0xff] %v777_v44  ;;  %v635_v50 = vadd.f32 %v11462_v10, %v634_v48 }
 0x13a   : > { %877 = vst [vmem:[#allocation3 + $0x8c] sm:$0xff] %v11286_v46 }
 0x13b   : > { %1273 = vst [vmem:[#allocation3 + $0x274] sm:$0xf] %v1241_v47  ;;  %v724_v2 = vadd.f32 %v723_v45, %v635_v50 }
 0x13c   : > { %857 = vst [vmem:[#allocation3] sm:$0xff] %v11286_v46 }
 0x13d   : > { %v920_v52 = vld [vmem:[#allocation2 + $0xb0] sm:$0xff]  ;;  %858 = vst [vmem:[#allocation3 + $0x8] sm:$0xff] %v11286_v46  ;;  %v778_v15 = vmax.f32 %v724_v2, 0.0  ;;  %v11564_v2 = vld [vmem:[%s12474_s3] ss:$0 sm:$0xff] }
 0x13e   : > { %v952_v55 = vpack.c.bf16 %v920_v52, %v920_v52  ;;  %v1303_v56 = vld [vmem:[#allocation2 + $0xac] sm:$0xff]  ;;  %v1304_v57 = vld [vmem:[#allocation2 + $0xb4] sm:$0xff]  ;;  %859 = vst [vmem:[#allocation3 + $0x10] sm:$0xff] %v11286_v46 }
 0x13f   : > { %v1399_v58 = vld [vmem:[#allocation2 + $0xad] sm:$0xff]  ;;  %v1335_v60 = vpack.c.bf16 %v1303_v56, %v1303_v56  ;;  %v1336_v61 = vpack.c.bf16 %v1304_v57, %v1304_v57  ;;  %v1400_v62 = vld [vmem:[#allocation2 + $0xb5] sm:$0xff]  ;;  %860 = vst [vmem:[#allocation3 + $0x18] sm:$0xf] %v11286_v46  ;;  %2325 = vmatpush.bf16.xpose.msra.mxu2 %v11535_v59  ;;  %v1242_v22 = vpack.c.bf16 %v778_v15, %v778_v15  ;;  %v10511_v57 = vld [vmem:[#allocation3 + $0xc0] sm:$0xf0] }
 0x140   : > { %v1431_v63 = vpack.c.bf16 %v1399_v58, %v1399_v58  ;;  %v1495_v0 = vld [vmem:[#allocation2 + $0xae] sm:$0xff]  ;;  %v1496_v1 = vld [vmem:[#allocation2 + $0xb6] sm:$0xff]  ;;  %984 = vst [vmem:[#allocation3 + $0x24c] sm:$0xf] %v952_v55  ;;  %v1432_v3 = vpack.c.bf16 %v1400_v62, %v1400_v62  ;;  %v921_v4 = vld [vmem:[#allocation2 + $0xc0] sm:$0xff]  ;;  %2338 = vmatpush.bf16.xpose.msra.mxu3 %v11539_v5  ;;  %v637_v11 = vpop.f32.mrf.mxu0 }
 0x141   : > { %1367 = vst [vmem:[#allocation3 + $0x240] sm:$0xf] %v1335_v60  ;;  %v1527_v6 = vpack.c.bf16 %v1495_v0, %v1495_v0  ;;  %v1017_v7 = vld [vmem:[#allocation2 + $0xc1] sm:$0xff]  ;;  %v1528_v8 = vpack.c.bf16 %v1496_v1, %v1496_v1  ;;  %v953_v13 = vpack.c.bf16 %v921_v4, %v921_v4  ;;  %v638_v16 = vadd.f32 %v11462_v10, %v637_v11  ;;  %v10504_v17 = vld [vmem:[#allocation3 + $0x88] sm:$0xf0] }
 0x142   : > { %1368 = vst [vmem:[#allocation3 + $0x25c] sm:$0xf] %v1336_v61  ;;  %v1113_v9 = vld [vmem:[#allocation2 + $0xc2] sm:$0xff]  ;;  %v1049_v14 = vpack.c.bf16 %v1017_v7, %v1017_v7  ;;  %v10508_v7 = vld [vmem:[#allocation3 + $0xac] sm:$0xf] }
 0x143   : > { %1463 = vst [vmem:[#allocation3 + $0x244] sm:$0xf] %v1431_v63  ;;  %v1145_v18 = vpack.c.bf16 %v1113_v9, %v1113_v9  ;;  %v727_v20 = vadd.f32 %v726_v12, %v638_v16  ;;  %v7763_v61 = vld [vmem:[#allocation3 + $0xc4] sm:$0xf0]  ;;  %v7733_v12 = vld [vmem:[#allocation3 + $0x70] sm:$0xf] }
 0x144   : > { %1464 = vst [vmem:[#allocation3 + $0x260] sm:$0xf] %v1432_v3  ;;  %v7761_v1 = vld [vmem:[#allocation3 + $0xa8] sm:$0xf]  ;;  %v11569_v11 = vor.u32 %v10508_v7, %v7763_v61  ;;  %v10501_v21 = vld [vmem:[#allocation3 + $0x74] sm:$0xf] }
 0x145   : > { %1559 = vst [vmem:[#allocation3 + $0x248] sm:$0xf] %v1527_v6  ;;  %v779_v26 = vmax.f32 %v727_v20, 0.0  ;;  %v11567_v6 = vor.u32 %v10511_v57, %v7761_v1  ;;  %v10544_v61 = vld [vmem:[#allocation3 + $0x1cc] sm:$0xf] }
 0x146   : > { %1560 = vst [vmem:[#allocation3 + $0x264] sm:$0xf] %v1528_v8  ;;  %v10540_v1 = vld [vmem:[#allocation3 + $0x1a8] sm:$0xf0] }
 0x147   : > { %985 = vst [vmem:[#allocation3 + $0x268] sm:$0xf] %v953_v13  ;;  %2326 = vmatpush.bf16.xpose.msra.mxu2 %v11544_v23  ;;  %v1243_v28 = vpack.c.bf16 %v779_v26, %v779_v26 }
 0x148   : > { %1081 = vst [vmem:[#allocation3 + $0x26c] sm:$0xf] %v1049_v14  ;;  %2339 = vmatpush.bf16.xpose.msra.mxu3 %v11546_v27  ;;  %v639_v29 = vpop.f32.mrf.mxu0  ;;  %v731_v14 = vpop.f32.mrf.mxu1 }
 0x149   : > { %1177 = vst [vmem:[#allocation3 + $0x270] sm:$0xf] %v1145_v18  ;;  %v640_v31 = vadd.f32 %v11462_v10, %v639_v29 }
 0x14a   : > { %842 = vst [vmem:[#allocation2 + $0xcb] sm:$0xff] %v778_v15 }
 0x14b   : > { %1274 = vst [vmem:[#allocation3 + $0x290] sm:$0xf] %v1242_v22  ;;  %v729_v35 = vadd.f32 %v728_v33, %v640_v31  ;;  %v11573_v33 = vor.u32 %v10504_v17, %v7733_v12 }
 0x14c   : > { %843 = vst [vmem:[#allocation2 + $0xdb] sm:$0xff] %v779_v26  ;;  %v7735_v26 = vld [vmem:[#allocation3 + $0x8c] sm:$0xf0] }
 0x14d   : > { %1275 = vst [vmem:[#allocation3 + $0x2ac] sm:$0xf] %v1243_v28  ;;  %v780_v39 = vmax.f32 %v729_v35, 0.0  ;;  %v11575_v36 = vor.u32 %v10501_v21, %v7735_v26 }
 0x14e   : > { %861 = vst [vmem:[#allocation3 + $0x1c] sm:$0xff] %v11286_v46 }
 0x14f   : > { %862 = vst [vmem:[#allocation3 + $0x24] sm:$0xff] %v11286_v46  ;;  %2327 = vmatpush.bf16.xpose.msra.mxu2 %v11552_v37  ;;  %v1244_v43 = vpack.c.bf16 %v780_v39, %v780_v39 }
 0x150   : > { %863 = vst [vmem:[#allocation3 + $0x2c] sm:$0xff] %v11286_v46  ;;  %2340 = vmatpush.bf16.xpose.msra.mxu3 %v11555_v40  ;;  %v642_v62 = vpop.f32.mrf.mxu0 }
 0x151   : > { %v922_v10 = vld [vmem:[#allocation2 + $0xc8] sm:$0xff]  ;;  %844 = vst [vmem:[#allocation2 + $0xe3] sm:$0xff] %v780_v39  ;;  %v643_v3 = vadd.f32 %v11564_v2, %v642_v62 }
 0x152   : > { %v954_v44 = vpack.c.bf16 %v922_v10, %v922_v10  ;;  %v1305_v45 = vld [vmem:[#allocation2 + $0xc4] sm:$0xff]  ;;  %v1306_v47 = vld [vmem:[#allocation2 + $0xcc] sm:$0xff]  ;;  %864 = vst [vmem:[#allocation3 + $0x34] sm:$0xf] %v11286_v46 }
 0x153   : > { %v1401_v48 = vld [vmem:[#allocation2 + $0xc5] sm:$0xff]  ;;  %v1337_v49 = vpack.c.bf16 %v1305_v45, %v1305_v45  ;;  %v1338_v50 = vpack.c.bf16 %v1306_v47, %v1306_v47  ;;  %v1402_v51 = vld [vmem:[#allocation2 + $0xcd] sm:$0xff]  ;;  %1276 = vst [vmem:[#allocation3 + $0x2c8] sm:$0xf] %v1244_v43  ;;  %v923_v56 = vld [vmem:[#allocation2 + $0xd8] sm:$0xff]  ;;  %v732_v20 = vadd.f32 %v731_v14, %v643_v3 }
 0x154   : > { %v1433_v52 = vpack.c.bf16 %v1401_v48, %v1401_v48  ;;  %v1497_v53 = vld [vmem:[#allocation2 + $0xc6] sm:$0xff]  ;;  %v1498_v54 = vld [vmem:[#allocation2 + $0xce] sm:$0xff]  ;;  %986 = vst [vmem:[#allocation3 + $0x284] sm:$0xf] %v954_v44  ;;  %v1434_v55 = vpack.c.bf16 %v1402_v51, %v1402_v51  ;;  %v1019_v60 = vld [vmem:[#allocation2 + $0xd9] sm:$0xff]  ;;  %v955_v4 = vpack.c.bf16 %v923_v56, %v923_v56 }
 0x155   : > { %1369 = vst [vmem:[#allocation3 + $0x278] sm:$0xf] %v1337_v49  ;;  %v1529_v58 = vpack.c.bf16 %v1497_v53, %v1497_v53  ;;  %v1530_v63 = vpack.c.bf16 %v1498_v54, %v1498_v54  ;;  %v1115_v0 = vld [vmem:[#allocation2 + $0xda] sm:$0xff]  ;;  %v1051_v8 = vpack.c.bf16 %v1019_v60, %v1019_v60  ;;  %v781_v35 = vmax.f32 %v732_v20, 0.0  ;;  %v10547_v53 = vld [vmem:[#allocation3 + $0x1e0] sm:$0xf0] }
 0x156   : > { %1370 = vst [vmem:[#allocation3 + $0x294] sm:$0xf] %v1338_v50  ;;  %v1147_v13 = vpack.c.bf16 %v1115_v0, %v1115_v0  ;;  %v7911_v54 = vld [vmem:[#allocation3 + $0x1e4] sm:$0xf0]  ;;  %v733_v0 = vpop.f32.mrf.mxu1 }
 0x157   : > { %1465 = vst [vmem:[#allocation3 + $0x27c] sm:$0xf] %v1433_v52  ;;  %2328 = vmatpush.bf16.xpose.msra.mxu2 %v11567_v6  ;;  %v1245_v10 = vpack.c.bf16 %v781_v35, %v781_v35  ;;  %v7909_v60 = vld [vmem:[#allocation3 + $0x1c8] sm:$0xf] }
 0x158   : > { %1466 = vst [vmem:[#allocation3 + $0x298] sm:$0xf] %v1434_v55  ;;  %v924_v9 = vld [vmem:[#allocation2 + $0xe0] sm:$0xff]  ;;  %2341 = vmatpush.bf16.xpose.msra.mxu3 %v11569_v11  ;;  %v644_v52 = vpop.f32.mrf.mxu0  ;;  %v11594_v62 = vor.u32 %v10547_v53, %v7909_v60 }
 0x159   : > { %1561 = vst [vmem:[#allocation3 + $0x280] sm:$0xf] %v1529_v58  ;;  %v1307_v15 = vld [vmem:[#allocation2 + $0xdc] sm:$0xff]  ;;  %v1308_v16 = vld [vmem:[#allocation2 + $0xe4] sm:$0xff]  ;;  %v956_v18 = vpack.c.bf16 %v924_v9, %v924_v9  ;;  %v645_v9 = vadd.f32 %v11564_v2, %v644_v52 }
 0x15a   : > { %1562 = vst [vmem:[#allocation3 + $0x29c] sm:$0xf] %v1530_v63  ;;  %v1403_v19 = vld [vmem:[#allocation2 + $0xdd] sm:$0xff]  ;;  %v1339_v22 = vpack.c.bf16 %v1307_v15, %v1307_v15  ;;  %v1404_v25 = vld [vmem:[#allocation2 + $0xe5] sm:$0xff]  ;;  %v1340_v28 = vpack.c.bf16 %v1308_v16, %v1308_v16  ;;  %v11596_v63 = vor.u32 %v10544_v61, %v7911_v54 }
 0x15b   : > { %987 = vst [vmem:[#allocation3 + $0x2a0] sm:$0xf] %v955_v4  ;;  %v1499_v29 = vld [vmem:[#allocation2 + $0xde] sm:$0xff]  ;;  %v1435_v31 = vpack.c.bf16 %v1403_v19, %v1403_v19  ;;  %v1500_v32 = vld [vmem:[#allocation2 + $0xe6] sm:$0xff]  ;;  %v1436_v34 = vpack.c.bf16 %v1404_v25, %v1404_v25  ;;  %v7881_v4 = vld [vmem:[#allocation3 + $0x190] sm:$0xf] }
 0x15c   : > { %1083 = vst [vmem:[#allocation3 + $0x2a4] sm:$0xf] %v1051_v8  ;;  %v1531_v38 = vpack.c.bf16 %v1499_v29, %v1499_v29  ;;  %v1532_v39 = vpack.c.bf16 %v1500_v32, %v1500_v32  ;;  %v11610_v7 = vor.u32 %v10540_v1, %v7881_v4  ;;  %v1103_v29 = vld [vmem:[#allocation2 + $0x4a] sm:$0xff] }
 0x15d   : > { %1179 = vst [vmem:[#allocation3 + $0x2a8] sm:$0xf] %v1147_v13  ;;  %v734_v13 = vadd.f32 %v733_v0, %v645_v9 }
 0x15e   : > { %988 = vst [vmem:[#allocation3 + $0x2bc] sm:$0xf] %v956_v18  ;;  %v736_v8 = vpop.f32.mrf.mxu1 }
 0x15f   : > { %1371 = vst [vmem:[#allocation3 + $0x2b0] sm:$0xf] %v1339_v22  ;;  %2329 = vmatpush.bf16.xpose.msra.mxu2 %v11573_v33  ;;  %v782_v17 = vmax.f32 %v734_v13, 0.0  ;;  %v1202_v22 = vld [vmem:[#allocation2 + $0x6b] sm:$0xff] }
 0x160   : > { %1372 = vst [vmem:[#allocation3 + $0x2cc] sm:$0xf] %v1340_v28  ;;  %2342 = vmatpush.bf16.xpose.msra.mxu3 %v11575_v36  ;;  %v647_v3 = vpop.f32.mrf.mxu0  ;;  %v1234_v28 = vpack.c.bf16 %v1202_v22, %v1202_v22 }
 0x161   : > { %1467 = vst [vmem:[#allocation3 + $0x2b4] sm:$0xf] %v1435_v31  ;;  %v648_v12 = vadd.f32 %v11564_v2, %v647_v3  ;;  %v1246_v21 = vpack.c.bf16 %v782_v17, %v782_v17  ;;  %v1104_v31 = vld [vmem:[#allocation2 + $0x52] sm:$0xff] }
 0x162   : > { %1468 = vst [vmem:[#allocation3 + $0x2d0] sm:$0xf] %v1436_v34  ;;  %v1199_v34 = vld [vmem:[#allocation2 + $0x4b] sm:$0xff] }
 0x163   : > { %1563 = vst [vmem:[#allocation3 + $0x2b8] sm:$0xf] %v1531_v38  ;;  %v737_v14 = vadd.f32 %v736_v8, %v648_v12  ;;  %v1136_v38 = vpack.c.bf16 %v1104_v31, %v1104_v31 }
 0x164   : > { %1564 = vst [vmem:[#allocation3 + $0x2d4] sm:$0xf] %v1532_v39  ;;  %v1231_v39 = vpack.c.bf16 %v1199_v34, %v1199_v34 }
 0x165   : > { %845 = vst [vmem:[#allocation2 + $0xf3] sm:$0xff] %v781_v35  ;;  %v783_v20 = vmax.f32 %v737_v14, 0.0  ;;  %v1135_v35 = vpack.c.bf16 %v1103_v29, %v1103_v29 }
 0x166   : > { %1277 = vst [vmem:[#allocation3 + $0x2e4] sm:$0xf] %v1245_v10  ;;  %v738_v18 = vpop.f32.mrf.mxu1 }
 0x167   : > { %865 = vst [vmem:[#allocation3 + $0x38] sm:$0xff] %v11286_v46  ;;  %v1247_v26 = vpack.c.bf16 %v783_v20, %v783_v20 }
 0x168   : > { %866 = vst [vmem:[#allocation3 + $0x40] sm:$0xff] %v11286_v46  ;;  %v649_v15 = vpop.f32.mrf.mxu0 }
 0x169   : > { %867 = vst [vmem:[#allocation3 + $0x48] sm:$0xff] %v11286_v46  ;;  %v650_v16 = vadd.f32 %v11564_v2, %v649_v15 }
 0x16a   : > { %868 = vst [vmem:[#allocation3 + $0x50] sm:$0xf] %v11286_v46 }
 0x16b   : > { %869 = vst [vmem:[#allocation3 + $0x54] sm:$0xff] %v11286_v46  ;;  %v739_v19 = vadd.f32 %v738_v18, %v650_v16 }
 0x16c   : > { %v925_v43 = vld [vmem:[#allocation2 + $0xf0] sm:$0xff]  ;;  %870 = vst [vmem:[#allocation3 + $0x5c] sm:$0xff] %v11286_v46 }
 0x16d   : > { %v1021_v44 = vld [vmem:[#allocation2 + $0xf1] sm:$0xff]  ;;  %v957_v47 = vpack.c.bf16 %v925_v43, %v925_v43  ;;  %871 = vst [vmem:[#allocation3 + $0x64] sm:$0xff] %v11286_v46  ;;  %v784_v25 = vmax.f32 %v739_v19, 0.0 }
 0x16e   : > { %v1117_v45 = vld [vmem:[#allocation2 + $0xf2] sm:$0xff]  ;;  %v1053_v48 = vpack.c.bf16 %v1021_v44, %v1021_v44  ;;  %872 = vst [vmem:[#allocation3 + $0x6c] sm:$0xf] %v11286_v46  ;;  %v10494_v51 = vld [vmem:[#allocation3 + $0x3c] sm:$0xf]  ;;  %v741_v16 = vpop.f32.mrf.mxu1 }
 0x16f   : > { %v1149_v49 = vpack.c.bf16 %v1117_v45, %v1117_v45  ;;  %989 = vst [vmem:[#allocation3 + $0x2d8] sm:$0xf] %v957_v47  ;;  %v7705_v50 = vld [vmem:[#allocation3 + $0x38] sm:$0xf]  ;;  %v1248_v32 = vpack.c.bf16 %v784_v25, %v784_v25 }
 0x170   : > { %1085 = vst [vmem:[#allocation3 + $0x2dc] sm:$0xf] %v1053_v48 }
 0x171   : > { %1181 = vst [vmem:[#allocation3 + $0x2e0] sm:$0xf] %v1149_v49 }
 0x172   : > { %874 = vst [vmem:[#allocation3 + $0x78] sm:$0xff] %v11286_v46  ;;  %v10497_v55 = vld [vmem:[#allocation3 + $0x50] sm:$0xf0]  ;;  %v7707_v56 = vld [vmem:[#allocation3 + $0x54] sm:$0xf0] }
 0x173   : > { %875 = vst [vmem:[#allocation3 + $0x80] sm:$0xff] %v11286_v46  ;;  %v11589_v57 = vor.u32 %v10497_v55, %v7705_v50  ;;  %v11591_v58 = vor.u32 %v10494_v51, %v7707_v56  ;;  %v10537_v55 = vld [vmem:[#allocation3 + $0x194] sm:$0xf]  ;;  %v652_v56 = vpop.f32.mrf.mxu0 }
 0x174   : > { %876 = vst [vmem:[#allocation3 + $0x88] sm:$0xf] %v11286_v46  ;;  %v653_v19 = vadd.f32 %v11564_v2, %v652_v56 }
 0x175   : > { %12529 = vst [vmem:[#allocation9_spill] sm:$0xff] %v11594_v62  ;;  %2330 = vmatpush.bf16.xpose.msra.mxu2 %v11589_v57  ;;  %2343 = vmatpush.bf16.xpose.msra.mxu3 %v11591_v58 }
 0x176   : > { %12530 = vst [vmem:[#allocation10_spill] sm:$0xff] %v11596_v63  ;;  %v742_v34 = vadd.f32 %v741_v16, %v653_v19 }
 0x177   : > { %878 = vst [vmem:[#allocation3 + $0x94] sm:$0xff] %v11286_v46 }
 0x178   : > { %879 = vst [vmem:[#allocation3 + $0x9c] sm:$0xff] %v11286_v46 }
 0x179   : > { %880 = vst [vmem:[#allocation3 + $0xa4] sm:$0xf] %v11286_v46 }
 0x17a   : > { %881 = vst [vmem:[#allocation3 + $0x428] sm:$0xff] %v11286_v46 }
 0x17b   : > { %882 = vst [vmem:[#allocation3 + $0x430] sm:$0xff] %v11286_v46 }
 0x17c   : > { %883 = vst [vmem:[#allocation3 + $0x438] sm:$0xff] %v11286_v46 }
 0x17d   : > { %2349 = vmatpush.bf16.xpose.msrb.mxu2 %v11594_v62  ;;  %2362 = vmatpush.bf16.xpose.msrb.mxu3 %v11596_v63  ;;  %884 = vst [vmem:[#allocation3 + $0x440] sm:$0xf] %v11286_v46 }
 0x17e   : > { %885 = vst [vmem:[#allocation3 + $0x444] sm:$0xff] %v11286_v46 }
 0x17f   : > { %886 = vst [vmem:[#allocation3 + $0x44c] sm:$0xff] %v11286_v46 }
 0x180   : > { %887 = vst [vmem:[#allocation3 + $0x454] sm:$0xff] %v11286_v46 }
 0x181   : > { %888 = vst [vmem:[#allocation3 + $0x45c] sm:$0xf] %v11286_v46 }
 0x182   : > { %889 = vst [vmem:[#allocation3 + $0x460] sm:$0xff] %v11286_v46 }
 0x183   : > { %890 = vst [vmem:[#allocation3 + $0x468] sm:$0xff] %v11286_v46 }
 0x184   : > { %891 = vst [vmem:[#allocation3 + $0x470] sm:$0xff] %v11286_v46 }
 0x185   : > { %2350 = vmatpush.bf16.xpose.msrb.mxu2 %v11610_v7  ;;  %892 = vst [vmem:[#allocation3 + $0x478] sm:$0xf] %v11286_v46 }
 0x186   : > { %893 = vst [vmem:[#allocation3 + $0x47c] sm:$0xff] %v11286_v46 }
 0x187   : > { %894 = vst [vmem:[#allocation3 + $0x484] sm:$0xff] %v11286_v46 }
 0x188   : > { %895 = vst [vmem:[#allocation3 + $0x48c] sm:$0xff] %v11286_v46 }
 0x189   : > { %896 = vst [vmem:[#allocation3 + $0x494] sm:$0xf] %v11286_v46 }
 0x18a   : > { %897 = vst [vmem:[#allocation3 + $0x498] sm:$0xff] %v11286_v46 }
 0x18b   : > { %898 = vst [vmem:[#allocation3 + $0x4a0] sm:$0xff] %v11286_v46 }
 0x18c   : > { %899 = vst [vmem:[#allocation3 + $0x4a8] sm:$0xff] %v11286_v46 }
 0x18d   : > { %900 = vst [vmem:[#allocation3 + $0x4b0] sm:$0xf] %v11286_v46 }
 0x18e   : > { %901 = vst [vmem:[#allocation3 + $0x4b4] sm:$0xff] %v11286_v46 }
 0x18f   : > { %902 = vst [vmem:[#allocation3 + $0x4bc] sm:$0xff] %v11286_v46 }
 0x190   : > { %903 = vst [vmem:[#allocation3 + $0x4c4] sm:$0xff] %v11286_v46 }
 0x191   : > { %904 = vst [vmem:[#allocation3 + $0x4cc] sm:$0xf] %v11286_v46 }
 0x192   : > { %846 = vst [vmem:[#allocation2 + $0xfb] sm:$0xff] %v782_v17 }
 0x193   : > { %1278 = vst [vmem:[#allocation3 + $0x300] sm:$0xf] %v1246_v21 }
 0x194   : > { %847 = vst [vmem:[#allocation2 + $0x10b] sm:$0xff] %v783_v20 }
 0x195   : > { %1279 = vst [vmem:[#allocation3 + $0x31c] sm:$0xf] %v1247_v26 }
 0x196   : > { %1266 = vst [vmem:[#allocation3 + $0x1b0] sm:$0xf] %v1234_v28 }
 0x197   : > { %848 = vst [vmem:[#allocation2 + $0x113] sm:$0xff] %v784_v25 }
 0x198   : > { %1280 = vst [vmem:[#allocation3 + $0x338] sm:$0xf] %v1248_v32 }
 0x199   : > { %v926_v10 = vld [vmem:[#allocation2 + $0xf8] sm:$0xff]  ;;  %1167 = vst [vmem:[#allocation3 + $0x158] sm:$0xf] %v1135_v35 }
 0x19a   : > { %v958_v43 = vpack.c.bf16 %v926_v10, %v926_v10  ;;  %v1309_v46 = vld [vmem:[#allocation2 + $0xf4] sm:$0xff]  ;;  %v1310_v44 = vld [vmem:[#allocation2 + $0xfc] sm:$0xff]  ;;  %1168 = vst [vmem:[#allocation3 + $0x174] sm:$0xf] %v1136_v38 }
 0x19b   : > { %v1405_v45 = vld [vmem:[#allocation2 + $0xf5] sm:$0xff]  ;;  %v1341_v47 = vpack.c.bf16 %v1309_v46, %v1309_v46  ;;  %v1342_v48 = vpack.c.bf16 %v1310_v44, %v1310_v44  ;;  %v1406_v49 = vld [vmem:[#allocation2 + $0xfd] sm:$0xff]  ;;  %1263 = vst [vmem:[#allocation3 + $0x15c] sm:$0xf] %v1231_v39  ;;  %v927_v54 = vld [vmem:[#allocation2 + $0x108] sm:$0xff]  ;;  %v654_v39 = vpop.f32.mrf.mxu0 }
 0x19c   : > { %v1437_v50 = vpack.c.bf16 %v1405_v45, %v1405_v45  ;;  %v1501_v51 = vld [vmem:[#allocation2 + $0xf6] sm:$0xff]  ;;  %v1502_v52 = vld [vmem:[#allocation2 + $0xfe] sm:$0xff]  ;;  %990 = vst [vmem:[#allocation3 + $0x2f4] sm:$0xf] %v958_v43  ;;  %v1438_v53 = vpack.c.bf16 %v1406_v49, %v1406_v49  ;;  %v1023_v61 = vld [vmem:[#allocation2 + $0x109] sm:$0xff]  ;;  %v959_v8 = vpack.c.bf16 %v927_v54, %v927_v54  ;;  %v655_v43 = vadd.f32 %v11564_v2, %v654_v39  ;;  %v743_v49 = vpop.f32.mrf.mxu1 }
 0x19d   : > { %1373 = vst [vmem:[#allocation3 + $0x2e8] sm:$0xf] %v1341_v47  ;;  %v1533_v60 = vpack.c.bf16 %v1501_v51, %v1501_v51  ;;  %v7883_v0 = vld [vmem:[#allocation3 + $0x1ac] sm:$0xf0]  ;;  %v1534_v1 = vpack.c.bf16 %v1502_v52, %v1502_v52  ;;  %v1055_v12 = vpack.c.bf16 %v1023_v61, %v1023_v61  ;;  %v785_v45 = vmax.f32 %v742_v34, 0.0  ;;  %v1198_v54 = vld [vmem:[#allocation2 + $0x3b] sm:$0xff] }
 0x19e   : > { %1374 = vst [vmem:[#allocation3 + $0x304] sm:$0xf] %v1342_v48  ;;  %v1119_v3 = vld [vmem:[#allocation2 + $0x10a] sm:$0xff]  ;;  %v11635_v4 = vor.u32 %v10537_v55, %v7883_v0  ;;  %v1312_v15 = vld [vmem:[#allocation2 + $0x114] sm:$0xff]  ;;  %v744_v52 = vadd.f32 %v743_v49, %v655_v43 }
 0x19f   : > { %1469 = vst [vmem:[#allocation3 + $0x2ec] sm:$0xf] %v1437_v50  ;;  %v928_v9 = vld [vmem:[#allocation2 + $0x110] sm:$0xff]  ;;  %v1151_v14 = vpack.c.bf16 %v1119_v3, %v1119_v3  ;;  %v1344_v28 = vpack.c.bf16 %v1312_v15, %v1312_v15  ;;  %v1102_v48 = vld [vmem:[#allocation2 + $0x3a] sm:$0xff]  ;;  %v1249_v50 = vpack.c.bf16 %v785_v45, %v785_v45 }
 0x1a0   : > { %1470 = vst [vmem:[#allocation3 + $0x308] sm:$0xf] %v1438_v53  ;;  %2363 = vmatpush.bf16.xpose.msrb.mxu3 %v11635_v4  ;;  %v1311_v13 = vld [vmem:[#allocation2 + $0x10c] sm:$0xff]  ;;  %v7853_v17 = vld [vmem:[#allocation3 + $0x158] sm:$0xf]  ;;  %v960_v20 = vpack.c.bf16 %v928_v9, %v928_v9  ;;  %v1134_v55 = vpack.c.bf16 %v1102_v48, %v1102_v48  ;;  %v786_v61 = vmax.f32 %v744_v52, 0.0 }
 0x1a1   : > { %1565 = vst [vmem:[#allocation3 + $0x2f0] sm:$0xf] %v1533_v60  ;;  %v10533_v18 = vld [vmem:[#allocation3 + $0x170] sm:$0xf0]  ;;  %v1343_v25 = vpack.c.bf16 %v1311_v13, %v1311_v13  ;;  %v1230_v60 = vpack.c.bf16 %v1198_v54, %v1198_v54  ;;  %v1099_v0 = vld [vmem:[#allocation2 + $0x1a] sm:$0xff] }
 0x1a2   : > { %1566 = vst [vmem:[#allocation3 + $0x30c] sm:$0xf] %v1534_v1  ;;  %v1407_v21 = vld [vmem:[#allocation2 + $0x10d] sm:$0xff]  ;;  %v11639_v22 = vor.u32 %v10533_v18, %v7853_v17  ;;  %v1408_v26 = vld [vmem:[#allocation2 + $0x115] sm:$0xff]  ;;  %v1100_v1 = vld [vmem:[#allocation2 + $0x22] sm:$0xff] }
 0x1a3   : > { %991 = vst [vmem:[#allocation3 + $0x310] sm:$0xf] %v959_v8  ;;  %v1503_v29 = vld [vmem:[#allocation2 + $0x10e] sm:$0xff]  ;;  %v1439_v31 = vpack.c.bf16 %v1407_v21, %v1407_v21  ;;  %v1504_v32 = vld [vmem:[#allocation2 + $0x116] sm:$0xff]  ;;  %v1440_v35 = vpack.c.bf16 %v1408_v26, %v1408_v26  ;;  %v657_v3 = vpop.f32.mrf.mxu0  ;;  %v1250_v8 = vpack.c.bf16 %v786_v61, %v786_v61  ;;  %v1132_v13 = vpack.c.bf16 %v1100_v1, %v1100_v1  ;;  %v1196_v17 = vld [vmem:[#allocation2 + $0x23] sm:$0xff] }
 0x1a4   : > { %1087 = vst [vmem:[#allocation3 + $0x314] sm:$0xf] %v1055_v12  ;;  %2351 = vmatpush.bf16.xpose.msrb.mxu2 %v11639_v22  ;;  %v1200_v38 = vld [vmem:[#allocation2 + $0x53] sm:$0xff]  ;;  %v1535_v10 = vpack.c.bf16 %v1503_v29, %v1503_v29  ;;  %v1536_v46 = vpack.c.bf16 %v1504_v32, %v1504_v32  ;;  %v658_v9 = vadd.f32 %v11564_v2, %v657_v3  ;;  %v1195_v15 = vld [vmem:[#allocation2 + $0x1b] sm:$0xff]  ;;  %v746_v18 = vpop.f32.mrf.mxu1 }
 0x1a5   : > { %1183 = vst [vmem:[#allocation3 + $0x318] sm:$0xf] %v1151_v14  ;;  %v1232_v44 = vpack.c.bf16 %v1200_v38, %v1200_v38  ;;  %v1101_v47 = vld [vmem:[#allocation2 + $0x32] sm:$0xff]  ;;  %v1131_v12 = vpack.c.bf16 %v1099_v0, %v1099_v0  ;;  %v10530_v16 = vld [vmem:[#allocation3 + $0x15c] sm:$0xf]  ;;  %v1227_v32 = vpack.c.bf16 %v1195_v15, %v1195_v15  ;;  %v1228_v38 = vpack.c.bf16 %v1196_v17, %v1196_v17  ;;  %v1097_v3 = vld [vmem:[#allocation2 + $0x2] sm:$0xff] }
 0x1a6   : > { %992 = vst [vmem:[#allocation3 + $0x32c] sm:$0xf] %v960_v20  ;;  %v1197_v51 = vld [vmem:[#allocation2 + $0x33] sm:$0xff]  ;;  %v1133_v53 = vpack.c.bf16 %v1101_v47, %v1101_v47  ;;  %v747_v26 = vadd.f32 %v746_v18, %v658_v9 }
 0x1a7   : > { %1375 = vst [vmem:[#allocation3 + $0x320] sm:$0xf] %v1343_v25  ;;  %v1229_v56 = vpack.c.bf16 %v1197_v51, %v1197_v51 }
 0x1a8   : > { %1376 = vst [vmem:[#allocation3 + $0x33c] sm:$0xf] %v1344_v28 }
 0x1a9   : > { %1471 = vst [vmem:[#allocation3 + $0x324] sm:$0xf] %v1439_v31 }
 0x1aa   : > { %1472 = vst [vmem:[#allocation3 + $0x340] sm:$0xf] %v1440_v35 }
 0x1ab   : > { %1567 = vst [vmem:[#allocation3 + $0x328] sm:$0xf] %v1535_v10  ;;  %v787_v10 = vmax.f32 %v747_v26, 0.0 }
 0x1ac   : > { %1568 = vst [vmem:[#allocation3 + $0x344] sm:$0xf] %v1536_v46  ;;  %v748_v18 = vpop.f32.mrf.mxu1 }
 0x1ad   : > { %1264 = vst [vmem:[#allocation3 + $0x178] sm:$0xf] %v1232_v44  ;;  %v1251_v17 = vpack.c.bf16 %v787_v10, %v787_v10 }
 0x1ae   : > { %849 = vst [vmem:[#allocation2 + $0x123] sm:$0xff] %v785_v45 }
 0x1af   : > { %1281 = vst [vmem:[#allocation3 + $0x354] sm:$0xf] %v1249_v50 }
 0x1b0   : > { %1165 = vst [vmem:[#allocation3 + $0x120] sm:$0xf] %v1133_v53 }
 0x1b1   : > { %1166 = vst [vmem:[#allocation3 + $0x13c] sm:$0xf] %v1134_v55 }
 0x1b2   : > { %1261 = vst [vmem:[#allocation3 + $0x124] sm:$0xf] %v1229_v56 }
 0x1b3   : > { %1262 = vst [vmem:[#allocation3 + $0x140] sm:$0xf] %v1230_v60  ;;  %v659_v60 = vpop.f32.mrf.mxu0 }
 0x1b4   : > { %v7855_v14 = vld [vmem:[#allocation3 + $0x174] sm:$0xf0]  ;;  %850 = vst [vmem:[#allocation2 + $0x12b] sm:$0xff] %v786_v61 }
 0x1b5   : > { %v11644_v19 = vor.u32 %v10530_v16, %v7855_v14  ;;  %v929_v20 = vld [vmem:[#allocation2 + $0x120] sm:$0xff]  ;;  %1282 = vst [vmem:[#allocation3 + $0x370] sm:$0xf] %v1250_v8  ;;  %v7699_v8 = vld [vmem:[%s12475_s4 + $0x1c] sm:$0xff] }
 0x1b6   : > { %v1025_v21 = vld [vmem:[#allocation2 + $0x121] sm:$0xff]  ;;  %v961_v28 = vpack.c.bf16 %v929_v20, %v929_v20  ;;  %1163 = vst [vmem:[#allocation3 + $0xe8] sm:$0xf] %v1131_v12  ;;  %v1726_v15 = vunpack.c.l.b16 %v7699_v8  ;;  %v1727_v16 = vunpack.c.h.b16 %v7699_v8  ;;  %v1098_v20 = vld [vmem:[#allocation2 + $0xa] sm:$0xff] }
 0x1b7   : > { %v1121_v25 = vld [vmem:[#allocation2 + $0x122] sm:$0xff]  ;;  %v1057_v29 = vpack.c.bf16 %v1025_v21, %v1025_v21  ;;  %2364 = vmatpush.bf16.xpose.msrb.mxu3 %v11644_v19  ;;  %1164 = vst [vmem:[#allocation3 + $0x104] sm:$0xf] %v1132_v13  ;;  %v660_v13 = vadd.f32 %v11564_v2, %v659_v60  ;;  %v1129_v21 = vpack.c.bf16 %v1097_v3, %v1097_v3 }
 0x1b8   : > { %v1153_v31 = vpack.c.bf16 %v1121_v25, %v1121_v25  ;;  %993 = vst [vmem:[#allocation3 + $0x348] sm:$0xf] %v961_v28  ;;  %v7825_v34 = vld [vmem:[#allocation3 + $0x120] sm:$0xf]  ;;  %v10526_v35 = vld [vmem:[#allocation3 + $0x138] sm:$0xf0]  ;;  %v11659_v26 = vpack.c.b16 %v1726_v15, %v1726_v15  ;;  %v11661_v28 = vpack.c.b16 %v1727_v16, %v1727_v16 }
 0x1b9   : > { %1089 = vst [vmem:[#allocation3 + $0x34c] sm:$0xf] %v1057_v29  ;;  %v11647_v39 = vor.u32 %v10526_v35, %v7825_v34  ;;  %v10523_v46 = vld [vmem:[#allocation3 + $0x124] sm:$0xf]  ;;  %v749_v35 = vadd.f32 %v748_v18, %v660_v13  ;;  %v10502_v13 = vld [vmem:[#allocation3 + $0x7c] sm:$0xf] }
 0x1ba   : > { %1185 = vst [vmem:[#allocation3 + $0x350] sm:$0xf] %v1153_v31  ;;  %v7827_v43 = vld [vmem:[#allocation3 + $0x13c] sm:$0xf0]  ;;  %2331 = vmatmul.bf16.vlgmr.msra.gmra.mxu2 %v11659_v26  ;;  %2344 = vmatmul.bf16.vlgmr.msra.gmra.mxu3 %v11661_v28 }
 0x1bb   : > { %2352 = vmatpush.bf16.xpose.msrb.mxu2 %v11647_v39  ;;  %v930_v44 = vld [vmem:[#allocation2 + $0x128] sm:$0xff]  ;;  %1259 = vst [vmem:[#allocation3 + $0xec] sm:$0xf] %v1227_v32  ;;  %v11650_v50 = vor.u32 %v10523_v46, %v7827_v43 }
 0x1bc   : > { %v962_v45 = vpack.c.bf16 %v930_v44, %v930_v44  ;;  %v1313_v47 = vld [vmem:[#allocation2 + $0x124] sm:$0xff]  ;;  %v1314_v48 = vld [vmem:[#allocation2 + $0x12c] sm:$0xff]  ;;  %1260 = vst [vmem:[#allocation3 + $0x108] sm:$0xf] %v1228_v38 }
 0x1bd   : > { %v1409_v49 = vld [vmem:[#allocation2 + $0x125] sm:$0xff]  ;;  %v1345_v51 = vpack.c.bf16 %v1313_v47, %v1313_v47  ;;  %v1346_v52 = vpack.c.bf16 %v1314_v48, %v1314_v48  ;;  %v1410_v53 = vld [vmem:[#allocation2 + $0x12d] sm:$0xff]  ;;  %851 = vst [vmem:[#allocation2 + $0x13b] sm:$0xff] %v787_v10 }
 0x1be   : > { %v1441_v54 = vpack.c.bf16 %v1409_v49, %v1409_v49  ;;  %v1505_v55 = vld [vmem:[#allocation2 + $0x126] sm:$0xff]  ;;  %v1506_v56 = vld [vmem:[#allocation2 + $0x12e] sm:$0xff]  ;;  %994 = vst [vmem:[#allocation3 + $0x364] sm:$0xf] %v962_v45  ;;  %v1442_v61 = vpack.c.bf16 %v1410_v53, %v1410_v53  ;;  %v1130_v45 = vpack.c.bf16 %v1098_v20, %v1098_v20  ;;  %v788_v49 = vmax.f32 %v749_v35, 0.0 }
 0x1bf   : > { %v10519_v0 = vld [vmem:[#allocation3 + $0x100] sm:$0xf0]  ;;  %2365 = vmatpush.bf16.xpose.msrb.mxu3 %v11650_v50  ;;  %1377 = vst [vmem:[#allocation3 + $0x358] sm:$0xf] %v1345_v51  ;;  %v1537_v1 = vpack.c.bf16 %v1505_v55, %v1505_v55  ;;  %v1538_v9 = vpack.c.bf16 %v1506_v56, %v1506_v56  ;;  %v7797_v12 = vld [vmem:[#allocation3 + $0xe8] sm:$0xf] }
 0x1c0   : > { %1378 = vst [vmem:[#allocation3 + $0x374] sm:$0xf] %v1346_v52  ;;  %v11657_v14 = vor.u32 %v10519_v0, %v7797_v12  ;;  %v1193_v25 = vld [vmem:[#allocation2 + $0x3] sm:$0xff]  ;;  %v1194_v44 = vld [vmem:[#allocation2 + $0xb] sm:$0xff]  ;;  %v1252_v51 = vpack.c.bf16 %v788_v49, %v788_v49  ;;  %v7741_v0 = vld [vmem:[#allocation3 + $0x78] sm:$0xf] }
 0x1c1   : > { %1473 = vst [vmem:[#allocation3 + $0x35c] sm:$0xf] %v1441_v54  ;;  %v1225_v47 = vpack.c.bf16 %v1193_v25, %v1193_v25  ;;  %v1226_v48 = vpack.c.bf16 %v1194_v44, %v1194_v44  ;;  %v1026_v35 = vld [vmem:[#allocation2 + $0x129] sm:$0xff] }
 0x1c2   : > { %1474 = vst [vmem:[#allocation3 + $0x378] sm:$0xf] %v1442_v61  ;;  %v10516_v29 = vld [vmem:[#allocation3 + $0xec] sm:$0xf] }
 0x1c3   : > { %1569 = vst [vmem:[#allocation3 + $0x360] sm:$0xf] %v1537_v1  ;;  %2353 = vmatpush.bf16.xpose.msrb.mxu2 %v11657_v14  ;;  %v7799_v2 = vld [vmem:[#allocation3 + $0x104] sm:$0xf0]  ;;  %v10505_v1 = vld [vmem:[#allocation3 + $0x90] sm:$0xf0] }
 0x1c4   : > { %1570 = vst [vmem:[#allocation3 + $0x37c] sm:$0xf] %v1538_v9  ;;  %v931_v31 = vld [vmem:[#allocation2 + $0x138] sm:$0xff]  ;;  %v11666_v38 = vor.u32 %v10516_v29, %v7799_v2 }
 0x1c5   : > { %v1027_v32 = vld [vmem:[#allocation2 + $0x139] sm:$0xff]  ;;  %v963_v10 = vpack.c.bf16 %v931_v31, %v931_v31  ;;  %1283 = vst [vmem:[#allocation3 + $0x38c] sm:$0xf] %v1251_v17 }
 0x1c6   : > { %v1123_v34 = vld [vmem:[#allocation2 + $0x13a] sm:$0xff]  ;;  %v1059_v43 = vpack.c.bf16 %v1027_v32, %v1027_v32  ;;  %1161 = vst [vmem:[#allocation3 + $0xb0] sm:$0xf] %v1129_v21 }
 0x1c7   : > { %v1155_v46 = vpack.c.bf16 %v1123_v34, %v1123_v34  ;;  %2366 = vmatpush.bf16.xpose.msrb.mxu3 %v11666_v38  ;;  %995 = vst [vmem:[#allocation3 + $0x380] sm:$0xf] %v963_v10  ;;  %v7743_v2 = vld [vmem:[#allocation3 + $0x94] sm:$0xf0]  ;;  %v11675_v34 = vor.u32 %v10505_v1, %v7741_v0 }
 0x1c8   : > { %1091 = vst [vmem:[#allocation3 + $0x384] sm:$0xf] %v1059_v43  ;;  %v1122_v43 = vld [vmem:[#allocation2 + $0x12a] sm:$0xff] }
 0x1c9   : > { %1187 = vst [vmem:[#allocation3 + $0x388] sm:$0xf] %v1155_v46  ;;  %v11677_v46 = vor.u32 %v10502_v13, %v7743_v2  ;;  %v10545_v13 = vld [vmem:[#allocation3 + $0x1d4] sm:$0xf] }
 0x1ca   : > { %1162 = vst [vmem:[#allocation3 + $0xcc] sm:$0xf] %v1130_v45 }
 0x1cb   : > { %1257 = vst [vmem:[#allocation3 + $0xb4] sm:$0xf] %v1225_v47  ;;  %v1024_v47 = vld [vmem:[#allocation2 + $0x111] sm:$0xff] }
 0x1cc   : > { %1258 = vst [vmem:[#allocation3 + $0xd0] sm:$0xf] %v1226_v48  ;;  %v1120_v48 = vld [vmem:[#allocation2 + $0x112] sm:$0xff]  ;;  %v1056_v0 = vpack.c.bf16 %v1024_v47, %v1024_v47 }
 0x1cd   : > { %852 = vst [vmem:[#allocation2 + $0x143] sm:$0xff] %v788_v49  ;;  %v7769_v52 = vld [vmem:[#allocation3 + $0xb0] sm:$0xf]  ;;  %v1058_v49 = vpack.c.bf16 %v1026_v35, %v1026_v35  ;;  %v1152_v1 = vpack.c.bf16 %v1120_v48, %v1120_v48  ;;  %v10541_v48 = vld [vmem:[#allocation3 + $0x1b0] sm:$0xf0] }
 0x1ce   : > { %1284 = vst [vmem:[#allocation3 + $0x3a8] sm:$0xf] %v1252_v51  ;;  %v7713_v51 = vld [vmem:[#allocation3 + $0x40] sm:$0xf] }
 0x1cf   : > { %1090 = vst [vmem:[#allocation3 + $0x368] sm:$0xf] %v1058_v49  ;;  %v10538_v49 = vld [vmem:[#allocation3 + $0x19c] sm:$0xf] }
 0x1d0   : > { %1088 = vst [vmem:[#allocation3 + $0x330] sm:$0xf] %v1056_v0 }
 0x1d1   : > { %v10512_v53 = vld [vmem:[#allocation3 + $0xc8] sm:$0xf0]  ;;  %1184 = vst [vmem:[#allocation3 + $0x334] sm:$0xf] %v1152_v1  ;;  %v1020_v1 = vld [vmem:[#allocation2 + $0xe1] sm:$0xff] }
 0x1d2   : > { %v11669_v54 = vor.u32 %v10512_v53, %v7769_v52  ;;  %v10509_v55 = vld [vmem:[#allocation3 + $0xb4] sm:$0xf]  ;;  %v10498_v52 = vld [vmem:[#allocation3 + $0x58] sm:$0xf0]  ;;  %v1154_v53 = vpack.c.bf16 %v1122_v43, %v1122_v43  ;;  %v7889_v43 = vld [vmem:[#allocation3 + $0x198] sm:$0xf] }
 0x1d3   : > { %v7771_v56 = vld [vmem:[#allocation3 + $0xcc] sm:$0xf0]  ;;  %v11701_v0 = vor.u32 %v10541_v48, %v7889_v43 }
 0x1d4   : > { %2354 = vmatpush.bf16.xpose.msrb.mxu2 %v11669_v54  ;;  %v11672_v60 = vor.u32 %v10509_v55, %v7771_v56  ;;  %v932_v61 = vld [vmem:[#allocation2 + $0x140] sm:$0xff]  ;;  %1186 = vst [vmem:[#allocation3 + $0x36c] sm:$0xf] %v1154_v53  ;;  %v10592_v53 = vld [vmem:[#allocation3 + $0x34c] sm:$0xf] }
 0x1d5   : > { %v964_v3 = vpack.c.bf16 %v932_v61, %v932_v61  ;;  %v1315_v8 = vld [vmem:[#allocation2 + $0x13c] sm:$0xff]  ;;  %v1316_v9 = vld [vmem:[#allocation2 + $0x144] sm:$0xff]  ;;  %v7917_v61 = vld [vmem:[#allocation3 + $0x1d0] sm:$0xf]  ;;  %12533 = vst [vmem:[#allocation13_spill] sm:$0xff] %v11701_v0 }
 0x1d6   : > { %v1411_v12 = vld [vmem:[#allocation2 + $0x13d] sm:$0xff]  ;;  %2367 = vmatpush.bf16.xpose.msrb.mxu3 %v11672_v60  ;;  %v1347_v15 = vpack.c.bf16 %v1315_v8, %v1315_v8  ;;  %v1348_v16 = vpack.c.bf16 %v1316_v9, %v1316_v9  ;;  %v1412_v17 = vld [vmem:[#allocation2 + $0x145] sm:$0xff] }
 0x1d7   : > { %v1443_v18 = vpack.c.bf16 %v1411_v12, %v1411_v12  ;;  %v1507_v20 = vld [vmem:[#allocation2 + $0x13e] sm:$0xff]  ;;  %v1508_v21 = vld [vmem:[#allocation2 + $0x146] sm:$0xff]  ;;  %996 = vst [vmem:[#allocation3 + $0x39c] sm:$0xf] %v964_v3  ;;  %v1444_v29 = vpack.c.bf16 %v1412_v17, %v1412_v17  ;;  %v11681_v3 = vor.u32 %v10498_v52, %v7713_v51  ;;  %v7891_v51 = vld [vmem:[#allocation3 + $0x1b4] sm:$0xf0] }
 0x1d8   : > { %v1028_v25 = vld [vmem:[#allocation2 + $0x141] sm:$0xff]  ;;  %1379 = vst [vmem:[#allocation3 + $0x390] sm:$0xf] %v1347_v15  ;;  %v1539_v32 = vpack.c.bf16 %v1507_v20, %v1507_v20  ;;  %v1540_v10 = vpack.c.bf16 %v1508_v21, %v1508_v21  ;;  %v10548_v8 = vld [vmem:[#allocation3 + $0x1e8] sm:$0xf0]  ;;  %v1022_v20 = vld [vmem:[#allocation2 + $0xf9] sm:$0xff] }
 0x1d9   : > { %v1124_v31 = vld [vmem:[#allocation2 + $0x142] sm:$0xff]  ;;  %1380 = vst [vmem:[#allocation3 + $0x3ac] sm:$0xf] %v1348_v16  ;;  %v1060_v44 = vpack.c.bf16 %v1028_v25, %v1028_v25  ;;  %v7919_v15 = vld [vmem:[#allocation3 + $0x1ec] sm:$0xf0]  ;;  %v11688_v16 = vor.u32 %v10548_v8, %v7917_v61  ;;  %v1118_v21 = vld [vmem:[#allocation2 + $0xfa] sm:$0xff] }
 0x1da   : > { %1475 = vst [vmem:[#allocation3 + $0x394] sm:$0xf] %v1443_v18  ;;  %v1156_v45 = vpack.c.bf16 %v1124_v31, %v1124_v31  ;;  %v10495_v55 = vld [vmem:[#allocation3 + $0x44] sm:$0xf]  ;;  %v7715_v56 = vld [vmem:[#allocation3 + $0x5c] sm:$0xf0]  ;;  %v1150_v47 = vpack.c.bf16 %v1118_v21, %v1118_v21 }
 0x1db   : > { %1476 = vst [vmem:[#allocation3 + $0x3b0] sm:$0xf] %v1444_v29  ;;  %v7700_v9 = vld [vmem:[%s12475_s4 + $0x24] sm:$0xff]  ;;  %v11686_v12 = vor.u32 %v10495_v55, %v7715_v56  ;;  %v10599_v18 = vld [vmem:[#allocation3 + $0x384] sm:$0xf]  ;;  %v11692_v29 = vor.u32 %v10545_v13, %v7919_v15  ;;  %v11707_v13 = vor.u32 %v10538_v49, %v7891_v51 }
 0x1dc   : > { %1571 = vst [vmem:[#allocation3 + $0x398] sm:$0xf] %v1539_v32  ;;  %2355 = vmatpush.bf16.xpose.msrb.mxu2 %v11675_v34  ;;  %v1728_v17 = vunpack.c.l.b16 %v7700_v9  ;;  %v8133_v25 = vld [vmem:[#allocation3 + $0x388] sm:$0xf]  ;;  %v1729_v2 = vunpack.c.h.b16 %v7700_v9  ;;  %v8105_v56 = vld [vmem:[#allocation3 + $0x350] sm:$0xf] }
 0x1dd   : > { %1572 = vst [vmem:[#allocation3 + $0x3b4] sm:$0xf] %v1540_v10  ;;  %v8099_v55 = vld [vmem:[#allocation3 + $0x364] sm:$0xf0]  ;;  %v10596_v61 = vld [vmem:[#allocation3 + $0x368] sm:$0xf0] }
 0x1de   : > { %2368 = vmatpush.bf16.xpose.msrb.mxu3 %v11677_v46  ;;  %1092 = vst [vmem:[#allocation3 + $0x3a0] sm:$0xf] %v1060_v44  ;;  %v11696_v10 = vpack.c.b16 %v1728_v17, %v1728_v17  ;;  %v11698_v52 = vpack.c.b16 %v1729_v2, %v1729_v2  ;;  %v1116_v8 = vld [vmem:[#allocation2 + $0xe2] sm:$0xff]  ;;  %v11703_v9 = vor.u32 %v10592_v53, %v8099_v55  ;;  %v10534_v21 = vld [vmem:[#allocation3 + $0x178] sm:$0xf0] }
 0x1df   : > { %1188 = vst [vmem:[#allocation3 + $0x3a4] sm:$0xf] %v1156_v45  ;;  %v1054_v45 = vpack.c.bf16 %v1022_v20, %v1022_v20  ;;  %v11709_v15 = vor.u32 %v10596_v61, %v8105_v56  ;;  %v1052_v17 = vpack.c.bf16 %v1020_v1, %v1020_v1  ;;  %v7861_v20 = vld [vmem:[#allocation3 + $0x160] sm:$0xf]  ;;  %v8071_v43 = vld [vmem:[#allocation3 + $0x32c] sm:$0xf0] }
 0x1e0   : > { %12531 = vst [vmem:[#allocation11_spill] sm:$0xff] %v11688_v16  ;;  %v7863_v2 = vld [vmem:[#allocation3 + $0x17c] sm:$0xf0]  ;;  %v7833_v56 = vld [vmem:[#allocation3 + $0x128] sm:$0xf] }
 0x1e1   : > { %12532 = vst [vmem:[#allocation12_spill] sm:$0xff] %v11692_v29  ;;  %v10527_v61 = vld [vmem:[#allocation3 + $0x140] sm:$0xf0]  ;;  %v10524_v1 = vld [vmem:[#allocation3 + $0x12c] sm:$0xf] }
 0x1e2   : > { %1086 = vst [vmem:[#allocation3 + $0x2f8] sm:$0xf] %v1054_v45  ;;  %v8077_v45 = vld [vmem:[#allocation3 + $0x318] sm:$0xf] }
 0x1e3   : > { %1182 = vst [vmem:[#allocation3 + $0x2fc] sm:$0xf] %v1150_v47  ;;  %v10589_v47 = vld [vmem:[#allocation3 + $0x330] sm:$0xf0] }
 0x1e4   : > { %2356 = vmatpush.bf16.xpose.msrb.mxu2 %v11681_v3  ;;  %12534 = vst [vmem:[#allocation14_spill] sm:$0xff] %v11703_v9  ;;  %v11722_v51 = vor.u32 %v10589_v47, %v8077_v45  ;;  %v7805_v45 = vld [vmem:[#allocation3 + $0xf0] sm:$0xf]  ;;  %v10520_v47 = vld [vmem:[#allocation3 + $0x108] sm:$0xf0] }
 0x1e5   : > { %v8127_v31 = vld [vmem:[#allocation3 + $0x39c] sm:$0xf0]  ;;  %12535 = vst [vmem:[#allocation15_spill] sm:$0xff] %v11707_v13 }
 0x1e6   : > { %2369 = vmatpush.bf16.xpose.msrb.mxu3 %v11686_v12  ;;  %v8130_v32 = vor.u32 %v10599_v18, %v8127_v31  ;;  %v10603_v35 = vld [vmem:[#allocation3 + $0x3a0] sm:$0xf0]  ;;  %12536 = vst [vmem:[#allocation16_spill] sm:$0xff] %v11709_v15  ;;  %v1148_v18 = vpack.c.bf16 %v1116_v8, %v1116_v8  ;;  %v1018_v31 = vld [vmem:[#allocation2 + $0xc9] sm:$0xff] }
 0x1e7   : > { %v8134_v44 = vor.u32 %v10603_v35, %v8133_v25  ;;  %1084 = vst [vmem:[#allocation3 + $0x2c0] sm:$0xf] %v1052_v17  ;;  %v10531_v25 = vld [vmem:[#allocation3 + $0x164] sm:$0xf]  ;;  %v10585_v35 = vld [vmem:[#allocation3 + $0x314] sm:$0xf]  ;;  %v1050_v53 = vpack.c.bf16 %v1018_v31, %v1018_v31  ;;  %v11726_v17 = vor.u32 %v10527_v61, %v7833_v56 }
 0x1e8   : > { %2427 = vmatpush.bf16.xpose.msrb.mxu1 %v8130_v32  ;;  %1180 = vst [vmem:[#allocation3 + $0x2c4] sm:$0xf] %v1148_v18  ;;  %v11714_v32 = vor.u32 %v10534_v21, %v7861_v20  ;;  %v11717_v48 = vor.u32 %v10531_v25, %v7863_v2  ;;  %v11719_v49 = vor.u32 %v10585_v35, %v8071_v43  ;;  %v7835_v8 = vld [vmem:[#allocation3 + $0x144] sm:$0xf0]  ;;  %v10578_v18 = vld [vmem:[#allocation3 + $0x2dc] sm:$0xf] }
 0x1e9   : > { %2440 = vmatpush.bf16.xpose.msrb.mxu0 %v8134_v44  ;;  %v1114_v44 = vld [vmem:[#allocation2 + $0xca] sm:$0xff]  ;;  %12540 = vst [vmem:[#allocation20_spill] sm:$0xff] %v11722_v51  ;;  %v8043_v20 = vld [vmem:[#allocation3 + $0x2f4] sm:$0xf0]  ;;  %v8049_v21 = vld [vmem:[#allocation3 + $0x2e0] sm:$0xf]  ;;  %v11729_v31 = vor.u32 %v10524_v1, %v7835_v8 }
 0x1ea   : > { %12537 = vst [vmem:[#allocation17_spill] sm:$0xff] %v11714_v32  ;;  %v1146_v55 = vpack.c.bf16 %v1114_v44, %v1114_v44  ;;  %v10582_v25 = vld [vmem:[#allocation3 + $0x2f8] sm:$0xf0]  ;;  %v1016_v2 = vld [vmem:[#allocation2 + $0xb1] sm:$0xff]  ;;  %v11731_v43 = vor.u32 %v10578_v18, %v8043_v20  ;;  %v10571_v1 = vld [vmem:[#allocation3 + $0x2a4] sm:$0xf] }
 0x1eb   : > { %2357 = vmatmul.bf16.vlgmr.msrb.gmra.mxu2 %v11696_v10  ;;  %12538 = vst [vmem:[#allocation18_spill] sm:$0xff] %v11717_v48  ;;  %v1112_v35 = vld [vmem:[#allocation2 + $0xb2] sm:$0xff]  ;;  %v11734_v44 = vor.u32 %v10582_v25, %v8049_v21  ;;  %v8021_v18 = vld [vmem:[#allocation3 + $0x2a8] sm:$0xf]  ;;  %v1110_v25 = vld [vmem:[#allocation2 + $0x9a] sm:$0xff] }
 0x1ec   : > { %2375 = vmatpush.bf16.xpose.msra.mxu2 %v11688_v16  ;;  %12539 = vst [vmem:[#allocation19_spill] sm:$0xff] %v11719_v49  ;;  %v10517_v56 = vld [vmem:[#allocation3 + $0xf4] sm:$0xf]  ;;  %v7807_v61 = vld [vmem:[#allocation3 + $0x10c] sm:$0xf0]  ;;  %v1014_v21 = vld [vmem:[#allocation2 + $0x99] sm:$0xff] }
 0x1ed   : > { %2370 = vmatmul.bf16.vlgmr.msrb.gmra.mxu3 %v11698_v52  ;;  %1082 = vst [vmem:[#allocation3 + $0x288] sm:$0xf] %v1050_v53  ;;  %v1048_v53 = vpack.c.bf16 %v1016_v2, %v1016_v2  ;;  %v11741_v62 = vor.u32 %v10517_v56, %v7807_v61  ;;  %v10564_v56 = vld [vmem:[#allocation3 + $0x26c] sm:$0xf]  ;;  %v7937_v16 = vld [vmem:[#allocation3 + $0x200] sm:$0xf] }
 0x1ee   : > { %2388 = vmatpush.bf16.xpose.msra.mxu3 %v11692_v29  ;;  %1178 = vst [vmem:[#allocation3 + $0x28c] sm:$0xf] %v1146_v55  ;;  %v1144_v55 = vpack.c.bf16 %v1112_v35, %v1112_v35  ;;  %v11738_v29 = vor.u32 %v10520_v47, %v7805_v45  ;;  %v8015_v8 = vld [vmem:[#allocation3 + $0x2bc] sm:$0xf0]  ;;  %v10513_v45 = vld [vmem:[#allocation3 + $0xd0] sm:$0xf0]  ;;  %v1046_v47 = vpack.c.bf16 %v1014_v21, %v1014_v21 }
 0x1ef   : > { %12541 = vst [vmem:[#allocation21_spill] sm:$0xff] %v11726_v17  ;;  %v10575_v20 = vld [vmem:[#allocation3 + $0x2c0] sm:$0xf0]  ;;  %v11743_v2 = vor.u32 %v10571_v1, %v8015_v8  ;;  %v7993_v1 = vld [vmem:[#allocation3 + $0x270] sm:$0xf] }
 0x1f0   : > { %2428 = vmatpush.bf16.xpose.msrb.mxu1 %v11703_v9  ;;  %12542 = vst [vmem:[#allocation22_spill] sm:$0xff] %v11729_v31  ;;  %v11746_v35 = vor.u32 %v10575_v20, %v8021_v18  ;;  %v7749_v20 = vld [vmem:[#allocation3 + $0x80] sm:$0xf]  ;;  %v10605_v9 = vld [vmem:[#allocation3 + $0x3b0] sm:$0xf0] }
 0x1f1   : > { %2441 = vmatpush.bf16.xpose.msrb.mxu0 %v11709_v15  ;;  %12543 = vst [vmem:[#allocation23_spill] sm:$0xff] %v11731_v43  ;;  %v8143_v15 = vld [vmem:[#allocation3 + $0x3ac] sm:$0xf0] }
 0x1f2   : > { %12544 = vst [vmem:[#allocation24_spill] sm:$0xff] %v11734_v44 }
 0x1f3   : > { %1080 = vst [vmem:[#allocation3 + $0x250] sm:$0xf] %v1048_v53  ;;  %v7777_v53 = vld [vmem:[#allocation3 + $0xb8] sm:$0xf] }
 0x1f4   : > { %2376 = vmatpush.bf16.xpose.msra.mxu2 %v11701_v0  ;;  %12545 = vst [vmem:[#allocation25_spill] sm:$0xff] %v11738_v29  ;;  %v7987_v61 = vld [vmem:[#allocation3 + $0x284] sm:$0xf0] }
 0x1f5   : > { %1176 = vst [vmem:[#allocation3 + $0x254] sm:$0xf] %v1144_v55  ;;  %v1142_v55 = vpack.c.bf16 %v1110_v25, %v1110_v25  ;;  %v10568_v8 = vld [vmem:[#allocation3 + $0x288] sm:$0xf0]  ;;  %v11755_v21 = vor.u32 %v10564_v56, %v7987_v61  ;;  %v7721_v56 = vld [vmem:[#allocation3 + $0x48] sm:$0xf] }
 0x1f6   : > { %2389 = vmatpush.bf16.xpose.msra.mxu3 %v11707_v13  ;;  %12546 = vst [vmem:[#allocation26_spill] sm:$0xff] %v11741_v62  ;;  %v11758_v25 = vor.u32 %v10568_v8, %v7993_v1  ;;  %v10499_v61 = vld [vmem:[#allocation3 + $0x60] sm:$0xf0] }
 0x1f7   : > { %12547 = vst [vmem:[#allocation27_spill] sm:$0xff] %v11743_v2 }
 0x1f8   : > { %2429 = vmatpush.bf16.xpose.msrb.mxu1 %v11719_v49  ;;  %12548 = vst [vmem:[#allocation28_spill] sm:$0xff] %v11746_v35 }
 0x1f9   : > { %2442 = vmatpush.bf16.xpose.msrb.mxu0 %v11722_v51  ;;  %1078 = vst [vmem:[#allocation3 + $0x218] sm:$0xf] %v1046_v47  ;;  %v10503_v47 = vld [vmem:[#allocation3 + $0x84] sm:$0xf] }
 0x1fa   : > { %1174 = vst [vmem:[#allocation3 + $0x21c] sm:$0xf] %v1142_v55 }
 0x1fb   : > { %12551 = vst [vmem:[#allocation31_spill] sm:$0xff] %v11755_v21 }
 0x1fc   : > { %2377 = vmatpush.bf16.xpose.msra.mxu2 %v11714_v32  ;;  %12552 = vst [vmem:[#allocation32_spill] sm:$0xff] %v11758_v25  ;;  %v10561_v51 = vld [vmem:[#allocation3 + $0x250] sm:$0xf0]  ;;  %v7947_v32 = vld [vmem:[#allocation3 + $0x224] sm:$0xf0] }
 0x1fe   : > { %2390 = vmatpush.bf16.xpose.msra.mxu3 %v11717_v48  ;;  %v8135_v48 = vld [vmem:[#allocation3 + $0x3a4] sm:$0xf0] }
 0x200   : > { %2430 = vmatpush.bf16.xpose.msrb.mxu1 %v11731_v43  ;;  %v11750_v43 = vor.u32 %v10513_v45, %v7777_v53  ;;  %v7751_v53 = vld [vmem:[#allocation3 + $0x9c] sm:$0xf0] }
 0x201   : > { %2443 = vmatpush.bf16.xpose.msrb.mxu0 %v11734_v44  ;;  %v7779_v44 = vld [vmem:[#allocation3 + $0xd4] sm:$0xf0]  ;;  %v11764_v55 = vor.u32 %v10503_v47, %v7751_v53  ;;  %v11773_v47 = vor.u32 %v10499_v61, %v7721_v56  ;;  %v10554_v56 = vld [vmem:[#allocation3 + $0x218] sm:$0xf0]  ;;  %v10601_v61 = vld [vmem:[#allocation3 + $0x394] sm:$0xf] }
 0x202   : > { %12549 = vst [vmem:[#allocation29_spill] sm:$0xff] %v11750_v43  ;;  %v11753_v18 = vor.u32 %v10510_v30, %v7779_v44  ;;  %v10557_v30 = vld [vmem:[#allocation3 + $0x234] sm:$0xf]  ;;  %v7959_v44 = vld [vmem:[#allocation3 + $0x24c] sm:$0xf0] }
 0x203   : > { %12554 = vst [vmem:[#allocation34_spill] sm:$0xff] %v11764_v55  ;;  %v11767_v1 = vor.u32 %v10557_v30, %v7959_v44  ;;  %v7925_v53 = vld [vmem:[#allocation3 + $0x1d8] sm:$0xf]  ;;  %v8125_v30 = vld [vmem:[#allocation3 + $0x380] sm:$0xf] }
 0x204   : > { %2378 = vmatpush.bf16.xpose.msra.mxu2 %v11726_v17  ;;  %12550 = vst [vmem:[#allocation30_spill] sm:$0xff] %v11753_v18  ;;  %v10602_v44 = vld [vmem:[#allocation3 + $0x398] sm:$0xf0] }
 0x205   : > { %12555 = vst [vmem:[#allocation35_spill] sm:$0xff] %v11767_v1 }
 0x206   : > { %2391 = vmatpush.bf16.xpose.msra.mxu3 %v11729_v31  ;;  %12557 = vst [vmem:[#allocation37_spill] sm:$0xff] %v11773_v47  ;;  %v7975_v31 = vld [vmem:[#allocation3 + $0x25c] sm:$0xf0] }
 0x208   : > { %2431 = vmatpush.bf16.xpose.msrb.mxu1 %v11743_v2  ;;  %v10506_v2 = vld [vmem:[#allocation3 + $0x98] sm:$0xf0] }
 0x209   : > { %2444 = vmatpush.bf16.xpose.msrb.mxu0 %v11746_v35  ;;  %v11761_v45 = vor.u32 %v10506_v2, %v7749_v20  ;;  %v7965_v35 = vld [vmem:[#allocation3 + $0x238] sm:$0xf]  ;;  %v10496_v2 = vld [vmem:[#allocation3 + $0x4c] sm:$0xf]  ;;  %v7723_v20 = vld [vmem:[#allocation3 + $0x64] sm:$0xf0] }
 0x20a   : > { %v11770_v8 = vor.u32 %v10561_v51, %v7965_v35  ;;  %v11779_v49 = vor.u32 %v10496_v2, %v7723_v20  ;;  %v10550_v51 = vld [vmem:[#allocation3 + $0x1fc] sm:$0xf]  ;;  %v7931_v35 = vld [vmem:[#allocation3 + $0x214] sm:$0xf0] }
 0x20b   : > { %12553 = vst [vmem:[#allocation33_spill] sm:$0xff] %v11761_v45  ;;  %v11785_v20 = vor.u32 %v10550_v51, %v7931_v35  ;;  %v10474_v51 = vld [vmem:[%s11392_s26 + $0xe4] sm:$0xf]  ;;  %v7635_v35 = vld [vmem:[%s11392_s26 + $0xe8] sm:$0xf0] }
 0x20c   : > { %2379 = vmatpush.bf16.xpose.msra.mxu2 %v11738_v29  ;;  %12556 = vst [vmem:[#allocation36_spill] sm:$0xff] %v11770_v8  ;;  %v8003_v29 = vld [vmem:[#allocation3 + $0x294] sm:$0xf0] }
 0x20d   : > { %12558 = vst [vmem:[#allocation38_spill] sm:$0xff] %v11779_v49 }
 0x20e   : > { %2392 = vmatpush.bf16.xpose.msra.mxu3 %v11741_v62  ;;  %12560 = vst [vmem:[#allocation40_spill] sm:$0xff] %v11785_v20  ;;  %v10566_v62 = vld [vmem:[#allocation3 + $0x27c] sm:$0xf] }
 0x210   : > { %2432 = vmatpush.bf16.xpose.msrb.mxu1 %v11755_v21  ;;  %v7701_v21 = vld [vmem:[%s12475_s4 + $0x2c] sm:$0xff] }
 0x211   : > { %2445 = vmatpush.bf16.xpose.msrb.mxu0 %v11758_v25  ;;  %v10549_v25 = vld [vmem:[#allocation3 + $0x1f0] sm:$0xf0]  ;;  %v1731_v2 = vunpack.c.h.b16 %v7701_v21 }
 0x212   : > { %v11781_v63 = vor.u32 %v10549_v25, %v7925_v53  ;;  %v11788_v25 = vor.u32 %v10554_v56, %v7937_v16  ;;  %v8146_v53 = vor.u32 %v10601_v61, %v8143_v15  ;;  %v8097_v15 = vld [vmem:[#allocation3 + $0x348] sm:$0xf]  ;;  %v8121_v61 = vld [vmem:[#allocation3 + $0x360] sm:$0xf] }
 0x214   : > { %2380 = vmatpush.bf16.xpose.msra.mxu2 %v11750_v43  ;;  %12559 = vst [vmem:[#allocation39_spill] sm:$0xff] %v11781_v63  ;;  %v8059_v43 = vld [vmem:[#allocation3 + $0x304] sm:$0xf0] }
 0x215   : > { %12561 = vst [vmem:[#allocation41_spill] sm:$0xff] %v11788_v25 }
 0x216   : > { %2393 = vmatpush.bf16.xpose.msra.mxu3 %v11753_v18 }
 0x218   : > { %2433 = vmatpush.bf16.xpose.msrb.mxu1 %v11767_v1  ;;  %v1730_v1 = vunpack.c.l.b16 %v7701_v21  ;;  %v7633_v21 = vld [vmem:[%s11392_s26 + $0xe0] sm:$0xf] }
 0x219   : > { %2446 = vmatpush.bf16.xpose.msrb.mxu0 %v11770_v8  ;;  %v8149_v8 = vld [vmem:[#allocation3 + $0x398] sm:$0xf] }
 0x21a   : > { %v8150_v18 = vor.u32 %v10605_v9, %v8149_v8  ;;  %v10594_v9 = vld [vmem:[#allocation3 + $0x35c] sm:$0xf]  ;;  %v8115_v8 = vld [vmem:[#allocation3 + $0x374] sm:$0xf0] }
 0x21c   : > { %2381 = vmatpush.bf16.xpose.msra.mxu2 %v11761_v45  ;;  %v11790_v45 = vpack.c.b16 %v1730_v1, %v1730_v1  ;;  %v7638_v1 = vor.u32 %v10474_v51, %v7635_v35  ;;  %v10587_v35 = vld [vmem:[#allocation3 + $0x324] sm:$0xf] }
 0x21e   : > { %2394 = vmatpush.bf16.xpose.msra.mxu3 %v11764_v55  ;;  %v8126_v55 = vor.u32 %v10602_v44, %v8125_v30  ;;  %v10475_v30 = vld [vmem:[%s11392_s26 + $0xe4] sm:$0xf0]  ;;  %v11796_v44 = vpack.c.b16 %v1731_v2, %v1731_v2  ;;  %7697 = vmatmul.msk.bf16.gmra.mxu1 %vm527_vm2, %v7638_v1  ;;  %v11808_v2 = vor.u32 %v10594_v9, %v8115_v8  ;;  %v10591_v1 = vld [vmem:[#allocation3 + $0x340] sm:$0xf0] }
 0x21f   : > { %v7634_v16 = vor.u32 %v10475_v30, %v7633_v21  ;;  %v8069_v30 = vld [vmem:[#allocation3 + $0x310] sm:$0xf] }
 0x220   : > { %2434 = vmatpush.bf16.xpose.msrb.mxu1 %v11785_v20  ;;  %12562 = vst [vmem:[#allocation42_spill] sm:$0xff] %v11808_v2  ;;  %v7643_v20 = vld [vmem:[%s11392_s26 + $0xf8] sm:$0xf0] }
 0x221   : > { %2447 = vmatpush.bf16.xpose.msrb.mxu0 %v11788_v25  ;;  %v10476_v25 = vld [vmem:[%s11392_s26 + $0xf4] sm:$0xf] }
 0x222   : > { %661 = vmatmul.bf16.gmra.mxu0 %v7634_v16  ;;  %v10588_v16 = vld [vmem:[#allocation3 + $0x328] sm:$0xf0] }
 0x223   : > { %v11818_v9 = vor.u32 %v10588_v16, %v8069_v30  ;;  %v10581_v30 = vld [vmem:[#allocation3 + $0x2f0] sm:$0xf0]  ;;  %v7646_v16 = vor.u32 %v10476_v25, %v7643_v20  ;;  %v7813_v20 = vld [vmem:[#allocation3 + $0xf8] sm:$0xf] }
 0x224   : > { %2382 = vmatpush.bf16.xpose.msra.mxu2 %v11773_v47  ;;  %v7897_v47 = vld [vmem:[#allocation3 + $0x1a0] sm:$0xf]  ;;  %v10521_v25 = vld [vmem:[#allocation3 + $0x110] sm:$0xf0] }
 0x226   : > { %2395 = vmatpush.bf16.xpose.msra.mxu3 %v11779_v49  ;;  %v8041_v49 = vld [vmem:[#allocation3 + $0x2d8] sm:$0xf] }
 0x228   : > { %2479 = vmatpush.bf16.xpose.msra.mxu1 %v8146_v53  ;;  %v10598_v53 = vld [vmem:[#allocation3 + $0x378] sm:$0xf0] }
 0x229   : > { %2492 = vmatpush.bf16.xpose.msra.mxu0 %v8150_v18  ;;  %v11811_v21 = vor.u32 %v10598_v53, %v8121_v61  ;;  %v7841_v61 = vld [vmem:[#allocation3 + $0x130] sm:$0xf] }
 0x22b   : > { %2383 = vmatmul.bf16.vlgmr.msra.gmra.mxu2 %v11790_v45  ;;  %12563 = vst [vmem:[#allocation43_spill] sm:$0xff] %v11811_v21 }
 0x22c   : > { %2401 = vmatpush.bf16.xpose.msrb.mxu2 %v11781_v63  ;;  %v10542_v63 = vld [vmem:[#allocation3 + $0x1b8] sm:$0xf0] }
 0x22d   : > { %v11801_v56 = vor.u32 %v10542_v63, %v7897_v47  ;;  %2396 = vmatmul.bf16.vlgmr.msra.gmra.mxu3 %v11796_v44  ;;  %v7869_v63 = vld [vmem:[#allocation3 + $0x168] sm:$0xf]  ;;  %v10535_v47 = vld [vmem:[#allocation3 + $0x180] sm:$0xf0] }
 0x22e   : > { %2414 = vmatpush.bf16.xpose.msrb.mxu3 %v8126_v55  ;;  %v10595_v55 = vld [vmem:[#allocation3 + $0x360] sm:$0xf0]  ;;  %v11815_v51 = vor.u32 %v10535_v47, %v7869_v63  ;;  %v7641_v63 = vld [vmem:[%s11392_s26 + $0xf0] sm:$0xf]  ;;  %v10477_v47 = vld [vmem:[%s11392_s26 + $0xf4] sm:$0xf0]  ;;  %7698 = vmatmul.msk.bf16.gmra.mxu1 %vm527_vm2, %v7646_v16 }
 0x22f   : > { %v11806_v18 = vor.u32 %v10595_v55, %v8097_v15  ;;  %v8087_v15 = vld [vmem:[#allocation3 + $0x33c] sm:$0xf0]  ;;  %v8093_v55 = vld [vmem:[#allocation3 + $0x328] sm:$0xf]  ;;  %v8031_v16 = vld [vmem:[#allocation3 + $0x2cc] sm:$0xf0] }
 0x230   : > { %2480 = vmatpush.bf16.xpose.msra.mxu1 %v11808_v2  ;;  %v11820_v8 = vor.u32 %v10587_v35, %v8087_v15  ;;  %v11823_v53 = vor.u32 %v10591_v1, %v8093_v55  ;;  %v7642_v2 = vor.u32 %v10477_v47, %v7641_v63  ;;  %v10580_v15 = vld [vmem:[#allocation3 + $0x2ec] sm:$0xf]  ;;  %v8065_v55 = vld [vmem:[#allocation3 + $0x2f0] sm:$0xf]  ;;  %v10573_v47 = vld [vmem:[#allocation3 + $0x2b4] sm:$0xf] }
 0x231   : > { %2493 = vmatpush.bf16.xpose.msra.mxu0 %v11811_v21  ;;  %v10528_v21 = vld [vmem:[#allocation3 + $0x148] sm:$0xf0] }
 0x232   : > { %12564 = vst [vmem:[#allocation44_spill] sm:$0xff] %v11820_v8  ;;  %v11831_v35 = vor.u32 %v10528_v21, %v7841_v61  ;;  %666 = vmatmul.bf16.gmra.mxu0 %v7642_v2  ;;  %v10584_v1 = vld [vmem:[#allocation3 + $0x308] sm:$0xf0]  ;;  %v8013_v2 = vld [vmem:[#allocation3 + $0x2a0] sm:$0xf]  ;;  %v11844_v61 = vor.u32 %v10521_v25, %v7813_v20 }
 0x233   : > { %12565 = vst [vmem:[#allocation45_spill] sm:$0xff] %v11823_v53  ;;  %v11840_v63 = vor.u32 %v10584_v1, %v8065_v55  ;;  %v10574_v21 = vld [vmem:[#allocation3 + $0x2b8] sm:$0xf0]  ;;  %v7785_v1 = vld [vmem:[#allocation3 + $0xc0] sm:$0xf] }
 0x234   : > { %2402 = vmatpush.bf16.xpose.msrb.mxu2 %v11801_v56  ;;  %v7985_v20 = vld [vmem:[#allocation3 + $0x268] sm:$0xf]  ;;  %v10567_v25 = vld [vmem:[#allocation3 + $0x280] sm:$0xf0] }
 0x235   : > { %12567 = vst [vmem:[#allocation47_spill] sm:$0xff] %v11840_v63 }
 0x236   : > { %2415 = vmatpush.bf16.xpose.msrb.mxu3 %v11806_v18 }
 0x238   : > { %2481 = vmatpush.bf16.xpose.msra.mxu1 %v11820_v8  ;;  %v11835_v8 = vor.u32 %v10581_v30, %v8041_v49  ;;  %v8037_v49 = vld [vmem:[#allocation3 + $0x2b8] sm:$0xf]  ;;  %v10577_v30 = vld [vmem:[#allocation3 + $0x2d0] sm:$0xf0] }
 0x239   : > { %2494 = vmatpush.bf16.xpose.msra.mxu0 %v11823_v53  ;;  %v11837_v53 = vor.u32 %v10580_v15, %v8059_v43  ;;  %v11847_v43 = vor.u32 %v10574_v21, %v8013_v2  ;;  %v11849_v15 = vor.u32 %v10573_v47, %v8031_v16  ;;  %v11852_v55 = vor.u32 %v10577_v30, %v8037_v49  ;;  %v8009_v2 = vld [vmem:[#allocation3 + $0x280] sm:$0xf]  ;;  %v10570_v21 = vld [vmem:[#allocation3 + $0x298] sm:$0xf0]  ;;  %v7757_v16 = vld [vmem:[#allocation3 + $0x88] sm:$0xf] }
 0x23a   : > { %v11861_v47 = vor.u32 %v10567_v25, %v7985_v20  ;;  %v10507_v49 = vld [vmem:[#allocation3 + $0xa0] sm:$0xf0]  ;;  %v11863_v30 = vor.u32 %v10566_v62, %v8003_v29  ;;  %v10560_v20 = vld [vmem:[#allocation3 + $0x248] sm:$0xf0]  ;;  %v7981_v62 = vld [vmem:[#allocation3 + $0x248] sm:$0xf] }
 0x23b   : > { %12566 = vst [vmem:[#allocation46_spill] sm:$0xff] %v11837_v53  ;;  %v10559_v25 = vld [vmem:[#allocation3 + $0x244] sm:$0xf] }
 0x23c   : > { %2403 = vmatpush.bf16.xpose.msrb.mxu2 %v11815_v51  ;;  %12568 = vst [vmem:[#allocation48_spill] sm:$0xff] %v11849_v15  ;;  %v10563_v29 = vld [vmem:[#allocation3 + $0x260] sm:$0xf0] }
 0x23d   : > { %12569 = vst [vmem:[#allocation49_spill] sm:$0xff] %v11852_v55 }
 0x23e   : > { %2416 = vmatpush.bf16.xpose.msrb.mxu3 %v11818_v9  ;;  %2435 = vmatmul.bf16.vlgmr.msrb.gmra.mxu1 %v11661_v28  ;;  %12570 = vst [vmem:[#allocation50_spill] sm:$0xff] %v11863_v30  ;;  %v7957_v28 = vld [vmem:[#allocation3 + $0x230] sm:$0xf] }
 0x23f   : > { %v11875_v17 = vor.u32 %v10560_v20, %v7957_v28  ;;  %v7702_v28 = vld [vmem:[%s12475_s4 + $0x34] sm:$0xf]  ;;  %v10553_v20 = vld [vmem:[#allocation3 + $0x210] sm:$0xf0] }
 0x240   : > { %2482 = vmatpush.bf16.xpose.msra.mxu1 %v11837_v53 }
 0x241   : > { %2495 = vmatpush.bf16.xpose.msra.mxu0 %v11840_v63  ;;  %v10514_v63 = vld [vmem:[#allocation3 + $0xd8] sm:$0xf0] }
 0x242   : > { %v11856_v53 = vor.u32 %v10514_v63, %v7785_v1  ;;  %2448 = vmatmul.bf16.vlgmr.msrb.gmra.mxu0 %v11696_v10  ;;  %v11866_v63 = vor.u32 %v10570_v21, %v8009_v2  ;;  %v11871_v10 = vor.u32 %v10507_v49, %v7757_v16  ;;  %v7729_v2 = vld [vmem:[#allocation3 + $0x50] sm:$0xf]  ;;  %v10500_v21 = vld [vmem:[#allocation3 + $0x68] sm:$0xf0]  ;;  %v11880_v16 = vor.u32 %v10563_v29, %v7981_v62 }
 0x243   : > { %v11883_v49 = vor.u32 %v10500_v21, %v7729_v2  ;;  %v1732_v29 = vunpack.c.l.b16 %v7702_v28  ;;  %v8113_v28 = vld [vmem:[#allocation3 + $0x358] sm:$0xf] }
 0x244   : > { %2404 = vmatpush.bf16.xpose.msrb.mxu2 %v11831_v35  ;;  %12571 = vst [vmem:[#allocation51_spill] sm:$0xff] %v11866_v63 }
 0x245   : > { %12573 = vst [vmem:[#allocation53_spill] sm:$0xff] %v11880_v16  ;;  %v1739_v0 = vpack.c.b16 %v1732_v29, %v1732_v29 }
 0x246   : > { %2417 = vmatpush.bf16.xpose.msrb.mxu3 %v11835_v8 }
 0x248   : > { %2483 = vmatpush.bf16.xpose.msra.mxu1 %v11849_v15  ;;  %v2345_v15 = vpop.f32.mrf.mxu3 }
 0x249   : > { %2496 = vmatpush.bf16.xpose.msra.mxu0 %v11852_v55  ;;  %v2332_v55 = vpop.f32.mrf.mxu2 }
 0x24a   : > { %v11868_v1 = vadd.f32 %v2345_v15, %v2332_v55  ;;  %v11877_v15 = vor.u32 %v10559_v25, %v7975_v31  ;;  %v7929_v31 = vld [vmem:[#allocation3 + $0x1f8] sm:$0xf]  ;;  %v8141_v25 = vld [vmem:[#allocation3 + $0x390] sm:$0xf] }
 0x24b   : > { %v11890_v2 = vor.u32 %v10553_v20, %v7929_v31  ;;  %v10597_v31 = vld [vmem:[#allocation3 + $0x370] sm:$0xf0]  ;;  %v10590_v20 = vld [vmem:[#allocation3 + $0x338] sm:$0xf0] }
 0x24c   : > { %2405 = vmatpush.bf16.xpose.msrb.mxu2 %v11844_v61  ;;  %12572 = vst [vmem:[#allocation52_spill] sm:$0xff] %v11877_v15 }
 0x24e   : > { %2418 = vmatpush.bf16.xpose.msrb.mxu3 %v11847_v43 }
 0x250   : > { %2484 = vmatpush.bf16.xpose.msra.mxu1 %v11863_v30  ;;  %v2347_v30 = vpop.f32.mrf.mxu3 }
 0x251   : > { %2497 = vmatpush.bf16.xpose.msra.mxu0 %v11866_v63  ;;  %v2334_v55 = vpop.f32.mrf.mxu2  ;;  %v10600_v63 = vld [vmem:[#allocation3 + $0x38c] sm:$0xf] }
 0x252   : > { %v10604_v30 = vld [vmem:[#allocation3 + $0x3a8] sm:$0xf0]  ;;  %v8138_v62 = vor.u32 %v10600_v63, %v8135_v48  ;;  %v10593_v48 = vld [vmem:[#allocation3 + $0x354] sm:$0xf]  ;;  %v8107_v63 = vld [vmem:[#allocation3 + $0x36c] sm:$0xf0] }
 0x253   : > { %v10552_v55 = vld [vmem:[#allocation3 + $0x20c] sm:$0xf]  ;;  %v8142_v21 = vor.u32 %v10604_v30, %v8141_v25 }
 0x254   : > { %2406 = vmatpush.bf16.xpose.msrb.mxu2 %v11856_v53 }
 0x256   : > { %2419 = vmatpush.bf16.xpose.msrb.mxu3 %v11861_v47 }
 0x258   : > { %2485 = vmatpush.bf16.xpose.msra.mxu1 %v11877_v15  ;;  %v10556_v15 = vld [vmem:[#allocation3 + $0x228] sm:$0xf0] }
 0x259   : > { %2498 = vmatpush.bf16.xpose.msra.mxu0 %v11880_v16  ;;  %v11892_v16 = vor.u32 %v10552_v55, %v7947_v32  ;;  %v11895_v13 = vor.u32 %v10556_v15, %v7953_v24  ;;  %v11901_v32 = vor.u32 %v10593_v48, %v8107_v63  ;;  %v11904_v24 = vor.u32 %v10597_v31, %v8113_v28  ;;  %v10586_v15 = vld [vmem:[#allocation3 + $0x31c] sm:$0xf]  ;;  %v10572_v63 = vld [vmem:[#allocation3 + $0x2ac] sm:$0xf] }
 0x25a   : > { %v10576_v28 = vld [vmem:[#allocation3 + $0x2c8] sm:$0xf0] }
 0x25c   : > { %2407 = vmatpush.bf16.xpose.msrb.mxu2 %v11871_v10 }
 0x25e   : > { %2420 = vmatpush.bf16.xpose.msrb.mxu3 %v11875_v17 }
 0x260   : > { %2486 = vmatpush.bf16.xpose.msra.mxu1 %v11892_v16 }
 0x261   : > { %2499 = vmatpush.bf16.xpose.msra.mxu0 %v11895_v13 }
 0x264   : > { %2408 = vmatpush.bf16.xpose.msrb.mxu2 %v11883_v49 }
 0x266   : > { %2421 = vmatpush.bf16.xpose.msrb.mxu3 %v11890_v2 }
 0x267   : > { %2487 = vmatmul.bf16.vlgmr.msra.gmra.mxu1 %v11796_v44  ;;  %v8051_v44 = vld [vmem:[#allocation3 + $0x2fc] sm:$0xf0] }
 0x268   : > { %2592 = vmatpush.bf16.xpose.msrb.mxu1 %v11610_v7  ;;  %2500 = vmatmul.bf16.vlgmr.msra.gmra.mxu0 %v1739_v0  ;;  %v8079_v7 = vld [vmem:[#allocation3 + $0x334] sm:$0xf0] }
 0x269   : > { %2605 = vmatpush.bf16.xpose.msrb.mxu0 %v11635_v4  ;;  %v8085_v4 = vld [vmem:[#allocation3 + $0x320] sm:$0xf]  ;;  %v11911_v25 = vor.u32 %v10586_v15, %v8079_v7 }
 0x26a   : > { %v11914_v30 = vor.u32 %v10590_v20, %v8085_v4  ;;  %v10565_v4 = vld [vmem:[#allocation3 + $0x274] sm:$0xf]  ;;  %v7995_v20 = vld [vmem:[#allocation3 + $0x28c] sm:$0xf0] }
 0x26b   : > { %2409 = vmatmul.bf16.vlgmr.msrb.gmra.mxu2 %v1739_v0  ;;  %v8057_v0 = vld [vmem:[#allocation3 + $0x2e8] sm:$0xf] }
 0x26c   : > { %2453 = vmatpush.bf16.xpose.msra.mxu2 %v8138_v62 }
 0x26d   : > { %2422 = vmatmul.bf16.vlgmr.msrb.gmra.mxu3 %v11659_v26  ;;  %v10579_v26 = vld [vmem:[#allocation3 + $0x2e4] sm:$0xf] }
 0x26e   : > { %2466 = vmatpush.bf16.xpose.msra.mxu3 %v8142_v21  ;;  %v11919_v55 = vor.u32 %v10579_v26, %v8051_v44  ;;  %v11938_v26 = vor.u32 %v10565_v4, %v7995_v20 }
 0x270   : > { %2593 = vmatpush.bf16.xpose.msrb.mxu1 %v11639_v22  ;;  %v10583_v22 = vld [vmem:[#allocation3 + $0x300] sm:$0xf0]  ;;  %v2371_v21 = vpop.f32.mrf.mxu3 }
 0x271   : > { %2606 = vmatpush.bf16.xpose.msrb.mxu0 %v11644_v19  ;;  %v2358_v19 = vpop.f32.mrf.mxu2  ;;  %v11923_v29 = vor.u32 %v10583_v22, %v8057_v0  ;;  %v10558_v0 = vld [vmem:[#allocation3 + $0x23c] sm:$0xf]  ;;  %v7967_v22 = vld [vmem:[#allocation3 + $0x254] sm:$0xf0] }
 0x272   : > { %v2359_v62 = vadd.f32 %v2358_v19, %v11868_v1  ;;  %v7973_v19 = vld [vmem:[#allocation3 + $0x240] sm:$0xf] }
 0x274   : > { %2454 = vmatpush.bf16.xpose.msra.mxu2 %v11901_v32  ;;  %v11926_v48 = vadd.f32 %v2371_v21, %v2359_v62  ;;  %v11946_v62 = vor.u32 %v10558_v0, %v7967_v22  ;;  %v10551_v21 = vld [vmem:[#allocation3 + $0x204] sm:$0xf]  ;;  %v12577_v0 = vld [vmem:[#allocation17_spill] sm:$0xff]  ;;  %v12578_v22 = vld [vmem:[#allocation18_spill] sm:$0xff] }
 0x276   : > { %2467 = vmatpush.bf16.xpose.msra.mxu3 %v11904_v24 }
 0x278   : > { %2594 = vmatpush.bf16.xpose.msrb.mxu1 %v11647_v39  ;;  %v8023_v39 = vld [vmem:[#allocation3 + $0x2c4] sm:$0xf0]  ;;  %v2373_v7 = vpop.f32.mrf.mxu3 }
 0x279   : > { %2607 = vmatpush.bf16.xpose.msrb.mxu0 %v11650_v50  ;;  %v8029_v50 = vld [vmem:[#allocation3 + $0x2b0] sm:$0xf]  ;;  %v11930_v31 = vor.u32 %v10572_v63, %v8023_v39  ;;  %v2360_v1 = vpop.f32.mrf.mxu2  ;;  %v7939_v63 = vld [vmem:[#allocation3 + $0x21c] sm:$0xf0]  ;;  %v7945_v39 = vld [vmem:[#allocation3 + $0x208] sm:$0xf] }
 0x27a   : > { %v11933_v15 = vor.u32 %v10576_v28, %v8029_v50  ;;  %v10491_v50 = vld [vmem:[#allocation3 + $0x20] sm:$0xf0]  ;;  %v10488_v28 = vld [vmem:[#allocation3 + $0xc] sm:$0xf]  ;;  %v8163_v1 = vld [vmem:[#allocation3 + $0x24] sm:$0xf0]  ;;  %v11954_v7 = vor.u32 %v10551_v21, %v7939_v63 }
 0x27c   : > { %2455 = vmatpush.bf16.xpose.msra.mxu2 %v11911_v25 }
 0x27e   : > { %2468 = vmatpush.bf16.xpose.msra.mxu3 %v11914_v30 }
 0x280   : > { %2595 = vmatpush.bf16.xpose.msrb.mxu1 %v11657_v14  ;;  %v8001_v14 = vld [vmem:[#allocation3 + $0x278] sm:$0xf] }
 0x281   : > { %2608 = vmatpush.bf16.xpose.msrb.mxu0 %v11666_v38  ;;  %v10569_v38 = vld [vmem:[#allocation3 + $0x290] sm:$0xf0] }
 0x282   : > { %v11941_v44 = vor.u32 %v10569_v38, %v8001_v14  ;;  %v8166_v14 = vor.u32 %v10488_v28, %v8163_v1 }
 0x284   : > { %2456 = vmatpush.bf16.xpose.msra.mxu2 %v11919_v55 }
 0x286   : > { %2469 = vmatpush.bf16.xpose.msra.mxu3 %v11923_v29 }
 0x288   : > { %2596 = vmatpush.bf16.xpose.msrb.mxu1 %v11669_v54  ;;  %v10562_v54 = vld [vmem:[#allocation3 + $0x258] sm:$0xf0] }
 0x289   : > { %2609 = vmatpush.bf16.xpose.msrb.mxu0 %v11672_v60  ;;  %v11949_v60 = vor.u32 %v10562_v54, %v7973_v19 }
 0x28c   : > { %2457 = vmatpush.bf16.xpose.msra.mxu2 %v11930_v31 }
 0x28e   : > { %2470 = vmatpush.bf16.xpose.msra.mxu3 %v11933_v15 }
 0x290   : > { %2597 = vmatpush.bf16.xpose.msrb.mxu1 %v11675_v34  ;;  %v8161_v34 = vld [vmem:[#allocation3 + $0x8] sm:$0xf] }
 0x291   : > { %2610 = vmatpush.bf16.xpose.msrb.mxu0 %v11677_v46  ;;  %v10555_v46 = vld [vmem:[#allocation3 + $0x220] sm:$0xf0]  ;;  %v8162_v4 = vor.u32 %v10491_v50, %v8161_v34 }
 0x292   : > { %v11957_v20 = vor.u32 %v10555_v46, %v7945_v39  ;;  %v12579_v39 = vld [vmem:[#allocation21_spill] sm:$0xff] }
 0x294   : > { %2458 = vmatpush.bf16.xpose.msra.mxu2 %v11938_v26 }
 0x296   : > { %2471 = vmatpush.bf16.xpose.msra.mxu3 %v11941_v44 }
 0x298   : > { %2598 = vmatpush.bf16.xpose.msrb.mxu1 %v11681_v3 }
 0x299   : > { %2611 = vmatpush.bf16.xpose.msrb.mxu0 %v11686_v12 }
 0x29c   : > { %2459 = vmatpush.bf16.xpose.msra.mxu2 %v11946_v62 }
 0x29e   : > { %2472 = vmatpush.bf16.xpose.msra.mxu3 %v11949_v60 }
 0x2a0   : > { %2599 = vmatpush.bf16.xpose.msrb.mxu1 %v8162_v4 }
 0x2a1   : > { %2612 = vmatpush.bf16.xpose.msrb.mxu0 %v8166_v14  ;;  %v12580_v14 = vld [vmem:[#allocation22_spill] sm:$0xff] }
 0x2a4   : > { %2460 = vmatpush.bf16.xpose.msra.mxu2 %v11954_v7 }
 0x2a6   : > { %2473 = vmatpush.bf16.xpose.msra.mxu3 %v11957_v20 }
 0x2a8   : > { %2644 = vmatpush.bf16.xpose.msra.mxu1 %v11801_v56  ;;  %v8155_v56 = vld [vmem:[#allocation3 + $0x1c] sm:$0xf0] }
 0x2a9   : > { %2657 = vmatpush.bf16.xpose.msra.mxu0 %v11806_v18 }
 0x2ab   : > { %2461 = vmatmul.bf16.vlgmr.msra.gmra.mxu2 %v11698_v52 }
 0x2ac   : > { %2566 = vmatpush.bf16.xpose.msrb.mxu2 %v11522_v42 }
 0x2ad   : > { %2474 = vmatmul.bf16.vlgmr.msra.gmra.mxu3 %v11790_v45  ;;  %v10487_v45 = vld [vmem:[#allocation3 + $0x4] sm:$0xf] }
 0x2ae   : > { %2579 = vmatpush.bf16.xpose.msrb.mxu3 %v11524_v41  ;;  %v2384_v42 = vpop.f32.mrf.mxu2 }
 0x2af   : > { %v2385_v41 = vadd.f32 %v2384_v42, %v11926_v48 }
 0x2b0   : > { %2645 = vmatpush.bf16.xpose.msra.mxu1 %v11815_v51  ;;  %v10493_v51 = vld [vmem:[#allocation3 + $0x30] sm:$0xf0] }
 0x2b1   : > { %2658 = vmatpush.bf16.xpose.msra.mxu0 %v11818_v9 }
 0x2b4   : > { %2567 = vmatpush.bf16.xpose.msrb.mxu2 %v11535_v59  ;;  %v2397_v59 = vpop.f32.mrf.mxu3 }
 0x2b6   : > { %2580 = vmatpush.bf16.xpose.msrb.mxu3 %v11539_v5  ;;  %v11977_v5 = vadd.f32 %v2397_v59, %v2385_v41  ;;  %v2386_v12 = vpop.f32.mrf.mxu2 }
 0x2b8   : > { %2646 = vmatpush.bf16.xpose.msra.mxu1 %v11831_v35 }
 0x2b9   : > { %2659 = vmatpush.bf16.xpose.msra.mxu0 %v11835_v8  ;;  %v12574_v8 = vld [vmem:[#allocation13_spill] sm:$0xff] }
 0x2bc   : > { %2568 = vmatpush.bf16.xpose.msrb.mxu2 %v11544_v23  ;;  %v1706_v23 = vld [vmem:[%s12475_s4 + $0x8] sm:$0xff] }
 0x2be   : > { %2581 = vmatpush.bf16.xpose.msrb.mxu3 %v11546_v27  ;;  %v2512_v27 = vunpack.c.h.b16 %v1706_v23 }
 0x2c0   : > { %2647 = vmatpush.bf16.xpose.msra.mxu1 %v11844_v61  ;;  %v11984_v3 = vpack.c.b16 %v2512_v27, %v2512_v27  ;;  %v662_v61 = vpop.f32.mrf.mxu0 }
 0x2c1   : > { %2660 = vmatpush.bf16.xpose.msra.mxu0 %v11847_v43  ;;  %v751_v43 = vpop.f32.mrf.mxu1 }
 0x2c2   : > { %2613 = vmatmul.bf16.vlgmr.msrb.gmra.mxu0 %v11984_v3 }
 0x2c4   : > { %2569 = vmatpush.bf16.xpose.msrb.mxu2 %v11552_v37  ;;  %v2399_v37 = vpop.f32.mrf.mxu3 }
 0x2c5   : > { %v12581_v37 = vld [vmem:[#allocation25_spill] sm:$0xff] }
 0x2c6   : > { %2582 = vmatpush.bf16.xpose.msrb.mxu3 %v11555_v40  ;;  %v2511_v40 = vunpack.c.l.b16 %v1706_v23 }
 0x2c8   : > { %2648 = vmatpush.bf16.xpose.msra.mxu1 %v11856_v53  ;;  %v11991_v52 = vpack.c.b16 %v2511_v40, %v2511_v40  ;;  %v12575_v53 = vld [vmem:[#allocation15_spill] sm:$0xff]  ;;  %v664_v19 = vpop.f32.mrf.mxu0 }
 0x2c9   : > { %2661 = vmatpush.bf16.xpose.msra.mxu0 %v11861_v47  ;;  %v12576_v47 = vld [vmem:[#allocation7_spill] sm:$0xff]  ;;  %v753_v54 = vpop.f32.mrf.mxu1 }
 0x2ca   : > { %2600 = vmatmul.bf16.vlgmr.msrb.gmra.mxu1 %v11991_v52 }
 0x2cc   : > { %2570 = vmatpush.bf16.xpose.msrb.mxu2 %v11567_v6  ;;  %v8153_v6 = vld [vmem:[#allocation3] sm:$0xf] }
 0x2ce   : > { %2583 = vmatpush.bf16.xpose.msrb.mxu3 %v11569_v11  ;;  %v10490_v11 = vld [vmem:[#allocation3 + $0x18] sm:$0xf0] }
 0x2cf   : > { %v8154_v18 = vor.u32 %v10490_v11, %v8153_v6 }
 0x2d0   : > { %2649 = vmatpush.bf16.xpose.msra.mxu1 %v11871_v10  ;;  %v12012_v10 = vld [vmem:[%s12474_s3] ss:$0 sm:$0xff] }
 0x2d1   : > { %2662 = vmatpush.bf16.xpose.msra.mxu0 %v11875_v17  ;;  %v8158_v17 = vor.u32 %v10487_v45, %v8155_v56  ;;  %v665_v21 = vadd.f32 %v12012_v10, %v664_v19  ;;  %v756_v41 = vpop.f32.mrf.mxu1 }
 0x2d4   : > { %2571 = vmatpush.bf16.xpose.msrb.mxu2 %v11573_v33  ;;  %v1705_v33 = vld [vmem:[%s12475_s4] sm:$0xff] }
 0x2d5   : > { %v2509_v9 = vunpack.c.l.b16 %v1705_v33 }
 0x2d6   : > { %2584 = vmatpush.bf16.xpose.msrb.mxu3 %v11575_v36  ;;  %v8177_v36 = vld [vmem:[#allocation3 + $0x18] sm:$0xf] }
 0x2d7   : > { %v2516_v35 = vpack.c.b16 %v2509_v9, %v2509_v9 }
 0x2d8   : > { %2650 = vmatpush.bf16.xpose.msra.mxu1 %v11883_v49  ;;  %v663_v49 = vadd.f32 %v12012_v10, %v662_v61 }
 0x2d9   : > { %2663 = vmatpush.bf16.xpose.msra.mxu0 %v11890_v2 }
 0x2da   : > { %v752_v48 = vadd.f32 %v751_v43, %v663_v49 }
 0x2dc   : > { %2572 = vmatpush.bf16.xpose.msrb.mxu2 %v11589_v57  ;;  %v8178_v57 = vor.u32 %v10493_v51, %v8177_v36  ;;  %v789_v38 = vmax.f32 %v752_v48, 0.0  ;;  %v12582_v36 = vld [vmem:[#allocation26_spill] sm:$0xff]  ;;  %v12583_v48 = vld [vmem:[#allocation29_spill] sm:$0xff] }
 0x2de   : > { %2585 = vmatpush.bf16.xpose.msrb.mxu3 %v11591_v58  ;;  %v2510_v58 = vunpack.c.h.b16 %v1705_v33  ;;  %853 = vst [vmem:[#allocation2 + $0x153] sm:$0xff] %v789_v38 }
 0x2e0   : > { %2651 = vmatpush.bf16.xpose.msra.mxu1 %v8178_v57  ;;  %v12015_v2 = vpack.c.b16 %v2510_v58, %v2510_v58 }
 0x2e1   : > { %2664 = vmatpush.bf16.xpose.msra.mxu0 %v12576_v47 }
 0x2e4   : > { %2573 = vmatpush.bf16.xpose.msrb.mxu2 %v8154_v18 }
 0x2e5   : > { %v933_v34 = vld [vmem:[#allocation2 + $0x150] sm:$0xff] }
 0x2e6   : > { %2586 = vmatpush.bf16.xpose.msrb.mxu3 %v8158_v17  ;;  %v1029_v50 = vld [vmem:[#allocation2 + $0x151] sm:$0xff]  ;;  %v965_v28 = vpack.c.bf16 %v933_v34, %v933_v34 }
 0x2e7   : > { %v1125_v46 = vld [vmem:[#allocation2 + $0x152] sm:$0xff]  ;;  %v1061_v1 = vpack.c.bf16 %v1029_v50, %v1029_v50 }
 0x2e8   : > { %2696 = vmatpush.bf16.xpose.msrb.mxu1 %v11901_v32  ;;  %v1253_v32 = vpack.c.bf16 %v789_v38, %v789_v38  ;;  %2665 = vmatmul.bf16.vlgmr.msra.gmra.mxu0 %v2516_v35  ;;  %v1157_v4 = vpack.c.bf16 %v1125_v46, %v1125_v46  ;;  %997 = vst [vmem:[#allocation3 + $0x3b8] sm:$0xf] %v965_v28 }
 0x2e9   : > { %2709 = vmatpush.bf16.xpose.msrb.mxu0 %v11904_v24  ;;  %v754_v24 = vadd.f32 %v753_v54, %v665_v21  ;;  %1093 = vst [vmem:[#allocation3 + $0x3bc] sm:$0xf] %v1061_v1  ;;  %v12584_v54 = vld [vmem:[#allocation30_spill] sm:$0xff] }
 0x2ea   : > { %1285 = vst [vmem:[#allocation3 + $0x3c4] sm:$0xf] %v1253_v32 }
 0x2eb   : > { %2574 = vmatmul.bf16.vlgmr.msrb.gmra.mxu2 %v2516_v35  ;;  %v790_v63 = vmax.f32 %v754_v24, 0.0  ;;  %1189 = vst [vmem:[#allocation3 + $0x3c0] sm:$0xf] %v1157_v4  ;;  %v12585_v4 = vld [vmem:[#allocation33_spill] sm:$0xff] }
 0x2ec   : > { %2618 = vmatpush.bf16.xpose.msra.mxu2 %v12574_v8  ;;  %v758_v8 = vpop.f32.mrf.mxu1 }
 0x2ed   : > { %2587 = vmatmul.bf16.vlgmr.msrb.gmra.mxu3 %v12015_v2  ;;  %854 = vst [vmem:[#allocation2 + $0x15b] sm:$0xff] %v790_v63  ;;  %v1254_v42 = vpack.c.bf16 %v790_v63, %v790_v63 }
 0x2ee   : > { %2631 = vmatpush.bf16.xpose.msra.mxu3 %v12575_v53  ;;  %v2410_v23 = vpop.f32.mrf.mxu2 }
 0x2ef   : > { %1286 = vst [vmem:[#allocation3 + $0x3e0] sm:$0xf] %v1254_v42  ;;  %v12032_v12 = vadd.f32 %v2410_v23, %v11977_v5  ;;  %v12587_v23 = vld [vmem:[#allocation37_spill] sm:$0xff] }
 0x2f0   : > { %2697 = vmatpush.bf16.xpose.msrb.mxu1 %v11911_v25  ;;  %v667_v25 = vpop.f32.mrf.mxu0  ;;  %v2423_v24 = vpop.f32.mrf.mxu3 }
 0x2f1   : > { %2710 = vmatpush.bf16.xpose.msrb.mxu0 %v11914_v30  ;;  %v668_v30 = vadd.f32 %v12012_v10, %v667_v25 }
 0x2f3   : > { %v757_v59 = vadd.f32 %v756_v41, %v668_v30 }
 0x2f4   : > { %2619 = vmatpush.bf16.xpose.msra.mxu2 %v12577_v0  ;;  %v934_v40 = vld [vmem:[#allocation2 + $0x158] sm:$0xff]  ;;  %v2436_v63 = vpop.f32.mrf.mxu1 }
 0x2f5   : > { %v12029_v27 = vmax.f32 %v757_v59, 0.0  ;;  %v1030_v6 = vld [vmem:[#allocation2 + $0x159] sm:$0xff]  ;;  %v966_v11 = vpack.c.bf16 %v934_v40, %v934_v40  ;;  %v2437_v34 = vadd.f32 %v2436_v63, %v2423_v24 }
 0x2f6   : > { %2632 = vmatpush.bf16.xpose.msra.mxu3 %v12578_v22  ;;  %v1062_v45 = vpack.c.bf16 %v1030_v6, %v1030_v6  ;;  %v1317_v18 = vld [vmem:[#allocation2 + $0x154] sm:$0xff]  ;;  %v1414_v17 = vld [vmem:[#allocation2 + $0x15d] sm:$0xff] }
 0x2f7   : > { %v1413_v33 = vld [vmem:[#allocation2 + $0x155] sm:$0xff]  ;;  %855 = vst [vmem:[#allocation2 + $0x16b] sm:$0xff] %v12029_v27  ;;  %v1349_v51 = vpack.c.bf16 %v1317_v18, %v1317_v18  ;;  %v1510_v53 = vld [vmem:[#allocation2 + $0x15e] sm:$0xff]  ;;  %v1446_v61 = vpack.c.bf16 %v1414_v17, %v1414_v17  ;;  %v1255_v21 = vpack.c.bf16 %v12029_v27, %v12029_v27 }
 0x2f8   : > { %2698 = vmatpush.bf16.xpose.msrb.mxu1 %v11919_v55  ;;  %v1126_v55 = vld [vmem:[#allocation2 + $0x15a] sm:$0xff]  ;;  %998 = vst [vmem:[#allocation3 + $0x3d4] sm:$0xf] %v966_v11  ;;  %v669_v57 = vpop.f32.mrf.mxu0  ;;  %v1445_v58 = vpack.c.bf16 %v1413_v33, %v1413_v33  ;;  %v1542_v49 = vpack.c.bf16 %v1510_v53, %v1510_v53  ;;  %v10489_v33 = vld [vmem:[#allocation3 + $0x14] sm:$0xf] }
 0x2f9   : > { %2711 = vmatpush.bf16.xpose.msrb.mxu0 %v11923_v29  ;;  %v1158_v56 = vpack.c.bf16 %v1126_v55, %v1126_v55  ;;  %v1318_v29 = vld [vmem:[#allocation2 + $0x15c] sm:$0xff]  ;;  %1094 = vst [vmem:[#allocation3 + $0x3d8] sm:$0xf] %v1062_v45  ;;  %v670_v35 = vadd.f32 %v12012_v10, %v669_v57  ;;  %v8169_v45 = vld [vmem:[#allocation3 + $0x10] sm:$0xf] }
 0x2fa   : > { %v1350_v5 = vpack.c.bf16 %v1318_v29, %v1318_v29  ;;  %v1509_v9 = vld [vmem:[#allocation2 + $0x156] sm:$0xff]  ;;  %1381 = vst [vmem:[#allocation3 + $0x3c8] sm:$0xf] %v1349_v51  ;;  %v8171_v51 = vld [vmem:[#allocation3 + $0x2c] sm:$0xf0] }
 0x2fb   : > { %1190 = vst [vmem:[#allocation3 + $0x3dc] sm:$0xf] %v1158_v56  ;;  %v1541_v43 = vpack.c.bf16 %v1509_v9, %v1509_v9  ;;  %v759_v47 = vadd.f32 %v758_v8, %v670_v35  ;;  %v10492_v56 = vld [vmem:[#allocation3 + $0x28] sm:$0xf0]  ;;  %v12588_v29 = vld [vmem:[#allocation38_spill] sm:$0xff] }
 0x2fc   : > { %2620 = vmatpush.bf16.xpose.msra.mxu2 %v12579_v39  ;;  %1382 = vst [vmem:[#allocation3 + $0x3e4] sm:$0xf] %v1350_v5  ;;  %v1708_v39 = vld [vmem:[%s12475_s4 + $0x18] sm:$0xf]  ;;  %v2438_v42 = vpop.f32.mrf.mxu1  ;;  %v8170_v57 = vor.u32 %v10492_v56, %v8169_v45  ;;  %v10651_v63 = vld [vmem:[#allocation3 + $0x1d8] sm:$0xf0] }
 0x2fd   : > { %1477 = vst [vmem:[#allocation3 + $0x3cc] sm:$0xf] %v1445_v58  ;;  %v792_v19 = vmax.f32 %v759_v47, 0.0  ;;  %v2515_v46 = vunpack.c.l.b16 %v1708_v39  ;;  %v1707_v58 = vld [vmem:[%s12475_s4 + $0x10] sm:$0xff]  ;;  %v8381_v47 = vld [vmem:[#allocation3 + $0x1f8] sm:$0xf] }
 0x2fe   : > { %2633 = vmatpush.bf16.xpose.msra.mxu3 %v12580_v14  ;;  %v935_v38 = vld [vmem:[#allocation2 + $0x168] sm:$0xff]  ;;  %1478 = vst [vmem:[#allocation3 + $0x3e8] sm:$0xf] %v1446_v61  ;;  %v12586_v14 = vld [vmem:[#allocation34_spill] sm:$0xff]  ;;  %v8174_v61 = vor.u32 %v10489_v33, %v8171_v51  ;;  %v8355_v39 = vld [vmem:[#allocation3 + $0x1dc] sm:$0xf0] }
 0x2ff   : > { %v1031_v0 = vld [vmem:[#allocation2 + $0x169] sm:$0xff]  ;;  %1573 = vst [vmem:[#allocation3 + $0x3d0] sm:$0xf] %v1541_v43  ;;  %v1256_v28 = vpack.c.bf16 %v792_v19, %v792_v19  ;;  %v10630_v51 = vld [vmem:[#allocation3 + $0x130] sm:$0xf0] }
 0x300   : > { %2699 = vmatpush.bf16.xpose.msrb.mxu1 %v11930_v31  ;;  %v2412_v31 = vpop.f32.mrf.mxu2  ;;  %v1127_v32 = vld [vmem:[#allocation2 + $0x16a] sm:$0xff]  ;;  %v1063_v22 = vpack.c.bf16 %v1031_v0, %v1031_v0  ;;  %1574 = vst [vmem:[#allocation3 + $0x3ec] sm:$0xf] %v1542_v49  ;;  %v2449_v50 = vpop.f32.mrf.mxu0  ;;  %v10658_v49 = vld [vmem:[#allocation3 + $0x210] sm:$0xf0] }
 0x301   : > { %2712 = vmatpush.bf16.xpose.msrb.mxu0 %v11933_v15  ;;  %v967_v15 = vpack.c.bf16 %v935_v38, %v935_v38  ;;  %v1159_v10 = vpack.c.bf16 %v1127_v32, %v1127_v32  ;;  %v12049_v1 = vadd.f32 %v2449_v50, %v2437_v34  ;;  %1287 = vst [vmem:[#allocation3 + $0x3fc] sm:$0xf] %v1255_v21  ;;  %v10655_v31 = vld [vmem:[#allocation3 + $0x1fc] sm:$0xf]  ;;  %v2514_v38 = vunpack.c.h.b16 %v1707_v58  ;;  %v12590_v32 = vld [vmem:[#allocation16_spill] sm:$0xff]  ;;  %v12593_v34 = vld [vmem:[#allocation19_spill] sm:$0xff] }
 0x302   : > { %1095 = vst [vmem:[#allocation3 + $0x3f4] sm:$0xf] %v1063_v22  ;;  %v8382_v0 = vor.u32 %v10658_v49, %v8381_v47  ;;  %v12591_v22 = vld [vmem:[#allocation10_spill] sm:$0xff]  ;;  %v8353_v50 = vld [vmem:[#allocation3 + $0x1c0] sm:$0xf] }
 0x303   : > { %999 = vst [vmem:[#allocation3 + $0x3f0] sm:$0xf] %v967_v15  ;;  %v12073_v21 = vpack.c.b16 %v2514_v38, %v2514_v38  ;;  %v8327_v42 = vld [vmem:[#allocation3 + $0x1a4] sm:$0xf0]  ;;  %v12601_v47 = vld [vmem:[#allocation35_spill] sm:$0xff] }
 0x304   : > { %2621 = vmatpush.bf16.xpose.msra.mxu2 %v12581_v37  ;;  %1191 = vst [vmem:[#allocation3 + $0x3f8] sm:$0xf] %v1159_v10  ;;  %v12061_v9 = vpop.f32.mrf.mxu1  ;;  %v12592_v10 = vld [vmem:[#allocation11_spill] sm:$0xff] }
 0x305   : > { %856 = vst [vmem:[#allocation2 + $0x173] sm:$0xff] %v792_v19 }
 0x306   : > { %2634 = vmatpush.bf16.xpose.msra.mxu3 %v12582_v36  ;;  %1288 = vst [vmem:[#allocation3 + $0x418] sm:$0xf] %v1256_v28  ;;  %v10648_v28 = vld [vmem:[#allocation3 + $0x1c4] sm:$0xf] }
 0x308   : > { %2700 = vmatpush.bf16.xpose.msrb.mxu1 %v11938_v26  ;;  %v12051_v26 = vpack.c.b16 %v2515_v46, %v2515_v46  ;;  %v2451_v25 = vpop.f32.mrf.mxu0  ;;  %v8354_v46 = vor.u32 %v10651_v63, %v8353_v50  ;;  %v10609_v50 = vld [vmem:[#allocation3 + $0x88] sm:$0xf0] }
 0x309   : > { %2713 = vmatpush.bf16.xpose.msrb.mxu0 %v11941_v44  ;;  %v2425_v44 = vpop.f32.mrf.mxu3  ;;  %v12595_v25 = vld [vmem:[#allocation23_spill] sm:$0xff] }
 0x30a   : > { %2652 = vmatmul.bf16.vlgmr.msra.gmra.mxu1 %v12051_v26  ;;  %v10644_v44 = vld [vmem:[#allocation3 + $0x1a0] sm:$0xf0] }
 0x30c   : > { %2622 = vmatpush.bf16.xpose.msra.mxu2 %v12583_v48  ;;  %v936_v41 = vld [vmem:[#allocation2 + $0x170] sm:$0xff]  ;;  %v8383_v48 = vld [vmem:[#allocation3 + $0x214] sm:$0xf0] }
 0x30d   : > { %v1032_v30 = vld [vmem:[#allocation2 + $0x171] sm:$0xff]  ;;  %v968_v27 = vpack.c.bf16 %v936_v41, %v936_v41  ;;  %v8386_v19 = vor.u32 %v10655_v31, %v8383_v48  ;;  %v8325_v41 = vld [vmem:[#allocation3 + $0x188] sm:$0xf]  ;;  %v10620_v31 = vld [vmem:[#allocation3 + $0xe4] sm:$0xf] }
 0x30e   : > { %2635 = vmatpush.bf16.xpose.msra.mxu3 %v12584_v54  ;;  %v1128_v59 = vld [vmem:[#allocation2 + $0x172] sm:$0xff]  ;;  %v1064_v37 = vpack.c.bf16 %v1032_v30, %v1032_v30  ;;  %v2490_v54 = vpop.f32.mrf.mxu1  ;;  %v8326_v30 = vor.u32 %v10644_v44, %v8325_v41  ;;  %v12602_v48 = vld [vmem:[#allocation36_spill] sm:$0xff]  ;;  %v10660_v44 = vld [vmem:[#allocation3 + $0x220] sm:$0xf0] }
 0x30f   : > { %v1160_v40 = vpack.c.bf16 %v1128_v59, %v1128_v59  ;;  %v1319_v6 = vld [vmem:[#allocation2 + $0x16c] sm:$0xff]  ;;  %v1320_v55 = vld [vmem:[#allocation2 + $0x174] sm:$0xff]  ;;  %1000 = vst [vmem:[#allocation3 + $0x40c] sm:$0xf] %v968_v27 }
 0x310   : > { %2701 = vmatpush.bf16.xpose.msrb.mxu1 %v11946_v62  ;;  %v1415_v11 = vld [vmem:[#allocation2 + $0x16d] sm:$0xff]  ;;  %v1351_v18 = vpack.c.bf16 %v1319_v6, %v1319_v6  ;;  %v1416_v62 = vld [vmem:[#allocation2 + $0x175] sm:$0xff]  ;;  %1096 = vst [vmem:[#allocation3 + $0x410] sm:$0xf] %v1064_v37  ;;  %v12067_v35 = vpop.f32.mrf.mxu0 }
 0x311   : > { %2714 = vmatpush.bf16.xpose.msrb.mxu0 %v11949_v60  ;;  %v1352_v60 = vpack.c.bf16 %v1320_v55, %v1320_v55  ;;  %v1511_v36 = vld [vmem:[#allocation2 + $0x16e] sm:$0xff]  ;;  %v1447_v17 = vpack.c.bf16 %v1415_v11, %v1415_v11  ;;  %v1512_v5 = vld [vmem:[#allocation2 + $0x176] sm:$0xff]  ;;  %1192 = vst [vmem:[#allocation3 + $0x414] sm:$0xf] %v1160_v40  ;;  %v1448_v8 = vpack.c.bf16 %v1416_v62, %v1416_v62  ;;  %v12597_v55 = vld [vmem:[#allocation27_spill] sm:$0xff] }
 0x312   : > { %1383 = vst [vmem:[#allocation3 + $0x400] sm:$0xf] %v1351_v18  ;;  %v1543_v53 = vpack.c.bf16 %v1511_v36, %v1511_v36  ;;  %v1544_v43 = vpack.c.bf16 %v1512_v5, %v1512_v5  ;;  %v10641_v59 = vld [vmem:[#allocation3 + $0x18c] sm:$0xf]  ;;  %v8299_v40 = vld [vmem:[#allocation3 + $0x16c] sm:$0xf0] }
 0x313   : > { %1384 = vst [vmem:[#allocation3 + $0x41c] sm:$0xf] %v1352_v60  ;;  %v8330_v27 = vor.u32 %v10641_v59, %v8327_v42  ;;  %v10637_v37 = vld [vmem:[#allocation3 + $0x168] sm:$0xf0]  ;;  %v8297_v11 = vld [vmem:[#allocation3 + $0x150] sm:$0xf] }
 0x314   : > { %2623 = vmatpush.bf16.xpose.msra.mxu2 %v12585_v4  ;;  %1479 = vst [vmem:[#allocation3 + $0x404] sm:$0xf] %v1447_v17  ;;  %v12594_v4 = vld [vmem:[#allocation20_spill] sm:$0xff]  ;;  %v8298_v56 = vor.u32 %v10637_v37, %v8297_v11  ;;  %v10634_v18 = vld [vmem:[#allocation3 + $0x154] sm:$0xf]  ;;  %v12599_v5 = vld [vmem:[#allocation31_spill] sm:$0xff] }
 0x315   : > { %1480 = vst [vmem:[#allocation3 + $0x420] sm:$0xf] %v1448_v8  ;;  %v12598_v62 = vld [vmem:[#allocation28_spill] sm:$0xff]  ;;  %v8302_v33 = vor.u32 %v10634_v18, %v8299_v40  ;;  %v8271_v17 = vld [vmem:[#allocation3 + $0x134] sm:$0xf0]  ;;  %v12608_v37 = vld [vmem:[#allocation43_spill] sm:$0xff] }
 0x316   : > { %2636 = vmatpush.bf16.xpose.msra.mxu3 %v12586_v14  ;;  %1575 = vst [vmem:[#allocation3 + $0x408] sm:$0xf] %v1543_v53  ;;  %v8358_v14 = vor.u32 %v10648_v28, %v8355_v39  ;;  %v10613_v54 = vld [vmem:[#allocation3 + $0xac] sm:$0xf]  ;;  %v8187_v28 = vld [vmem:[#allocation3 + $0x8c] sm:$0xf0] }
 0x317   : > { %1576 = vst [vmem:[#allocation3 + $0x424] sm:$0xf] %v1544_v43  ;;  %v12605_v42 = vld [vmem:[#allocation8_spill] sm:$0xff]  ;;  %v12606_v59 = vld [vmem:[#allocation42_spill] sm:$0xff]  ;;  %v10650_v11 = vld [vmem:[#allocation3 + $0x1d4] sm:$0xf] }
 0x318   : > { %2702 = vmatpush.bf16.xpose.msrb.mxu1 %v11954_v7  ;;  %v2513_v7 = vunpack.c.l.b16 %v1707_v58  ;;  %v2503_v24 = vpop.f32.mrf.mxu0  ;;  %v10627_v58 = vld [vmem:[#allocation3 + $0x11c] sm:$0xf]  ;;  %v10657_v41 = vld [vmem:[#allocation3 + $0x20c] sm:$0xf] }
 0x319   : > { %2715 = vmatpush.bf16.xpose.msrb.mxu0 %v11957_v20  ;;  %v12589_v20 = vld [vmem:[#allocation14_spill] sm:$0xff]  ;;  %v8274_v43 = vor.u32 %v10627_v58, %v8271_v17  ;;  %v8313_v58 = vld [vmem:[#allocation3 + $0x160] sm:$0xf] }
 0x31a   : > { %v2520_v15 = vpack.c.b16 %v2513_v7, %v2513_v7  ;;  %v10623_v7 = vld [vmem:[#allocation3 + $0xf8] sm:$0xf0]  ;;  %v8343_v17 = vld [vmem:[#allocation3 + $0x1b4] sm:$0xf0] }
 0x31c   : > { %2624 = vmatpush.bf16.xpose.msra.mxu2 %v12587_v23  ;;  %v12596_v23 = vld [vmem:[#allocation24_spill] sm:$0xff] }
 0x31e   : > { %2637 = vmatpush.bf16.xpose.msra.mxu3 %v12588_v29 }
 0x320   : > { %2703 = vmatpush.bf16.xpose.msrb.mxu1 %v12591_v22  ;;  %v8213_v22 = vld [vmem:[#allocation3 + $0xa8] sm:$0xf] }
 0x321   : > { %2716 = vmatpush.bf16.xpose.msrb.mxu0 %v12592_v10  ;;  %v12604_v10 = vld [vmem:[#allocation41_spill] sm:$0xff] }
 0x324   : > { %2625 = vmatpush.bf16.xpose.msra.mxu2 %v8170_v57  ;;  %v8269_v57 = vld [vmem:[#allocation3 + $0x118] sm:$0xf] }
 0x325   : > { %v8270_v8 = vor.u32 %v10630_v51, %v8269_v57  ;;  %v10643_v51 = vld [vmem:[#allocation3 + $0x19c] sm:$0xf] }
 0x326   : > { %2638 = vmatpush.bf16.xpose.msra.mxu3 %v8174_v61  ;;  %v12600_v61 = vld [vmem:[#allocation32_spill] sm:$0xff]  ;;  %v8346_v57 = vor.u32 %v10643_v51, %v8343_v17  ;;  %v8391_v51 = vld [vmem:[#allocation3 + $0x21c] sm:$0xf0] }
 0x327   : > { %2704 = vmatmul.bf16.vlgmr.msrb.gmra.mxu1 %v11984_v3 }
 0x328   : > { %3482 = vmatpush.bf16.xpose.msra.mxu1 %v8382_v0  ;;  %2717 = vmatmul.bf16.vlgmr.msrb.gmra.mxu0 %v2520_v15  ;;  %v10616_v0 = vld [vmem:[#allocation3 + $0xc0] sm:$0xf0] }
 0x329   : > { %3495 = vmatpush.bf16.xpose.msra.mxu0 %v8386_v19  ;;  %v8214_v19 = vor.u32 %v10616_v0, %v8213_v22  ;;  %v10629_v22 = vld [vmem:[#allocation3 + $0x12c] sm:$0xf] }
 0x32b   : > { %2626 = vmatmul.bf16.vlgmr.msra.gmra.mxu2 %v2520_v15  ;;  %v12603_v15 = vld [vmem:[#allocation40_spill] sm:$0xff] }
 0x32c   : > { %2670 = vmatpush.bf16.xpose.msrb.mxu2 %v12589_v20 }
 0x32d   : > { %2639 = vmatmul.bf16.vlgmr.msra.gmra.mxu3 %v12073_v21 }
 0x32e   : > { %2683 = vmatpush.bf16.xpose.msrb.mxu3 %v12590_v32  ;;  %v2462_v3 = vpop.f32.mrf.mxu2  ;;  %v8215_v32 = vld [vmem:[#allocation3 + $0xc4] sm:$0xf0] }
 0x32f   : > { %v2463_v6 = vadd.f32 %v2462_v3, %v12049_v1  ;;  %v8218_v24 = vor.u32 %v10613_v54, %v8215_v32  ;;  %v8285_v32 = vld [vmem:[#allocation3 + $0x128] sm:$0xf] }
 0x330   : > { %3483 = vmatpush.bf16.xpose.msra.mxu1 %v8354_v46  ;;  %v2475_v45 = vpop.f32.mrf.mxu3  ;;  %v10606_v46 = vld [vmem:[#allocation3 + $0x74] sm:$0xf] }
 0x331   : > { %3496 = vmatpush.bf16.xpose.msra.mxu0 %v8358_v14  ;;  %v2476_v29 = vadd.f32 %v2475_v45, %v2463_v6  ;;  %v8397_v14 = vld [vmem:[#allocation3 + $0x208] sm:$0xf]  ;;  %v8369_v6 = vld [vmem:[#allocation3 + $0x1d0] sm:$0xf] }
 0x332   : > { %v8371_v45 = vld [vmem:[#allocation3 + $0x1ec] sm:$0xf0] }
 0x333   : > { %v2489_v60 = vadd.f32 %v12061_v9, %v2476_v29  ;;  %v8243_v9 = vld [vmem:[#allocation3 + $0xfc] sm:$0xf0]  ;;  %v8374_v29 = vor.u32 %v10650_v11, %v8371_v45 }
 0x334   : > { %2671 = vmatpush.bf16.xpose.msrb.mxu2 %v12593_v34  ;;  %v8246_v20 = vor.u32 %v10620_v31, %v8243_v9  ;;  %v8185_v34 = vld [vmem:[#allocation3 + $0x70] sm:$0xf]  ;;  %v8389_v45 = vld [vmem:[#allocation3 + $0x200] sm:$0xf] }
 0x335   : > { %v12086_v36 = vadd.f32 %v12067_v35, %v2489_v60  ;;  %v8241_v35 = vld [vmem:[#allocation3 + $0xe0] sm:$0xf]  ;;  %v10646_v60 = vld [vmem:[#allocation3 + $0x1b0] sm:$0xf0] }
 0x336   : > { %2684 = vmatpush.bf16.xpose.msrb.mxu3 %v12594_v4  ;;  %v2464_v1 = vpop.f32.mrf.mxu2  ;;  %v8242_v49 = vor.u32 %v10623_v7, %v8241_v35  ;;  %v8186_v4 = vor.u32 %v10609_v50, %v8185_v34  ;;  %v8315_v7 = vld [vmem:[#allocation3 + $0x17c] sm:$0xf0]  ;;  %v12614_v31 = vld [vmem:[#allocation49_spill] sm:$0xff] }
 0x337   : > { %v12611_v1 = vld [vmem:[#allocation46_spill] sm:$0xff] }
 0x338   : > { %3484 = vmatpush.bf16.xpose.msra.mxu1 %v8326_v30  ;;  %v2477_v53 = vpop.f32.mrf.mxu3  ;;  %v8399_v30 = vld [vmem:[#allocation3 + $0x224] sm:$0xf0] }
 0x339   : > { %3497 = vmatpush.bf16.xpose.msra.mxu0 %v8330_v27  ;;  %v8398_v27 = vor.u32 %v10660_v44, %v8397_v14  ;;  %v8402_v3 = vor.u32 %v10657_v41, %v8399_v30  ;;  %v10639_v53 = vld [vmem:[#allocation3 + $0x178] sm:$0xf0]  ;;  %v10622_v14 = vld [vmem:[#allocation3 + $0xf4] sm:$0xf]  ;;  %v8259_v44 = vld [vmem:[#allocation3 + $0x10c] sm:$0xf0] }
 0x33a   : > { %v12617_v41 = vld [vmem:[#allocation52_spill] sm:$0xff] }
 0x33c   : > { %2672 = vmatpush.bf16.xpose.msrb.mxu2 %v12595_v25  ;;  %v8190_v25 = vor.u32 %v10606_v46, %v8187_v28  ;;  %v8257_v28 = vld [vmem:[#allocation3 + $0xf0] sm:$0xf] }
 0x33e   : > { %2685 = vmatpush.bf16.xpose.msrb.mxu3 %v12596_v23  ;;  %v12607_v23 = vld [vmem:[#allocation9_spill] sm:$0xff] }
 0x33f   : > { %v12092_v38 = vpop.f32.mrf.mxu0 }
 0x340   : > { %3485 = vmatpush.bf16.xpose.msra.mxu1 %v8298_v56  ;;  %v12609_v56 = vld [vmem:[#allocation44_spill] sm:$0xff] }
 0x341   : > { %3498 = vmatpush.bf16.xpose.msra.mxu0 %v8302_v33  ;;  %v8341_v33 = vld [vmem:[#allocation3 + $0x198] sm:$0xf] }
 0x344   : > { %2673 = vmatpush.bf16.xpose.msrb.mxu2 %v12597_v55  ;;  %v10653_v55 = vld [vmem:[#allocation3 + $0x1e8] sm:$0xf0] }
 0x345   : > { %v8370_v18 = vor.u32 %v10653_v55, %v8369_v6  ;;  %v8231_v6 = vld [vmem:[#allocation3 + $0xd4] sm:$0xf0] }
 0x346   : > { %2686 = vmatpush.bf16.xpose.msrb.mxu3 %v12598_v62  ;;  %v12610_v62 = vld [vmem:[#allocation45_spill] sm:$0xff] }
 0x347   : > { %v2616_v63 = vpop.f32.mrf.mxu0  ;;  %v2601_v39 = vpop.f32.mrf.mxu1 }
 0x348   : > { %3486 = vmatpush.bf16.xpose.msra.mxu1 %v8270_v8  ;;  %v12616_v63 = vld [vmem:[#allocation51_spill] sm:$0xff] }
 0x349   : > { %3499 = vmatpush.bf16.xpose.msra.mxu0 %v8274_v43  ;;  %v10636_v43 = vld [vmem:[#allocation3 + $0x164] sm:$0xf] }
 0x34c   : > { %2674 = vmatpush.bf16.xpose.msrb.mxu2 %v12599_v5  ;;  %v12612_v5 = vld [vmem:[#allocation47_spill] sm:$0xff] }
 0x34e   : > { %2687 = vmatpush.bf16.xpose.msrb.mxu3 %v12600_v61 }
 0x34f   : > { %v2603_v40 = vpop.f32.mrf.mxu1 }
 0x350   : > { %3487 = vmatpush.bf16.xpose.msra.mxu1 %v8242_v49  ;;  %v8314_v49 = vor.u32 %v10639_v53, %v8313_v58  ;;  %v10615_v40 = vld [vmem:[#allocation3 + $0xbc] sm:$0xf]  ;;  %v12620_v53 = vld [vmem:[#allocation39_spill] sm:$0xff] }
 0x351   : > { %3500 = vmatpush.bf16.xpose.msra.mxu0 %v8246_v20  ;;  %v8318_v20 = vor.u32 %v10636_v43, %v8315_v7  ;;  %v8234_v11 = vor.u32 %v10615_v40, %v8231_v6 }
 0x354   : > { %2675 = vmatpush.bf16.xpose.msrb.mxu2 %v12601_v47  ;;  %v12613_v47 = vld [vmem:[#allocation48_spill] sm:$0xff] }
 0x356   : > { %2688 = vmatpush.bf16.xpose.msrb.mxu3 %v12602_v48 }
 0x358   : > { %3488 = vmatpush.bf16.xpose.msra.mxu1 %v8214_v19  ;;  %v8287_v19 = vld [vmem:[#allocation3 + $0x144] sm:$0xf0] }
 0x359   : > { %3501 = vmatpush.bf16.xpose.msra.mxu0 %v8218_v24  ;;  %v8290_v34 = vor.u32 %v10629_v22, %v8287_v19  ;;  %v10645_v19 = vld [vmem:[#allocation3 + $0x1a8] sm:$0xf0] }
 0x35c   : > { %2676 = vmatpush.bf16.xpose.msrb.mxu2 %v12603_v15  ;;  %v10632_v15 = vld [vmem:[#allocation3 + $0x140] sm:$0xf0] }
 0x35e   : > { %2689 = vmatpush.bf16.xpose.msrb.mxu3 %v12604_v10  ;;  %v12615_v10 = vld [vmem:[#allocation50_spill] sm:$0xff] }
 0x360   : > { %3489 = vmatpush.bf16.xpose.msra.mxu1 %v8186_v4  ;;  %v10625_v4 = vld [vmem:[#allocation3 + $0x108] sm:$0xf0] }
 0x361   : > { %3502 = vmatpush.bf16.xpose.msra.mxu0 %v8190_v25  ;;  %v8258_v30 = vor.u32 %v10625_v4, %v8257_v28  ;;  %v10638_v28 = vld [vmem:[#allocation3 + $0x170] sm:$0xf0]  ;;  %v8305_v4 = vld [vmem:[#allocation3 + $0x158] sm:$0xf] }
 0x364   : > { %2677 = vmatpush.bf16.xpose.msrb.mxu2 %v12605_v42 }
 0x366   : > { %2690 = vmatpush.bf16.xpose.msrb.mxu3 %v12607_v23  ;;  %v8262_v23 = vor.u32 %v10622_v14, %v8259_v44  ;;  %v8307_v14 = vld [vmem:[#allocation3 + $0x174] sm:$0xf0]  ;;  %v8306_v44 = vor.u32 %v10638_v28, %v8305_v4  ;;  %v10607_v4 = vld [vmem:[#allocation3 + $0x7c] sm:$0xf] }
 0x368   : > { %3534 = vmatpush.bf16.xpose.msrb.mxu1 %v8398_v27 }
 0x369   : > { %3547 = vmatpush.bf16.xpose.msrb.mxu0 %v8402_v3  ;;  %v10618_v3 = vld [vmem:[#allocation3 + $0xd0] sm:$0xf0] }
 0x36b   : > { %2678 = vmatmul.bf16.vlgmr.msrb.gmra.mxu2 %v12015_v2  ;;  %v8342_v2 = vor.u32 %v10646_v60, %v8341_v33  ;;  %v8203_v33 = vld [vmem:[#allocation3 + $0x9c] sm:$0xf0]  ;;  %v10656_v60 = vld [vmem:[#allocation3 + $0x204] sm:$0xf] }
 0x36c   : > { %2722 = vmatpush.bf16.xpose.msra.mxu2 %v12606_v59  ;;  %v12618_v59 = vld [vmem:[#allocation53_spill] sm:$0xff]  ;;  %v8394_v58 = vor.u32 %v10656_v60, %v8391_v51  ;;  %v10683_v51 = vld [vmem:[#allocation3 + $0x2dc] sm:$0xf] }
 0x36d   : > { %2691 = vmatmul.bf16.vlgmr.msrb.gmra.mxu3 %v11991_v52  ;;  %v2666_v52 = vpop.f32.mrf.mxu0 }
 0x36e   : > { %2735 = vmatpush.bf16.xpose.msra.mxu3 %v12608_v37  ;;  %v12107_v8 = vadd.f32 %v2666_v52, %v12086_v36  ;;  %v2575_v61 = vpop.f32.mrf.mxu2  ;;  %v8229_v37 = vld [vmem:[#allocation3 + $0xb8] sm:$0xf]  ;;  %v10715_v52 = vld [vmem:[#allocation3 + $0x3d8] sm:$0xf0] }
 0x36f   : > { %v2576_v9 = vadd.f32 %v2575_v61, %v12032_v12  ;;  %v8286_v12 = vor.u32 %v10632_v15, %v8285_v32  ;;  %v8230_v55 = vor.u32 %v10618_v3, %v8229_v37  ;;  %v8529_v37 = vld [vmem:[#allocation3 + $0x318] sm:$0xf]  ;;  %v10694_v3 = vld [vmem:[#allocation3 + $0x330] sm:$0xf0] }
 0x370   : > { %3535 = vmatpush.bf16.xpose.msrb.mxu1 %v8370_v18  ;;  %v2588_v35 = vpop.f32.mrf.mxu3  ;;  %v10659_v18 = vld [vmem:[#allocation3 + $0x218] sm:$0xf0] }
 0x371   : > { %3548 = vmatpush.bf16.xpose.msrb.mxu0 %v8374_v29  ;;  %v2589_v48 = vadd.f32 %v2588_v35, %v2576_v9  ;;  %v10608_v29 = vld [vmem:[#allocation3 + $0x84] sm:$0xf]  ;;  %v8390_v17 = vor.u32 %v10659_v18, %v8389_v45  ;;  %v8363_v35 = vld [vmem:[#allocation3 + $0x1e4] sm:$0xf0]  ;;  %v8530_v18 = vor.u32 %v10694_v3, %v8529_v37  ;;  %v10662_v37 = vld [vmem:[#allocation3 + $0x234] sm:$0xf] }
 0x372   : > { %v10652_v9 = vld [vmem:[#allocation3 + $0x1e0] sm:$0xf0]  ;;  %v8411_v3 = vld [vmem:[#allocation3 + $0x24c] sm:$0xf0] }
 0x373   : > { %v2602_v0 = vadd.f32 %v2601_v39, %v2589_v48  ;;  %v8179_v39 = vld [vmem:[%s12475_s4 + $0x38] sm:$0xff]  ;;  %v8579_v48 = vld [vmem:[#allocation3 + $0x39c] sm:$0xf0] }
 0x374   : > { %2723 = vmatpush.bf16.xpose.msra.mxu2 %v12609_v56  ;;  %v2885_v50 = vunpack.c.l.b16 %v8179_v39  ;;  %v2886_v46 = vunpack.c.h.b16 %v8179_v39  ;;  %v10701_v39 = vld [vmem:[#allocation3 + $0x368] sm:$0xf0] }
 0x375   : > { %v2668_v36 = vpop.f32.mrf.mxu0  ;;  %v12126_v27 = vadd.f32 %v12092_v38, %v2602_v0  ;;  %v10611_v38 = vld [vmem:[#allocation3 + $0x98] sm:$0xf0]  ;;  %v8585_v0 = vld [vmem:[#allocation3 + $0x388] sm:$0xf] }
 0x376   : > { %2736 = vmatpush.bf16.xpose.msra.mxu3 %v12610_v62  ;;  %v2577_v54 = vpop.f32.mrf.mxu2  ;;  %v12117_v42 = vpack.c.b16 %v2885_v50, %v2885_v50  ;;  %v12119_v25 = vpack.c.b16 %v2886_v46, %v2886_v46  ;;  %v8201_v62 = vld [vmem:[#allocation3 + $0x80] sm:$0xf]  ;;  %v10708_v36 = vld [vmem:[#allocation3 + $0x3a0] sm:$0xf0] }
 0x377   : > { %v8586_v22 = vor.u32 %v10708_v36, %v8585_v0  ;;  %v8333_v54 = vld [vmem:[#allocation3 + $0x190] sm:$0xf]  ;;  %v10680_v0 = vld [vmem:[#allocation3 + $0x2c0] sm:$0xf0] }
 0x378   : > { %3536 = vmatpush.bf16.xpose.msrb.mxu1 %v8342_v2  ;;  %v2590_v24 = vpop.f32.mrf.mxu3  ;;  %3503 = vmatmul.bf16.vlgmr.msra.gmra.mxu0 %v12119_v25  ;;  %v10711_v2 = vld [vmem:[#allocation3 + $0x3bc] sm:$0xf] }
 0x379   : > { %3549 = vmatpush.bf16.xpose.msrb.mxu0 %v8346_v57  ;;  %3490 = vmatmul.bf16.vlgmr.msra.gmra.mxu1 %v12117_v42  ;;  %v8613_v57 = vld [vmem:[#allocation3 + $0x3c0] sm:$0xf]  ;;  %v8551_v24 = vld [vmem:[#allocation3 + $0x364] sm:$0xf0] }
 0x37a   : > { %v8614_v43 = vor.u32 %v10715_v52, %v8613_v57 }
 0x37c   : > { %2724 = vmatpush.bf16.xpose.msra.mxu2 %v12611_v1  ;;  %v8202_v1 = vor.u32 %v10611_v38, %v8201_v62  ;;  %v10631_v62 = vld [vmem:[#allocation3 + $0x138] sm:$0xf0] }
 0x37e   : > { %2737 = vmatpush.bf16.xpose.msra.mxu3 %v12612_v5  ;;  %v12619_v5 = vld [vmem:[#allocation12_spill] sm:$0xff] }
 0x380   : > { %3537 = vmatpush.bf16.xpose.msrb.mxu1 %v8314_v49 }
 0x381   : > { %3550 = vmatpush.bf16.xpose.msrb.mxu0 %v8318_v20  ;;  %v10649_v20 = vld [vmem:[#allocation3 + $0x1cc] sm:$0xf] }
 0x382   : > { %v8366_v32 = vor.u32 %v10649_v20, %v8363_v35  ;;  %v8467_v35 = vld [vmem:[#allocation3 + $0x2bc] sm:$0xf0]  ;;  %v8473_v20 = vld [vmem:[#allocation3 + $0x2a8] sm:$0xf] }
 0x384   : > { %2725 = vmatpush.bf16.xpose.msra.mxu2 %v12613_v47  ;;  %v8361_v47 = vld [vmem:[#allocation3 + $0x1c8] sm:$0xf] }
 0x385   : > { %v8362_v49 = vor.u32 %v10652_v9, %v8361_v47  ;;  %v10676_v47 = vld [vmem:[#allocation3 + $0x2a4] sm:$0xf] }
 0x386   : > { %2738 = vmatpush.bf16.xpose.msra.mxu3 %v12614_v31  ;;  %v10704_v31 = vld [vmem:[#allocation3 + $0x384] sm:$0xf] }
 0x387   : > { %v12130_v56 = vpop.f32.mrf.mxu1  ;;  %v8582_v15 = vor.u32 %v10704_v31, %v8579_v48  ;;  %v10621_v48 = vld [vmem:[#allocation3 + $0xec] sm:$0xf] }
 0x388   : > { %3538 = vmatpush.bf16.xpose.msrb.mxu1 %v8286_v12  ;;  %v8334_v12 = vor.u32 %v10645_v19, %v8333_v54  ;;  %v8221_v19 = vld [vmem:[#allocation3 + $0xb0] sm:$0xf] }
 0x389   : > { %3551 = vmatpush.bf16.xpose.msrb.mxu0 %v8290_v34  ;;  %v8557_v34 = vld [vmem:[#allocation3 + $0x350] sm:$0xf] }
 0x38a   : > { %v8223_v54 = vld [vmem:[#allocation3 + $0xcc] sm:$0xf0] }
 0x38c   : > { %2726 = vmatpush.bf16.xpose.msra.mxu2 %v12615_v10  ;;  %v8335_v10 = vld [vmem:[#allocation3 + $0x1ac] sm:$0xf0] }
 0x38e   : > { %2739 = vmatpush.bf16.xpose.msra.mxu3 %v12616_v63  ;;  %v10642_v63 = vld [vmem:[#allocation3 + $0x194] sm:$0xf] }
 0x38f   : > { %v2655_v7 = vpop.f32.mrf.mxu1  ;;  %v8338_v50 = vor.u32 %v10642_v63, %v8335_v10  ;;  %v8445_v63 = vld [vmem:[#allocation3 + $0x270] sm:$0xf] }
 0x390   : > { %3539 = vmatpush.bf16.xpose.msrb.mxu1 %v8258_v30  ;;  %v8523_v30 = vld [vmem:[#allocation3 + $0x32c] sm:$0xf0]  ;;  %v8251_v7 = vld [vmem:[#allocation3 + $0x104] sm:$0xf0] }
 0x391   : > { %3552 = vmatpush.bf16.xpose.msrb.mxu0 %v8262_v23  ;;  %v10635_v23 = vld [vmem:[#allocation3 + $0x15c] sm:$0xf]  ;;  %v8254_v36 = vor.u32 %v10621_v48, %v8251_v7  ;;  %v8601_v48 = vld [vmem:[#allocation3 + $0x398] sm:$0xf] }
 0x392   : > { %v8310_v6 = vor.u32 %v10635_v23, %v8307_v14  ;;  %v8195_v14 = vld [vmem:[#allocation3 + $0x94] sm:$0xf0]  ;;  %v10707_v7 = vld [vmem:[#allocation3 + $0x398] sm:$0xf0] }
 0x393   : > { %v8180_v23 = vld [vmem:[%s12475_s4 + $0x40] sm:$0xff] }
 0x394   : > { %2727 = vmatpush.bf16.xpose.msra.mxu2 %v12617_v41  ;;  %v10690_v41 = vld [vmem:[#allocation3 + $0x314] sm:$0xf] }
 0x396   : > { %2740 = vmatpush.bf16.xpose.msra.mxu3 %v12618_v59 }
 0x398   : > { %3540 = vmatpush.bf16.xpose.msrb.mxu1 %v8230_v55 }
 0x399   : > { %3553 = vmatpush.bf16.xpose.msrb.mxu0 %v8234_v11  ;;  %v8526_v11 = vor.u32 %v10690_v41, %v8523_v30  ;;  %v8405_v30 = vld [vmem:[#allocation3 + $0x210] sm:$0xf] }
 0x39c   : > { %2728 = vmatpush.bf16.xpose.msra.mxu2 %v11892_v16  ;;  %v8607_v16 = vld [vmem:[#allocation3 + $0x3d4] sm:$0xf0] }
 0x39d   : > { %v8610_v61 = vor.u32 %v10711_v2, %v8607_v16  ;;  %v10687_v2 = vld [vmem:[#allocation3 + $0x2f8] sm:$0xf0] }
 0x39e   : > { %2741 = vmatpush.bf16.xpose.msra.mxu3 %v11895_v13  ;;  %v8206_v13 = vor.u32 %v10608_v29, %v8203_v33  ;;  %v8277_v29 = vld [vmem:[#allocation3 + $0x120] sm:$0xf] }
 0x39f   : > { %v8279_v33 = vld [vmem:[#allocation3 + $0x13c] sm:$0xf0]  ;;  %v8278_v60 = vor.u32 %v10631_v62, %v8277_v29  ;;  %v2887_v62 = vunpack.c.l.b16 %v8180_v23  ;;  %v10666_v29 = vld [vmem:[#allocation3 + $0x250] sm:$0xf0] }
 0x3a0   : > { %3541 = vmatpush.bf16.xpose.msrb.mxu1 %v8202_v1  ;;  %v10628_v1 = vld [vmem:[#allocation3 + $0x124] sm:$0xf] }
 0x3a1   : > { %3554 = vmatpush.bf16.xpose.msrb.mxu0 %v8206_v13 }
 0x3a4   : > { %2729 = vmatpush.bf16.xpose.msra.mxu2 %v12619_v5  ;;  %v8282_v5 = vor.u32 %v10628_v1, %v8279_v33  ;;  %v10713_v33 = vld [vmem:[#allocation3 + $0x3cc] sm:$0xf] }
 0x3a6   : > { %2742 = vmatpush.bf16.xpose.msra.mxu3 %v12620_v53 }
 0x3a8   : > { %3586 = vmatpush.bf16.xpose.msra.mxu1 %v8610_v61 }
 0x3a9   : > { %3599 = vmatpush.bf16.xpose.msra.mxu0 %v8614_v43  ;;  %v8249_v43 = vld [vmem:[#allocation3 + $0xe8] sm:$0xf] }
 0x3ab   : > { %2730 = vmatmul.bf16.vlgmr.msra.gmra.mxu2 %v12073_v21  ;;  %v10697_v21 = vld [vmem:[#allocation3 + $0x34c] sm:$0xf] }
 0x3ac   : > { %3508 = vmatpush.bf16.xpose.msrb.mxu2 %v8390_v17  ;;  %v8554_v46 = vor.u32 %v10697_v21, %v8551_v24  ;;  %v8495_v17 = vld [vmem:[#allocation3 + $0x2f4] sm:$0xf0]  ;;  %v8439_v21 = vld [vmem:[#allocation3 + $0x284] sm:$0xf0]  ;;  %v10614_v24 = vld [vmem:[#allocation3 + $0xb4] sm:$0xf] }
 0x3ad   : > { %2743 = vmatmul.bf16.vlgmr.msra.gmra.mxu3 %v12051_v26  ;;  %v8558_v26 = vor.u32 %v10701_v39, %v8557_v34  ;;  %v8498_v13 = vor.u32 %v10683_v51, %v8495_v17  ;;  %v10673_v34 = vld [vmem:[#allocation3 + $0x288] sm:$0xf0]  ;;  %v8226_v39 = vor.u32 %v10614_v24, %v8223_v54  ;;  %v8629_v51 = vld [vmem:[#allocation3 + $0x3d0] sm:$0xf]  ;;  %v10700_v54 = vld [vmem:[#allocation3 + $0x360] sm:$0xf0] }
 0x3ae   : > { %3521 = vmatpush.bf16.xpose.msrb.mxu3 %v8394_v58  ;;  %v2627_v59 = vpop.f32.mrf.mxu2  ;;  %v10624_v58 = vld [vmem:[#allocation3 + $0x100] sm:$0xf0]  ;;  %v8446_v28 = vor.u32 %v10673_v34, %v8445_v63  ;;  %v10717_v17 = vld [vmem:[#allocation3 + $0x3e8] sm:$0xf0]  ;;  %v8573_v24 = vld [vmem:[#allocation3 + $0x360] sm:$0xf] }
 0x3af   : > { %v2628_v40 = vadd.f32 %v2627_v59, %v12126_v27  ;;  %v8501_v27 = vld [vmem:[#allocation3 + $0x2e0] sm:$0xf]  ;;  %v8250_v9 = vor.u32 %v10624_v58, %v8249_v43  ;;  %v10661_v59 = vld [vmem:[#allocation3 + $0x228] sm:$0xf0]  ;;  %v8377_v58 = vld [vmem:[#allocation3 + $0x1d8] sm:$0xf] }
 0x3b0   : > { %3587 = vmatpush.bf16.xpose.msra.mxu1 %v8582_v15  ;;  %v2640_v55 = vpop.f32.mrf.mxu3  ;;  %v8502_v52 = vor.u32 %v10687_v2, %v8501_v27  ;;  %v8474_v15 = vor.u32 %v10680_v0, %v8473_v20  ;;  %v2888_v27 = vunpack.c.h.b16 %v8180_v23  ;;  %v8414_v2 = vor.u32 %v10662_v37, %v8411_v3  ;;  %v8577_v43 = vld [vmem:[#allocation3 + $0x380] sm:$0xf]  ;;  %v10710_v20 = vld [vmem:[#allocation3 + $0x3b0] sm:$0xf0]  ;;  %v10703_v63 = vld [vmem:[#allocation3 + $0x378] sm:$0xf0] }
 0x3b1   : > { %3600 = vmatpush.bf16.xpose.msra.mxu0 %v8586_v22  ;;  %v2641_v45 = vadd.f32 %v2640_v55, %v2628_v40  ;;  %v10617_v22 = vld [vmem:[#allocation3 + $0xc8] sm:$0xf0]  ;;  %v12154_v40 = vpop.f32.mrf.mxu0  ;;  %v8605_v55 = vld [vmem:[#allocation3 + $0x3b8] sm:$0xf]  ;;  %v8578_v0 = vor.u32 %v10707_v7, %v8577_v43  ;;  %v10696_v23 = vld [vmem:[#allocation3 + $0x340] sm:$0xf0] }
 0x3b2   : > { %v8222_v10 = vor.u32 %v10617_v22, %v8221_v19  ;;  %v10647_v22 = vld [vmem:[#allocation3 + $0x1b8] sm:$0xf0]  ;;  %v8549_v19 = vld [vmem:[#allocation3 + $0x348] sm:$0xf]  ;;  %v10678_v43 = vld [vmem:[#allocation3 + $0x2b4] sm:$0xf] }
 0x3b3   : > { %v12138_v38 = vadd.f32 %v12130_v56, %v2641_v45  ;;  %v8181_v56 = vld [vmem:[%s12475_s4 + $0x48] sm:$0xff]  ;;  %v8417_v45 = vld [vmem:[#allocation3 + $0x238] sm:$0xf]  ;;  %v8550_v34 = vor.u32 %v10700_v54, %v8549_v19  ;;  %v8483_v7 = vld [vmem:[#allocation3 + $0x2cc] sm:$0xf0] }
 0x3b4   : > { %3509 = vmatpush.bf16.xpose.msrb.mxu2 %v8362_v49  ;;  %v2889_v53 = vunpack.c.l.b16 %v8181_v56  ;;  %v2890_v61 = vunpack.c.h.b16 %v8181_v56  ;;  %v10654_v56 = vld [vmem:[#allocation3 + $0x1f0] sm:$0xf0]  ;;  %v10671_v19 = vld [vmem:[#allocation3 + $0x27c] sm:$0xf]  ;;  %v8455_v54 = vld [vmem:[#allocation3 + $0x294] sm:$0xf0] }
 0x3b6   : > { %3522 = vmatpush.bf16.xpose.msrb.mxu3 %v8366_v32  ;;  %v2629_v16 = vpop.f32.mrf.mxu2  ;;  %v12143_v49 = vpack.c.b16 %v2889_v53, %v2889_v53  ;;  %v12145_v31 = vpack.c.b16 %v2890_v61, %v2890_v61  ;;  %v8470_v32 = vor.u32 %v10676_v47, %v8467_v35  ;;  %v12156_v53 = vpack.c.b16 %v2888_v27, %v2888_v27  ;;  %v10706_v47 = vld [vmem:[#allocation3 + $0x394] sm:$0xf]  ;;  %v8595_v35 = vld [vmem:[#allocation3 + $0x3ac] sm:$0xf0] }
 0x3b7   : > { %v8418_v16 = vor.u32 %v10666_v29, %v8417_v45  ;;  %v8517_v27 = vld [vmem:[#allocation3 + $0x2f0] sm:$0xf] }
 0x3b8   : > { %3588 = vmatpush.bf16.xpose.msra.mxu1 %v8554_v46  ;;  %v2642_v57 = vpop.f32.mrf.mxu3  ;;  %3555 = vmatmul.bf16.vlgmr.msrb.gmra.mxu0 %v12145_v31  ;;  %v10610_v46 = vld [vmem:[#allocation3 + $0x90] sm:$0xf0] }
 0x3b9   : > { %3601 = vmatpush.bf16.xpose.msra.mxu0 %v8558_v26  ;;  %3542 = vmatmul.bf16.vlgmr.msrb.gmra.mxu1 %v12143_v49  ;;  %v8630_v57 = vor.u32 %v10717_v17, %v8629_v51  ;;  %v2720_v61 = vpop.f32.mrf.mxu0 }
 0x3ba   : > { %v10679_v61 = vld [vmem:[#allocation3 + $0x2b8] sm:$0xf0] }
 0x3bc   : > { %3510 = vmatpush.bf16.xpose.msrb.mxu2 %v8334_v12  ;;  %v10669_v12 = vld [vmem:[#allocation3 + $0x26c] sm:$0xf] }
 0x3bd   : > { %v8442_v26 = vor.u32 %v10669_v12, %v8439_v21  ;;  %v10699_v12 = vld [vmem:[#allocation3 + $0x35c] sm:$0xf]  ;;  %v8567_v21 = vld [vmem:[#allocation3 + $0x374] sm:$0xf0] }
 0x3be   : > { %3523 = vmatpush.bf16.xpose.msrb.mxu3 %v8338_v50  ;;  %v8193_v50 = vld [vmem:[#allocation3 + $0x78] sm:$0xf] }
 0x3bf   : > { %v8194_v41 = vor.u32 %v10610_v46, %v8193_v50  ;;  %v8574_v50 = vor.u32 %v10703_v63, %v8573_v24  ;;  %v10640_v46 = vld [vmem:[#allocation3 + $0x180] sm:$0xf0]  ;;  %v8209_v24 = vld [vmem:[#allocation3 + $0x88] sm:$0xf] }
 0x3c0   : > { %3589 = vmatpush.bf16.xpose.msra.mxu1 %v8526_v11  ;;  %v10714_v11 = vld [vmem:[#allocation3 + $0x3d0] sm:$0xf0]  ;;  %v10612_v63 = vld [vmem:[#allocation3 + $0xa0] sm:$0xf0] }
 0x3c1   : > { %3602 = vmatpush.bf16.xpose.msra.mxu0 %v8530_v18  ;;  %v8406_v18 = vor.u32 %v10661_v59, %v8405_v30  ;;  %v8606_v1 = vor.u32 %v10714_v11, %v8605_v55  ;;  %v8545_v59 = vld [vmem:[#allocation3 + $0x328] sm:$0xf] }
 0x3c2   : > { %v8546_v45 = vor.u32 %v10696_v23, %v8545_v59  ;;  %v10716_v59 = vld [vmem:[#allocation3 + $0x3e0] sm:$0xf0]  ;;  %v8433_v23 = vld [vmem:[#allocation3 + $0x248] sm:$0xf] }
 0x3c4   : > { %3511 = vmatpush.bf16.xpose.msrb.mxu2 %v8306_v44  ;;  %v12149_v44 = vpop.f32.mrf.mxu1 }
 0x3c6   : > { %3524 = vmatpush.bf16.xpose.msrb.mxu3 %v8310_v6  ;;  %v8198_v6 = vor.u32 %v10607_v4, %v8195_v14  ;;  %v10692_v14 = vld [vmem:[#allocation3 + $0x324] sm:$0xf] }
 0x3c8   : > { %3590 = vmatpush.bf16.xpose.msra.mxu1 %v8498_v13  ;;  %v2894_v13 = vpack.c.b16 %v2887_v62, %v2887_v62  ;;  %v10633_v62 = vld [vmem:[#allocation3 + $0x148] sm:$0xf0] }
 0x3c9   : > { %3603 = vmatpush.bf16.xpose.msra.mxu0 %v8502_v52 }
 0x3cc   : > { %3512 = vmatpush.bf16.xpose.msrb.mxu2 %v8278_v60  ;;  %v8623_v60 = vld [vmem:[#allocation3 + $0x3e4] sm:$0xf0]  ;;  %v2707_v52 = vpop.f32.mrf.mxu1 }
 0x3ce   : > { %3525 = vmatpush.bf16.xpose.msrb.mxu3 %v8282_v5  ;;  %v8626_v5 = vor.u32 %v10713_v33, %v8623_v60  ;;  %v8493_v33 = vld [vmem:[#allocation3 + $0x2d8] sm:$0xf]  ;;  %v10686_v60 = vld [vmem:[#allocation3 + $0x2f0] sm:$0xf0] }
 0x3d0   : > { %3591 = vmatpush.bf16.xpose.msra.mxu1 %v8470_v32  ;;  %v8602_v32 = vor.u32 %v10710_v20, %v8601_v48  ;;  %v8486_v48 = vor.u32 %v10678_v43, %v8483_v7  ;;  %v10698_v43 = vld [vmem:[#allocation3 + $0x354] sm:$0xf]  ;;  %v8559_v7 = vld [vmem:[#allocation3 + $0x36c] sm:$0xf0] }
 0x3d1   : > { %3604 = vmatpush.bf16.xpose.msra.mxu0 %v8474_v15  ;;  %v8349_v15 = vld [vmem:[#allocation3 + $0x1a0] sm:$0xf] }
 0x3d4   : > { %3513 = vmatpush.bf16.xpose.msrb.mxu2 %v8250_v9  ;;  %v8378_v9 = vor.u32 %v10654_v56, %v8377_v58  ;;  %v8265_v58 = vld [vmem:[#allocation3 + $0xf8] sm:$0xf]  ;;  %v8465_v56 = vld [vmem:[#allocation3 + $0x2a0] sm:$0xf] }
 0x3d6   : > { %3526 = vmatpush.bf16.xpose.msrb.mxu3 %v8254_v36  ;;  %v8598_v36 = vor.u32 %v10706_v47, %v8595_v35  ;;  %v10682_v47 = vld [vmem:[#allocation3 + $0x2d0] sm:$0xf0]  ;;  %v8466_v35 = vor.u32 %v10679_v61, %v8465_v56 }
 0x3d8   : > { %3592 = vmatpush.bf16.xpose.msra.mxu1 %v8442_v26  ;;  %v8521_v26 = vld [vmem:[#allocation3 + $0x310] sm:$0xf] }
 0x3d9   : > { %3605 = vmatpush.bf16.xpose.msra.mxu0 %v8446_v28  ;;  %v10693_v28 = vld [vmem:[#allocation3 + $0x328] sm:$0xf0] }
 0x3da   : > { %v8522_v3 = vor.u32 %v10693_v28, %v8521_v26  ;;  %v8615_v26 = vld [vmem:[#allocation3 + $0x3dc] sm:$0xf0]  ;;  %v8182_v28 = vld [vmem:[%s12475_s4 + $0x50] sm:$0xf] }
 0x3dc   : > { %3514 = vmatpush.bf16.xpose.msrb.mxu2 %v8222_v10  ;;  %v8350_v10 = vor.u32 %v10647_v22, %v8349_v15  ;;  %v10672_v15 = vld [vmem:[#allocation3 + $0x280] sm:$0xf0] }
 0x3de   : > { %3527 = vmatpush.bf16.xpose.msrb.mxu3 %v8226_v39  ;;  %v8570_v39 = vor.u32 %v10699_v12, %v8567_v21  ;;  %v10675_v12 = vld [vmem:[#allocation3 + $0x298] sm:$0xf0] }
 0x3e0   : > { %3593 = vmatpush.bf16.xpose.msra.mxu1 %v8414_v2  ;;  %v10689_v2 = vld [vmem:[#allocation3 + $0x308] sm:$0xf0] }
 0x3e1   : > { %3606 = vmatpush.bf16.xpose.msra.mxu0 %v8418_v16  ;;  %v8518_v52 = vor.u32 %v10689_v2, %v8517_v27  ;;  %v10705_v27 = vld [vmem:[#allocation3 + $0x38c] sm:$0xf]  ;;  %v8587_v2 = vld [vmem:[#allocation3 + $0x3a4] sm:$0xf0] }
 0x3e4   : > { %3515 = vmatpush.bf16.xpose.msrb.mxu2 %v8194_v41  ;;  %v8539_v41 = vld [vmem:[#allocation3 + $0x33c] sm:$0xf0] }
 0x3e5   : > { %v8542_v55 = vor.u32 %v10692_v14, %v8539_v41  ;;  %v10664_v14 = vld [vmem:[#allocation3 + $0x244] sm:$0xf]  ;;  %v8427_v41 = vld [vmem:[#allocation3 + $0x25c] sm:$0xf0] }
 0x3e6   : > { %3528 = vmatpush.bf16.xpose.msrb.mxu3 %v8198_v6 }
 0x3e7   : > { %3594 = vmatmul.bf16.vlgmr.msra.gmra.mxu1 %v12119_v25  ;;  %v8321_v25 = vld [vmem:[#allocation3 + $0x168] sm:$0xf] }
 0x3e8   : > { %3638 = vmatpush.bf16.xpose.msrb.mxu1 %v8626_v5  ;;  %3607 = vmatmul.bf16.vlgmr.msra.gmra.mxu0 %v2894_v13  ;;  %v8322_v4 = vor.u32 %v10640_v46, %v8321_v25  ;;  %v8494_v5 = vor.u32 %v10686_v60, %v8493_v33  ;;  %v8210_v25 = vor.u32 %v10612_v63, %v8209_v24  ;;  %v10712_v46 = vld [vmem:[#allocation3 + $0x3c4] sm:$0xf]  ;;  %v8759_v24 = vld [vmem:[#allocation3 + $0x1ac] sm:$0xf0] }
 0x3e9   : > { %3651 = vmatpush.bf16.xpose.msrb.mxu0 %v8630_v57  ;;  %v8430_v33 = vor.u32 %v10664_v14, %v8427_v41  ;;  %v8503_v14 = vld [vmem:[#allocation3 + $0x2fc] sm:$0xf0]  ;;  %v8509_v41 = vld [vmem:[#allocation3 + $0x2e8] sm:$0xf] }
 0x3eb   : > { %3516 = vmatmul.bf16.vlgmr.msrb.gmra.mxu2 %v2894_v13 }
 0x3ec   : > { %3560 = vmatpush.bf16.xpose.msra.mxu2 %v8406_v18  ;;  %v8293_v18 = vld [vmem:[#allocation3 + $0x130] sm:$0xf] }
 0x3ed   : > { %3529 = vmatmul.bf16.vlgmr.msrb.gmra.mxu3 %v12156_v53  ;;  %v8294_v17 = vor.u32 %v10633_v62, %v8293_v18  ;;  %v10768_v18 = vld [vmem:[#allocation3 + $0x23c] sm:$0xf]  ;;  %v8843_v62 = vld [vmem:[#allocation3 + $0x254] sm:$0xf0] }
 0x3ee   : > { %3573 = vmatpush.bf16.xpose.msra.mxu3 %v8606_v1  ;;  %v2679_v30 = vpop.f32.mrf.mxu2  ;;  %v8511_v1 = vld [vmem:[#allocation3 + $0x304] sm:$0xf0] }
 0x3ef   : > { %v2680_v37 = vadd.f32 %v2679_v30, %v12107_v8  ;;  %v10685_v8 = vld [vmem:[#allocation3 + $0x2ec] sm:$0xf]  ;;  %v8621_v30 = vld [vmem:[#allocation3 + $0x3c8] sm:$0xf] }
 0x3f0   : > { %3639 = vmatpush.bf16.xpose.msrb.mxu1 %v8598_v36  ;;  %v2692_v6 = vpop.f32.mrf.mxu3  ;;  %v8514_v13 = vor.u32 %v10685_v8, %v8511_v1  ;;  %v10619_v36 = vld [vmem:[#allocation3 + $0xd8] sm:$0xf0]  ;;  %v8846_v1 = vor.u32 %v10768_v18, %v8843_v62  ;;  %v10677_v62 = vld [vmem:[#allocation3 + $0x2ac] sm:$0xf] }
 0x3f1   : > { %3652 = vmatpush.bf16.xpose.msrb.mxu0 %v8602_v32  ;;  %v2693_v11 = vadd.f32 %v2692_v6, %v2680_v37  ;;  %v8437_v32 = vld [vmem:[#allocation3 + $0x268] sm:$0xf]  ;;  %v8618_v37 = vor.u32 %v10712_v46, %v8615_v26  ;;  %v10668_v6 = vld [vmem:[#allocation3 + $0x260] sm:$0xf0]  ;;  %v10747_v46 = vld [vmem:[#allocation3 + $0x194] sm:$0xf] }
 0x3f2   : > { %v8438_v21 = vor.u32 %v10672_v15, %v8437_v32  ;;  %v8434_v60 = vor.u32 %v10668_v6, %v8433_v23  ;;  %v10743_v23 = vld [vmem:[#allocation3 + $0x170] sm:$0xf0]  ;;  %v8729_v6 = vld [vmem:[#allocation3 + $0x158] sm:$0xf] }
 0x3f3   : > { %v2706_v29 = vadd.f32 %v12149_v44, %v2693_v11  ;;  %v10626_v44 = vld [vmem:[#allocation3 + $0x110] sm:$0xf0] }
 0x3f4   : > { %3561 = vmatpush.bf16.xpose.msra.mxu2 %v8378_v9  ;;  %v8489_v9 = vld [vmem:[#allocation3 + $0x2b8] sm:$0xf]  ;;  %v10771_v11 = vld [vmem:[#allocation3 + $0x250] sm:$0xf0] }
 0x3f5   : > { %v12163_v51 = vadd.f32 %v12154_v40, %v2706_v29  ;;  %v8266_v40 = vor.u32 %v10626_v44, %v8265_v58  ;;  %v8490_v20 = vor.u32 %v10682_v47, %v8489_v9  ;;  %v8622_v29 = vor.u32 %v10716_v59, %v8621_v30  ;;  %v10761_v58 = vld [vmem:[#allocation3 + $0x204] sm:$0xf]  ;;  %v8815_v44 = vld [vmem:[#allocation3 + $0x21c] sm:$0xf0]  ;;  %v8565_v9 = vld [vmem:[#allocation3 + $0x358] sm:$0xf] }
 0x3f6   : > { %3574 = vmatpush.bf16.xpose.msra.mxu3 %v8578_v0  ;;  %v2681_v16 = vpop.f32.mrf.mxu2  ;;  %v8237_v0 = vld [vmem:[#allocation3 + $0xc0] sm:$0xf]  ;;  %v10702_v47 = vld [vmem:[#allocation3 + $0x370] sm:$0xf0]  ;;  %v10688_v30 = vld [vmem:[#allocation3 + $0x300] sm:$0xf0] }
 0x3f7   : > { %v8238_v22 = vor.u32 %v10619_v36, %v8237_v0  ;;  %v8593_v16 = vld [vmem:[#allocation3 + $0x390] sm:$0xf]  ;;  %v8566_v0 = vor.u32 %v10702_v47, %v8565_v9  ;;  %v8785_v36 = vld [vmem:[#allocation3 + $0x1c8] sm:$0xf]  ;;  %v10729_v47 = vld [vmem:[#allocation3 + $0x100] sm:$0xf0] }
 0x3f8   : > { %3640 = vmatpush.bf16.xpose.msrb.mxu1 %v8570_v39  ;;  %v2694_v57 = vpop.f32.mrf.mxu3 }
 0x3f9   : > { %3653 = vmatpush.bf16.xpose.msrb.mxu0 %v8574_v50  ;;  %v8409_v50 = vld [vmem:[#allocation3 + $0x230] sm:$0xf]  ;;  %v8813_v57 = vld [vmem:[#allocation3 + $0x200] sm:$0xf] }
 0x3fc   : > { %3562 = vmatpush.bf16.xpose.msra.mxu2 %v8350_v10  ;;  %v8461_v10 = vld [vmem:[#allocation3 + $0x280] sm:$0xf] }
 0x3fd   : > { %v8462_v39 = vor.u32 %v10675_v12, %v8461_v10  ;;  %v10750_v12 = vld [vmem:[#allocation3 + $0x1a8] sm:$0xf0] }
 0x3fe   : > { %3575 = vmatpush.bf16.xpose.msra.mxu3 %v8550_v34  ;;  %v8458_v34 = vor.u32 %v10671_v19, %v8455_v54  ;;  %v8537_v19 = vld [vmem:[#allocation3 + $0x320] sm:$0xf]  ;;  %v10695_v54 = vld [vmem:[#allocation3 + $0x338] sm:$0xf0] }
 0x400   : > { %3641 = vmatpush.bf16.xpose.msrb.mxu1 %v8542_v55  ;;  %v8841_v55 = vld [vmem:[#allocation3 + $0x238] sm:$0xf] }
 0x401   : > { %3654 = vmatpush.bf16.xpose.msrb.mxu0 %v8546_v45 }
 0x404   : > { %3563 = vmatpush.bf16.xpose.msra.mxu2 %v8322_v4  ;;  %v10665_v4 = vld [vmem:[#allocation3 + $0x248] sm:$0xf0] }
 0x405   : > { %v8410_v45 = vor.u32 %v10665_v4, %v8409_v50  ;;  %v10684_v4 = vld [vmem:[#allocation3 + $0x2e4] sm:$0xf] }
 0x406   : > { %3576 = vmatpush.bf16.xpose.msra.mxu3 %v8522_v3  ;;  %v2891_v3 = vunpack.c.l.b16 %v8182_v28  ;;  %v8762_v28 = vor.u32 %v10747_v46, %v8759_v24  ;;  %v8506_v59 = vor.u32 %v10684_v4, %v8503_v14  ;;  %v10767_v24 = vld [vmem:[#allocation3 + $0x234] sm:$0xf]  ;;  %v10773_v46 = vld [vmem:[#allocation3 + $0x260] sm:$0xf0]  ;;  %v8645_v4 = vld [vmem:[#allocation3 + $0xb0] sm:$0xf] }
 0x407   : > { %v9057_v14 = vld [vmem:[#allocation3 + $0x3f0] sm:$0xf] }
 0x408   : > { %3642 = vmatpush.bf16.xpose.msrb.mxu1 %v8514_v13  ;;  %v2898_v8 = vpack.c.b16 %v2891_v3, %v2891_v3  ;;  %v8590_v13 = vor.u32 %v10705_v27, %v8587_v2  ;;  %v8510_v3 = vor.u32 %v10688_v30, %v8509_v41  ;;  %v10736_v2 = vld [vmem:[#allocation3 + $0x138] sm:$0xf0]  ;;  %v10826_v41 = vld [vmem:[#allocation3 + $0x408] sm:$0xf0] }
 0x409   : > { %3655 = vmatpush.bf16.xpose.msrb.mxu0 %v8518_v52  ;;  %v10764_v52 = vld [vmem:[#allocation3 + $0x218] sm:$0xf0] }
 0x40a   : > { %v8814_v61 = vor.u32 %v10764_v52, %v8813_v57  ;;  %v10733_v52 = vld [vmem:[#allocation3 + $0x124] sm:$0xf] }
 0x40c   : > { %3564 = vmatpush.bf16.xpose.msra.mxu2 %v8294_v17  ;;  %v8842_v17 = vor.u32 %v10771_v11, %v8841_v55  ;;  %v8730_v55 = vor.u32 %v10743_v23, %v8729_v6  ;;  %v10740_v11 = vld [vmem:[#allocation3 + $0x15c] sm:$0xf]  ;;  %v10719_v23 = vld [vmem:[#allocation3 + $0xb4] sm:$0xf] }
 0x40e   : > { %3577 = vmatpush.bf16.xpose.msra.mxu3 %v8494_v5  ;;  %v10709_v5 = vld [vmem:[#allocation3 + $0x3a8] sm:$0xf0] }
 0x40f   : > { %v8594_v56 = vor.u32 %v10709_v5, %v8593_v16  ;;  %v8703_v16 = vld [vmem:[#allocation3 + $0x13c] sm:$0xf0] }
 0x410   : > { %3643 = vmatpush.bf16.xpose.msrb.mxu1 %v8486_v48  ;;  %v10757_v48 = vld [vmem:[#allocation3 + $0x1e0] sm:$0xf0] }
 0x411   : > { %3656 = vmatpush.bf16.xpose.msrb.mxu0 %v8490_v20  ;;  %v8787_v20 = vld [vmem:[#allocation3 + $0x1e4] sm:$0xf0]  ;;  %v8786_v32 = vor.u32 %v10757_v48, %v8785_v36  ;;  %v10726_v36 = vld [vmem:[#allocation3 + $0xec] sm:$0xf] }
 0x414   : > { %3565 = vmatpush.bf16.xpose.msra.mxu2 %v8266_v40  ;;  %v8818_v40 = vor.u32 %v10761_v58, %v8815_v44  ;;  %v8706_v58 = vor.u32 %v10733_v52, %v8703_v16  ;;  %v10670_v44 = vld [vmem:[#allocation3 + $0x274] sm:$0xf] }
 0x416   : > { %3578 = vmatpush.bf16.xpose.msra.mxu3 %v8466_v35  ;;  %v8562_v35 = vor.u32 %v10698_v43, %v8559_v7  ;;  %v8453_v43 = vld [vmem:[#allocation3 + $0x278] sm:$0xf]  ;;  %v10674_v7 = vld [vmem:[#allocation3 + $0x290] sm:$0xf0] }
 0x417   : > { %v8454_v48 = vor.u32 %v10674_v7, %v8453_v43  ;;  %v10749_v7 = vld [vmem:[#allocation3 + $0x1a0] sm:$0xf0] }
 0x418   : > { %3644 = vmatpush.bf16.xpose.msrb.mxu1 %v8458_v34  ;;  %v8538_v34 = vor.u32 %v10695_v54, %v8537_v19  ;;  %v10770_v19 = vld [vmem:[#allocation3 + $0x248] sm:$0xf0]  ;;  %v8425_v54 = vld [vmem:[#allocation3 + $0x240] sm:$0xf] }
 0x419   : > { %3657 = vmatpush.bf16.xpose.msrb.mxu0 %v8462_v39  ;;  %v8757_v39 = vld [vmem:[#allocation3 + $0x190] sm:$0xf] }
 0x41c   : > { %3566 = vmatpush.bf16.xpose.msra.mxu2 %v8238_v22  ;;  %v8531_v22 = vld [vmem:[#allocation3 + $0x334] sm:$0xf0] }
 0x41e   : > { %3579 = vmatpush.bf16.xpose.msra.mxu3 %v8438_v21 }
 0x420   : > { %3645 = vmatpush.bf16.xpose.msrb.mxu1 %v8430_v33  ;;  %v3491_v33 = vpop.f32.mrf.mxu1 }
 0x421   : > { %3658 = vmatpush.bf16.xpose.msrb.mxu0 %v8434_v60  ;;  %v3504_v60 = vpop.f32.mrf.mxu0 }
 0x424   : > { %3567 = vmatpush.bf16.xpose.msra.mxu2 %v8210_v25  ;;  %v8758_v25 = vor.u32 %v10750_v12, %v8757_v39 }
 0x426   : > { %3580 = vmatpush.bf16.xpose.msra.mxu3 %v8410_v45 }
 0x427   : > { %3646 = vmatmul.bf16.vlgmr.msrb.gmra.mxu1 %v12145_v31  ;;  %v10691_v31 = vld [vmem:[#allocation3 + $0x31c] sm:$0xf] }
 0x428   : > { %4426 = vmatpush.bf16.xpose.msra.mxu1 %v8842_v17  ;;  %3659 = vmatmul.bf16.vlgmr.msrb.gmra.mxu0 %v2898_v8  ;;  %v8534_v10 = vor.u32 %v10691_v31, %v8531_v22  ;;  %v12173_v17 = vadd.f32 %v3504_v60, %v3491_v33  ;;  %v8833_v22 = vld [vmem:[#allocation3 + $0x230] sm:$0xf]  ;;  %v10766_v60 = vld [vmem:[#allocation3 + $0x228] sm:$0xf0] }
 0x429   : > { %4439 = vmatpush.bf16.xpose.msra.mxu0 %v8846_v1  ;;  %v10681_v1 = vld [vmem:[#allocation3 + $0x2c8] sm:$0xf0]  ;;  %v8834_v39 = vor.u32 %v10770_v19, %v8833_v22  ;;  %v8829_v33 = vld [vmem:[#allocation3 + $0x210] sm:$0xf] }
 0x42b   : > { %3568 = vmatmul.bf16.vlgmr.msra.gmra.mxu2 %v2898_v8  ;;  %v8481_v8 = vld [vmem:[#allocation3 + $0x2b0] sm:$0xf] }
 0x42c   : > { %3612 = vmatpush.bf16.xpose.msrb.mxu2 %v8618_v37  ;;  %v8731_v37 = vld [vmem:[#allocation3 + $0x174] sm:$0xf0]  ;;  %v8482_v5 = vor.u32 %v10681_v1, %v8481_v8  ;;  %v10819_v1 = vld [vmem:[#allocation3 + $0x3d0] sm:$0xf0] }
 0x42d   : > { %3581 = vmatmul.bf16.vlgmr.msra.gmra.mxu3 %v12117_v42  ;;  %v10754_v42 = vld [vmem:[#allocation3 + $0x1cc] sm:$0xf]  ;;  %v8734_v18 = vor.u32 %v10740_v11, %v8731_v37  ;;  %v10763_v11 = vld [vmem:[#allocation3 + $0x210] sm:$0xf0]  ;;  %v9029_v8 = vld [vmem:[#allocation3 + $0x3b8] sm:$0xf] }
 0x42e   : > { %3625 = vmatpush.bf16.xpose.msrb.mxu3 %v8622_v29  ;;  %v8790_v15 = vor.u32 %v10754_v42, %v8787_v20  ;;  %v2731_v21 = vpop.f32.mrf.mxu2  ;;  %v8475_v29 = vld [vmem:[#allocation3 + $0x2c4] sm:$0xf0]  ;;  %v10663_v42 = vld [vmem:[#allocation3 + $0x23c] sm:$0xf]  ;;  %v9030_v16 = vor.u32 %v10819_v1, %v9029_v8  ;;  %v10791_v8 = vld [vmem:[#allocation3 + $0x2f0] sm:$0xf0] }
 0x42f   : > { %v2732_v63 = vadd.f32 %v2731_v21, %v12163_v51  ;;  %v8478_v27 = vor.u32 %v10677_v62, %v8475_v29  ;;  %v8673_v20 = vld [vmem:[#allocation3 + $0xe8] sm:$0xf]  ;;  %v8807_v62 = vld [vmem:[#allocation3 + $0x214] sm:$0xf0] }
 0x430   : > { %4427 = vmatpush.bf16.xpose.msra.mxu1 %v8814_v61  ;;  %v2744_v50 = vpop.f32.mrf.mxu3  ;;  %v3493_v61 = vpop.f32.mrf.mxu1 }
 0x431   : > { %4440 = vmatpush.bf16.xpose.msra.mxu0 %v8818_v40  ;;  %v12171_v26 = vadd.f32 %v2744_v50, %v2732_v63  ;;  %v3506_v40 = vpop.f32.mrf.mxu0  ;;  %v8835_v63 = vld [vmem:[#allocation3 + $0x24c] sm:$0xf0]  ;;  %v10812_v61 = vld [vmem:[#allocation3 + $0x398] sm:$0xf0] }
 0x432   : > { %v8647_v50 = vld [vmem:[#allocation3 + $0xcc] sm:$0xf0]  ;;  %v8838_v30 = vor.u32 %v10767_v24, %v8835_v63  ;;  %v10742_v24 = vld [vmem:[#allocation3 + $0x168] sm:$0xf0] }
 0x433   : > { %v8650_v37 = vor.u32 %v10719_v23, %v8647_v50 }
 0x434   : > { %3613 = vmatpush.bf16.xpose.msrb.mxu2 %v8590_v13  ;;  %v8701_v13 = vld [vmem:[#allocation3 + $0x120] sm:$0xf] }
 0x435   : > { %v8702_v57 = vor.u32 %v10736_v2, %v8701_v13  ;;  %v8830_v2 = vor.u32 %v10766_v60, %v8829_v33  ;;  %v8777_v13 = vld [vmem:[#allocation3 + $0x1c0] sm:$0xf]  ;;  %v10732_v33 = vld [vmem:[#allocation3 + $0x11c] sm:$0xf]  ;;  %v8917_v60 = vld [vmem:[#allocation3 + $0x2d8] sm:$0xf] }
 0x436   : > { %3626 = vmatpush.bf16.xpose.msrb.mxu3 %v8594_v56  ;;  %v2733_v51 = vpop.f32.mrf.mxu2  ;;  %v8447_v56 = vld [vmem:[#allocation3 + $0x28c] sm:$0xf0] }
 0x437   : > { %v8450_v9 = vor.u32 %v10670_v44, %v8447_v56  ;;  %v10753_v44 = vld [vmem:[#allocation3 + $0x1c4] sm:$0xf]  ;;  %v9001_v56 = vld [vmem:[#allocation3 + $0x380] sm:$0xf] }
 0x438   : > { %4428 = vmatpush.bf16.xpose.msra.mxu1 %v8786_v32  ;;  %v2746_v45 = vpop.f32.mrf.mxu3  ;;  %v12175_v31 = vpop.f32.mrf.mxu1 }
 0x439   : > { %4441 = vmatpush.bf16.xpose.msra.mxu0 %v8790_v15  ;;  %v8419_v15 = vld [vmem:[#allocation3 + $0x254] sm:$0xf0]  ;;  %v12177_v12 = vpop.f32.mrf.mxu0 }
 0x43a   : > { %v8422_v21 = vor.u32 %v10663_v42, %v8419_v15  ;;  %v10805_v42 = vld [vmem:[#allocation3 + $0x360] sm:$0xf0] }
 0x43c   : > { %3614 = vmatpush.bf16.xpose.msrb.mxu2 %v8562_v35  ;;  %v8675_v35 = vld [vmem:[#allocation3 + $0x104] sm:$0xf0] }
 0x43d   : > { %v8678_v32 = vor.u32 %v10726_v36, %v8675_v35  ;;  %v10746_v36 = vld [vmem:[#allocation3 + $0x18c] sm:$0xf] }
 0x43e   : > { %3627 = vmatpush.bf16.xpose.msrb.mxu3 %v8566_v0  ;;  %v8674_v0 = vor.u32 %v10729_v47, %v8673_v20  ;;  %v8751_v47 = vld [vmem:[#allocation3 + $0x1a4] sm:$0xf0]  ;;  %v10752_v20 = vld [vmem:[#allocation3 + $0x1b8] sm:$0xf0] }
 0x43f   : > { %v8754_v22 = vor.u32 %v10746_v36, %v8751_v47  ;;  %v10772_v47 = vld [vmem:[#allocation3 + $0x258] sm:$0xf0] }
 0x440   : > { %4429 = vmatpush.bf16.xpose.msra.mxu1 %v8758_v25  ;;  %v8857_v25 = vld [vmem:[#allocation3 + $0x248] sm:$0xf]  ;;  %v3545_v6 = vpop.f32.mrf.mxu1 }
 0x441   : > { %4442 = vmatpush.bf16.xpose.msra.mxu0 %v8762_v28  ;;  %v8858_v51 = vor.u32 %v10773_v46, %v8857_v25  ;;  %v3558_v45 = vpop.f32.mrf.mxu0  ;;  %v8745_v46 = vld [vmem:[#allocation3 + $0x168] sm:$0xf]  ;;  %v8693_v6 = vld [vmem:[#allocation3 + $0x118] sm:$0xf] }
 0x442   : > { %v8717_v45 = vld [vmem:[#allocation3 + $0x130] sm:$0xf] }
 0x444   : > { %3615 = vmatpush.bf16.xpose.msrb.mxu2 %v8534_v10  ;;  %v10667_v10 = vld [vmem:[#allocation3 + $0x258] sm:$0xf0] }
 0x445   : > { %v8426_v28 = vor.u32 %v10667_v10, %v8425_v54 }
 0x446   : > { %3628 = vmatpush.bf16.xpose.msrb.mxu3 %v8538_v34  ;;  %v10722_v34 = vld [vmem:[#allocation3 + $0xc8] sm:$0xf0] }
 0x448   : > { %4430 = vmatpush.bf16.xpose.msra.mxu1 %v8730_v55  ;;  %v8805_v55 = vld [vmem:[#allocation3 + $0x1f8] sm:$0xf] }
 0x449   : > { %4443 = vmatpush.bf16.xpose.msra.mxu0 %v8734_v18  ;;  %v10760_v18 = vld [vmem:[#allocation3 + $0x1fc] sm:$0xf]  ;;  %v8806_v29 = vor.u32 %v10763_v11, %v8805_v55  ;;  %v8695_v55 = vld [vmem:[#allocation3 + $0x134] sm:$0xf0] }
 0x44a   : > { %v8698_v1 = vor.u32 %v10732_v33, %v8695_v55  ;;  %v8793_v55 = vld [vmem:[#allocation3 + $0x1d0] sm:$0xf] }
 0x44b   : > { %v8795_v33 = vld [vmem:[#allocation3 + $0x1ec] sm:$0xf0] }
 0x44c   : > { %3616 = vmatpush.bf16.xpose.msrb.mxu2 %v8506_v59  ;;  %v8646_v59 = vor.u32 %v10722_v34, %v8645_v4  ;;  %v8721_v34 = vld [vmem:[#allocation3 + $0x150] sm:$0xf] }
 0x44d   : > { %v8722_v25 = vor.u32 %v10742_v24, %v8721_v34  ;;  %v8945_v4 = vld [vmem:[#allocation3 + $0x310] sm:$0xf]  ;;  %v9073_v24 = vld [vmem:[#allocation3 + $0x400] sm:$0xf] }
 0x44e   : > { %3629 = vmatpush.bf16.xpose.msrb.mxu3 %v8510_v3  ;;  %v9058_v3 = vor.u32 %v10826_v41, %v9057_v14  ;;  %v10798_v14 = vld [vmem:[#allocation3 + $0x328] sm:$0xf0] }
 0x450   : > { %4431 = vmatpush.bf16.xpose.msra.mxu1 %v8702_v57  ;;  %v8779_v57 = vld [vmem:[#allocation3 + $0x1dc] sm:$0xf0] }
 0x451   : > { %4444 = vmatpush.bf16.xpose.msra.mxu0 %v8706_v58  ;;  %v8801_v58 = vld [vmem:[#allocation3 + $0x1d8] sm:$0xf]  ;;  %v8782_v40 = vor.u32 %v10753_v44, %v8779_v57  ;;  %v8889_v44 = vld [vmem:[#allocation3 + $0x2a0] sm:$0xf] }
 0x454   : > { %3617 = vmatpush.bf16.xpose.msrb.mxu2 %v8478_v27  ;;  %v8810_v27 = vor.u32 %v10760_v18, %v8807_v62  ;;  %v10738_v18 = vld [vmem:[#allocation3 + $0x148] sm:$0xf0] }
 0x456   : > { %3630 = vmatpush.bf16.xpose.msrb.mxu3 %v8482_v5  ;;  %v10756_v5 = vld [vmem:[#allocation3 + $0x1d8] sm:$0xf0] }
 0x457   : > { %v8778_v52 = vor.u32 %v10756_v5, %v8777_v13  ;;  %v8665_v5 = vld [vmem:[#allocation3 + $0xe0] sm:$0xf] }
 0x458   : > { %4432 = vmatpush.bf16.xpose.msra.mxu1 %v8674_v0  ;;  %v8667_v13 = vld [vmem:[#allocation3 + $0xfc] sm:$0xf0] }
 0x459   : > { %4445 = vmatpush.bf16.xpose.msra.mxu0 %v8678_v32  ;;  %v8973_v32 = vld [vmem:[#allocation3 + $0x348] sm:$0xf] }
 0x45c   : > { %3618 = vmatpush.bf16.xpose.msrb.mxu2 %v8450_v9  ;;  %v8749_v9 = vld [vmem:[#allocation3 + $0x188] sm:$0xf] }
 0x45d   : > { %v8750_v35 = vor.u32 %v10749_v7, %v8749_v9  ;;  %v8637_v7 = vld [vmem:[#allocation3 + $0xa8] sm:$0xf]  ;;  %v8849_v9 = vld [vmem:[#allocation3 + $0x240] sm:$0xf] }
 0x45e   : > { %3631 = vmatpush.bf16.xpose.msrb.mxu3 %v8454_v48  ;;  %v8773_v48 = vld [vmem:[#allocation3 + $0x1a0] sm:$0xf] }
 0x45f   : > { %v8774_v54 = vor.u32 %v10752_v20, %v8773_v48  ;;  %v8639_v48 = vld [vmem:[#allocation3 + $0xc4] sm:$0xf0]  ;;  %v8661_v20 = vld [vmem:[#allocation3 + $0xc0] sm:$0xf] }
 0x460   : > { %4433 = vmatpush.bf16.xpose.msra.mxu1 %v8646_v59 }
 0x461   : > { %4446 = vmatpush.bf16.xpose.msra.mxu0 %v8650_v37  ;;  %v8946_v37 = vor.u32 %v10798_v14, %v8945_v4  ;;  %v10765_v4 = vld [vmem:[#allocation3 + $0x220] sm:$0xf0]  ;;  %v10762_v14 = vld [vmem:[#allocation3 + $0x20c] sm:$0xf] }
 0x464   : > { %3619 = vmatpush.bf16.xpose.msrb.mxu2 %v8422_v21  ;;  %v8974_v21 = vor.u32 %v10805_v42, %v8973_v32  ;;  %v10769_v32 = vld [vmem:[#allocation3 + $0x244] sm:$0xf]  ;;  %v8851_v42 = vld [vmem:[#allocation3 + $0x25c] sm:$0xf0] }
 0x465   : > { %v8854_v34 = vor.u32 %v10769_v32, %v8851_v42  ;;  %v8737_v32 = vld [vmem:[#allocation3 + $0x160] sm:$0xf]  ;;  %v10744_v42 = vld [vmem:[#allocation3 + $0x178] sm:$0xf0] }
 0x466   : > { %3632 = vmatpush.bf16.xpose.msrb.mxu3 %v8426_v28  ;;  %v10739_v28 = vld [vmem:[#allocation3 + $0x154] sm:$0xf] }
 0x468   : > { %4478 = vmatpush.bf16.xpose.msrb.mxu1 %v8858_v51 }
 0x469   : > { %4491 = vmatpush.bf16.xpose.msrb.mxu0 %v9058_v3 }
 0x46b   : > { %3620 = vmatmul.bf16.vlgmr.msrb.gmra.mxu2 %v12156_v53  ;;  %v10759_v53 = vld [vmem:[#allocation3 + $0x1f0] sm:$0xf0] }
 0x46c   : > { %4400 = vmatpush.bf16.xpose.msra.mxu2 %v8834_v39  ;;  %v8802_v43 = vor.u32 %v10759_v53, %v8801_v58  ;;  %v8723_v39 = vld [vmem:[#allocation3 + $0x16c] sm:$0xf0]  ;;  %v10731_v58 = vld [vmem:[#allocation3 + $0x110] sm:$0xf0]  ;;  %v10725_v53 = vld [vmem:[#allocation3 + $0xe4] sm:$0xf] }
 0x46d   : > { %3633 = vmatmul.bf16.vlgmr.msrb.gmra.mxu3 %v12143_v49  ;;  %v9002_v49 = vor.u32 %v10812_v61, %v9001_v56  ;;  %v10784_v56 = vld [vmem:[#allocation3 + $0x2b8] sm:$0xf0]  ;;  %v8670_v61 = vor.u32 %v10725_v53, %v8667_v13  ;;  %v10751_v53 = vld [vmem:[#allocation3 + $0x1b0] sm:$0xf0] }
 0x46e   : > { %4413 = vmatpush.bf16.xpose.msra.mxu3 %v8838_v30  ;;  %v3517_v0 = vpop.f32.mrf.mxu2  ;;  %v8726_v30 = vor.u32 %v10739_v28, %v8723_v39  ;;  %v8821_v28 = vld [vmem:[#allocation3 + $0x208] sm:$0xf] }
 0x46f   : > { %v3518_v15 = vadd.f32 %v3517_v0, %v12173_v17  ;;  %v10745_v17 = vld [vmem:[#allocation3 + $0x180] sm:$0xf0]  ;;  %v10724_v0 = vld [vmem:[#allocation3 + $0xd8] sm:$0xf0] }
 0x470   : > { %4479 = vmatpush.bf16.xpose.msrb.mxu1 %v8830_v2  ;;  %v3530_v19 = vpop.f32.mrf.mxu3  ;;  %v8746_v59 = vor.u32 %v10745_v17, %v8745_v46  ;;  %v8918_v2 = vor.u32 %v10791_v8, %v8917_v60  ;;  %v8662_v39 = vor.u32 %v10724_v0, %v8661_v20 }
 0x471   : > { %4492 = vmatpush.bf16.xpose.msrb.mxu0 %v9030_v16  ;;  %v3531_v10 = vadd.f32 %v3530_v19, %v3518_v15  ;;  %v10728_v16 = vld [vmem:[#allocation3 + $0xf8] sm:$0xf0]  ;;  %v8861_v15 = vld [vmem:[#allocation3 + $0x268] sm:$0xf]  ;;  %v10777_v19 = vld [vmem:[#allocation3 + $0x280] sm:$0xf0] }
 0x472   : > { %v8666_v57 = vor.u32 %v10728_v16, %v8665_v5  ;;  %v10814_v16 = vld [vmem:[#allocation3 + $0x3a8] sm:$0xf0] }
 0x473   : > { %v3544_v63 = vadd.f32 %v12175_v31, %v3531_v10  ;;  %v10735_v31 = vld [vmem:[#allocation3 + $0x130] sm:$0xf0]  ;;  %v9067_v10 = vld [vmem:[#allocation3 + $0x414] sm:$0xf0] }
 0x474   : > { %4401 = vmatpush.bf16.xpose.msra.mxu2 %v8806_v29  ;;  %v8694_v11 = vor.u32 %v10735_v31, %v8693_v6  ;;  %v10821_v31 = vld [vmem:[#allocation3 + $0x3e0] sm:$0xf0]  ;;  %v8631_v6 = vld [vmem:[%s12475_s4 + $0x54] sm:$0xff] }
 0x475   : > { %v12184_v50 = vadd.f32 %v12177_v12, %v3544_v63  ;;  %v8632_v12 = vld [vmem:[%s12475_s4 + $0x5c] sm:$0xff]  ;;  %v10828_v63 = vld [vmem:[#allocation3 + $0x418] sm:$0xf0] }
 0x476   : > { %4414 = vmatpush.bf16.xpose.msra.mxu3 %v8810_v27  ;;  %v3519_v41 = vpop.f32.mrf.mxu2  ;;  %v3805_v51 = vunpack.c.l.b16 %v8632_v12  ;;  %v3806_v3 = vunpack.c.h.b16 %v8632_v12  ;;  %v8718_v27 = vor.u32 %v10738_v18, %v8717_v45  ;;  %v9074_v17 = vor.u32 %v10828_v63, %v9073_v24  ;;  %v10755_v18 = vld [vmem:[#allocation3 + $0x1d4] sm:$0xf]  ;;  %v10800_v24 = vld [vmem:[#allocation3 + $0x338] sm:$0xf0] }
 0x477   : > { %v8823_v41 = vld [vmem:[#allocation3 + $0x224] sm:$0xf0]  ;;  %v3803_v45 = vunpack.c.l.b16 %v8631_v6  ;;  %v8798_v5 = vor.u32 %v10755_v18, %v8795_v33  ;;  %v8681_v18 = vld [vmem:[#allocation3 + $0xf0] sm:$0xf]  ;;  %v10730_v33 = vld [vmem:[#allocation3 + $0x108] sm:$0xf0] }
 0x478   : > { %4480 = vmatpush.bf16.xpose.msrb.mxu1 %v8802_v43  ;;  %v3532_v23 = vpop.f32.mrf.mxu3  ;;  %v12189_v62 = vpack.c.b16 %v3805_v51, %v3805_v51  ;;  %v12191_v29 = vpack.c.b16 %v3806_v3, %v3806_v3  ;;  %v8890_v43 = vor.u32 %v10784_v56, %v8889_v44  ;;  %v8826_v12 = vor.u32 %v10762_v14, %v8823_v41  ;;  %v10748_v56 = vld [vmem:[#allocation3 + $0x19c] sm:$0xf]  ;;  %v3608_v14 = vpop.f32.mrf.mxu0 }
 0x479   : > { %4493 = vmatpush.bf16.xpose.msrb.mxu0 %v9002_v49  ;;  %v10721_v49 = vld [vmem:[#allocation3 + $0xc0] sm:$0xf0]  ;;  %v9039_v23 = vld [vmem:[#allocation3 + $0x3dc] sm:$0xf0]  ;;  %v3810_v60 = vpack.c.b16 %v3803_v45, %v3803_v45 }
 0x47a   : > { %4434 = vmatmul.bf16.vlgmr.msra.gmra.mxu1 %v12189_v62  ;;  %4447 = vmatmul.bf16.vlgmr.msra.gmra.mxu0 %v12191_v29  ;;  %v8638_v36 = vor.u32 %v10721_v49, %v8637_v7  ;;  %v8983_v49 = vld [vmem:[#allocation3 + $0x36c] sm:$0xf0] }
 0x47c   : > { %4402 = vmatpush.bf16.xpose.msra.mxu2 %v8778_v52  ;;  %v8689_v52 = vld [vmem:[#allocation3 + $0xf8] sm:$0xf] }
 0x47e   : > { %4415 = vmatpush.bf16.xpose.msra.mxu3 %v8782_v40  ;;  %v8690_v40 = vor.u32 %v10731_v58, %v8689_v52  ;;  %v3804_v52 = vunpack.c.h.b16 %v8631_v6  ;;  %v8765_v58 = vld [vmem:[#allocation3 + $0x198] sm:$0xf]  ;;  %v10793_v6 = vld [vmem:[#allocation3 + $0x300] sm:$0xf0] }
 0x480   : > { %4481 = vmatpush.bf16.xpose.msrb.mxu1 %v8774_v54  ;;  %v10824_v54 = vld [vmem:[#allocation3 + $0x3fc] sm:$0xf]  ;;  %v12198_v44 = vpack.c.b16 %v3804_v52, %v3804_v52  ;;  %v10786_v52 = vld [vmem:[#allocation3 + $0x2c8] sm:$0xf0] }
 0x481   : > { %4494 = vmatpush.bf16.xpose.msrb.mxu0 %v8974_v21  ;;  %v9070_v46 = vor.u32 %v10824_v54, %v9067_v10  ;;  %v10796_v54 = vld [vmem:[#allocation3 + $0x31c] sm:$0xf]  ;;  %v8955_v10 = vld [vmem:[#allocation3 + $0x334] sm:$0xf0] }
 0x484   : > { %4403 = vmatpush.bf16.xpose.msra.mxu2 %v8750_v35  ;;  %v10718_v35 = vld [vmem:[#allocation3 + $0xac] sm:$0xf] }
 0x485   : > { %v8642_v21 = vor.u32 %v10718_v35, %v8639_v48 }
 0x486   : > { %4416 = vmatpush.bf16.xpose.msra.mxu3 %v8754_v22  ;;  %v8850_v22 = vor.u32 %v10772_v47, %v8849_v9  ;;  %v8989_v9 = vld [vmem:[#allocation3 + $0x358] sm:$0xf]  ;;  %v10807_v47 = vld [vmem:[#allocation3 + $0x370] sm:$0xf0] }
 0x488   : > { %4482 = vmatpush.bf16.xpose.msrb.mxu1 %v8746_v59  ;;  %v10817_v59 = vld [vmem:[#allocation3 + $0x3c4] sm:$0xf] }
 0x489   : > { %4495 = vmatpush.bf16.xpose.msrb.mxu0 %v8946_v37  ;;  %v9045_v37 = vld [vmem:[#allocation3 + $0x3c8] sm:$0xf]  ;;  %v9042_v51 = vor.u32 %v10817_v59, %v9039_v23 }
 0x48a   : > { %v9046_v3 = vor.u32 %v10821_v31, %v9045_v37  ;;  %v8711_v59 = vld [vmem:[#allocation3 + $0x144] sm:$0xf0]  ;;  %v10789_v37 = vld [vmem:[#allocation3 + $0x2e4] sm:$0xf]  ;;  %v8927_v31 = vld [vmem:[#allocation3 + $0x2fc] sm:$0xf0] }
 0x48c   : > { %4404 = vmatpush.bf16.xpose.msra.mxu2 %v8722_v25  ;;  %v8862_v25 = vor.u32 %v10777_v19, %v8861_v15  ;;  %v10741_v15 = vld [vmem:[#allocation3 + $0x164] sm:$0xf]  ;;  %v8738_v19 = vor.u32 %v10744_v42, %v8737_v32  ;;  %v9065_v42 = vld [vmem:[#allocation3 + $0x3f8] sm:$0xf] }
 0x48e   : > { %4417 = vmatpush.bf16.xpose.msra.mxu3 %v8726_v30  ;;  %v8822_v30 = vor.u32 %v10765_v4, %v8821_v28  ;;  %v8634_v28 = vld [vmem:[%s12475_s4 + $0x6c] sm:$0xf] }
 0x48f   : > { %v3809_v41 = vunpack.c.l.b16 %v8634_v28 }
 0x490   : > { %4483 = vmatpush.bf16.xpose.msrb.mxu1 %v8718_v27  ;;  %v9011_v27 = vld [vmem:[#allocation3 + $0x3a4] sm:$0xf0] }
 0x491   : > { %4496 = vmatpush.bf16.xpose.msrb.mxu0 %v8918_v2  ;;  %v9017_v2 = vld [vmem:[#allocation3 + $0x390] sm:$0xf] }
 0x494   : > { %4405 = vmatpush.bf16.xpose.msra.mxu2 %v8694_v11  ;;  %v10758_v11 = vld [vmem:[#allocation3 + $0x1e8] sm:$0xf0] }
 0x495   : > { %v8794_v8 = vor.u32 %v10758_v11, %v8793_v55  ;;  %v8930_v11 = vor.u32 %v10789_v37, %v8927_v31  ;;  %v9037_v37 = vld [vmem:[#allocation3 + $0x3c0] sm:$0xf]  ;;  %v10820_v31 = vld [vmem:[#allocation3 + $0x3d8] sm:$0xf0] }
 0x496   : > { %4418 = vmatpush.bf16.xpose.msra.mxu3 %v8698_v1  ;;  %v10810_v1 = vld [vmem:[#allocation3 + $0x38c] sm:$0xf] }
 0x497   : > { %v9014_v13 = vor.u32 %v10810_v1, %v9011_v27  ;;  %v3610_v1 = vpop.f32.mrf.mxu0  ;;  %v10727_v27 = vld [vmem:[#allocation3 + $0xf4] sm:$0xf] }
 0x498   : > { %4484 = vmatpush.bf16.xpose.msrb.mxu1 %v8690_v40  ;;  %v8766_v40 = vor.u32 %v10751_v53, %v8765_v58  ;;  %v9003_v1 = vld [vmem:[#allocation3 + $0x39c] sm:$0xf0] }
 0x499   : > { %4497 = vmatpush.bf16.xpose.msrb.mxu0 %v8890_v43  ;;  %v10803_v43 = vld [vmem:[#allocation3 + $0x354] sm:$0xf] }
 0x49a   : > { %v8986_v20 = vor.u32 %v10803_v43, %v8983_v49  ;;  %v10720_v43 = vld [vmem:[#allocation3 + $0xbc] sm:$0xf] }
 0x49c   : > { %4406 = vmatpush.bf16.xpose.msra.mxu2 %v8666_v57  ;;  %v9018_v57 = vor.u32 %v10814_v16, %v9017_v2  ;;  %v8683_v2 = vld [vmem:[#allocation3 + $0x10c] sm:$0xf0]  ;;  %v8682_v16 = vor.u32 %v10730_v33, %v8681_v18  ;;  %v9038_v18 = vor.u32 %v10820_v31, %v9037_v37  ;;  %v10792_v37 = vld [vmem:[#allocation3 + $0x2f8] sm:$0xf0] }
 0x49d   : > { %v8686_v58 = vor.u32 %v10727_v27, %v8683_v2  ;;  %v9009_v27 = vld [vmem:[#allocation3 + $0x388] sm:$0xf]  ;;  %v10813_v2 = vld [vmem:[#allocation3 + $0x3a0] sm:$0xf0] }
 0x49e   : > { %4419 = vmatpush.bf16.xpose.msra.mxu3 %v8670_v61  ;;  %v8767_v61 = vld [vmem:[#allocation3 + $0x1b4] sm:$0xf0] }
 0x49f   : > { %v8770_v48 = vor.u32 %v10748_v56, %v8767_v61  ;;  %v8653_v61 = vld [vmem:[#allocation3 + $0xb8] sm:$0xf] }
 0x4a0   : > { %4485 = vmatpush.bf16.xpose.msrb.mxu1 %v8662_v39  ;;  %v8709_v39 = vld [vmem:[#allocation3 + $0x128] sm:$0xf] }
 0x4a1   : > { %4498 = vmatpush.bf16.xpose.msrb.mxu0 %v8862_v25  ;;  %v10737_v25 = vld [vmem:[#allocation3 + $0x140] sm:$0xf0] }
 0x4a2   : > { %v8710_v23 = vor.u32 %v10737_v25, %v8709_v39 }
 0x4a4   : > { %4407 = vmatpush.bf16.xpose.msra.mxu2 %v8638_v36  ;;  %v8990_v36 = vor.u32 %v10807_v47, %v8989_v9  ;;  %v9059_v9 = vld [vmem:[#allocation3 + $0x40c] sm:$0xf0]  ;;  %v8633_v47 = vld [vmem:[%s12475_s4 + $0x64] sm:$0xff] }
 0x4a5   : > { %v3808_v39 = vunpack.c.h.b16 %v8633_v47 }
 0x4a6   : > { %4420 = vmatpush.bf16.xpose.msra.mxu3 %v8642_v21  ;;  %v8961_v21 = vld [vmem:[#allocation3 + $0x320] sm:$0xf] }
 0x4a8   : > { %4530 = vmatpush.bf16.xpose.msra.mxu1 %v9070_v46  ;;  %4499 = vmatmul.bf16.vlgmr.msrb.gmra.mxu0 %v3810_v60 }
 0x4a9   : > { %4543 = vmatpush.bf16.xpose.msra.mxu0 %v9074_v17  ;;  %v3595_v17 = vpop.f32.mrf.mxu1 }
 0x4ab   : > { %4408 = vmatmul.bf16.vlgmr.msra.gmra.mxu2 %v3810_v60 }
 0x4ac   : > { %4452 = vmatpush.bf16.xpose.msrb.mxu2 %v8850_v22  ;;  %v8739_v22 = vld [vmem:[#allocation3 + $0x17c] sm:$0xf0] }
 0x4ad   : > { %4421 = vmatmul.bf16.vlgmr.msra.gmra.mxu3 %v12198_v44  ;;  %v8742_v63 = vor.u32 %v10741_v15, %v8739_v22  ;;  %v10827_v15 = vld [vmem:[#allocation3 + $0x410] sm:$0xf0]  ;;  %v8877_v22 = vld [vmem:[#allocation3 + $0x278] sm:$0xf] }
 0x4ae   : > { %4465 = vmatpush.bf16.xpose.msrb.mxu3 %v8854_v34  ;;  %v3569_v7 = vpop.f32.mrf.mxu2  ;;  %v8958_v34 = vor.u32 %v10796_v54, %v8955_v10  ;;  %v3807_v54 = vunpack.c.l.b16 %v8633_v47  ;;  %v10779_v10 = vld [vmem:[#allocation3 + $0x290] sm:$0xf0] }
 0x4af   : > { %v3570_v35 = vadd.f32 %v3569_v7, %v12184_v50  ;;  %v10823_v7 = vld [vmem:[#allocation3 + $0x3f4] sm:$0xf] }
 0x4b0   : > { %4531 = vmatpush.bf16.xpose.msra.mxu1 %v9042_v51  ;;  %v3582_v46 = vpop.f32.mrf.mxu3  ;;  %v12210_v51 = vpack.c.b16 %v3809_v41, %v3809_v41  ;;  %v3814_v28 = vpack.c.b16 %v3807_v54, %v3807_v54  ;;  %v10816_v41 = vld [vmem:[#allocation3 + $0x3bc] sm:$0xf] }
 0x4b1   : > { %4544 = vmatpush.bf16.xpose.msra.mxu0 %v9046_v3  ;;  %v12203_v0 = vadd.f32 %v3570_v35, %v12138_v38  ;;  %v8962_v38 = vor.u32 %v10800_v24, %v8961_v21  ;;  %v3596_v4 = vadd.f32 %v3595_v17, %v3582_v46  ;;  %v8933_v3 = vld [vmem:[#allocation3 + $0x2e8] sm:$0xf]  ;;  %v8655_v35 = vld [vmem:[#allocation3 + $0xd4] sm:$0xf0]  ;;  %v10882_v24 = vld [vmem:[#allocation3 + $0x280] sm:$0xf0]  ;;  %v8878_v46 = vor.u32 %v10779_v10, %v8877_v22 }
 0x4b2   : > { %4486 = vmatmul.bf16.vlgmr.msrb.gmra.mxu1 %v12210_v51  ;;  %v8934_v45 = vor.u32 %v10793_v6, %v8933_v3  ;;  %v9285_v21 = vld [vmem:[#allocation3 + $0x268] sm:$0xf]  ;;  %v9257_v6 = vld [vmem:[#allocation3 + $0x230] sm:$0xf]  ;;  %v10858_v22 = vld [vmem:[#allocation3 + $0x1c4] sm:$0xf] }
 0x4b3   : > { %v9286_v17 = vor.u32 %v10882_v24, %v9285_v21  ;;  %v10795_v10 = vld [vmem:[#allocation3 + $0x314] sm:$0xf]  ;;  %v8947_v21 = vld [vmem:[#allocation3 + $0x32c] sm:$0xf0] }
 0x4b4   : > { %4453 = vmatpush.bf16.xpose.msrb.mxu2 %v8822_v30  ;;  %v10734_v30 = vld [vmem:[#allocation3 + $0x12c] sm:$0xf] }
 0x4b5   : > { %v8714_v55 = vor.u32 %v10734_v30, %v8711_v59  ;;  %v9031_v30 = vld [vmem:[#allocation3 + $0x3d4] sm:$0xf0]  ;;  %v12220_v59 = vpack.c.b16 %v3808_v39, %v3808_v39  ;;  %v9175_v39 = vld [vmem:[#allocation3 + $0x1a4] sm:$0xf0] }
 0x4b6   : > { %4466 = vmatpush.bf16.xpose.msrb.mxu3 %v8826_v12  ;;  %v3571_v50 = vpop.f32.mrf.mxu2  ;;  %v12208_v12 = vadd.f32 %v3608_v14, %v3596_v4  ;;  %v9034_v3 = vor.u32 %v10816_v41, %v9031_v30  ;;  %v10788_v30 = vld [vmem:[#allocation3 + $0x2dc] sm:$0xf] }
 0x4b7   : > { %v8658_v50 = vor.u32 %v10720_v43, %v8655_v35  ;;  %v10806_v43 = vld [vmem:[#allocation3 + $0x368] sm:$0xf0]  ;;  %v9203_v35 = vld [vmem:[#allocation3 + $0x1dc] sm:$0xf0] }
 0x4b8   : > { %4532 = vmatpush.bf16.xpose.msra.mxu1 %v9014_v13  ;;  %v3584_v60 = vpop.f32.mrf.mxu3  ;;  %v8899_v13 = vld [vmem:[#allocation3 + $0x2c4] sm:$0xf0]  ;;  %v9206_v54 = vor.u32 %v10858_v22, %v9203_v35  ;;  %v10833_v35 = vld [vmem:[#allocation3 + $0xf8] sm:$0xf0]  ;;  %v9089_v22 = vld [vmem:[#allocation3 + $0xe0] sm:$0xf] }
 0x4b9   : > { %4545 = vmatpush.bf16.xpose.msra.mxu0 %v9018_v57  ;;  %v8905_v57 = vld [vmem:[#allocation3 + $0x2b0] sm:$0xf] }
 0x4ba   : > { %v8906_v56 = vor.u32 %v10786_v52, %v8905_v57  ;;  %v10865_v57 = vld [vmem:[#allocation3 + $0x1fc] sm:$0xf]  ;;  %v9231_v52 = vld [vmem:[#allocation3 + $0x214] sm:$0xf0] }
 0x4bc   : > { %4454 = vmatpush.bf16.xpose.msrb.mxu2 %v8794_v8  ;;  %v3597_v8 = vpop.f32.mrf.mxu1 }
 0x4bd   : > { %v10809_v8 = vld [vmem:[#allocation3 + $0x384] sm:$0xf] }
 0x4be   : > { %4467 = vmatpush.bf16.xpose.msrb.mxu3 %v8798_v5  ;;  %v10782_v5 = vld [vmem:[#allocation3 + $0x2ac] sm:$0xf] }
 0x4bf   : > { %v8902_v53 = vor.u32 %v10782_v5, %v8899_v13  ;;  %v9229_v5 = vld [vmem:[#allocation3 + $0x1f8] sm:$0xf]  ;;  %v10868_v13 = vld [vmem:[#allocation3 + $0x210] sm:$0xf0] }
 0x4c0   : > { %4533 = vmatpush.bf16.xpose.msra.mxu1 %v8986_v20  ;;  %v8871_v20 = vld [vmem:[#allocation3 + $0x28c] sm:$0xf0] }
 0x4c1   : > { %4546 = vmatpush.bf16.xpose.msra.mxu0 %v8990_v36  ;;  %v12218_v36 = vpop.f32.mrf.mxu0 }
 0x4c4   : > { %4455 = vmatpush.bf16.xpose.msrb.mxu2 %v8766_v40  ;;  %v10723_v40 = vld [vmem:[#allocation3 + $0xd0] sm:$0xf0]  ;;  %v12213_v49 = vpop.f32.mrf.mxu1 }
 0x4c5   : > { %v8654_v32 = vor.u32 %v10723_v40, %v8653_v61  ;;  %v8975_v61 = vld [vmem:[#allocation3 + $0x364] sm:$0xf0]  ;;  %v8981_v40 = vld [vmem:[#allocation3 + $0x350] sm:$0xf] }
 0x4c6   : > { %4468 = vmatpush.bf16.xpose.msrb.mxu3 %v8770_v48  ;;  %v10775_v48 = vld [vmem:[#allocation3 + $0x274] sm:$0xf] }
 0x4c7   : > { %v8874_v25 = vor.u32 %v10775_v48, %v8871_v20  ;;  %v8982_v20 = vor.u32 %v10806_v43, %v8981_v40  ;;  %v8869_v40 = vld [vmem:[#allocation3 + $0x270] sm:$0xf]  ;;  %v10778_v43 = vld [vmem:[#allocation3 + $0x288] sm:$0xf0] }
 0x4c8   : > { %4534 = vmatpush.bf16.xpose.msra.mxu1 %v8958_v34  ;;  %v9287_v34 = vld [vmem:[#allocation3 + $0x284] sm:$0xf0] }
 0x4c9   : > { %4547 = vmatpush.bf16.xpose.msra.mxu0 %v8962_v38  ;;  %v9066_v38 = vor.u32 %v10827_v15, %v9065_v42 }
 0x4cc   : > { %4456 = vmatpush.bf16.xpose.msrb.mxu2 %v8738_v19  ;;  %v9062_v19 = vor.u32 %v10823_v7, %v9059_v9  ;;  %v3649_v14 = vpop.f32.mrf.mxu1  ;;  %v10861_v9 = vld [vmem:[#allocation3 + $0x1d8] sm:$0xf0] }
 0x4cd   : > { %v10851_v14 = vld [vmem:[#allocation3 + $0x18c] sm:$0xf] }
 0x4ce   : > { %4469 = vmatpush.bf16.xpose.msrb.mxu3 %v8742_v63  ;;  %v10879_v63 = vld [vmem:[#allocation3 + $0x26c] sm:$0xf] }
 0x4cf   : > { %v9290_v4 = vor.u32 %v10879_v63, %v9287_v34  ;;  %v10799_v63 = vld [vmem:[#allocation3 + $0x330] sm:$0xf0] }
 0x4d0   : > { %4535 = vmatpush.bf16.xpose.msra.mxu1 %v8930_v11  ;;  %v10872_v11 = vld [vmem:[#allocation3 + $0x234] sm:$0xf] }
 0x4d1   : > { %4548 = vmatpush.bf16.xpose.msra.mxu0 %v8934_v45  ;;  %v9259_v45 = vld [vmem:[#allocation3 + $0x24c] sm:$0xf0] }
 0x4d2   : > { %v9262_v60 = vor.u32 %v10872_v11, %v9259_v45  ;;  %v10844_v45 = vld [vmem:[#allocation3 + $0x154] sm:$0xf] }
 0x4d4   : > { %4457 = vmatpush.bf16.xpose.msrb.mxu2 %v8710_v23  ;;  %v3662_v23 = vpop.f32.mrf.mxu0 }
 0x4d5   : > { %v8919_v23 = vld [vmem:[#allocation3 + $0x2f4] sm:$0xf0] }
 0x4d6   : > { %4470 = vmatpush.bf16.xpose.msrb.mxu3 %v8714_v55  ;;  %v10875_v55 = vld [vmem:[#allocation3 + $0x248] sm:$0xf0]  ;;  %v8922_v31 = vor.u32 %v10788_v30, %v8919_v23 }
 0x4d7   : > { %v9258_v33 = vor.u32 %v10875_v55, %v9257_v6  ;;  %v9147_v6 = vld [vmem:[#allocation3 + $0x16c] sm:$0xf0] }
 0x4d8   : > { %4536 = vmatpush.bf16.xpose.msra.mxu1 %v8902_v53  ;;  %v9230_v53 = vor.u32 %v10868_v13, %v9229_v5  ;;  %v9145_v55 = vld [vmem:[#allocation3 + $0x150] sm:$0xf]  ;;  %v9117_v13 = vld [vmem:[#allocation3 + $0x118] sm:$0xf] }
 0x4d9   : > { %4549 = vmatpush.bf16.xpose.msra.mxu0 %v8906_v56  ;;  %v9234_v56 = vor.u32 %v10865_v57, %v9231_v52  ;;  %v10837_v52 = vld [vmem:[#allocation3 + $0x11c] sm:$0xf] }
 0x4dc   : > { %4458 = vmatpush.bf16.xpose.msrb.mxu2 %v8682_v16  ;;  %v9006_v16 = vor.u32 %v10809_v8, %v9003_v1  ;;  %v8897_v8 = vld [vmem:[#allocation3 + $0x2a8] sm:$0xf]  ;;  %v10785_v1 = vld [vmem:[#allocation3 + $0x2c0] sm:$0xf0] }
 0x4dd   : > { %v8898_v5 = vor.u32 %v10785_v1, %v8897_v8  ;;  %v8997_v8 = vld [vmem:[#allocation3 + $0x360] sm:$0xf]  ;;  %v10808_v1 = vld [vmem:[#allocation3 + $0x378] sm:$0xf0] }
 0x4de   : > { %4471 = vmatpush.bf16.xpose.msrb.mxu3 %v8686_v58  ;;  %v9010_v58 = vor.u32 %v10813_v2, %v9009_v27  ;;  %v10840_v2 = vld [vmem:[#allocation3 + $0x130] sm:$0xf0] }
 0x4df   : > { %v9118_v57 = vor.u32 %v10840_v2, %v9117_v13  ;;  %v9217_v2 = vld [vmem:[#allocation3 + $0x1d0] sm:$0xf] }
 0x4e0   : > { %4537 = vmatpush.bf16.xpose.msra.mxu1 %v8874_v25  ;;  %v9219_v13 = vld [vmem:[#allocation3 + $0x1ec] sm:$0xf0] }
 0x4e1   : > { %4550 = vmatpush.bf16.xpose.msra.mxu0 %v8878_v46 }
 0x4e4   : > { %4459 = vmatpush.bf16.xpose.msrb.mxu2 %v8654_v32  ;;  %v9201_v32 = vld [vmem:[#allocation3 + $0x1c0] sm:$0xf] }
 0x4e5   : > { %v9202_v15 = vor.u32 %v10861_v9, %v9201_v32  ;;  %v9081_v9 = vld [vmem:[#allocation3 + $0x408] sm:$0xf]  ;;  %v9301_v32 = vld [vmem:[#allocation3 + $0x278] sm:$0xf] }
 0x4e6   : > { %4472 = vmatpush.bf16.xpose.msrb.mxu3 %v8658_v50  ;;  %v8953_v50 = vld [vmem:[#allocation3 + $0x318] sm:$0xf] }
 0x4e7   : > { %4538 = vmatmul.bf16.vlgmr.msra.gmra.mxu1 %v12191_v29  ;;  %v10802_v29 = vld [vmem:[#allocation3 + $0x34c] sm:$0xf] }
 0x4e8   : > { %5318 = vmatpush.bf16.xpose.msrb.mxu1 %v9286_v17  ;;  %4551 = vmatmul.bf16.vlgmr.msra.gmra.mxu0 %v3814_v28  ;;  %v8978_v7 = vor.u32 %v10802_v29, %v8975_v61  ;;  %v8954_v17 = vor.u32 %v10799_v63, %v8953_v50  ;;  %v10825_v29 = vld [vmem:[#allocation3 + $0x404] sm:$0xf]  ;;  %v9075_v61 = vld [vmem:[#allocation3 + $0x41c] sm:$0xf0] }
 0x4e9   : > { %5331 = vmatpush.bf16.xpose.msrb.mxu0 %v9290_v4 }
 0x4eb   : > { %4460 = vmatmul.bf16.vlgmr.msrb.gmra.mxu2 %v3814_v28  ;;  %v9173_v28 = vld [vmem:[#allocation3 + $0x188] sm:$0xf] }
 0x4ec   : > { %4504 = vmatpush.bf16.xpose.msra.mxu2 %v9062_v19 }
 0x4ed   : > { %4473 = vmatmul.bf16.vlgmr.msrb.gmra.mxu3 %v12220_v59 }
 0x4ee   : > { %4517 = vmatpush.bf16.xpose.msra.mxu3 %v9066_v38  ;;  %v3621_v47 = vpop.f32.mrf.mxu2  ;;  %v10854_v38 = vld [vmem:[#allocation3 + $0x1a0] sm:$0xf0] }
 0x4ef   : > { %v3622_v48 = vadd.f32 %v3621_v47, %v12208_v12  ;;  %v8950_v12 = vor.u32 %v10795_v10, %v8947_v21  ;;  %v9174_v4 = vor.u32 %v10854_v38, %v9173_v28  ;;  %v10829_v47 = vld [vmem:[#allocation3 + $0x420] sm:$0xf0]  ;;  %v9090_v21 = vor.u32 %v10833_v35, %v9089_v22  ;;  %v9047_v38 = vld [vmem:[#allocation3 + $0x3e4] sm:$0xf0]  ;;  %v9273_v28 = vld [vmem:[#allocation3 + $0x240] sm:$0xf] }
 0x4f0   : > { %5319 = vmatpush.bf16.xpose.msrb.mxu1 %v9258_v33  ;;  %v3634_v42 = vpop.f32.mrf.mxu3  ;;  %v10781_v33 = vld [vmem:[#allocation3 + $0x2a4] sm:$0xf]  ;;  %v9082_v10 = vor.u32 %v10829_v47, %v9081_v9  ;;  %v10853_v9 = vld [vmem:[#allocation3 + $0x19c] sm:$0xf]  ;;  %v9191_v47 = vld [vmem:[#allocation3 + $0x1b4] sm:$0xf0] }
 0x4f1   : > { %5332 = vmatpush.bf16.xpose.msrb.mxu0 %v9262_v60  ;;  %v3635_v19 = vadd.f32 %v3634_v42, %v3622_v48  ;;  %v8891_v60 = vld [vmem:[#allocation3 + $0x2bc] sm:$0xf0]  ;;  %v9078_v48 = vor.u32 %v10825_v29, %v9075_v61  ;;  %v10884_v42 = vld [vmem:[#allocation3 + $0x290] sm:$0xf0]  ;;  %v8969_v29 = vld [vmem:[#allocation3 + $0x328] sm:$0xf] }
 0x4f2   : > { %v8894_v27 = vor.u32 %v10781_v33, %v8891_v60  ;;  %v9302_v63 = vor.u32 %v10884_v42, %v9301_v32  ;;  %v10804_v33 = vld [vmem:[#allocation3 + $0x35c] sm:$0xf]  ;;  %v8991_v60 = vld [vmem:[#allocation3 + $0x374] sm:$0xf0]  ;;  %v10801_v61 = vld [vmem:[#allocation3 + $0x340] sm:$0xf0]  ;;  %v9194_v32 = vor.u32 %v10853_v9, %v9191_v47 }
 0x4f3   : > { %v3648_v24 = vadd.f32 %v12213_v49, %v3635_v19  ;;  %v9178_v49 = vor.u32 %v10851_v14, %v9175_v39  ;;  %v10881_v19 = vld [vmem:[#allocation3 + $0x27c] sm:$0xf]  ;;  %v9053_v39 = vld [vmem:[#allocation3 + $0x3d0] sm:$0xf]  ;;  %v10874_v14 = vld [vmem:[#allocation3 + $0x244] sm:$0xf]  ;;  %v8970_v35 = vor.u32 %v10801_v61, %v8969_v29 }
 0x4f4   : > { %4505 = vmatpush.bf16.xpose.msra.mxu2 %v9034_v3  ;;  %v10847_v3 = vld [vmem:[#allocation3 + $0x168] sm:$0xf0]  ;;  %v9511_v61 = vld [vmem:[#allocation3 + $0x444] sm:$0xf0] }
 0x4f5   : > { %v3661_v34 = vadd.f32 %v12218_v36, %v3648_v24  ;;  %v8925_v36 = vld [vmem:[#allocation3 + $0x2e0] sm:$0xf]  ;;  %v9146_v11 = vor.u32 %v10847_v3, %v9145_v55  ;;  %v10830_v24 = vld [vmem:[#allocation3 + $0xe4] sm:$0xf]  ;;  %v10815_v3 = vld [vmem:[#allocation3 + $0x3b0] sm:$0xf0] }
 0x4f6   : > { %4518 = vmatpush.bf16.xpose.msra.mxu3 %v9038_v18  ;;  %v3623_v25 = vpop.f32.mrf.mxu2  ;;  %v9150_v18 = vor.u32 %v10844_v45, %v9147_v6  ;;  %v10867_v55 = vld [vmem:[#allocation3 + $0x20c] sm:$0xf] }
 0x4f7   : > { %v12228_v46 = vadd.f32 %v3661_v34, %v12171_v26  ;;  %v8926_v26 = vor.u32 %v10792_v37, %v8925_v36  ;;  %v10822_v25 = vld [vmem:[#allocation3 + $0x3e8] sm:$0xf0]  ;;  %v10811_v36 = vld [vmem:[#allocation3 + $0x394] sm:$0xf]  ;;  %v9019_v37 = vld [vmem:[#allocation3 + $0x3ac] sm:$0xf0]  ;;  %v4435_v22 = vpop.f32.mrf.mxu1 }
 0x4f8   : > { %5320 = vmatpush.bf16.xpose.msrb.mxu1 %v9230_v53  ;;  %v3636_v41 = vpop.f32.mrf.mxu3  ;;  %v10774_v53 = vld [vmem:[#allocation3 + $0x26c] sm:$0xf]  ;;  %v9022_v6 = vor.u32 %v10811_v36, %v9019_v37  ;;  %v10783_v36 = vld [vmem:[#allocation3 + $0x2b4] sm:$0xf]  ;;  %v8907_v37 = vld [vmem:[#allocation3 + $0x2cc] sm:$0xf0] }
 0x4f9   : > { %5333 = vmatpush.bf16.xpose.msrb.mxu0 %v9234_v56  ;;  %v8863_v56 = vld [vmem:[#allocation3 + $0x284] sm:$0xf0]  ;;  %v9275_v41 = vld [vmem:[#allocation3 + $0x25c] sm:$0xf0]  ;;  %v10790_v42 = vld [vmem:[#allocation3 + $0x2ec] sm:$0xf] }
 0x4fa   : > { %v9278_v23 = vor.u32 %v10874_v14, %v9275_v41  ;;  %v10935_v29 = vld [vmem:[#allocation3 + $0x42c] sm:$0xf] }
 0x4fb   : > { %v10939_v9 = vld [vmem:[#allocation3 + $0x448] sm:$0xf0] }
 0x4fc   : > { %4506 = vmatpush.bf16.xpose.msra.mxu2 %v9006_v16  ;;  %v9119_v16 = vld [vmem:[#allocation3 + $0x134] sm:$0xf0] }
 0x4fe   : > { %4519 = vmatpush.bf16.xpose.msra.mxu3 %v9010_v58  ;;  %v9122_v58 = vor.u32 %v10837_v52, %v9119_v16  ;;  %v10863_v16 = vld [vmem:[#allocation3 + $0x1e8] sm:$0xf0] }
 0x4ff   : > { %v9218_v52 = vor.u32 %v10863_v16, %v9217_v2  ;;  %v8879_v2 = vld [vmem:[#allocation3 + $0x294] sm:$0xf0] }
 0x500   : > { %5321 = vmatpush.bf16.xpose.msrb.mxu1 %v9202_v15  ;;  %v8870_v15 = vor.u32 %v10778_v43, %v8869_v40  ;;  %v9189_v43 = vld [vmem:[#allocation3 + $0x198] sm:$0xf] }
 0x501   : > { %5334 = vmatpush.bf16.xpose.msrb.mxu0 %v9206_v54  ;;  %v9303_v54 = vld [vmem:[#allocation3 + $0x294] sm:$0xf0] }
 0x502   : > { %v9306_v34 = vor.u32 %v10881_v19, %v9303_v54  ;;  %v9083_v19 = vld [vmem:[%s12475_s4 + $0x70] sm:$0xff]  ;;  %v4448_v54 = vpop.f32.mrf.mxu0 }
 0x504   : > { %4507 = vmatpush.bf16.xpose.msra.mxu2 %v8978_v7  ;;  %v8866_v7 = vor.u32 %v10774_v53, %v8863_v56  ;;  %v10797_v53 = vld [vmem:[#allocation3 + $0x324] sm:$0xf]  ;;  %v8963_v56 = vld [vmem:[#allocation3 + $0x33c] sm:$0xf0] }
 0x505   : > { %v8966_v40 = vor.u32 %v10797_v53, %v8963_v56  ;;  %v10835_v53 = vld [vmem:[#allocation3 + $0x108] sm:$0xf0]  ;;  %v10780_v56 = vld [vmem:[#allocation3 + $0x298] sm:$0xf0] }
 0x506   : > { %4520 = vmatpush.bf16.xpose.msra.mxu3 %v8982_v20  ;;  %v9091_v20 = vld [vmem:[#allocation3 + $0xfc] sm:$0xf0] }
 0x507   : > { %v9094_v50 = vor.u32 %v10830_v24, %v9091_v20  ;;  %v8941_v24 = vld [vmem:[#allocation3 + $0x2f0] sm:$0xf] }
 0x508   : > { %5322 = vmatpush.bf16.xpose.msrb.mxu1 %v9174_v4  ;;  %v10877_v4 = vld [vmem:[#allocation3 + $0x258] sm:$0xf0] }
 0x509   : > { %5335 = vmatpush.bf16.xpose.msrb.mxu0 %v9178_v49  ;;  %v9054_v49 = vor.u32 %v10822_v25, %v9053_v39  ;;  %v9274_v30 = vor.u32 %v10877_v4, %v9273_v28  ;;  %v10846_v25 = vld [vmem:[#allocation3 + $0x164] sm:$0xf] }
 0x50c   : > { %4508 = vmatpush.bf16.xpose.msra.mxu2 %v8950_v12  ;;  %v10818_v12 = vld [vmem:[#allocation3 + $0x3cc] sm:$0xf] }
 0x50e   : > { %4521 = vmatpush.bf16.xpose.msra.mxu3 %v8954_v17  ;;  %v9050_v17 = vor.u32 %v10818_v12, %v9047_v38  ;;  %v10849_v12 = vld [vmem:[#allocation3 + $0x178] sm:$0xf0] }
 0x510   : > { %5323 = vmatpush.bf16.xpose.msrb.mxu1 %v9146_v11  ;;  %v9247_v11 = vld [vmem:[#allocation3 + $0x224] sm:$0xf0] }
 0x511   : > { %5336 = vmatpush.bf16.xpose.msrb.mxu0 %v9150_v18 }
 0x514   : > { %4509 = vmatpush.bf16.xpose.msra.mxu2 %v8922_v31  ;;  %v9025_v31 = vld [vmem:[#allocation3 + $0x398] sm:$0xf] }
 0x515   : > { %v9026_v45 = vor.u32 %v10815_v3, %v9025_v31  ;;  %v4437_v31 = vpop.f32.mrf.mxu1  ;;  %v4450_v3 = vpop.f32.mrf.mxu0 }
 0x516   : > { %4522 = vmatpush.bf16.xpose.msra.mxu3 %v8926_v26  ;;  %v10870_v26 = vld [vmem:[#allocation3 + $0x220] sm:$0xf0]  ;;  %v9461_v31 = vld [vmem:[#allocation3 + $0x3c0] sm:$0xf]  ;;  %v10925_v3 = vld [vmem:[#allocation3 + $0x3d8] sm:$0xf0] }
 0x518   : > { %5324 = vmatpush.bf16.xpose.msrb.mxu1 %v9118_v57  ;;  %v8998_v57 = vor.u32 %v10808_v1, %v8997_v8 }
 0x519   : > { %5337 = vmatpush.bf16.xpose.msrb.mxu0 %v9122_v58 }
 0x51c   : > { %4510 = vmatpush.bf16.xpose.msra.mxu2 %v8894_v27  ;;  %v8994_v27 = vor.u32 %v10804_v33, %v8991_v60 }
 0x51e   : > { %4523 = vmatpush.bf16.xpose.msra.mxu3 %v8898_v5  ;;  %v10860_v5 = vld [vmem:[#allocation3 + $0x1d4] sm:$0xf] }
 0x51f   : > { %v9222_v58 = vor.u32 %v10860_v5, %v9219_v13  ;;  %v8885_v5 = vld [vmem:[#allocation3 + $0x280] sm:$0xf]  ;;  %v9293_v13 = vld [vmem:[#allocation3 + $0x270] sm:$0xf] }
 0x520   : > { %5325 = vmatpush.bf16.xpose.msrb.mxu1 %v9090_v21  ;;  %v4722_v21 = vunpack.c.h.b16 %v9083_v19 }
 0x521   : > { %5338 = vmatpush.bf16.xpose.msrb.mxu0 %v9094_v50  ;;  %v10794_v50 = vld [vmem:[#allocation3 + $0x308] sm:$0xf0] }
 0x522   : > { %v12237_v39 = vpack.c.b16 %v4722_v21, %v4722_v21  ;;  %v8942_v4 = vor.u32 %v10794_v50, %v8941_v24  ;;  %v10876_v21 = vld [vmem:[#allocation3 + $0x250] sm:$0xf0]  ;;  %v10873_v24 = vld [vmem:[#allocation3 + $0x23c] sm:$0xf]  ;;  %v9267_v50 = vld [vmem:[#allocation3 + $0x254] sm:$0xf0] }
 0x524   : > { %4511 = vmatpush.bf16.xpose.msra.mxu2 %v8866_v7  ;;  %v10856_v7 = vld [vmem:[#allocation3 + $0x1b0] sm:$0xf0] }
 0x525   : > { %v9190_v20 = vor.u32 %v10856_v7, %v9189_v43  ;;  %v9295_v43 = vld [vmem:[#allocation3 + $0x28c] sm:$0xf0] }
 0x526   : > { %4524 = vmatpush.bf16.xpose.msra.mxu3 %v8870_v15  ;;  %v8935_v15 = vld [vmem:[#allocation3 + $0x304] sm:$0xf0]  ;;  %v9517_v7 = vld [vmem:[#allocation3 + $0x430] sm:$0xf] }
 0x528   : > { %5370 = vmatpush.bf16.xpose.msra.mxu1 %v9302_v63  ;;  %v8938_v63 = vor.u32 %v10790_v42, %v8935_v15  ;;  %5339 = vmatmul.bf16.vlgmr.msrb.gmra.mxu0 %v12237_v39 }
 0x529   : > { %5383 = vmatpush.bf16.xpose.msra.mxu0 %v9306_v34  ;;  %v9161_v34 = vld [vmem:[#allocation3 + $0x160] sm:$0xf] }
 0x52b   : > { %4512 = vmatmul.bf16.vlgmr.msra.gmra.mxu2 %v12198_v44  ;;  %v9245_v44 = vld [vmem:[#allocation3 + $0x208] sm:$0xf] }
 0x52c   : > { %4556 = vmatpush.bf16.xpose.msrb.mxu2 %v9078_v48  ;;  %v9246_v18 = vor.u32 %v10870_v26, %v9245_v44  ;;  %v8913_v44 = vld [vmem:[#allocation3 + $0x2b8] sm:$0xf]  ;;  %v10787_v26 = vld [vmem:[#allocation3 + $0x2d0] sm:$0xf0] }
 0x52d   : > { %4525 = vmatmul.bf16.vlgmr.msra.gmra.mxu3 %v12189_v62  ;;  %v9250_v62 = vor.u32 %v10867_v55, %v9247_v11  ;;  %v8910_v55 = vor.u32 %v10783_v36, %v8907_v37  ;;  %v9133_v11 = vld [vmem:[#allocation3 + $0x128] sm:$0xf]  ;;  %v8914_v60 = vor.u32 %v10787_v26, %v8913_v44  ;;  %v9455_v37 = vld [vmem:[#allocation3 + $0x3d4] sm:$0xf0] }
 0x52e   : > { %4569 = vmatpush.bf16.xpose.msrb.mxu3 %v9082_v10  ;;  %v4409_v48 = vpop.f32.mrf.mxu2  ;;  %v4721_v10 = vunpack.c.l.b16 %v9083_v19 }
 0x52f   : > { %v12243_v16 = vpop.f32.mrf.mxu1 }
 0x530   : > { %5371 = vmatpush.bf16.xpose.msra.mxu1 %v9274_v30  ;;  %v12235_v38 = vpack.c.b16 %v4721_v10, %v4721_v10  ;;  %v4422_v28 = vpop.f32.mrf.mxu3  ;;  %v9265_v10 = vld [vmem:[#allocation3 + $0x238] sm:$0xf] }
 0x531   : > { %5384 = vmatpush.bf16.xpose.msra.mxu0 %v9278_v23  ;;  %v4423_v14 = vadd.f32 %v4422_v28, %v4409_v48  ;;  %v9107_v48 = vld [vmem:[#allocation3 + $0x10c] sm:$0xf0]  ;;  %v9270_v28 = vor.u32 %v10873_v24, %v9267_v50  ;;  %v10900_v50 = vld [vmem:[#allocation3 + $0x314] sm:$0xf] }
 0x532   : > { %5326 = vmatmul.bf16.vlgmr.msrb.gmra.mxu1 %v12235_v38 }
 0x533   : > { %v4436_v23 = vadd.f32 %v4435_v22, %v4423_v14  ;;  %v9518_v22 = vor.u32 %v10939_v9, %v9517_v7  ;;  %v10907_v7 = vld [vmem:[#allocation3 + $0x34c] sm:$0xf]  ;;  %v10852_v9 = vld [vmem:[#allocation3 + $0x194] sm:$0xf] }
 0x534   : > { %4557 = vmatpush.bf16.xpose.msrb.mxu2 %v9050_v17  ;;  %v9163_v17 = vld [vmem:[#allocation3 + $0x17c] sm:$0xf0] }
 0x535   : > { %v9166_v30 = vor.u32 %v10846_v25, %v9163_v17  ;;  %v9489_v25 = vld [vmem:[#allocation3 + $0x3f8] sm:$0xf]  ;;  %v10932_v17 = vld [vmem:[#allocation3 + $0x410] sm:$0xf0] }
 0x536   : > { %4570 = vmatpush.bf16.xpose.msrb.mxu3 %v9054_v49  ;;  %v4411_v41 = vpop.f32.mrf.mxu2  ;;  %v9162_v49 = vor.u32 %v10849_v12, %v9161_v34  ;;  %v10928_v34 = vld [vmem:[#allocation3 + $0x3f4] sm:$0xf]  ;;  %v9483_v12 = vld [vmem:[#allocation3 + $0x40c] sm:$0xf0]  ;;  %v9490_v14 = vor.u32 %v10932_v17, %v9489_v25  ;;  %v10845_v25 = vld [vmem:[#allocation3 + $0x15c] sm:$0xf] }
 0x537   : > { %v9237_v41 = vld [vmem:[#allocation3 + $0x200] sm:$0xf]  ;;  %v9377_v17 = vld [vmem:[#allocation3 + $0x318] sm:$0xf] }
 0x538   : > { %5372 = vmatpush.bf16.xpose.msra.mxu1 %v9246_v18  ;;  %v10839_v18 = vld [vmem:[#allocation3 + $0x12c] sm:$0xf]  ;;  %v4424_v33 = vpop.f32.mrf.mxu3 }
 0x539   : > { %5385 = vmatpush.bf16.xpose.msra.mxu0 %v9250_v62  ;;  %v9135_v62 = vld [vmem:[#allocation3 + $0x144] sm:$0xf0]  ;;  %v9427_v33 = vld [vmem:[#allocation3 + $0x39c] sm:$0xf0] }
 0x53a   : > { %v9138_v1 = vor.u32 %v10839_v18, %v9135_v62  ;;  %v10914_v62 = vld [vmem:[#allocation3 + $0x384] sm:$0xf] }
 0x53c   : > { %4558 = vmatpush.bf16.xpose.msrb.mxu2 %v9022_v6  ;;  %v12241_v6 = vadd.f32 %v4448_v54, %v4436_v23  ;;  %v4489_v54 = vpop.f32.mrf.mxu1  ;;  %v9239_v23 = vld [vmem:[#allocation3 + $0x21c] sm:$0xf0] }
 0x53e   : > { %4571 = vmatpush.bf16.xpose.msrb.mxu3 %v9026_v45  ;;  %v10842_v45 = vld [vmem:[#allocation3 + $0x140] sm:$0xf0] }
 0x53f   : > { %v9134_v8 = vor.u32 %v10842_v45, %v9133_v11  ;;  %v9209_v11 = vld [vmem:[#allocation3 + $0x1c8] sm:$0xf] }
 0x540   : > { %5373 = vmatpush.bf16.xpose.msra.mxu1 %v9218_v52  ;;  %v10880_v52 = vld [vmem:[#allocation3 + $0x274] sm:$0xf]  ;;  %v9211_v45 = vld [vmem:[#allocation3 + $0x1e4] sm:$0xf0] }
 0x541   : > { %5386 = vmatpush.bf16.xpose.msra.mxu0 %v9222_v58  ;;  %v9105_v58 = vld [vmem:[#allocation3 + $0xf0] sm:$0xf]  ;;  %v9298_v42 = vor.u32 %v10880_v52, %v9295_v43 }
 0x542   : > { %v9106_v15 = vor.u32 %v10835_v53, %v9105_v58  ;;  %v10855_v53 = vld [vmem:[#allocation3 + $0x1a8] sm:$0xf0] }
 0x544   : > { %4559 = vmatpush.bf16.xpose.msrb.mxu2 %v8994_v27  ;;  %v10776_v27 = vld [vmem:[#allocation3 + $0x27c] sm:$0xf] }
 0x546   : > { %4572 = vmatpush.bf16.xpose.msrb.mxu3 %v8998_v57  ;;  %v10883_v57 = vld [vmem:[#allocation3 + $0x288] sm:$0xf0] }
 0x547   : > { %v9294_v47 = vor.u32 %v10883_v57, %v9293_v13  ;;  %v9430_v57 = vor.u32 %v10914_v62, %v9427_v33  ;;  %v9099_v62 = vld [vmem:[#allocation3 + $0x104] sm:$0xf0]  ;;  %v9309_v33 = vld [vmem:[#allocation3 + $0x280] sm:$0xf] }
 0x548   : > { %5374 = vmatpush.bf16.xpose.msra.mxu1 %v9190_v20  ;;  %v8886_v20 = vor.u32 %v10780_v56, %v8885_v5 }
 0x549   : > { %5387 = vmatpush.bf16.xpose.msra.mxu0 %v9194_v32  ;;  %v9514_v32 = vor.u32 %v10935_v29, %v9511_v61  ;;  %v9181_v29 = vld [vmem:[#allocation3 + $0x190] sm:$0xf] }
 0x54a   : > { %v9183_v61 = vld [vmem:[#allocation3 + $0x1ac] sm:$0xf0]  ;;  %v9182_v43 = vor.u32 %v10855_v53, %v9181_v29  ;;  %v9315_v53 = vld [vmem:[#allocation3 + $0x2bc] sm:$0xf0]  ;;  %v10941_v29 = vld [vmem:[#allocation3 + $0x458] sm:$0xf0] }
 0x54c   : > { %4560 = vmatpush.bf16.xpose.msrb.mxu2 %v8966_v40  ;;  %v8882_v40 = vor.u32 %v10776_v27, %v8879_v2  ;;  %v10918_v27 = vld [vmem:[#allocation3 + $0x3a0] sm:$0xf0] }
 0x54e   : > { %4573 = vmatpush.bf16.xpose.msrb.mxu3 %v8970_v35  ;;  %v10832_v35 = vld [vmem:[#allocation3 + $0xf4] sm:$0xf] }
 0x54f   : > { %v9110_v19 = vor.u32 %v10832_v35, %v9107_v48  ;;  %v10911_v35 = vld [vmem:[#allocation3 + $0x368] sm:$0xf0] }
 0x550   : > { %5375 = vmatpush.bf16.xpose.msra.mxu1 %v9162_v49  ;;  %v10869_v49 = vld [vmem:[#allocation3 + $0x218] sm:$0xf0] }
 0x551   : > { %5388 = vmatpush.bf16.xpose.msra.mxu0 %v9166_v30  ;;  %v10866_v30 = vld [vmem:[#allocation3 + $0x204] sm:$0xf]  ;;  %v9238_v36 = vor.u32 %v10869_v49, %v9237_v41  ;;  %v10841_v49 = vld [vmem:[#allocation3 + $0x138] sm:$0xf0] }
 0x552   : > { %v9242_v44 = vor.u32 %v10866_v30, %v9239_v23  ;;  %v9125_v23 = vld [vmem:[#allocation3 + $0x120] sm:$0xf] }
 0x554   : > { %4561 = vmatpush.bf16.xpose.msrb.mxu2 %v8938_v63  ;;  %v9266_v63 = vor.u32 %v10876_v21, %v9265_v10  ;;  %v9153_v10 = vld [vmem:[#allocation3 + $0x158] sm:$0xf] }
 0x555   : > { %v9155_v21 = vld [vmem:[#allocation3 + $0x174] sm:$0xf0] }
 0x556   : > { %4574 = vmatpush.bf16.xpose.msrb.mxu3 %v8942_v4  ;;  %v9486_v4 = vor.u32 %v10928_v34, %v9483_v12 }
 0x558   : > { %5376 = vmatpush.bf16.xpose.msra.mxu1 %v9134_v8  ;;  %v10859_v8 = vld [vmem:[#allocation3 + $0x1cc] sm:$0xf] }
 0x559   : > { %5389 = vmatpush.bf16.xpose.msra.mxu0 %v9138_v1  ;;  %v9433_v1 = vld [vmem:[#allocation3 + $0x388] sm:$0xf]  ;;  %v9214_v5 = vor.u32 %v10859_v8, %v9211_v45 }
 0x55a   : > { %v9434_v58 = vor.u32 %v10918_v27, %v9433_v1  ;;  %v9509_v1 = vld [vmem:[#allocation3 + $0x428] sm:$0xf]  ;;  %v10938_v27 = vld [vmem:[#allocation3 + $0x440] sm:$0xf0] }
 0x55c   : > { %4562 = vmatpush.bf16.xpose.msrb.mxu2 %v8910_v55  ;;  %v10862_v55 = vld [vmem:[#allocation3 + $0x1e0] sm:$0xf0] }
 0x55d   : > { %v9210_v18 = vor.u32 %v10862_v55, %v9209_v11  ;;  %v10834_v11 = vld [vmem:[#allocation3 + $0x100] sm:$0xf0] }
 0x55e   : > { %4575 = vmatpush.bf16.xpose.msrb.mxu3 %v8914_v60 }
 0x560   : > { %5377 = vmatpush.bf16.xpose.msra.mxu1 %v9106_v15 }
 0x561   : > { %5390 = vmatpush.bf16.xpose.msra.mxu0 %v9110_v19 }
 0x564   : > { %4563 = vmatpush.bf16.xpose.msrb.mxu2 %v8882_v40  ;;  %v12263_v8 = vpop.f32.mrf.mxu1 }
 0x566   : > { %4576 = vmatpush.bf16.xpose.msrb.mxu3 %v8886_v20  ;;  %v9186_v20 = vor.u32 %v10852_v9, %v9183_v61  ;;  %v10831_v61 = vld [vmem:[#allocation3 + $0xec] sm:$0xf]  ;;  %v9321_v9 = vld [vmem:[#allocation3 + $0x2a8] sm:$0xf] }
 0x568   : > { %5422 = vmatpush.bf16.xpose.msrb.mxu1 %v9514_v32 }
 0x569   : > { %5435 = vmatpush.bf16.xpose.msrb.mxu0 %v9518_v22  ;;  %v12252_v22 = vpop.f32.mrf.mxu0 }
 0x56b   : > { %4564 = vmatmul.bf16.vlgmr.msrb.gmra.mxu2 %v12220_v59  ;;  %v10921_v59 = vld [vmem:[#allocation3 + $0x3bc] sm:$0xf] }
 0x56c   : > { %5344 = vmatpush.bf16.xpose.msra.mxu2 %v9294_v47  ;;  %v9458_v26 = vor.u32 %v10921_v59, %v9455_v37  ;;  %v9405_v47 = vld [vmem:[#allocation3 + $0x350] sm:$0xf]  ;;  %v9126_v59 = vor.u32 %v10841_v49, %v9125_v23  ;;  %v10893_v37 = vld [vmem:[#allocation3 + $0x2dc] sm:$0xf]  ;;  %v10871_v23 = vld [vmem:[#allocation3 + $0x228] sm:$0xf0] }
 0x56d   : > { %4577 = vmatmul.bf16.vlgmr.msrb.gmra.mxu3 %v12210_v51  ;;  %v9462_v51 = vor.u32 %v10925_v3, %v9461_v31  ;;  %v9406_v15 = vor.u32 %v10911_v35, %v9405_v47  ;;  %v9343_v31 = vld [vmem:[#allocation3 + $0x2f4] sm:$0xf0]  ;;  %v10838_v3 = vld [vmem:[#allocation3 + $0x124] sm:$0xf]  ;;  %v9102_v35 = vor.u32 %v10831_v61, %v9099_v62  ;;  %v10917_v62 = vld [vmem:[#allocation3 + $0x398] sm:$0xf0] }
 0x56e   : > { %5357 = vmatpush.bf16.xpose.msra.mxu3 %v9298_v42  ;;  %v4461_v60 = vpop.f32.mrf.mxu2  ;;  %v9346_v55 = vor.u32 %v10893_v37, %v9343_v31  ;;  %v10890_v47 = vld [vmem:[#allocation3 + $0x2c0] sm:$0xf0]  ;;  %v10923_v31 = vld [vmem:[#allocation3 + $0x3cc] sm:$0xf]  ;;  %v9197_v61 = vld [vmem:[#allocation3 + $0x1a0] sm:$0xf] }
 0x56f   : > { %v4462_v2 = vadd.f32 %v4461_v60, %v12241_v6  ;;  %v9399_v6 = vld [vmem:[#allocation3 + $0x364] sm:$0xf0]  ;;  %v10885_v60 = vld [vmem:[#allocation3 + $0x298] sm:$0xf0] }
 0x570   : > { %5423 = vmatpush.bf16.xpose.msrb.mxu1 %v9486_v4  ;;  %v4474_v13 = vpop.f32.mrf.mxu3  ;;  %v9402_v32 = vor.u32 %v10907_v7, %v9399_v6  ;;  %v9158_v4 = vor.u32 %v10845_v25, %v9155_v21  ;;  %v9510_v7 = vor.u32 %v10938_v27, %v9509_v1  ;;  %v10930_v25 = vld [vmem:[#allocation3 + $0x404] sm:$0xf]  ;;  %v9443_v1 = vld [vmem:[#allocation3 + $0x3ac] sm:$0xf0] }
 0x571   : > { %5436 = vmatpush.bf16.xpose.msrb.mxu0 %v9490_v14  ;;  %v4475_v52 = vadd.f32 %v4474_v13, %v4462_v2  ;;  %v4502_v30 = vpop.f32.mrf.mxu0  ;;  %v9084_v2 = vld [vmem:[%s12475_s4 + $0x78] sm:$0xff]  ;;  %v10937_v13 = vld [vmem:[#allocation3 + $0x43c] sm:$0xf] }
 0x572   : > { %v4723_v6 = vunpack.c.l.b16 %v9084_v2  ;;  %v9253_v30 = vld [vmem:[#allocation3 + $0x210] sm:$0xf] }
 0x573   : > { %v4488_v56 = vadd.f32 %v12243_v16, %v4475_v52  ;;  %v10848_v16 = vld [vmem:[#allocation3 + $0x170] sm:$0xf0]  ;;  %v9254_v37 = vor.u32 %v10871_v23, %v9253_v30  ;;  %v9341_v30 = vld [vmem:[#allocation3 + $0x2d8] sm:$0xf] }
 0x574   : > { %5345 = vmatpush.bf16.xpose.msra.mxu2 %v9266_v63  ;;  %v9154_v24 = vor.u32 %v10848_v16, %v9153_v10  ;;  %v9371_v63 = vld [vmem:[#allocation3 + $0x32c] sm:$0xf0]  ;;  %v4730_v16 = vpack.c.b16 %v4723_v6, %v4723_v6  ;;  %v9397_v6 = vld [vmem:[#allocation3 + $0x348] sm:$0xf]  ;;  %v10896_v23 = vld [vmem:[#allocation3 + $0x2f0] sm:$0xf0] }
 0x575   : > { %v12250_v40 = vadd.f32 %v4488_v56, %v12203_v0  ;;  %v9085_v0 = vld [vmem:[%s12475_s4 + $0x80] sm:$0xff]  ;;  %v9374_v14 = vor.u32 %v10900_v50, %v9371_v63  ;;  %v9533_v56 = vld [vmem:[#allocation3 + $0x440] sm:$0xf]  ;;  %v10931_v50 = vld [vmem:[#allocation3 + $0x408] sm:$0xf0] }
 0x576   : > { %5358 = vmatpush.bf16.xpose.msra.mxu3 %v9270_v28  ;;  %v4463_v48 = vpop.f32.mrf.mxu2  ;;  %v4725_v19 = vunpack.c.l.b16 %v9085_v0  ;;  %v4726_v54 = vunpack.c.h.b16 %v9085_v0  ;;  %v10904_v28 = vld [vmem:[#allocation3 + $0x330] sm:$0xf0]  ;;  %v4541_v0 = vpop.f32.mrf.mxu1 }
 0x577   : > { %v9378_v41 = vor.u32 %v10904_v28, %v9377_v17  ;;  %v9499_v17 = vld [vmem:[#allocation3 + $0x41c] sm:$0xf0]  ;;  %v9505_v28 = vld [vmem:[#allocation3 + $0x408] sm:$0xf] }
 0x578   : > { %5424 = vmatpush.bf16.xpose.msrb.mxu1 %v9458_v26  ;;  %v4476_v42 = vpop.f32.mrf.mxu3  ;;  %v12257_v34 = vpack.c.b16 %v4725_v19, %v4725_v19  ;;  %v12259_v12 = vpack.c.b16 %v4726_v54, %v4726_v54  ;;  %v10897_v26 = vld [vmem:[#allocation3 + $0x2f8] sm:$0xf0]  ;;  %v9281_v19 = vld [vmem:[#allocation3 + $0x248] sm:$0xf]  ;;  %v10878_v54 = vld [vmem:[#allocation3 + $0x260] sm:$0xf0] }
 0x579   : > { %5437 = vmatpush.bf16.xpose.msrb.mxu0 %v9462_v51  ;;  %v12268_v52 = vpop.f32.mrf.mxu0  ;;  %v9534_v42 = vor.u32 %v10941_v29, %v9533_v56  ;;  %v9282_v63 = vor.u32 %v10878_v54, %v9281_v19  ;;  %v9169_v54 = vld [vmem:[#allocation3 + $0x168] sm:$0xf] }
 0x57a   : > { %5378 = vmatmul.bf16.vlgmr.msra.gmra.mxu1 %v12257_v34  ;;  %5391 = vmatmul.bf16.vlgmr.msra.gmra.mxu0 %v12259_v12 }
 0x57c   : > { %5346 = vmatpush.bf16.xpose.msra.mxu2 %v9238_v36  ;;  %v9127_v36 = vld [vmem:[#allocation3 + $0x13c] sm:$0xf0] }
 0x57d   : > { %v9130_v51 = vor.u32 %v10838_v3, %v9127_v36  ;;  %v9453_v36 = vld [vmem:[#allocation3 + $0x3b8] sm:$0xf]  ;;  %v9471_v3 = vld [vmem:[#allocation3 + $0x3e4] sm:$0xf0] }
 0x57e   : > { %5359 = vmatpush.bf16.xpose.msra.mxu3 %v9242_v44  ;;  %v9349_v44 = vld [vmem:[#allocation3 + $0x2e0] sm:$0xf] }
 0x57f   : > { %v9350_v45 = vor.u32 %v10897_v26, %v9349_v44  ;;  %v9477_v44 = vld [vmem:[#allocation3 + $0x3d0] sm:$0xf]  ;;  %v10927_v26 = vld [vmem:[#allocation3 + $0x3e8] sm:$0xf0] }
 0x580   : > { %5425 = vmatpush.bf16.xpose.msrb.mxu1 %v9430_v57  ;;  %v9527_v57 = vld [vmem:[#allocation3 + $0x454] sm:$0xf0] }
 0x581   : > { %5438 = vmatpush.bf16.xpose.msrb.mxu0 %v9434_v58  ;;  %v9530_v48 = vor.u32 %v10937_v13, %v9527_v57  ;;  %v4554_v21 = vpop.f32.mrf.mxu0 }
 0x582   : > { %v9369_v21 = vld [vmem:[#allocation3 + $0x310] sm:$0xf] }
 0x584   : > { %5347 = vmatpush.bf16.xpose.msra.mxu2 %v9210_v18  ;;  %v9097_v18 = vld [vmem:[#allocation3 + $0xe8] sm:$0xf] }
 0x585   : > { %v9098_v58 = vor.u32 %v10834_v11, %v9097_v18  ;;  %v9478_v11 = vor.u32 %v10927_v26, %v9477_v44  ;;  %v9425_v18 = vld [vmem:[#allocation3 + $0x380] sm:$0xf]  ;;  %v9342_v44 = vor.u32 %v10896_v23, %v9341_v30  ;;  %v9691_v30 = vld [vmem:[#allocation3 + $0x254] sm:$0xf0] }
 0x586   : > { %5360 = vmatpush.bf16.xpose.msra.mxu3 %v9214_v5  ;;  %v10886_v5 = vld [vmem:[#allocation3 + $0x2a4] sm:$0xf]  ;;  %v9426_v57 = vor.u32 %v10917_v62, %v9425_v18  ;;  %v9525_v18 = vld [vmem:[#allocation3 + $0x438] sm:$0xf]  ;;  %v10940_v62 = vld [vmem:[#allocation3 + $0x450] sm:$0xf0] }
 0x588   : > { %5426 = vmatpush.bf16.xpose.msrb.mxu1 %v9402_v32  ;;  %v9318_v32 = vor.u32 %v10886_v5, %v9315_v53  ;;  %v10920_v5 = vld [vmem:[#allocation3 + $0x3b0] sm:$0xf0] }
 0x589   : > { %5439 = vmatpush.bf16.xpose.msrb.mxu0 %v9406_v15  ;;  %v9322_v15 = vor.u32 %v10890_v47, %v9321_v9  ;;  %v10910_v9 = vld [vmem:[#allocation3 + $0x360] sm:$0xf0] }
 0x58c   : > { %5348 = vmatpush.bf16.xpose.msra.mxu2 %v9182_v43  ;;  %v9310_v43 = vor.u32 %v10885_v60, %v9309_v33  ;;  %v10916_v60 = vld [vmem:[#allocation3 + $0x394] sm:$0xf] }
 0x58d   : > { %v9446_v53 = vor.u32 %v10916_v60, %v9443_v1  ;;  %v9313_v60 = vld [vmem:[#allocation3 + $0x2a0] sm:$0xf]  ;;  %v10889_v1 = vld [vmem:[#allocation3 + $0x2b8] sm:$0xf0] }
 0x58e   : > { %5361 = vmatpush.bf16.xpose.msra.mxu3 %v9186_v20  ;;  %v4724_v20 = vunpack.c.h.b16 %v9084_v2  ;;  %v9449_v2 = vld [vmem:[#allocation3 + $0x398] sm:$0xf] }
 0x58f   : > { %v9450_v29 = vor.u32 %v10920_v5, %v9449_v2  ;;  %v10888_v5 = vld [vmem:[#allocation3 + $0x2b4] sm:$0xf] }
 0x590   : > { %5427 = vmatpush.bf16.xpose.msrb.mxu1 %v9374_v14  ;;  %v12270_v10 = vpack.c.b16 %v4724_v20, %v4724_v20  ;;  %v9421_v20 = vld [vmem:[#allocation3 + $0x360] sm:$0xf] }
 0x591   : > { %5440 = vmatpush.bf16.xpose.msrb.mxu0 %v9378_v41  ;;  %v9502_v41 = vor.u32 %v10930_v25, %v9499_v17  ;;  %v9393_v25 = vld [vmem:[#allocation3 + $0x328] sm:$0xf]  ;;  %v10906_v17 = vld [vmem:[#allocation3 + $0x340] sm:$0xf0] }
 0x594   : > { %5349 = vmatpush.bf16.xpose.msra.mxu2 %v9154_v24  ;;  %v9481_v24 = vld [vmem:[#allocation3 + $0x3f0] sm:$0xf] }
 0x595   : > { %v9482_v14 = vor.u32 %v10931_v50, %v9481_v24  ;;  %v10903_v24 = vld [vmem:[#allocation3 + $0x328] sm:$0xf0]  ;;  %v10902_v50 = vld [vmem:[#allocation3 + $0x324] sm:$0xf] }
 0x596   : > { %5362 = vmatpush.bf16.xpose.msra.mxu3 %v9158_v4  ;;  %v10934_v4 = vld [vmem:[#allocation3 + $0x420] sm:$0xf0] }
 0x597   : > { %v9506_v49 = vor.u32 %v10934_v4, %v9505_v28  ;;  %v9370_v28 = vor.u32 %v10903_v24, %v9369_v21  ;;  %v9719_v21 = vld [vmem:[#allocation3 + $0x28c] sm:$0xf0] }
 0x598   : > { %5428 = vmatpush.bf16.xpose.msrb.mxu1 %v9346_v55  ;;  %v9474_v55 = vor.u32 %v10923_v31, %v9471_v3  ;;  %v9365_v31 = vld [vmem:[#allocation3 + $0x2f0] sm:$0xf]  ;;  %v10899_v3 = vld [vmem:[#allocation3 + $0x308] sm:$0xf0] }
 0x599   : > { %5441 = vmatpush.bf16.xpose.msrb.mxu0 %v9350_v45  ;;  %v10864_v45 = vld [vmem:[#allocation3 + $0x1f0] sm:$0xf0] }
 0x59c   : > { %5350 = vmatpush.bf16.xpose.msra.mxu2 %v9126_v59  ;;  %v10924_v59 = vld [vmem:[#allocation3 + $0x3d0] sm:$0xf0] }
 0x59e   : > { %5363 = vmatpush.bf16.xpose.msra.mxu3 %v9130_v51  ;;  %v9454_v51 = vor.u32 %v10924_v59, %v9453_v36  ;;  %v10895_v59 = vld [vmem:[#allocation3 + $0x2ec] sm:$0xf] }
 0x5a0   : > { %5429 = vmatpush.bf16.xpose.msrb.mxu1 %v9318_v32  ;;  %v10913_v32 = vld [vmem:[#allocation3 + $0x378] sm:$0xf0] }
 0x5a1   : > { %5442 = vmatpush.bf16.xpose.msrb.mxu0 %v9322_v15  ;;  %v9398_v15 = vor.u32 %v10910_v9, %v9397_v6  ;;  %v9422_v19 = vor.u32 %v10913_v32, %v9421_v20  ;;  %v9747_v6 = vld [vmem:[#allocation3 + $0x2c4] sm:$0xf0]  ;;  %v10929_v32 = vld [vmem:[#allocation3 + $0x3fc] sm:$0xf] }
 0x5a4   : > { %5351 = vmatpush.bf16.xpose.msra.mxu2 %v9098_v58 }
 0x5a6   : > { %5364 = vmatpush.bf16.xpose.msra.mxu3 %v9102_v35 }
 0x5a7   : > { %5430 = vmatmul.bf16.vlgmr.msrb.gmra.mxu1 %v12237_v39  ;;  %v9225_v39 = vld [vmem:[#allocation3 + $0x1d8] sm:$0xf] }
 0x5a8   : > { %5474 = vmatpush.bf16.xpose.msra.mxu1 %v9530_v48  ;;  %5443 = vmatmul.bf16.vlgmr.msrb.gmra.mxu0 %v4730_v16  ;;  %v9226_v33 = vor.u32 %v10864_v45, %v9225_v39  ;;  %v9415_v48 = vld [vmem:[#allocation3 + $0x374] sm:$0xf0]  ;;  %v10836_v45 = vld [vmem:[#allocation3 + $0x110] sm:$0xf0] }
 0x5a9   : > { %5487 = vmatpush.bf16.xpose.msra.mxu0 %v9534_v42  ;;  %v9113_v39 = vld [vmem:[#allocation3 + $0xf8] sm:$0xf] }
 0x5aa   : > { %v9114_v2 = vor.u32 %v10836_v45, %v9113_v39 }
 0x5ab   : > { %5352 = vmatmul.bf16.vlgmr.msra.gmra.mxu2 %v4730_v16 }
 0x5ac   : > { %5396 = vmatpush.bf16.xpose.msrb.mxu2 %v9310_v43  ;;  %v10857_v43 = vld [vmem:[#allocation3 + $0x1b8] sm:$0xf0] }
 0x5ad   : > { %5365 = vmatmul.bf16.vlgmr.msra.gmra.mxu3 %v12270_v10  ;;  %v9198_v35 = vor.u32 %v10857_v43, %v9197_v61  ;;  %v10995_v61 = vld [vmem:[#allocation3 + $0x2c0] sm:$0xf0]  ;;  %v9314_v43 = vor.u32 %v10889_v1, %v9313_v60  ;;  %v10908_v1 = vld [vmem:[#allocation3 + $0x354] sm:$0xf] }
 0x5ae   : > { %5409 = vmatpush.bf16.xpose.msrb.mxu3 %v9510_v7  ;;  %v4513_v27 = vpop.f32.mrf.mxu2 }
 0x5af   : > { %v4514_v13 = vadd.f32 %v4513_v27, %v12252_v22  ;;  %v10909_v22 = vld [vmem:[#allocation3 + $0x35c] sm:$0xf] }
 0x5b0   : > { %5475 = vmatpush.bf16.xpose.msra.mxu1 %v9502_v41  ;;  %v4526_v58 = vpop.f32.mrf.mxu3  ;;  %v9418_v16 = vor.u32 %v10909_v22, %v9415_v48  ;;  %v9141_v41 = vld [vmem:[#allocation3 + $0x130] sm:$0xf] }
 0x5b1   : > { %5488 = vmatpush.bf16.xpose.msra.mxu0 %v9506_v49  ;;  %v4527_v56 = vadd.f32 %v4526_v58, %v4514_v13  ;;  %v10843_v49 = vld [vmem:[#allocation3 + $0x148] sm:$0xf0]  ;;  %v9331_v13 = vld [vmem:[#allocation3 + $0x2cc] sm:$0xf0]  ;;  %v9526_v58 = vor.u32 %v10940_v62, %v9525_v18 }
 0x5b2   : > { %v9142_v36 = vor.u32 %v10843_v49, %v9141_v41  ;;  %v9334_v9 = vor.u32 %v10888_v5, %v9331_v13  ;;  %v10981_v41 = vld [vmem:[#allocation3 + $0x250] sm:$0xf0]  ;;  %v10978_v49 = vld [vmem:[#allocation3 + $0x23c] sm:$0xf]  ;;  %v9413_v5 = vld [vmem:[#allocation3 + $0x358] sm:$0xf] }
 0x5b3   : > { %v4540_v7 = vadd.f32 %v12263_v8, %v4527_v56  ;;  %v10850_v8 = vld [vmem:[#allocation3 + $0x180] sm:$0xf0]  ;;  %v10892_v56 = vld [vmem:[#allocation3 + $0x2d0] sm:$0xf0] }
 0x5b4   : > { %5397 = vmatpush.bf16.xpose.msrb.mxu2 %v9282_v63  ;;  %v9387_v63 = vld [vmem:[#allocation3 + $0x33c] sm:$0xf0]  ;;  %v10912_v13 = vld [vmem:[#allocation3 + $0x370] sm:$0xf0] }
 0x5b5   : > { %v12277_v47 = vadd.f32 %v12268_v52, %v4540_v7  ;;  %v9170_v52 = vor.u32 %v10850_v8, %v9169_v54  ;;  %v9390_v4 = vor.u32 %v10902_v50, %v9387_v63  ;;  %v10992_v7 = vld [vmem:[#allocation3 + $0x2ac] sm:$0xf]  ;;  %v10985_v8 = vld [vmem:[#allocation3 + $0x274] sm:$0xf]  ;;  %v10922_v63 = vld [vmem:[#allocation3 + $0x3c4] sm:$0xf] }
 0x5b6   : > { %5410 = vmatpush.bf16.xpose.msrb.mxu3 %v9482_v14  ;;  %v4515_v42 = vpop.f32.mrf.mxu2  ;;  %v9394_v14 = vor.u32 %v10906_v17, %v9393_v25  ;;  %v9750_v20 = vor.u32 %v10992_v7, %v9747_v6  ;;  %v10988_v54 = vld [vmem:[#allocation3 + $0x288] sm:$0xf0]  ;;  %v9722_v50 = vor.u32 %v10985_v8, %v9719_v21  ;;  %v9463_v25 = vld [vmem:[#allocation3 + $0x3dc] sm:$0xf0]  ;;  %v9469_v17 = vld [vmem:[#allocation3 + $0x3c8] sm:$0xf] }
 0x5b7   : > { %v9491_v42 = vld [vmem:[#allocation3 + $0x414] sm:$0xf0]  ;;  %v10957_v8 = vld [vmem:[#allocation3 + $0x194] sm:$0xf] }
 0x5b8   : > { %5476 = vmatpush.bf16.xpose.msra.mxu1 %v9474_v55  ;;  %v4528_v0 = vpop.f32.mrf.mxu3  ;;  %v9519_v55 = vld [vmem:[#allocation3 + $0x44c] sm:$0xf0] }
 0x5b9   : > { %5489 = vmatpush.bf16.xpose.msra.mxu0 %v9478_v11  ;;  %v9366_v11 = vor.u32 %v10899_v3, %v9365_v31  ;;  %v9494_v0 = vor.u32 %v10929_v32, %v9491_v42  ;;  %v10919_v31 = vld [vmem:[#allocation3 + $0x3a8] sm:$0xf0]  ;;  %v10905_v32 = vld [vmem:[#allocation3 + $0x338] sm:$0xf0] }
 0x5bc   : > { %5398 = vmatpush.bf16.xpose.msrb.mxu2 %v9254_v37  ;;  %v9359_v37 = vld [vmem:[#allocation3 + $0x304] sm:$0xf0] }
 0x5bd   : > { %v9362_v26 = vor.u32 %v10895_v59, %v9359_v37  ;;  %v9435_v59 = vld [vmem:[#allocation3 + $0x3a4] sm:$0xf0]  ;;  %v9441_v37 = vld [vmem:[#allocation3 + $0x390] sm:$0xf] }
 0x5be   : > { %5411 = vmatpush.bf16.xpose.msrb.mxu3 %v9454_v51  ;;  %v10936_v51 = vld [vmem:[#allocation3 + $0x434] sm:$0xf]  ;;  %v9442_v45 = vor.u32 %v10919_v31, %v9441_v37  ;;  %v9737_v37 = vld [vmem:[#allocation3 + $0x2a0] sm:$0xf]  ;;  %v10994_v31 = vld [vmem:[#allocation3 + $0x2b8] sm:$0xf0] }
 0x5bf   : > { %v9522_v27 = vor.u32 %v10936_v51, %v9519_v55  ;;  %v10971_v55 = vld [vmem:[#allocation3 + $0x204] sm:$0xf] }
 0x5c0   : > { %5477 = vmatpush.bf16.xpose.msra.mxu1 %v9446_v53 }
 0x5c1   : > { %5490 = vmatpush.bf16.xpose.msra.mxu0 %v9450_v29  ;;  %v9745_v29 = vld [vmem:[#allocation3 + $0x2a8] sm:$0xf] }
 0x5c2   : > { %v9746_v22 = vor.u32 %v10995_v61, %v9745_v29  ;;  %v9633_v29 = vld [vmem:[#allocation3 + $0x1c8] sm:$0xf] }
 0x5c4   : > { %5399 = vmatpush.bf16.xpose.msrb.mxu2 %v9226_v33  ;;  %v9086_v33 = vld [vmem:[%s12475_s4 + $0x88] sm:$0xf] }
 0x5c5   : > { %v4727_v53 = vunpack.c.l.b16 %v9086_v33 }
 0x5c6   : > { %5412 = vmatpush.bf16.xpose.msrb.mxu3 %v9426_v57  ;;  %v9337_v57 = vld [vmem:[#allocation3 + $0x2b8] sm:$0xf] }
 0x5c7   : > { %v4734_v48 = vpack.c.b16 %v4727_v53, %v4727_v53  ;;  %v9635_v53 = vld [vmem:[#allocation3 + $0x1e4] sm:$0xf0] }
 0x5c8   : > { %5478 = vmatpush.bf16.xpose.msra.mxu1 %v9418_v16  ;;  %v10933_v16 = vld [vmem:[#allocation3 + $0x418] sm:$0xf0] }
 0x5c9   : > { %5491 = vmatpush.bf16.xpose.msra.mxu0 %v9422_v19  ;;  %v9717_v19 = vld [vmem:[#allocation3 + $0x270] sm:$0xf] }
 0x5cc   : > { %5400 = vmatpush.bf16.xpose.msrb.mxu2 %v9198_v35  ;;  %v9338_v35 = vor.u32 %v10892_v56, %v9337_v57  ;;  %v9414_v56 = vor.u32 %v10912_v13, %v9413_v5  ;;  %v9549_v5 = vld [vmem:[#allocation3 + $0x120] sm:$0xf] }
 0x5ce   : > { %5413 = vmatpush.bf16.xpose.msrb.mxu3 %v9398_v15  ;;  %v9497_v15 = vld [vmem:[#allocation3 + $0x400] sm:$0xf] }
 0x5cf   : > { %v9498_v24 = vor.u32 %v10933_v16, %v9497_v15  ;;  %v10960_v15 = vld [vmem:[#allocation3 + $0x1a8] sm:$0xf0]  ;;  %v9607_v16 = vld [vmem:[#allocation3 + $0x1ac] sm:$0xf0] }
 0x5d0   : > { %5479 = vmatpush.bf16.xpose.msra.mxu1 %v9390_v4  ;;  %v9466_v4 = vor.u32 %v10922_v63, %v9463_v25  ;;  %v9610_v21 = vor.u32 %v10957_v8, %v9607_v16  ;;  %v9357_v25 = vld [vmem:[#allocation3 + $0x2e8] sm:$0xf]  ;;  %v9683_v8 = vld [vmem:[#allocation3 + $0x24c] sm:$0xf0] }
 0x5d1   : > { %5492 = vmatpush.bf16.xpose.msra.mxu0 %v9394_v14  ;;  %v9689_v14 = vld [vmem:[#allocation3 + $0x238] sm:$0xf] }
 0x5d4   : > { %5401 = vmatpush.bf16.xpose.msrb.mxu2 %v9170_v52  ;;  %v9718_v52 = vor.u32 %v10988_v54, %v9717_v19  ;;  %v9605_v19 = vld [vmem:[#allocation3 + $0x190] sm:$0xf] }
 0x5d5   : > { %v9606_v54 = vor.u32 %v10960_v15, %v9605_v19  ;;  %v10980_v19 = vld [vmem:[#allocation3 + $0x248] sm:$0xf0] }
 0x5d6   : > { %5414 = vmatpush.bf16.xpose.msrb.mxu3 %v9370_v28  ;;  %v10926_v28 = vld [vmem:[#allocation3 + $0x3e0] sm:$0xf0] }
 0x5d7   : > { %v9470_v23 = vor.u32 %v10926_v28, %v9469_v17  ;;  %v10898_v17 = vld [vmem:[#allocation3 + $0x300] sm:$0xf0] }
 0x5d8   : > { %5480 = vmatpush.bf16.xpose.msra.mxu1 %v9362_v26  ;;  %v10974_v26 = vld [vmem:[#allocation3 + $0x218] sm:$0xf0] }
 0x5d9   : > { %5493 = vmatpush.bf16.xpose.msra.mxu0 %v9366_v11  ;;  %v9663_v11 = vld [vmem:[#allocation3 + $0x21c] sm:$0xf0] }
 0x5da   : > { %v9666_v60 = vor.u32 %v10971_v55, %v9663_v11 }
 0x5dc   : > { %5402 = vmatpush.bf16.xpose.msrb.mxu2 %v9142_v36  ;;  %v9694_v36 = vor.u32 %v10978_v49, %v9691_v30  ;;  %v9577_v49 = vld [vmem:[#allocation3 + $0x158] sm:$0xf] }
 0x5de   : > { %5415 = vmatpush.bf16.xpose.msrb.mxu3 %v9342_v44  ;;  %v9661_v44 = vld [vmem:[#allocation3 + $0x200] sm:$0xf] }
 0x5df   : > { %v9662_v62 = vor.u32 %v10974_v26, %v9661_v44  ;;  %v9329_v44 = vld [vmem:[#allocation3 + $0x2b0] sm:$0xf]  ;;  %v10891_v26 = vld [vmem:[#allocation3 + $0x2c8] sm:$0xf0] }
 0x5e0   : > { %5481 = vmatpush.bf16.xpose.msra.mxu1 %v9334_v9  ;;  %v10901_v9 = vld [vmem:[#allocation3 + $0x31c] sm:$0xf] }
 0x5e1   : > { %5494 = vmatpush.bf16.xpose.msra.mxu0 %v9338_v35  ;;  %v9379_v35 = vld [vmem:[#allocation3 + $0x334] sm:$0xf0] }
 0x5e2   : > { %v9382_v42 = vor.u32 %v10901_v9, %v9379_v35  ;;  %v9711_v9 = vld [vmem:[#allocation3 + $0x284] sm:$0xf0] }
 0x5e3   : > { %v9933_v35 = vld [vmem:[#allocation3 + $0x428] sm:$0xf] }
 0x5e4   : > { %5403 = vmatpush.bf16.xpose.msrb.mxu2 %v9114_v2 }
 0x5e6   : > { %5416 = vmatpush.bf16.xpose.msrb.mxu3 %v9314_v43  ;;  %v10964_v43 = vld [vmem:[#allocation3 + $0x1cc] sm:$0xf] }
 0x5e7   : > { %5482 = vmatmul.bf16.vlgmr.msra.gmra.mxu1 %v12259_v12  ;;  %v10915_v12 = vld [vmem:[#allocation3 + $0x38c] sm:$0xf]  ;;  %v9638_v6 = vor.u32 %v10964_v43, %v9635_v53  ;;  %v10987_v43 = vld [vmem:[#allocation3 + $0x280] sm:$0xf0] }
 0x5e8   : > { %6262 = vmatpush.bf16.xpose.msrb.mxu1 %v9746_v22  ;;  %5495 = vmatmul.bf16.vlgmr.msra.gmra.mxu0 %v4734_v48  ;;  %v9438_v3 = vor.u32 %v10915_v12, %v9435_v59  ;;  %v5340_v22 = vpop.f32.mrf.mxu0  ;;  %v9323_v12 = vld [vmem:[#allocation3 + $0x2c4] sm:$0xf0] }
 0x5e9   : > { %6275 = vmatpush.bf16.xpose.msrb.mxu0 %v9750_v20  ;;  %v9385_v20 = vld [vmem:[#allocation3 + $0x320] sm:$0xf] }
 0x5eb   : > { %5404 = vmatmul.bf16.vlgmr.msrb.gmra.mxu2 %v4734_v48 }
 0x5ec   : > { %5448 = vmatpush.bf16.xpose.msra.mxu2 %v9522_v27  ;;  %v9407_v27 = vld [vmem:[#allocation3 + $0x36c] sm:$0xf0] }
 0x5ed   : > { %5417 = vmatmul.bf16.vlgmr.msrb.gmra.mxu3 %v12235_v38  ;;  %v9690_v38 = vor.u32 %v10981_v41, %v9689_v14  ;;  %v9410_v57 = vor.u32 %v10908_v1, %v9407_v27  ;;  %v9579_v14 = vld [vmem:[#allocation3 + $0x174] sm:$0xf0]  ;;  %v9358_v41 = vor.u32 %v10898_v17, %v9357_v25  ;;  %v10997_v1 = vld [vmem:[#allocation3 + $0x2d0] sm:$0xf0]  ;;  %v9330_v27 = vor.u32 %v10891_v26, %v9329_v44 }
 0x5ee   : > { %5461 = vmatpush.bf16.xpose.msra.mxu3 %v9526_v58  ;;  %v4565_v51 = vpop.f32.mrf.mxu2  ;;  %v10967_v58 = vld [vmem:[#allocation3 + $0x1e0] sm:$0xf0]  ;;  %v9653_v17 = vld [vmem:[#allocation3 + $0x1f8] sm:$0xf] }
 0x5ef   : > { %v4566_v39 = vadd.f32 %v4565_v51, %v12277_v47  ;;  %v9634_v61 = vor.u32 %v10967_v58, %v9633_v29  ;;  %v10991_v51 = vld [vmem:[#allocation3 + $0x2a4] sm:$0xf] }
 0x5f0   : > { %6263 = vmatpush.bf16.xpose.msrb.mxu1 %v9718_v52  ;;  %v4578_v18 = vpop.f32.mrf.mxu3  ;;  %v9351_v52 = vld [vmem:[#allocation3 + $0x2fc] sm:$0xf0]  ;;  %v5342_v63 = vpop.f32.mrf.mxu0  ;;  %v10943_v58 = vld [vmem:[#allocation3 + $0x124] sm:$0xf] }
 0x5f1   : > { %6276 = vmatpush.bf16.xpose.msrb.mxu0 %v9722_v50  ;;  %v4579_v33 = vadd.f32 %v4578_v18, %v4566_v39  ;;  %v9739_v39 = vld [vmem:[#allocation3 + $0x2bc] sm:$0xf0]  ;;  %v11050_v18 = vld [vmem:[#allocation3 + $0x478] sm:$0xf0] }
 0x5f2   : > { %v9742_v13 = vor.u32 %v10991_v51, %v9739_v39  ;;  %v10966_v51 = vld [vmem:[#allocation3 + $0x1d8] sm:$0xf0]  ;;  %v9625_v39 = vld [vmem:[#allocation3 + $0x1c0] sm:$0xf] }
 0x5f3   : > { %v12286_v2 = vadd.f32 %v4579_v33, %v12228_v46  ;;  %v5327_v46 = vpop.f32.mrf.mxu1  ;;  %v9551_v33 = vld [vmem:[#allocation3 + $0x13c] sm:$0xf0] }
 0x5f4   : > { %5449 = vmatpush.bf16.xpose.msra.mxu2 %v9494_v0  ;;  %v12288_v48 = vadd.f32 %v5340_v22, %v5327_v46  ;;  %v9386_v0 = vor.u32 %v10905_v32, %v9385_v20  ;;  %v11043_v46 = vld [vmem:[#allocation3 + $0x440] sm:$0xf0]  ;;  %v9733_v20 = vld [vmem:[#allocation3 + $0x280] sm:$0xf]  ;;  %v10990_v32 = vld [vmem:[#allocation3 + $0x298] sm:$0xf0] }
 0x5f5   : > { %v9934_v15 = vor.u32 %v11043_v46, %v9933_v35  ;;  %v9734_v16 = vor.u32 %v10990_v32, %v9733_v20  ;;  %v10956_v46 = vld [vmem:[#allocation3 + $0x18c] sm:$0xf]  ;;  %v11015_v20 = vld [vmem:[#allocation3 + $0x360] sm:$0xf0] }
 0x5f6   : > { %5462 = vmatpush.bf16.xpose.msra.mxu3 %v9498_v24  ;;  %v4567_v47 = vpop.f32.mrf.mxu2  ;;  %v10894_v24 = vld [vmem:[#allocation3 + $0x2e4] sm:$0xf] }
 0x5f7   : > { %v9354_v28 = vor.u32 %v10894_v24, %v9351_v52  ;;  %v9554_v47 = vor.u32 %v10943_v58, %v9551_v33  ;;  %v9705_v24 = vld [vmem:[#allocation3 + $0x248] sm:$0xf]  ;;  %v10983_v52 = vld [vmem:[#allocation3 + $0x260] sm:$0xf0]  ;;  %v9649_v33 = vld [vmem:[#allocation3 + $0x1d8] sm:$0xf] }
 0x5f8   : > { %6264 = vmatpush.bf16.xpose.msrb.mxu1 %v9690_v38  ;;  %v4580_v7 = vpop.f32.mrf.mxu3  ;;  %v12292_v55 = vpop.f32.mrf.mxu0  ;;  %v9706_v25 = vor.u32 %v10983_v52, %v9705_v24  ;;  %v10949_v24 = vld [vmem:[#allocation3 + $0x154] sm:$0xf]  ;;  %v9793_v52 = vld [vmem:[#allocation3 + $0x310] sm:$0xf] }
 0x5f9   : > { %6277 = vmatpush.bf16.xpose.msrb.mxu0 %v9694_v36  ;;  %v10887_v36 = vld [vmem:[#allocation3 + $0x2ac] sm:$0xf] }
 0x5fa   : > { %v9326_v11 = vor.u32 %v10887_v36, %v9323_v12  ;;  %v10984_v7 = vld [vmem:[#allocation3 + $0x26c] sm:$0xf]  ;;  %v11029_v36 = vld [vmem:[#allocation3 + $0x3d0] sm:$0xf0] }
 0x5fb   : > { %v5329_v50 = vpop.f32.mrf.mxu1 }
 0x5fc   : > { %5450 = vmatpush.bf16.xpose.msra.mxu2 %v9466_v4  ;;  %v10953_v4 = vld [vmem:[#allocation3 + $0x170] sm:$0xf0]  ;;  %v11036_v50 = vld [vmem:[#allocation3 + $0x408] sm:$0xf0] }
 0x5fd   : > { %v9578_v30 = vor.u32 %v10953_v4, %v9577_v49  ;;  %v10970_v4 = vld [vmem:[#allocation3 + $0x1fc] sm:$0xf]  ;;  %v9677_v49 = vld [vmem:[#allocation3 + $0x210] sm:$0xf] }
 0x5fe   : > { %5463 = vmatpush.bf16.xpose.msra.mxu3 %v9470_v23  ;;  %v10950_v23 = vld [vmem:[#allocation3 + $0x15c] sm:$0xf] }
 0x5ff   : > { %v9582_v38 = vor.u32 %v10950_v23, %v9579_v14  ;;  %v9655_v14 = vld [vmem:[#allocation3 + $0x214] sm:$0xf0] }
 0x600   : > { %6265 = vmatpush.bf16.xpose.msrb.mxu1 %v9662_v62  ;;  %v9738_v62 = vor.u32 %v10994_v31, %v9737_v37  ;;  %v9658_v37 = vor.u32 %v10970_v4, %v9655_v14  ;;  %v9753_v4 = vld [vmem:[#allocation3 + $0x2b0] sm:$0xf]  ;;  %v10996_v14 = vld [vmem:[#allocation3 + $0x2c8] sm:$0xf0] }
 0x601   : > { %6278 = vmatpush.bf16.xpose.msrb.mxu0 %v9666_v60  ;;  %v9761_v60 = vld [vmem:[#allocation3 + $0x2b8] sm:$0xf] }
 0x603   : > { %v12290_v59 = vpop.f32.mrf.mxu1 }
 0x604   : > { %5451 = vmatpush.bf16.xpose.msra.mxu2 %v9438_v3  ;;  %v10946_v3 = vld [vmem:[#allocation3 + $0x138] sm:$0xf0] }
 0x606   : > { %5464 = vmatpush.bf16.xpose.msra.mxu3 %v9442_v45  ;;  %v9961_v45 = vld [vmem:[#allocation3 + $0x460] sm:$0xf] }
 0x607   : > { %v9962_v53 = vor.u32 %v11050_v18, %v9961_v45  ;;  %v9627_v45 = vld [vmem:[#allocation3 + $0x1dc] sm:$0xf0] }
 0x608   : > { %6266 = vmatpush.bf16.xpose.msrb.mxu1 %v9634_v61  ;;  %v9709_v61 = vld [vmem:[#allocation3 + $0x268] sm:$0xf] }
 0x609   : > { %6279 = vmatpush.bf16.xpose.msrb.mxu0 %v9638_v6  ;;  %v5394_v6 = vpop.f32.mrf.mxu0  ;;  %v9710_v22 = vor.u32 %v10987_v43, %v9709_v61  ;;  %v9599_v61 = vld [vmem:[#allocation3 + $0x1a4] sm:$0xf0] }
 0x60a   : > { %v10962_v6 = vld [vmem:[#allocation3 + $0x1b8] sm:$0xf0]  ;;  %v9602_v32 = vor.u32 %v10956_v46, %v9599_v61  ;;  %v9697_v61 = vld [vmem:[#allocation3 + $0x240] sm:$0xf] }
 0x60b   : > { %v5381_v29 = vpop.f32.mrf.mxu1  ;;  %v9699_v46 = vld [vmem:[#allocation3 + $0x25c] sm:$0xf0] }
 0x60c   : > { %5452 = vmatpush.bf16.xpose.msra.mxu2 %v9410_v57  ;;  %v9550_v57 = vor.u32 %v10946_v3, %v9549_v5  ;;  %v9597_v29 = vld [vmem:[#allocation3 + $0x188] sm:$0xf] }
 0x60e   : > { %5465 = vmatpush.bf16.xpose.msra.mxu3 %v9414_v56  ;;  %v9762_v56 = vor.u32 %v10997_v1, %v9761_v60  ;;  %v10963_v60 = vld [vmem:[#allocation3 + $0x1c4] sm:$0xf]  ;;  %v9849_v1 = vld [vmem:[#allocation3 + $0x380] sm:$0xf] }
 0x610   : > { %6267 = vmatpush.bf16.xpose.msrb.mxu1 %v9606_v54  ;;  %v10977_v54 = vld [vmem:[#allocation3 + $0x234] sm:$0xf] }
 0x611   : > { %6280 = vmatpush.bf16.xpose.msrb.mxu0 %v9610_v21  ;;  %v9686_v63 = vor.u32 %v10977_v54, %v9683_v8  ;;  %v9593_v8 = vld [vmem:[#allocation3 + $0x168] sm:$0xf] }
 0x614   : > { %5453 = vmatpush.bf16.xpose.msra.mxu2 %v9382_v42  ;;  %v9714_v42 = vor.u32 %v10984_v7, %v9711_v9  ;;  %v9621_v7 = vld [vmem:[#allocation3 + $0x1a0] sm:$0xf] }
 0x616   : > { %5466 = vmatpush.bf16.xpose.msra.mxu3 %v9386_v0  ;;  %v9681_v0 = vld [vmem:[#allocation3 + $0x230] sm:$0xf] }
 0x617   : > { %v9682_v21 = vor.u32 %v10980_v19, %v9681_v0  ;;  %v9569_v0 = vld [vmem:[#allocation3 + $0x150] sm:$0xf] }
 0x618   : > { %6268 = vmatpush.bf16.xpose.msrb.mxu1 %v9578_v30  ;;  %v10976_v30 = vld [vmem:[#allocation3 + $0x228] sm:$0xf0]  ;;  %v9571_v19 = vld [vmem:[#allocation3 + $0x16c] sm:$0xf0] }
 0x619   : > { %6281 = vmatpush.bf16.xpose.msrb.mxu0 %v9582_v38  ;;  %v9877_v38 = vld [vmem:[#allocation3 + $0x3b8] sm:$0xf]  ;;  %v9678_v3 = vor.u32 %v10976_v30, %v9677_v49  ;;  %v10948_v49 = vld [vmem:[#allocation3 + $0x148] sm:$0xf0]  ;;  %v10993_v30 = vld [vmem:[#allocation3 + $0x2b4] sm:$0xf] }
 0x61a   : > { %v9878_v26 = vor.u32 %v11029_v36, %v9877_v38  ;;  %v9971_v38 = vld [vmem:[#allocation3 + $0x484] sm:$0xf0] }
 0x61c   : > { %5454 = vmatpush.bf16.xpose.msra.mxu2 %v9354_v28  ;;  %v10973_v28 = vld [vmem:[#allocation3 + $0x210] sm:$0xf0] }
 0x61e   : > { %5467 = vmatpush.bf16.xpose.msra.mxu3 %v9358_v41  ;;  %v9654_v41 = vor.u32 %v10973_v28, %v9653_v17  ;;  %v10945_v17 = vld [vmem:[#allocation3 + $0x130] sm:$0xf0]  ;;  %v9543_v28 = vld [vmem:[#allocation3 + $0x134] sm:$0xf0] }
 0x620   : > { %6269 = vmatpush.bf16.xpose.msrb.mxu1 %v9550_v57 }
 0x621   : > { %6282 = vmatpush.bf16.xpose.msrb.mxu0 %v9554_v47 }
 0x624   : > { %5455 = vmatpush.bf16.xpose.msra.mxu2 %v9326_v11 }
 0x626   : > { %5468 = vmatpush.bf16.xpose.msra.mxu3 %v9330_v27  ;;  %v11022_v27 = vld [vmem:[#allocation3 + $0x398] sm:$0xf0] }
 0x628   : > { %6314 = vmatpush.bf16.xpose.msra.mxu1 %v9762_v56 }
 0x629   : > { %6327 = vmatpush.bf16.xpose.msra.mxu0 %v9962_v53  ;;  %v9850_v53 = vor.u32 %v11022_v27, %v9849_v1  ;;  %v10989_v1 = vld [vmem:[#allocation3 + $0x290] sm:$0xf0]  ;;  %v10986_v27 = vld [vmem:[#allocation3 + $0x27c] sm:$0xf] }
 0x62b   : > { %5456 = vmatmul.bf16.vlgmr.msra.gmra.mxu2 %v12270_v10  ;;  %v9905_v10 = vld [vmem:[#allocation3 + $0x3f0] sm:$0xf] }
 0x62c   : > { %6236 = vmatpush.bf16.xpose.msrb.mxu2 %v9738_v62  ;;  %v9626_v62 = vor.u32 %v10966_v51, %v9625_v39  ;;  %v11001_v51 = vld [vmem:[#allocation3 + $0x2f0] sm:$0xf0] }
 0x62d   : > { %5469 = vmatmul.bf16.vlgmr.msra.gmra.mxu3 %v12257_v34  ;;  %v9906_v34 = vor.u32 %v11036_v50, %v9905_v10  ;;  %v11008_v10 = vld [vmem:[#allocation3 + $0x328] sm:$0xf0]  ;;  %v9574_v50 = vor.u32 %v10949_v24, %v9571_v19  ;;  %v10975_v24 = vld [vmem:[#allocation3 + $0x220] sm:$0xf0] }
 0x62e   : > { %6249 = vmatpush.bf16.xpose.msrb.mxu3 %v9742_v13  ;;  %v5353_v23 = vpop.f32.mrf.mxu2  ;;  %v9630_v13 = vor.u32 %v10963_v60, %v9627_v45  ;;  %v9725_v60 = vld [vmem:[#allocation3 + $0x278] sm:$0xf] }
 0x62f   : > { %v5354_v12 = vadd.f32 %v5353_v23, %v12288_v48  ;;  %v10969_v48 = vld [vmem:[#allocation3 + $0x1f0] sm:$0xf0]  ;;  %v11048_v23 = vld [vmem:[#allocation3 + $0x46c] sm:$0xf] }
 0x630   : > { %6315 = vmatpush.bf16.xpose.msra.mxu1 %v9734_v16  ;;  %v5366_v31 = vpop.f32.mrf.mxu3  ;;  %v9650_v57 = vor.u32 %v10969_v48, %v9649_v33  ;;  %v10952_v16 = vld [vmem:[#allocation3 + $0x168] sm:$0xf0]  ;;  %v9974_v39 = vor.u32 %v11048_v23, %v9971_v38  ;;  %v9641_v38 = vld [vmem:[#allocation3 + $0x1d0] sm:$0xf] }
 0x631   : > { %6328 = vmatpush.bf16.xpose.msra.mxu0 %v9934_v15  ;;  %v5367_v44 = vadd.f32 %v5366_v31, %v5354_v12  ;;  %v9570_v54 = vor.u32 %v10952_v16, %v9569_v0  ;;  %v9755_v12 = vld [vmem:[#allocation3 + $0x2cc] sm:$0xf0]  ;;  %v11052_v31 = vld [vmem:[#allocation3 + $0x488] sm:$0xf0]  ;;  %v11038_v16 = vld [vmem:[#allocation3 + $0x418] sm:$0xf0] }
 0x632   : > { %v9758_v45 = vor.u32 %v10993_v30, %v9755_v12  ;;  %v10965_v12 = vld [vmem:[#allocation3 + $0x1d4] sm:$0xf] }
 0x633   : > { %v5380_v11 = vadd.f32 %v12290_v59, %v5367_v44  ;;  %v10959_v59 = vld [vmem:[#allocation3 + $0x1a0] sm:$0xf0]  ;;  %v9754_v44 = vor.u32 %v10996_v14, %v9753_v4 }
 0x634   : > { %6237 = vmatpush.bf16.xpose.msrb.mxu2 %v9710_v22  ;;  %v9598_v43 = vor.u32 %v10959_v59, %v9597_v29  ;;  %v9821_v22 = vld [vmem:[#allocation3 + $0x348] sm:$0xf]  ;;  %v9726_v59 = vor.u32 %v10989_v1, %v9725_v60  ;;  %v11031_v4 = vld [vmem:[#allocation3 + $0x3e0] sm:$0xf0]  ;;  %v12324_v60 = vld [vmem:[%s264_s17] sm:$0xff]  ;;  %s257_s17 = sand.u32 1, %s11274_s22  }
 0x635   : > { %v12299_v18 = vadd.f32 %v12292_v55, %v5380_v11  ;;  %v9536_v55 = vld [vmem:[%s12475_s4 + $0x94] sm:$0xff]  ;;  %v9822_v15 = vor.u32 %v11015_v20, %v9821_v22  ;;  %v9535_v29 = vld [vmem:[%s12475_s4 + $0x8c] sm:$0xff]  ;;  %v9538_v1 = vld [vmem:[%s12475_s4 + $0xa4] sm:$0xf]  ;;  %7348 = vst [vmem:[#allocation1] ss:$2 sm:$0xff] %v12324_v60 }
 0x636   : > { %6250 = vmatpush.bf16.xpose.msrb.mxu3 %v9714_v42  ;;  %v5355_v5 = vpop.f32.mrf.mxu2  ;;  %v5641_v47 = vunpack.c.l.b16 %v9536_v55  ;;  %v5642_v56 = vunpack.c.h.b16 %v9536_v55  ;;  %v9622_v42 = vor.u32 %v10962_v6, %v9621_v7  ;;  %v5639_v7 = vunpack.c.l.b16 %v9535_v29  ;;  %v10979_v6 = vld [vmem:[#allocation3 + $0x244] sm:$0xf]  ;;  %s7514_s15 = sshll.u32 %s257_s17, 3  ;;  %s7423_s25 = scalar_lea.sflag [#allocation5], %s257_s17 }
 0x637   : > { %v11041_v5 = vld [vmem:[#allocation3 + $0x434] sm:$0xf]  ;;  %v9702_v0 = vor.u32 %v10979_v6, %v9699_v46  ;;  %v9585_v6 = vld [vmem:[#allocation3 + $0x160] sm:$0xf]  ;;  %v10954_v46 = vld [vmem:[#allocation3 + $0x178] sm:$0xf0] }
 0x638   : > { %6316 = vmatpush.bf16.xpose.msra.mxu1 %v9706_v25  ;;  %v5368_v58 = vpop.f32.mrf.mxu3  ;;  %v12304_v9 = vpack.c.b16 %v5641_v47, %v5641_v47  ;;  %v12306_v35 = vpack.c.b16 %v5642_v56, %v5642_v56  ;;  %v9794_v25 = vor.u32 %v11008_v10, %v9793_v52  ;;  %v5646_v22 = vpack.c.b16 %v5639_v7, %v5639_v7  ;;  %v10972_v10 = vld [vmem:[#allocation3 + $0x20c] sm:$0xf]  ;;  %s259_s29 = scalar_lea.vmem [#allocation4], %s7514_s15 }
 0x639   : > { %6329 = vmatpush.bf16.xpose.msra.mxu0 %v9906_v34  ;;  %v9541_v34 = vld [vmem:[#allocation3 + $0x118] sm:$0xf]  ;;  %s7436_s9 = sshll.u32 %s259_s29, 4  ;;  %s7437_s9 = int_to_ptr.vmem [resolvable:$true] %s7436_s9 }
 0x63a   : > { %6270 = vmatmul.bf16.vlgmr.msrb.gmra.mxu1 %v12304_v9  ;;  %6283 = vmatmul.bf16.vlgmr.msrb.gmra.mxu0 %v12306_v35  ;;  %v9542_v36 = vor.u32 %v10945_v17, %v9541_v34  ;;  %v9949_v58 = vld [vmem:[#allocation3 + $0x438] sm:$0xf]  ;;  %v9887_v34 = vld [vmem:[#allocation3 + $0x3dc] sm:$0xf0] }
 0x63c   : > { %6238 = vmatpush.bf16.xpose.msrb.mxu2 %v9682_v21  ;;  %v10955_v21 = vld [vmem:[#allocation3 + $0x180] sm:$0xf0] }
 0x63e   : > { %6251 = vmatpush.bf16.xpose.msrb.mxu3 %v9686_v63  ;;  %v9594_v63 = vor.u32 %v10955_v21, %v9593_v8  ;;  %v5640_v8 = vunpack.c.h.b16 %v9535_v29  ;;  %v9669_v21 = vld [vmem:[#allocation3 + $0x208] sm:$0xf]  ;;  %v9837_v29 = vld [vmem:[#allocation3 + $0x358] sm:$0xf] }
 0x640   : > { %6317 = vmatpush.bf16.xpose.msra.mxu1 %v9678_v3  ;;  %v10942_v3 = vld [vmem:[#allocation3 + $0x11c] sm:$0xf]  ;;  %v12313_v52 = vpack.c.b16 %v5640_v8, %v5640_v8  ;;  %v9587_v8 = vld [vmem:[#allocation3 + $0x17c] sm:$0xf0] }
 0x641   : > { %6330 = vmatpush.bf16.xpose.msra.mxu0 %v9878_v26  ;;  %v9765_v26 = vld [vmem:[#allocation3 + $0x2d8] sm:$0xf]  ;;  %v9546_v11 = vor.u32 %v10942_v3, %v9543_v28  ;;  %v9893_v28 = vld [vmem:[#allocation3 + $0x3c8] sm:$0xf]  ;;  %v11020_v3 = vld [vmem:[#allocation3 + $0x38c] sm:$0xf] }
 0x642   : > { %v9766_v48 = vor.u32 %v11001_v51, %v9765_v26  ;;  %v9894_v23 = vor.u32 %v11031_v4, %v9893_v28  ;;  %v9865_v26 = vld [vmem:[#allocation3 + $0x390] sm:$0xf]  ;;  %v11047_v28 = vld [vmem:[#allocation3 + $0x464] sm:$0xf]  ;;  %v9963_v4 = vld [vmem:[#allocation3 + $0x47c] sm:$0xf0] }
 0x644   : > { %6239 = vmatpush.bf16.xpose.msrb.mxu2 %v9654_v41  ;;  %v9565_v41 = vld [vmem:[#allocation3 + $0x130] sm:$0xf] }
 0x646   : > { %6252 = vmatpush.bf16.xpose.msrb.mxu3 %v9658_v37  ;;  %v9977_v37 = vld [vmem:[#allocation3 + $0x470] sm:$0xf] }
 0x647   : > { %v9978_v33 = vor.u32 %v11052_v31, %v9977_v37  ;;  %v9643_v37 = vld [vmem:[#allocation3 + $0x1ec] sm:$0xf0] }
 0x648   : > { %6318 = vmatpush.bf16.xpose.msra.mxu1 %v9650_v57  ;;  %v9727_v57 = vld [vmem:[#allocation3 + $0x294] sm:$0xf0] }
 0x649   : > { %6331 = vmatpush.bf16.xpose.msra.mxu0 %v9850_v53  ;;  %v11045_v53 = vld [vmem:[#allocation3 + $0x450] sm:$0xf0]  ;;  %v9730_v47 = vor.u32 %v10986_v27, %v9727_v57  ;;  %v10958_v57 = vld [vmem:[#allocation3 + $0x19c] sm:$0xf] }
 0x64a   : > { %v9950_v56 = vor.u32 %v11045_v53, %v9949_v58  ;;  %v9615_v58 = vld [vmem:[#allocation3 + $0x1b4] sm:$0xf0] }
 0x64c   : > { %6240 = vmatpush.bf16.xpose.msrb.mxu2 %v9626_v62  ;;  %v9566_v62 = vor.u32 %v10948_v49, %v9565_v41 }
 0x64e   : > { %6253 = vmatpush.bf16.xpose.msrb.mxu3 %v9630_v13  ;;  %v9943_v13 = vld [vmem:[#allocation3 + $0x44c] sm:$0xf0] }
 0x64f   : > { %v9946_v55 = vor.u32 %v11041_v5, %v9943_v13  ;;  %v5444_v5 = vpop.f32.mrf.mxu0  ;;  %v5645_v13 = vunpack.c.l.b16 %v9538_v1  ;;  %v11103_v1 = vld [vmem:[#allocation3 + $0x2dc] sm:$0xf] }
 0x650   : > { %6319 = vmatpush.bf16.xpose.msra.mxu1 %v9622_v42  ;;  %v9915_v42 = vld [vmem:[#allocation3 + $0x414] sm:$0xf0] }
 0x651   : > { %6332 = vmatpush.bf16.xpose.msra.mxu0 %v9822_v15  ;;  %v9921_v15 = vld [vmem:[#allocation3 + $0x400] sm:$0xf] }
 0x654   : > { %6241 = vmatpush.bf16.xpose.msrb.mxu2 %v9598_v43  ;;  %v10982_v43 = vld [vmem:[#allocation3 + $0x258] sm:$0xf0] }
 0x655   : > { %v9698_v20 = vor.u32 %v10982_v43, %v9697_v61  ;;  %v11017_v61 = vld [vmem:[#allocation3 + $0x370] sm:$0xf0]  ;;  %v9618_v43 = vor.u32 %v10958_v57, %v9615_v58  ;;  %v11040_v57 = vld [vmem:[#allocation3 + $0x42c] sm:$0xf]  ;;  %v9935_v58 = vld [vmem:[#allocation3 + $0x444] sm:$0xf0] }
 0x656   : > { %6254 = vmatpush.bf16.xpose.msrb.mxu3 %v9602_v32  ;;  %v11034_v32 = vld [vmem:[#allocation3 + $0x3fc] sm:$0xf] }
 0x657   : > { %v9918_v19 = vor.u32 %v11034_v32, %v9915_v42  ;;  %v7350_v32 = vld.sshfl [vmem:[#allocation1 + $0x8] sm:$0xff pattern:$0x75316420] }
 0x658   : > { %6320 = vmatpush.bf16.xpose.msra.mxu1 %v9594_v63  ;;  %v9670_v63 = vor.u32 %v10975_v24, %v9669_v21  ;;  %v9586_v24 = vor.u32 %v10954_v46, %v9585_v6  ;;  %v9938_v46 = vor.u32 %v11040_v57, %v9935_v58  ;;  %v11075_v57 = vld [vmem:[#allocation3 + $0x1fc] sm:$0xf]  ;;  %v10079_v58 = vld [vmem:[#allocation3 + $0x214] sm:$0xf0] }
 0x659   : > { %6333 = vmatpush.bf16.xpose.msra.mxu0 %v9794_v25  ;;  %v11027_v25 = vld [vmem:[#allocation3 + $0x3c4] sm:$0xf] }
 0x65a   : > { %v9890_v49 = vor.u32 %v11027_v25, %v9887_v34  ;;  %v11010_v25 = vld [vmem:[#allocation3 + $0x338] sm:$0xf0] }
 0x65c   : > { %6242 = vmatpush.bf16.xpose.msrb.mxu2 %v9570_v54  ;;  %v9922_v54 = vor.u32 %v11038_v16, %v9921_v15 }
 0x65e   : > { %6255 = vmatpush.bf16.xpose.msrb.mxu3 %v9574_v50  ;;  %v9671_v50 = vld [vmem:[#allocation3 + $0x224] sm:$0xf0] }
 0x65f   : > { %v9674_v41 = vor.u32 %v10972_v10, %v9671_v50  ;;  %v11006_v10 = vld [vmem:[#allocation3 + $0x31c] sm:$0xf]  ;;  %v9803_v50 = vld [vmem:[#allocation3 + $0x334] sm:$0xf0] }
 0x660   : > { %6321 = vmatpush.bf16.xpose.msra.mxu1 %v9566_v62  ;;  %v10961_v62 = vld [vmem:[#allocation3 + $0x1b0] sm:$0xf0] }
 0x661   : > { %6334 = vmatpush.bf16.xpose.msra.mxu0 %v9766_v48  ;;  %v5431_v48 = vpop.f32.mrf.mxu1 }
 0x664   : > { %6243 = vmatpush.bf16.xpose.msrb.mxu2 %v9542_v36  ;;  %v10968_v36 = vld [vmem:[#allocation3 + $0x1e8] sm:$0xf0] }
 0x665   : > { %v9642_v31 = vor.u32 %v10968_v36, %v9641_v38  ;;  %v9969_v38 = vld [vmem:[#allocation3 + $0x468] sm:$0xf]  ;;  %v11051_v36 = vld [vmem:[#allocation3 + $0x480] sm:$0xf0] }
 0x666   : > { %6256 = vmatpush.bf16.xpose.msrb.mxu3 %v9546_v11  ;;  %v9646_v11 = vor.u32 %v10965_v12, %v9643_v37  ;;  %v9537_v12 = vld [vmem:[%s12475_s4 + $0x9c] sm:$0xff]  ;;  %v10944_v37 = vld [vmem:[#allocation3 + $0x12c] sm:$0xf] }
 0x668   : > { %6366 = vmatpush.bf16.xpose.msrb.mxu1 %v9974_v39  ;;  %6335 = vmatmul.bf16.vlgmr.msra.gmra.mxu0 %v5646_v22  ;;  %v9613_v39 = vld [vmem:[#allocation3 + $0x198] sm:$0xf] }
 0x669   : > { %6379 = vmatpush.bf16.xpose.msrb.mxu0 %v9978_v33  ;;  %v9614_v53 = vor.u32 %v10961_v62, %v9613_v39  ;;  %v5433_v15 = vpop.f32.mrf.mxu1  ;;  %v5643_v39 = vunpack.c.l.b16 %v9537_v12  ;;  %v10189_v62 = vld [vmem:[#allocation3 + $0x2d8] sm:$0xf] }
 0x66a   : > { %v11096_v15 = vld [vmem:[#allocation3 + $0x2a4] sm:$0xf] }
 0x66b   : > { %6244 = vmatmul.bf16.vlgmr.msrb.gmra.mxu2 %v5646_v22  ;;  %v9838_v22 = vor.u32 %v11017_v61, %v9837_v29 }
 0x66c   : > { %6288 = vmatpush.bf16.xpose.msra.mxu2 %v9754_v44  ;;  %v9859_v44 = vld [vmem:[#allocation3 + $0x3a4] sm:$0xf0] }
 0x66d   : > { %6257 = vmatmul.bf16.vlgmr.msrb.gmra.mxu3 %v12313_v52 }
 0x66e   : > { %6301 = vmatpush.bf16.xpose.msra.mxu3 %v9758_v45  ;;  %v5405_v17 = vpop.f32.mrf.mxu2 }
 0x66f   : > { %v5406_v14 = vadd.f32 %v5405_v17, %v12299_v18  ;;  %v11024_v18 = vld [vmem:[#allocation3 + $0x3a8] sm:$0xf0]  ;;  %v9806_v17 = vor.u32 %v11006_v10, %v9803_v50  ;;  %v10133_v50 = vld [vmem:[#allocation3 + $0x268] sm:$0xf] }
 0x670   : > { %6367 = vmatpush.bf16.xpose.msrb.mxu1 %v9946_v55  ;;  %v9866_v45 = vor.u32 %v11024_v18, %v9865_v26  ;;  %v5418_v33 = vpop.f32.mrf.mxu3  ;;  %v9831_v55 = vld [vmem:[#allocation3 + $0x36c] sm:$0xf0]  ;;  %v10999_v18 = vld [vmem:[#allocation3 + $0x2e4] sm:$0xf] }
 0x671   : > { %6380 = vmatpush.bf16.xpose.msrb.mxu0 %v9950_v56  ;;  %v12318_v30 = vadd.f32 %v5406_v14, %v12250_v40  ;;  %v9862_v40 = vor.u32 %v11020_v3, %v9859_v44  ;;  %v5432_v27 = vadd.f32 %v5431_v48, %v5418_v33  ;;  %v12332_v56 = vpack.c.b16 %v5645_v13, %v5645_v13  ;;  %v11106_v33 = vld [vmem:[#allocation3 + $0x2f0] sm:$0xf0] }
 0x672   : > { %v9966_v3 = vor.u32 %v11047_v28, %v9963_v4 }
 0x673   : > { %6322 = vmatmul.bf16.vlgmr.msra.gmra.mxu1 %v12332_v56 }
 0x674   : > { %6289 = vmatpush.bf16.xpose.msra.mxu2 %v9726_v59  ;;  %v11013_v59 = vld [vmem:[#allocation3 + $0x354] sm:$0xf] }
 0x675   : > { %v9834_v7 = vor.u32 %v11013_v59, %v9831_v55  ;;  %v10190_v59 = vor.u32 %v11106_v33, %v10189_v62  ;;  %v5650_v55 = vpack.c.b16 %v5643_v39, %v5643_v39  ;;  %v9851_v62 = vld [vmem:[#allocation3 + $0x39c] sm:$0xf0] }
 0x676   : > { %6302 = vmatpush.bf16.xpose.msra.mxu3 %v9730_v47  ;;  %v5407_v51 = vpop.f32.mrf.mxu2  ;;  %v12330_v47 = vadd.f32 %v5444_v5, %v5432_v27  ;;  %v10191_v27 = vld [vmem:[#allocation3 + $0x2f4] sm:$0xf0]  ;;  %v5644_v5 = vunpack.c.h.b16 %v9537_v12  ;;  %v11085_v12 = vld [vmem:[#allocation3 + $0x248] sm:$0xf0] }
 0x677   : > { %v9775_v51 = vld [vmem:[#allocation3 + $0x2fc] sm:$0xf0]  ;;  %v10194_v29 = vor.u32 %v11103_v1, %v10191_v27  ;;  %v11023_v1 = vld [vmem:[#allocation3 + $0x3a0] sm:$0xf0] }
 0x678   : > { %6368 = vmatpush.bf16.xpose.msrb.mxu1 %v9918_v19  ;;  %v5420_v42 = vpop.f32.mrf.mxu3  ;;  %v5446_v19 = vpop.f32.mrf.mxu0  ;;  %v9778_v13 = vor.u32 %v10999_v18, %v9775_v51  ;;  %v12344_v6 = vpack.c.b16 %v5644_v5, %v5644_v5 }
 0x679   : > { %6381 = vmatpush.bf16.xpose.msrb.mxu0 %v9922_v54  ;;  %v10951_v54 = vld [vmem:[#allocation3 + $0x164] sm:$0xf]  ;;  %v11099_v42 = vld [vmem:[#allocation3 + $0x2b8] sm:$0xf0] }
 0x67a   : > { %v9590_v34 = vor.u32 %v10951_v54, %v9587_v8  ;;  %v11033_v54 = vld [vmem:[#allocation3 + $0x3f4] sm:$0xf]  ;;  %v9907_v8 = vld [vmem:[#allocation3 + $0x40c] sm:$0xf0] }
 0x67b   : > { %v9910_v10 = vor.u32 %v11033_v54, %v9907_v8  ;;  %v9795_v54 = vld [vmem:[#allocation3 + $0x32c] sm:$0xf0]  ;;  %v9801_v8 = vld [vmem:[#allocation3 + $0x318] sm:$0xf] }
 0x67c   : > { %6290 = vmatpush.bf16.xpose.msra.mxu2 %v9698_v20  ;;  %v7349_v20 = vld.sshfl [vmem:[#allocation1] sm:$0xff pattern:$0x75316420] }
 0x67d   : > { %v7354_v16 = vsel %vm7353_vm3, %v7349_v20, 0.0 }
 0x67e   : > { %6303 = vmatpush.bf16.xpose.msra.mxu3 %v9702_v0  ;;  %v7355_v0 = vsel %vm7353_vm3, %v7350_v32, 0.0  ;;  %v10161_v32 = vld [vmem:[#allocation3 + $0x2a0] sm:$0xf] }
 0x67f   : > { %v7356_v21 = vadd.f32 %v7355_v0, %v7354_v16  ;;  %v10163_v16 = vld [vmem:[#allocation3 + $0x2bc] sm:$0xf0]  ;;  %v10162_v0 = vor.u32 %v11099_v42, %v10161_v32 }
 0x680   : > { %6369 = vmatpush.bf16.xpose.msrb.mxu1 %v9890_v49  ;;  %v10947_v49 = vld [vmem:[#allocation3 + $0x140] sm:$0xf0]  ;;  %v12342_v44 = vpop.f32.mrf.mxu0  ;;  %v10166_v19 = vor.u32 %v11096_v15, %v10163_v16  ;;  %v10051_v32 = vld [vmem:[#allocation3 + $0x1dc] sm:$0xf0] }
 0x681   : > { %6382 = vmatpush.bf16.xpose.msrb.mxu0 %v9894_v23  ;;  %7357 = vadd.xlane.f32.xlu0 %v7356_v21  ;;  %v12337_v23 = vpop.f32.mrf.mxu1  ;;  %v9913_v21 = vld [vmem:[#allocation3 + $0x3f8] sm:$0xf]  ;;  %v10049_v15 = vld [vmem:[#allocation3 + $0x1c0] sm:$0xf]  ;;  %v11068_v16 = vld [vmem:[#allocation3 + $0x1c4] sm:$0xf] }
 0x684   : > { %6291 = vmatpush.bf16.xpose.msra.mxu2 %v9670_v63  ;;  %v9809_v63 = vld [vmem:[#allocation3 + $0x320] sm:$0xf] }
 0x685   : > { %v9810_v14 = vor.u32 %v11010_v25, %v9809_v63  ;;  %v11092_v63 = vld [vmem:[#allocation3 + $0x280] sm:$0xf0]  ;;  %v11089_v25 = vld [vmem:[#allocation3 + $0x26c] sm:$0xf] }
 0x686   : > { %6304 = vmatpush.bf16.xpose.msra.mxu3 %v9674_v41  ;;  %v9557_v41 = vld [vmem:[#allocation3 + $0x128] sm:$0xf]  ;;  %v10134_v28 = vor.u32 %v11092_v63, %v10133_v50 }
 0x687   : > { %v9558_v26 = vor.u32 %v10947_v49, %v9557_v41  ;;  %v9885_v41 = vld [vmem:[#allocation3 + $0x3c0] sm:$0xf]  ;;  %v11030_v49 = vld [vmem:[#allocation3 + $0x3d8] sm:$0xf0]  ;;  %v10023_v50 = vld [vmem:[#allocation3 + $0x1a4] sm:$0xf0] }
 0x688   : > { %6370 = vmatpush.bf16.xpose.msrb.mxu1 %v9862_v40  ;;  %v9970_v40 = vor.u32 %v11051_v36, %v9969_v38  ;;  %v10105_v36 = vld [vmem:[#allocation3 + $0x230] sm:$0xf]  ;;  %v9886_v18 = vor.u32 %v11030_v49, %v9885_v41  ;;  %v9767_v41 = vld [vmem:[#allocation3 + $0x2f4] sm:$0xf0] }
 0x689   : > { %6383 = vmatpush.bf16.xpose.msrb.mxu0 %v9866_v45  ;;  %v11003_v45 = vld [vmem:[#allocation3 + $0x300] sm:$0xf0]  ;;  %v5485_v61 = vpop.f32.mrf.mxu1  ;;  %v9985_v49 = vld [vmem:[#allocation3 + $0x478] sm:$0xf] }
 0x68c   : > { %6292 = vmatpush.bf16.xpose.msra.mxu2 %v9642_v31  ;;  %v9559_v31 = vld [vmem:[#allocation3 + $0x144] sm:$0xf0] }
 0x68d   : > { %v9562_v48 = vor.u32 %v10944_v37, %v9559_v31  ;;  %v11082_v31 = vld [vmem:[#allocation3 + $0x234] sm:$0xf] }
 0x68e   : > { %6305 = vmatpush.bf16.xpose.msra.mxu3 %v9646_v11  ;;  %v9781_v11 = vld [vmem:[#allocation3 + $0x2e8] sm:$0xf] }
 0x690   : > { %6371 = vmatpush.bf16.xpose.msrb.mxu1 %v9834_v7  ;;  %v11044_v7 = vld [vmem:[#allocation3 + $0x448] sm:$0xf0] }
 0x691   : > { %6384 = vmatpush.bf16.xpose.msrb.mxu0 %v9838_v22  ;;  %v5498_v22 = vpop.f32.mrf.mxu0 }
 0x694   : > { %6293 = vmatpush.bf16.xpose.msra.mxu2 %v9614_v53  ;;  %v9782_v53 = vor.u32 %v11003_v45, %v9781_v11  ;;  %v10106_v11 = vor.u32 %v11085_v12, %v10105_v36  ;;  %v11019_v45 = vld [vmem:[#allocation3 + $0x384] sm:$0xf]  ;;  %v9773_v36 = vld [vmem:[#allocation3 + $0x2e0] sm:$0xf]  ;;  %v11002_v12 = vld [vmem:[#allocation3 + $0x2f8] sm:$0xf0] }
 0x695   : > { %v9854_v5 = vor.u32 %v11019_v45, %v9851_v62  ;;  %v11105_v45 = vld [vmem:[#allocation3 + $0x2ec] sm:$0xf]  ;;  %v10207_v62 = vld [vmem:[#allocation3 + $0x304] sm:$0xf0] }
 0x696   : > { %6306 = vmatpush.bf16.xpose.msra.mxu3 %v9618_v43  ;;  %v9941_v43 = vld [vmem:[#allocation3 + $0x430] sm:$0xf] }
 0x697   : > { %v9942_v20 = vor.u32 %v11044_v7, %v9941_v43  ;;  %v11012_v43 = vld [vmem:[#allocation3 + $0x34c] sm:$0xf]  ;;  %v9823_v7 = vld [vmem:[#allocation3 + $0x364] sm:$0xf0] }
 0x698   : > { %6372 = vmatpush.bf16.xpose.msrb.mxu1 %v9806_v17  ;;  %v9826_v22 = vor.u32 %v11012_v43, %v9823_v7  ;;  %v10179_v43 = vld [vmem:[#allocation3 + $0x2cc] sm:$0xf0] }
 0x699   : > { %6385 = vmatpush.bf16.xpose.msrb.mxu0 %v9810_v14  ;;  %v9879_v14 = vld [vmem:[#allocation3 + $0x3d4] sm:$0xf0] }
 0x69c   : > { %6294 = vmatpush.bf16.xpose.msra.mxu2 %v9586_v24  ;;  %v11037_v24 = vld [vmem:[#allocation3 + $0x410] sm:$0xf0] }
 0x69d   : > { %v9914_v17 = vor.u32 %v11037_v24, %v9913_v21  ;;  %v11009_v21 = vld [vmem:[#allocation3 + $0x330] sm:$0xf0] }
 0x69e   : > { %6307 = vmatpush.bf16.xpose.msra.mxu3 %v9590_v34  ;;  %v10135_v34 = vld [vmem:[#allocation3 + $0x284] sm:$0xf0]  ;;  %v9802_v63 = vor.u32 %v11009_v21, %v9801_v8  ;;  %v9901_v21 = vld [vmem:[#allocation3 + $0x3d0] sm:$0xf] }
 0x69f   : > { %v10138_v4 = vor.u32 %v11089_v25, %v10135_v34  ;;  %v10021_v25 = vld [vmem:[#allocation3 + $0x188] sm:$0xf] }
 0x6a0   : > { %6373 = vmatpush.bf16.xpose.msrb.mxu1 %v9778_v13  ;;  %v10077_v13 = vld [vmem:[#allocation3 + $0x1f8] sm:$0xf]  ;;  %v9895_v8 = vld [vmem:[#allocation3 + $0x3e4] sm:$0xf0] }
 0x6a1   : > { %6386 = vmatpush.bf16.xpose.msrb.mxu0 %v9782_v53 }
 0x6a4   : > { %6295 = vmatpush.bf16.xpose.msra.mxu2 %v9558_v26 }
 0x6a6   : > { %6308 = vmatpush.bf16.xpose.msra.mxu3 %v9562_v48  ;;  %v9857_v48 = vld [vmem:[#allocation3 + $0x388] sm:$0xf] }
 0x6a7   : > { %6374 = vmatmul.bf16.vlgmr.msrb.gmra.mxu1 %v12306_v35  ;;  %v11026_v35 = vld [vmem:[#allocation3 + $0x3bc] sm:$0xf] }
 0x6a8   : > { %7154 = vmatpush.bf16.xpose.msra.mxu1 %v10190_v59  ;;  %6387 = vmatmul.bf16.vlgmr.msrb.gmra.mxu0 %v5650_v55  ;;  %v9882_v38 = vor.u32 %v11026_v35, %v9879_v14  ;;  %v10998_v14 = vld [vmem:[#allocation3 + $0x2dc] sm:$0xf] }
 0x6a9   : > { %7167 = vmatpush.bf16.xpose.msra.mxu0 %v10194_v29 }
 0x6ab   : > { %6296 = vmatmul.bf16.vlgmr.msra.gmra.mxu2 %v5650_v55  ;;  %v9858_v55 = vor.u32 %v11023_v1, %v9857_v48  ;;  %v11054_v48 = vld [vmem:[#allocation3 + $0x154] sm:$0xf]  ;;  %v11042_v1 = vld [vmem:[#allocation3 + $0x43c] sm:$0xf] }
 0x6ac   : > { %6340 = vmatpush.bf16.xpose.msrb.mxu2 %v9966_v3  ;;  %v10107_v3 = vld [vmem:[#allocation3 + $0x24c] sm:$0xf0] }
 0x6ad   : > { %6309 = vmatmul.bf16.vlgmr.msra.gmra.mxu3 %v12344_v6  ;;  %v10110_v39 = vor.u32 %v11082_v31, %v10107_v3  ;;  %v9770_v31 = vor.u32 %v10998_v14, %v9767_v41  ;;  %v11057_v3 = vld [vmem:[#allocation3 + $0x168] sm:$0xf0]  ;;  %v9867_v14 = vld [vmem:[#allocation3 + $0x3ac] sm:$0xf0]  ;;  %v9873_v41 = vld [vmem:[#allocation3 + $0x398] sm:$0xf] }
 0x6ae   : > { %6353 = vmatpush.bf16.xpose.msrb.mxu3 %v9970_v40  ;;  %v5457_v37 = vpop.f32.mrf.mxu2 }
 0x6af   : > { %v5458_v26 = vadd.f32 %v5457_v37, %v12330_v47  ;;  %v11078_v47 = vld [vmem:[#allocation3 + $0x210] sm:$0xf0] }
 0x6b0   : > { %7155 = vmatpush.bf16.xpose.msra.mxu1 %v10162_v0  ;;  %v5470_v51 = vpop.f32.mrf.mxu3  ;;  %v10078_v29 = vor.u32 %v11078_v47, %v10077_v13  ;;  %v10054_v0 = vor.u32 %v11068_v16, %v10051_v32  ;;  %v10210_v47 = vor.u32 %v11105_v45, %v10207_v62  ;;  %v11039_v32 = vld [vmem:[#allocation3 + $0x420] sm:$0xf0]  ;;  %v10151_v16 = vld [vmem:[#allocation3 + $0x294] sm:$0xf0] }
 0x6b1   : > { %7168 = vmatpush.bf16.xpose.msra.mxu0 %v10166_v19  ;;  %v5471_v40 = vadd.f32 %v5470_v51, %v5458_v26  ;;  %v11005_v19 = vld [vmem:[#allocation3 + $0x314] sm:$0xf]  ;;  %v10205_v51 = vld [vmem:[#allocation3 + $0x2e8] sm:$0xf]  ;;  %v9987_v45 = vld [vmem:[%s12475_s4 + $0xa8] sm:$0xff] }
 0x6b2   : > { %v9798_v24 = vor.u32 %v11005_v19, %v9795_v54  ;;  %v11028_v54 = vld [vmem:[#allocation3 + $0x3cc] sm:$0xf] }
 0x6b3   : > { %v5484_v33 = vadd.f32 %v12337_v23, %v5471_v40  ;;  %v10082_v23 = vor.u32 %v11075_v57, %v10079_v58  ;;  %v9774_v40 = vor.u32 %v11002_v12, %v9773_v36  ;;  %v9957_v57 = vld [vmem:[#allocation3 + $0x440] sm:$0xf]  ;;  %v11046_v58 = vld [vmem:[#allocation3 + $0x458] sm:$0xf0]  ;;  %v10093_v36 = vld [vmem:[#allocation3 + $0x208] sm:$0xf] }
 0x6b4   : > { %6341 = vmatpush.bf16.xpose.msrb.mxu2 %v9938_v46  ;;  %v11016_v46 = vld [vmem:[#allocation3 + $0x368] sm:$0xf0]  ;;  %v11080_v12 = vld [vmem:[#allocation3 + $0x220] sm:$0xf0] }
 0x6b5   : > { %v5497_v27 = vadd.f32 %v12342_v44, %v5484_v33  ;;  %v9829_v44 = vld [vmem:[#allocation3 + $0x350] sm:$0xf] }
 0x6b6   : > { %6354 = vmatpush.bf16.xpose.msrb.mxu3 %v9942_v20  ;;  %v5459_v53 = vpop.f32.mrf.mxu2  ;;  %v11071_v20 = vld [vmem:[#allocation3 + $0x1d8] sm:$0xf0]  ;;  %v9830_v42 = vor.u32 %v11016_v46, %v9829_v44  ;;  %v11035_v46 = vld [vmem:[#allocation3 + $0x404] sm:$0xf] }
 0x6b7   : > { %v12352_v59 = vadd.f32 %v5497_v27, %v12286_v2  ;;  %v10050_v2 = vor.u32 %v11071_v20, %v10049_v15  ;;  %v9951_v27 = vld [vmem:[#allocation3 + $0x454] sm:$0xf0]  ;;  %v9929_v20 = vld [vmem:[#allocation3 + $0x408] sm:$0xf]  ;;  %v6284_v62 = vpop.f32.mrf.mxu0 }
 0x6b8   : > { %7156 = vmatpush.bf16.xpose.msra.mxu1 %v10134_v28  ;;  %v5472_v61 = vpop.f32.mrf.mxu3  ;;  %v11049_v28 = vld [vmem:[#allocation3 + $0x474] sm:$0xf]  ;;  %v9954_v53 = vor.u32 %v11042_v1, %v9951_v27  ;;  %v10149_v15 = vld [vmem:[#allocation3 + $0x278] sm:$0xf]  ;;  %v6558_v1 = vunpack.c.h.b16 %v9987_v45  ;;  %v9845_v27 = vld [vmem:[#allocation3 + $0x360] sm:$0xf] }
 0x6b9   : > { %7169 = vmatpush.bf16.xpose.msra.mxu0 %v10138_v4  ;;  %v9979_v4 = vld [vmem:[#allocation3 + $0x48c] sm:$0xf0]  ;;  %v11101_v61 = vld [vmem:[#allocation3 + $0x2c8] sm:$0xf0] }
 0x6ba   : > { %v9982_v37 = vor.u32 %v11049_v28, %v9979_v4 }
 0x6bc   : > { %6342 = vmatpush.bf16.xpose.msrb.mxu2 %v9910_v10  ;;  %v11064_v10 = vld [vmem:[#allocation3 + $0x1a0] sm:$0xf0] }
 0x6bd   : > { %v10022_v34 = vor.u32 %v11064_v10, %v10021_v25  ;;  %v9898_v10 = vor.u32 %v11028_v54, %v9895_v8  ;;  %v11084_v25 = vld [vmem:[#allocation3 + $0x244] sm:$0xf]  ;;  %v10037_v8 = vld [vmem:[#allocation3 + $0x198] sm:$0xf] }
 0x6be   : > { %6355 = vmatpush.bf16.xpose.msrb.mxu3 %v9914_v17  ;;  %v11061_v17 = vld [vmem:[#allocation3 + $0x18c] sm:$0xf] }
 0x6bf   : > { %v10026_v35 = vor.u32 %v11061_v17, %v10023_v50  ;;  %v10121_v50 = vld [vmem:[#allocation3 + $0x240] sm:$0xf] }
 0x6c0   : > { %7157 = vmatpush.bf16.xpose.msra.mxu1 %v10106_v11  ;;  %v11108_v11 = vld [vmem:[#allocation3 + $0x300] sm:$0xf0] }
 0x6c1   : > { %7170 = vmatpush.bf16.xpose.msra.mxu0 %v10110_v39  ;;  %v9993_v39 = vld [vmem:[#allocation3 + $0x150] sm:$0xf]  ;;  %v10206_v13 = vor.u32 %v11108_v11, %v10205_v51  ;;  %v11014_v11 = vld [vmem:[#allocation3 + $0x35c] sm:$0xf] }
 0x6c2   : > { %v9994_v33 = vor.u32 %v11057_v3, %v9993_v39  ;;  %v6271_v39 = vpop.f32.mrf.mxu1 }
 0x6c4   : > { %6343 = vmatpush.bf16.xpose.msrb.mxu2 %v9882_v38  ;;  %v11053_v38 = vld [vmem:[#allocation3 + $0x490] sm:$0xf0] }
 0x6c5   : > { %v9986_v26 = vor.u32 %v11053_v38, %v9985_v49  ;;  %v11025_v49 = vld [vmem:[#allocation3 + $0x3b0] sm:$0xf0] }
 0x6c6   : > { %6356 = vmatpush.bf16.xpose.msrb.mxu3 %v9886_v18  ;;  %v9995_v18 = vld [vmem:[#allocation3 + $0x16c] sm:$0xf0]  ;;  %v9874_v3 = vor.u32 %v11025_v49, %v9873_v41  ;;  %v11000_v49 = vld [vmem:[#allocation3 + $0x2ec] sm:$0xf] }
 0x6c8   : > { %7158 = vmatpush.bf16.xpose.msra.mxu1 %v10078_v29  ;;  %v10177_v29 = vld [vmem:[#allocation3 + $0x2b0] sm:$0xf] }
 0x6c9   : > { %7171 = vmatpush.bf16.xpose.msra.mxu0 %v10082_v23  ;;  %v11098_v23 = vld [vmem:[#allocation3 + $0x2b4] sm:$0xf]  ;;  %v10178_v7 = vor.u32 %v11101_v61, %v10177_v29  ;;  %v10067_v29 = vld [vmem:[#allocation3 + $0x1ec] sm:$0xf0] }
 0x6ca   : > { %v10182_v44 = vor.u32 %v11098_v23, %v10179_v43 }
 0x6cc   : > { %6344 = vmatpush.bf16.xpose.msrb.mxu2 %v9854_v5  ;;  %v9998_v5 = vor.u32 %v11054_v48, %v9995_v18  ;;  %v10094_v18 = vor.u32 %v11080_v12, %v10093_v36  ;;  %v6557_v48 = vunpack.c.l.b16 %v9987_v45  ;;  %v10415_v45 = vld [vmem:[#allocation3 + $0x4b4] sm:$0xf0] }
 0x6ce   : > { %6357 = vmatpush.bf16.xpose.msrb.mxu3 %v9858_v55  ;;  %v9958_v55 = vor.u32 %v11046_v58, %v9957_v57  ;;  %v11073_v57 = vld [vmem:[#allocation3 + $0x1e8] sm:$0xf0]  ;;  %v12359_v58 = vpack.c.b16 %v6557_v48, %v6557_v48 }
 0x6d0   : > { %7159 = vmatpush.bf16.xpose.msra.mxu1 %v10050_v2  ;;  %v11091_v2 = vld [vmem:[#allocation3 + $0x27c] sm:$0xf] }
 0x6d1   : > { %7172 = vmatpush.bf16.xpose.msra.mxu0 %v10054_v0  ;;  %v9930_v0 = vor.u32 %v11039_v32, %v9929_v20 }
 0x6d4   : > { %6345 = vmatpush.bf16.xpose.msrb.mxu2 %v9826_v22  ;;  %v9923_v22 = vld [vmem:[#allocation3 + $0x41c] sm:$0xf0] }
 0x6d6   : > { %6358 = vmatpush.bf16.xpose.msrb.mxu3 %v9830_v42  ;;  %v9926_v42 = vor.u32 %v11035_v46, %v9923_v22  ;;  %v11007_v22 = vld [vmem:[#allocation3 + $0x324] sm:$0xf] }
 0x6d8   : > { %7160 = vmatpush.bf16.xpose.msra.mxu1 %v10022_v34  ;;  %v10123_v34 = vld [vmem:[#allocation3 + $0x25c] sm:$0xf0] }
 0x6d9   : > { %7173 = vmatpush.bf16.xpose.msra.mxu0 %v10026_v35  ;;  %v10126_v4 = vor.u32 %v11084_v25, %v10123_v34  ;;  %v11021_v35 = vld [vmem:[#allocation3 + $0x394] sm:$0xf] }
 0x6da   : > { %v9870_v38 = vor.u32 %v11021_v35, %v9867_v14 }
 0x6dc   : > { %6346 = vmatpush.bf16.xpose.msrb.mxu2 %v9798_v24  ;;  %v11032_v24 = vld [vmem:[#allocation3 + $0x3e8] sm:$0xf0] }
 0x6dd   : > { %v9902_v17 = vor.u32 %v11032_v24, %v9901_v21  ;;  %v11066_v21 = vld [vmem:[#allocation3 + $0x1b0] sm:$0xf0]  ;;  %v11288_v24 = vmov 839922192  }
 0x6de   : > { %6359 = vmatpush.bf16.xpose.msrb.mxu3 %v9802_v63  ;;  %v11087_v63 = vld [vmem:[#allocation3 + $0x258] sm:$0xf0] }
 0x6df   : > { %v10122_v28 = vor.u32 %v11087_v63, %v10121_v50  ;;  %v11063_v50 = vld [vmem:[#allocation3 + $0x19c] sm:$0xf]  ;;  %v10039_v63 = vld [vmem:[#allocation3 + $0x1b4] sm:$0xf0] }
 0x6e0   : > { %7161 = vmatpush.bf16.xpose.msra.mxu1 %v9994_v33  ;;  %v11287_v33 = vmov 256.0   ;;  %v10042_v14 = vor.u32 %v11063_v50, %v10039_v63  ;;  %v11093_v50 = vld [vmem:[#allocation3 + $0x288] sm:$0xf0] }
 0x6e1   : > { %7174 = vmatpush.bf16.xpose.msra.mxu0 %v9998_v5  ;;  %11214 = vrcp.f32 %v11287_v33  ;;  %v11018_v5 = vld [vmem:[#allocation3 + $0x378] sm:$0xf0]  ;;  %v10199_v33 = vld [vmem:[#allocation3 + $0x2fc] sm:$0xf0] }
 0x6e2   : > { %v9846_v23 = vor.u32 %v11018_v5, %v9845_v27  ;;  %v11163_v27 = vld [vmem:[#allocation3 + $0x4b8] sm:$0xf0] }
 0x6e4   : > { %6347 = vmatpush.bf16.xpose.msrb.mxu2 %v9770_v31  ;;  %v10095_v31 = vld [vmem:[#allocation3 + $0x224] sm:$0xf0] }
 0x6e6   : > { %6360 = vmatpush.bf16.xpose.msrb.mxu3 %v9774_v40  ;;  %v9839_v40 = vld [vmem:[#allocation3 + $0x374] sm:$0xf0] }
 0x6e7   : > { %7162 = vmatmul.bf16.vlgmr.msra.gmra.mxu1 %v12359_v58  ;;  %v11215_v46 = vpop.eup %11214 }
 0x6e8   : > { %7206 = vmatpush.bf16.xpose.msrb.mxu1 %v10206_v13  ;;  %v9842_v13 = vor.u32 %v11014_v11, %v9839_v40  ;;  %vm7364_vm4 = vweird.f32 %v11215_v46  ;;  %v11059_v11 = vld [vmem:[#allocation3 + $0x178] sm:$0xf0]  ;;  %v11004_v40 = vld [vmem:[#allocation3 + $0x308] sm:$0xf0] }
 0x6e9   : > { %7219 = vmatpush.bf16.xpose.msrb.mxu0 %v10210_v47  ;;  %v10065_v47 = vld [vmem:[#allocation3 + $0x1d0] sm:$0xf] }
 0x6eb   : > { %6348 = vmatmul.bf16.vlgmr.msrb.gmra.mxu2 %v12313_v52  ;;  %v11094_v52 = vld [vmem:[#allocation3 + $0x290] sm:$0xf0] }
 0x6ec   : > { %6392 = vmatpush.bf16.xpose.msra.mxu2 %v9982_v37  ;;  %v10150_v19 = vor.u32 %v11094_v52, %v10149_v15  ;;  %v11077_v37 = vld [vmem:[#allocation3 + $0x20c] sm:$0xf]  ;;  %v7360_v15 = vmul.f32 256.0, %v11215_v46  ;;  %v6273_v52 = vpop.f32.mrf.mxu1 }
 0x6ed   : > { %6361 = vmatmul.bf16.vlgmr.msrb.gmra.mxu3 %v12304_v9  ;;  %v10154_v9 = vor.u32 %v11091_v2, %v10151_v16  ;;  %v10098_v51 = vor.u32 %v11077_v37, %v10095_v31  ;;  %v6286_v2 = vpop.f32.mrf.mxu0  ;;  %v9789_v37 = vld [vmem:[#allocation3 + $0x2f0] sm:$0xf]  ;;  %v10197_v31 = vld [vmem:[#allocation3 + $0x2e0] sm:$0xf]  ;;  %v10393_v52 = vld [vmem:[#allocation3 + $0x468] sm:$0xf] }
 0x6ee   : > { %6405 = vmatpush.bf16.xpose.msra.mxu3 %v9986_v26  ;;  %v6245_v26 = vpop.f32.mrf.mxu2  ;;  %v11156_v2 = vld [vmem:[#allocation3 + $0x480] sm:$0xf0] }
 0x6f0   : > { %7207 = vmatpush.bf16.xpose.msrb.mxu1 %v10178_v7  ;;  %v6258_v61 = vpop.f32.mrf.mxu3 }
 0x6f1   : > { %7220 = vmatpush.bf16.xpose.msrb.mxu0 %v10182_v44  ;;  %v6259_v43 = vadd.f32 %v6258_v61, %v6245_v26  ;;  %v10066_v44 = vor.u32 %v11073_v57, %v10065_v47  ;;  %v11104_v26 = vld [vmem:[#allocation3 + $0x2e4] sm:$0xf]  ;;  %v10011_v47 = vld [vmem:[#allocation3 + $0x17c] sm:$0xf0]  ;;  %v9790_v57 = vor.u32 %v11004_v40, %v9789_v37  ;;  %v10331_v40 = vld [vmem:[#allocation3 + $0x40c] sm:$0xf0] }
 0x6f2   : > { %v10202_v61 = vor.u32 %v11104_v26, %v10199_v33  ;;  %v11083_v26 = vld [vmem:[#allocation3 + $0x23c] sm:$0xf] }
 0x6f3   : > { %v6272_v32 = vadd.f32 %v6271_v39, %v6259_v43  ;;  %v11159_v39 = vld [vmem:[#allocation3 + $0x49c] sm:$0xf] }
 0x6f4   : > { %6393 = vmatpush.bf16.xpose.msra.mxu2 %v9954_v53  ;;  %v12361_v53 = vpack.c.b16 %v6558_v1, %v6558_v1  ;;  %v7358_v35 = vpop.xlane.xlu0 %7357  ;;  %v12372_v12 = vpop.f32.mrf.mxu1  ;;  %v10421_v1 = vld [vmem:[#allocation3 + $0x4a0] sm:$0xf] }
 0x6f5   : > { %v12365_v16 = vadd.f32 %v6284_v62, %v6272_v32  ;;  %v10422_v43 = vor.u32 %v11163_v27, %v10421_v1  ;;  %v11152_v32 = vld [vmem:[#allocation3 + $0x464] sm:$0xf] }
 0x6f6   : > { %6406 = vmatpush.bf16.xpose.msra.mxu3 %v9958_v55  ;;  %v11070_v55 = vld [vmem:[#allocation3 + $0x1d4] sm:$0xf]  ;;  %v6247_v7 = vpop.f32.mrf.mxu2  ;;  %7175 = vmatmul.bf16.vlgmr.msra.gmra.mxu0 %v12361_v53 }
 0x6f7   : > { %v10070_v20 = vor.u32 %v11070_v55, %v10067_v29  ;;  %v10418_v29 = vor.u32 %v11159_v39, %v10415_v45  ;;  %v10337_v45 = vld [vmem:[#allocation3 + $0x3f8] sm:$0xf] }
 0x6f8   : > { %7208 = vmatpush.bf16.xpose.msrb.mxu1 %v10150_v19  ;;  %v11011_v19 = vld [vmem:[#allocation3 + $0x340] sm:$0xf0]  ;;  %v6260_v34 = vpop.f32.mrf.mxu3 }
 0x6f9   : > { %7221 = vmatpush.bf16.xpose.msrb.mxu0 %v10154_v9  ;;  %v7361_v9 = vsub.f32 1.0, %v7360_v15  ;;  %v10171_v15 = vld [vmem:[#allocation3 + $0x2c4] sm:$0xf0]  ;;  %v11090_v34 = vld [vmem:[#allocation3 + $0x274] sm:$0xf] }
 0x6fb   : > { %v7362_v25 = vmul.f32 %v11215_v46, %v7361_v9 }
 0x6fc   : > { %6394 = vmatpush.bf16.xpose.msra.mxu2 %v9926_v42  ;;  %v9811_v42 = vld [vmem:[#allocation3 + $0x33c] sm:$0xf0] }
 0x6fd   : > { %v9814_v54 = vor.u32 %v11007_v22, %v9811_v42  ;;  %v10169_v22 = vld [vmem:[#allocation3 + $0x2a8] sm:$0xf]  ;;  %v10387_v42 = vld [vmem:[#allocation3 + $0x47c] sm:$0xf0] }
 0x6fe   : > { %6407 = vmatpush.bf16.xpose.msra.mxu3 %v9930_v0  ;;  %v9817_v0 = vld [vmem:[#allocation3 + $0x328] sm:$0xf] }
 0x700   : > { %7209 = vmatpush.bf16.xpose.msrb.mxu1 %v10122_v28  ;;  %v10038_v28 = vor.u32 %v11066_v21, %v10037_v8 }
 0x701   : > { %7222 = vmatpush.bf16.xpose.msrb.mxu0 %v10126_v4  ;;  %v7363_v4 = vadd.f32 %v11215_v46, %v7362_v25 }
 0x703   : > { %v12370_v36 = vsel %vm7364_vm4, %v11215_v46, %v7363_v4  ;;  %v6325_v46 = vpop.f32.mrf.mxu1  ;;  %v10143_v4 = vld [vmem:[#allocation3 + $0x28c] sm:$0xf0] }
 0x704   : > { %6395 = vmatpush.bf16.xpose.msra.mxu2 %v9898_v10  ;;  %v12367_v10 = vunpack.c.l.s4 %v11288_v24  ;;  %v10141_v24 = vld [vmem:[#allocation3 + $0x270] sm:$0xf]  ;;  %v10309_v46 = vld [vmem:[#allocation3 + $0x3c0] sm:$0xf] }
 0x706   : > { %6408 = vmatpush.bf16.xpose.msra.mxu3 %v9902_v17  ;;  %v9818_v17 = vor.u32 %v11011_v19, %v9817_v0  ;;  %v7370_v41 = vunpack.c.0.s8 %v12367_v10  ;;  %v10390_v19 = vor.u32 %v11152_v32, %v10387_v42 }
 0x708   : > { %7210 = vmatpush.bf16.xpose.msrb.mxu1 %v10094_v18  ;;  %v7366_v18 = vmul.f32 %v12370_v36, %v7358_v35  ;;  %v11149_v35 = vld [vmem:[#allocation3 + $0x448] sm:$0xf0] }
 0x709   : > { %7223 = vmatpush.bf16.xpose.msrb.mxu0 %v10098_v51  ;;  %v10009_v51 = vld [vmem:[#allocation3 + $0x160] sm:$0xf] }
 0x70a   : > { %v7371_v48 = vperm.slane %v7366_v18, %v7370_v41  ;;  %v10115_v18 = vld [vmem:[#allocation3 + $0x254] sm:$0xf0] }
 0x70c   : > { %6396 = vmatpush.bf16.xpose.msra.mxu2 %v9870_v38  ;;  %v9783_v38 = vld [vmem:[#allocation3 + $0x304] sm:$0xf0]  ;;  %v12378_v55 = vsub.f32 %v12324_v60, %v7371_v48  ;;  %v11097_v60 = vld [vmem:[#allocation3 + $0x2ac] sm:$0xf]  ;;  %v10118_v48 = vor.u32 %v11083_v26, %v10115_v18 }
 0x70d   : > { %v9786_v62 = vor.u32 %v11000_v49, %v9783_v38  ;;  %v10174_v9 = vor.u32 %v11097_v60, %v10171_v15  ;;  %v10146_v38 = vor.u32 %v11090_v34, %v10143_v4  ;;  %v11128_v34 = vld [vmem:[#allocation3 + $0x3a0] sm:$0xf0]  ;;  %v11065_v4 = vld [vmem:[#allocation3 + $0x1a8] sm:$0xf0] }
 0x70e   : > { %6409 = vmatpush.bf16.xpose.msra.mxu3 %v9874_v3  ;;  %v11107_v3 = vld [vmem:[#allocation3 + $0x2f8] sm:$0xf0]  ;;  %v7374_v7 = vmul.f32 %v12378_v55, %v12378_v55  ;;  %v11121_v26 = vld [vmem:[#allocation3 + $0x368] sm:$0xf0] }
 0x70f   : > { %v10198_v5 = vor.u32 %v11107_v3, %v10197_v31  ;;  %v10113_v31 = vld [vmem:[#allocation3 + $0x238] sm:$0xf]  ;;  %v11086_v3 = vld [vmem:[#allocation3 + $0x250] sm:$0xf0] }
 0x710   : > { %7211 = vmatpush.bf16.xpose.msrb.mxu1 %v10066_v44  ;;  %7376 = vst [vmem:[#allocation1] ss:$2 sm:$0xff] %v7374_v7 }
 0x711   : > { %7224 = vmatpush.bf16.xpose.msrb.mxu0 %v10070_v20  ;;  %v11100_v20 = vld [vmem:[#allocation3 + $0x2c0] sm:$0xf0] }
 0x712   : > { %v10170_v0 = vor.u32 %v11100_v20, %v10169_v22  ;;  %v11135_v22 = vld [vmem:[#allocation3 + $0x3d8] sm:$0xf0] }
 0x713   : > { %v10310_v15 = vor.u32 %v11135_v22, %v10309_v46 }
 0x714   : > { %6397 = vmatpush.bf16.xpose.msra.mxu2 %v9842_v13  ;;  %v11056_v13 = vld [vmem:[#allocation3 + $0x164] sm:$0xf] }
 0x715   : > { %v10014_v44 = vor.u32 %v11056_v13, %v10011_v47  ;;  %v10085_v47 = vld [vmem:[#allocation3 + $0x200] sm:$0xf] }
 0x716   : > { %6410 = vmatpush.bf16.xpose.msra.mxu3 %v9846_v23  ;;  %v10010_v23 = vor.u32 %v11059_v11, %v10009_v51  ;;  %v10114_v51 = vor.u32 %v11086_v3, %v10113_v31  ;;  %v11138_v11 = vld [vmem:[#allocation3 + $0x3f4] sm:$0xf]  ;;  %v10253_v3 = vld [vmem:[#allocation3 + $0x350] sm:$0xf] }
 0x717   : > { %v7377_v8 = vld.sshfl [vmem:[#allocation1] sm:$0xff pattern:$0x75316420]  ;;  %v7378_v21 = vld.sshfl [vmem:[#allocation1 + $0x8] sm:$0xff pattern:$0x75316420]  ;;  %v10334_v27 = vor.u32 %v11138_v11, %v10331_v40  ;;  %v10254_v40 = vor.u32 %v11121_v26, %v10253_v3 }
 0x718   : > { %7212 = vmatpush.bf16.xpose.msrb.mxu1 %v10038_v28  ;;  %v7381_v63 = vsel %vm7353_vm3, %v7377_v8, 0.0  ;;  %v7382_v25 = vsel %vm7353_vm3, %v7378_v21, 0.0  ;;  %v11124_v8 = vld [vmem:[#allocation3 + $0x384] sm:$0xf]  ;;  %v10275_v21 = vld [vmem:[#allocation3 + $0x39c] sm:$0xf0] }
 0x719   : > { %7225 = vmatpush.bf16.xpose.msrb.mxu0 %v10042_v14  ;;  %v7383_v28 = vadd.f32 %v7382_v25, %v7381_v63  ;;  %v10142_v14 = vor.u32 %v11093_v50, %v10141_v24  ;;  %v11069_v63 = vld [vmem:[#allocation3 + $0x1cc] sm:$0xf]  ;;  %v10281_v25 = vld [vmem:[#allocation3 + $0x388] sm:$0xf]  ;;  %v11062_v31 = vld [vmem:[#allocation3 + $0x194] sm:$0xf] }
 0x71a   : > { %v11058_v11 = vld [vmem:[#allocation3 + $0x170] sm:$0xf0]  ;;  %v11148_v3 = vld [vmem:[#allocation3 + $0x440] sm:$0xf0]  ;;  %v11147_v26 = vld [vmem:[#allocation3 + $0x43c] sm:$0xf] }
 0x71b   : > { %7384 = vadd.xlane.f32.xlu0 %v7383_v28  ;;  %v10282_v28 = vor.u32 %v11128_v34, %v10281_v25  ;;  %v11154_v34 = vld [vmem:[#allocation3 + $0x474] sm:$0xf] }
 0x71c   : > { %6398 = vmatpush.bf16.xpose.msra.mxu2 %v9814_v54  ;;  %v10394_v54 = vor.u32 %v11156_v2, %v10393_v52  ;;  %v11072_v52 = vld [vmem:[#allocation3 + $0x1e0] sm:$0xf0] }
 0x71e   : > { %6411 = vmatpush.bf16.xpose.msra.mxu3 %v9818_v17  ;;  %v10359_v17 = vld [vmem:[#allocation3 + $0x444] sm:$0xf0] }
 0x720   : > { %7213 = vmatpush.bf16.xpose.msrb.mxu1 %v10010_v23  ;;  %v10087_v23 = vld [vmem:[#allocation3 + $0x21c] sm:$0xf0] }
 0x721   : > { %7226 = vmatpush.bf16.xpose.msrb.mxu0 %v10014_v44  ;;  %v10303_v44 = vld [vmem:[#allocation3 + $0x3d4] sm:$0xf0] }
 0x724   : > { %6399 = vmatpush.bf16.xpose.msra.mxu2 %v9786_v62  ;;  %v11142_v62 = vld [vmem:[#allocation3 + $0x410] sm:$0xf0] }
 0x725   : > { %v10338_v13 = vor.u32 %v11142_v62, %v10337_v45  ;;  %v10003_v45 = vld [vmem:[#allocation3 + $0x174] sm:$0xf0]  ;;  %v10213_v62 = vld [vmem:[#allocation3 + $0x2f0] sm:$0xf] }
 0x726   : > { %6412 = vmatpush.bf16.xpose.msra.mxu3 %v9790_v57  ;;  %v11079_v57 = vld [vmem:[#allocation3 + $0x218] sm:$0xf0] }
 0x727   : > { %v10086_v7 = vor.u32 %v11079_v57, %v10085_v47  ;;  %v11161_v47 = vld [vmem:[#allocation3 + $0x4ac] sm:$0xf]  ;;  %v10431_v57 = vld [vmem:[#allocation3 + $0x4c4] sm:$0xf0] }
 0x728   : > { %7258 = vmatpush.bf16.xpose.msra.mxu1 %v10418_v29 }
 0x729   : > { %7271 = vmatpush.bf16.xpose.msra.mxu0 %v10422_v43 }
 0x72b   : > { %6400 = vmatmul.bf16.vlgmr.msra.gmra.mxu2 %v12344_v6  ;;  %v11145_v6 = vld [vmem:[#allocation3 + $0x42c] sm:$0xf] }
 0x72c   : > { %7180 = vmatpush.bf16.xpose.msrb.mxu2 %v10198_v5  ;;  %v10362_v49 = vor.u32 %v11145_v6, %v10359_v17  ;;  %v10278_v17 = vor.u32 %v11124_v8, %v10275_v21  ;;  %v11102_v8 = vld [vmem:[#allocation3 + $0x2d0] sm:$0xf0]  ;;  %v10385_v21 = vld [vmem:[#allocation3 + $0x460] sm:$0xf] }
 0x72d   : > { %6413 = vmatmul.bf16.vlgmr.msra.gmra.mxu3 %v12332_v56  ;;  %v10365_v56 = vld [vmem:[#allocation3 + $0x430] sm:$0xf] }
 0x72e   : > { %7193 = vmatpush.bf16.xpose.msrb.mxu3 %v10202_v61  ;;  %v10366_v37 = vor.u32 %v11149_v35, %v10365_v56  ;;  %v6297_v39 = vpop.f32.mrf.mxu2  ;;  %v11076_v61 = vld [vmem:[#allocation3 + $0x204] sm:$0xf]  ;;  %v10029_v35 = vld [vmem:[#allocation3 + $0x190] sm:$0xf] }
 0x72f   : > { %v6298_v33 = vadd.f32 %v6297_v39, %v12365_v16  ;;  %v11131_v16 = vld [vmem:[#allocation3 + $0x3bc] sm:$0xf]  ;;  %v10090_v60 = vor.u32 %v11076_v61, %v10087_v23  ;;  %v10001_v39 = vld [vmem:[#allocation3 + $0x158] sm:$0xf]  ;;  %v10219_v23 = vld [vmem:[#allocation3 + $0x32c] sm:$0xf0] }
 0x730   : > { %7259 = vmatpush.bf16.xpose.msra.mxu1 %v10390_v19  ;;  %v6310_v1 = vpop.f32.mrf.mxu3  ;;  %v10306_v32 = vor.u32 %v11131_v16, %v10303_v44  ;;  %v10057_v19 = vld [vmem:[#allocation3 + $0x1c8] sm:$0xf]  ;;  %v10002_v61 = vor.u32 %v11058_v11, %v10001_v39  ;;  %v11165_v16 = vld [vmem:[#allocation3 + $0x4c8] sm:$0xf0]  ;;  %v11055_v44 = vld [vmem:[#allocation3 + $0x15c] sm:$0xf] }
 0x731   : > { %7272 = vmatpush.bf16.xpose.msra.mxu0 %v10394_v54  ;;  %v6311_v5 = vadd.f32 %v6310_v1, %v6298_v33  ;;  %v10058_v54 = vor.u32 %v11072_v52, %v10057_v19  ;;  %v11109_v33 = vld [vmem:[#allocation3 + $0x308] sm:$0xf0]  ;;  %v10413_v1 = vld [vmem:[#allocation3 + $0x498] sm:$0xf]  ;;  %v11151_v11 = vld [vmem:[#allocation3 + $0x458] sm:$0xf0] }
 0x732   : > { %v10214_v46 = vor.u32 %v11109_v33, %v10213_v62  ;;  %v10129_v33 = vld [vmem:[#allocation3 + $0x248] sm:$0xf] }
 0x733   : > { %v6324_v29 = vadd.f32 %v12372_v12, %v6311_v5  ;;  %v12391_v12 = vpop.f32.mrf.mxu0  ;;  %v9988_v5 = vld [vmem:[%s12475_s4 + $0xb0] sm:$0xff] }
 0x734   : > { %7181 = vmatpush.bf16.xpose.msrb.mxu2 %v10170_v0  ;;  %v6560_v52 = vunpack.c.h.b16 %v9988_v5 }
 0x735   : > { %v12389_v43 = vadd.f32 %v6324_v29, %v12318_v30  ;;  %v9989_v30 = vld [vmem:[%s12475_s4 + $0xb8] sm:$0xff] }
 0x736   : > { %7194 = vmatpush.bf16.xpose.msrb.mxu3 %v10174_v9  ;;  %v6299_v20 = vpop.f32.mrf.mxu2  ;;  %v6561_v2 = vunpack.c.l.b16 %v9989_v30  ;;  %v6562_v0 = vunpack.c.h.b16 %v9989_v30  ;;  %v10059_v9 = vld [vmem:[#allocation3 + $0x1e4] sm:$0xf0]  ;;  %v12409_v25 = vpack.c.b16 %v6560_v52, %v6560_v52  ;;  %v11134_v52 = vld [vmem:[#allocation3 + $0x3d0] sm:$0xf0] }
 0x737   : > { %v10062_v6 = vor.u32 %v11069_v63, %v10059_v9  ;;  %v6559_v20 = vunpack.c.l.b16 %v9988_v5  ;;  %v10185_v9 = vld [vmem:[#allocation3 + $0x2b8] sm:$0xf]  ;;  %v11155_v63 = vld [vmem:[#allocation3 + $0x478] sm:$0xf0] }
 0x738   : > { %7260 = vmatpush.bf16.xpose.msra.mxu1 %v10362_v49  ;;  %v6312_v42 = vpop.f32.mrf.mxu3  ;;  %v12396_v24 = vpack.c.b16 %v6561_v2, %v6561_v2  ;;  %v12398_v50 = vpack.c.b16 %v6562_v0, %v6562_v0  ;;  %v10030_v49 = vor.u32 %v11065_v4, %v10029_v35  ;;  %v11158_v4 = vld [vmem:[#allocation3 + $0x490] sm:$0xf0]  ;;  %v10386_v35 = vor.u32 %v11155_v63, %v10385_v21 }
 0x739   : > { %7273 = vmatpush.bf16.xpose.msra.mxu0 %v10366_v37  ;;  %v10247_v37 = vld [vmem:[#allocation3 + $0x364] sm:$0xf0]  ;;  %v10006_v42 = vor.u32 %v11055_v44, %v10003_v45  ;;  %v6566_v19 = vpack.c.b16 %v6559_v20, %v6559_v20 }
 0x73a   : > { %7214 = vmatmul.bf16.vlgmr.msrb.gmra.mxu1 %v12396_v24  ;;  %7227 = vmatmul.bf16.vlgmr.msrb.gmra.mxu0 %v12398_v50 }
 0x73b   : > { %v6338_v56 = vpop.f32.mrf.mxu0 }
 0x73c   : > { %7182 = vmatpush.bf16.xpose.msrb.mxu2 %v10142_v14  ;;  %v10031_v14 = vld [vmem:[#allocation3 + $0x1ac] sm:$0xf0]  ;;  %v10186_v56 = vor.u32 %v11102_v8, %v10185_v9  ;;  %v11137_v9 = vld [vmem:[#allocation3 + $0x3e8] sm:$0xf0] }
 0x73d   : > { %v10034_v18 = vor.u32 %v11062_v31, %v10031_v14  ;;  %v10357_v31 = vld [vmem:[#allocation3 + $0x428] sm:$0xf] }
 0x73e   : > { %7195 = vmatpush.bf16.xpose.msrb.mxu3 %v10146_v38  ;;  %v11117_v38 = vld [vmem:[#allocation3 + $0x34c] sm:$0xf]  ;;  %v10358_v39 = vor.u32 %v11148_v3, %v10357_v31  ;;  %v10045_v31 = vld [vmem:[#allocation3 + $0x1a0] sm:$0xf]  ;;  %v11067_v3 = vld [vmem:[#allocation3 + $0x1b8] sm:$0xf0] }
 0x740   : > { %7261 = vmatpush.bf16.xpose.msra.mxu1 %v10334_v27  ;;  %v11162_v27 = vld [vmem:[#allocation3 + $0x4b0] sm:$0xf0] }
 0x741   : > { %7274 = vmatpush.bf16.xpose.msra.mxu0 %v10338_v13  ;;  %v11110_v13 = vld [vmem:[#allocation3 + $0x314] sm:$0xf]  ;;  %v10414_v22 = vor.u32 %v11162_v27, %v10413_v1  ;;  %v10329_v1 = vld [vmem:[#allocation3 + $0x3f0] sm:$0xf]  ;;  %v11141_v27 = vld [vmem:[#allocation3 + $0x408] sm:$0xf0] }
 0x742   : > { %v10222_v30 = vor.u32 %v11110_v13, %v10219_v23  ;;  %v11140_v13 = vld [vmem:[#allocation3 + $0x404] sm:$0xf] }
 0x743   : > { %v12407_v29 = vpop.f32.mrf.mxu0  ;;  %v11144_v23 = vld [vmem:[#allocation3 + $0x420] sm:$0xf0] }
 0x744   : > { %7183 = vmatpush.bf16.xpose.msrb.mxu2 %v10114_v51  ;;  %v10250_v51 = vor.u32 %v11117_v38, %v10247_v37  ;;  %v10157_v38 = vld [vmem:[#allocation3 + $0x280] sm:$0xf]  ;;  %v11095_v37 = vld [vmem:[#allocation3 + $0x298] sm:$0xf0] }
 0x746   : > { %7196 = vmatpush.bf16.xpose.msrb.mxu3 %v10118_v48  ;;  %v12402_v48 = vpop.f32.mrf.mxu1 }
 0x748   : > { %7262 = vmatpush.bf16.xpose.msra.mxu1 %v10306_v32  ;;  %v11114_v32 = vld [vmem:[#allocation3 + $0x330] sm:$0xf0] }
 0x749   : > { %7275 = vmatpush.bf16.xpose.msra.mxu0 %v10310_v15  ;;  %v10434_v15 = vor.u32 %v11161_v47, %v10431_v57  ;;  %v10347_v47 = vld [vmem:[#allocation3 + $0x41c] sm:$0xf0] }
 0x74c   : > { %7184 = vmatpush.bf16.xpose.msrb.mxu2 %v10086_v7  ;;  %v10437_v7 = vld [vmem:[#allocation3 + $0x4b0] sm:$0xf] }
 0x74d   : > { %v10438_v2 = vor.u32 %v11165_v16, %v10437_v7  ;;  %v10330_v16 = vor.u32 %v11141_v27, %v10329_v1  ;;  %v10423_v1 = vld [vmem:[#allocation3 + $0x4bc] sm:$0xf0] }
 0x74e   : > { %7197 = vmatpush.bf16.xpose.msrb.mxu3 %v10090_v60  ;;  %v10225_v60 = vld [vmem:[#allocation3 + $0x318] sm:$0xf] }
 0x74f   : > { %v10226_v0 = vor.u32 %v11114_v32, %v10225_v60  ;;  %v10101_v60 = vld [vmem:[#allocation3 + $0x210] sm:$0xf]  ;;  %v11081_v32 = vld [vmem:[#allocation3 + $0x228] sm:$0xf0] }
 0x750   : > { %7263 = vmatpush.bf16.xpose.msra.mxu1 %v10278_v17  ;;  %v6390_v17 = vpop.f32.mrf.mxu0 }
 0x751   : > { %7276 = vmatpush.bf16.xpose.msra.mxu0 %v10282_v28  ;;  %v10409_v28 = vld [vmem:[#allocation3 + $0x478] sm:$0xf]  ;;  %v10273_v17 = vld [vmem:[#allocation3 + $0x380] sm:$0xf] }
 0x754   : > { %7185 = vmatpush.bf16.xpose.msrb.mxu2 %v10058_v54  ;;  %v6377_v54 = vpop.f32.mrf.mxu1 }
 0x756   : > { %7198 = vmatpush.bf16.xpose.msrb.mxu3 %v10062_v6  ;;  %v10403_v6 = vld [vmem:[#allocation3 + $0x48c] sm:$0xf0] }
 0x757   : > { %v10406_v14 = vor.u32 %v11154_v34, %v10403_v6  ;;  %v10073_v6 = vld [vmem:[#allocation3 + $0x1d8] sm:$0xf] }
 0x758   : > { %7264 = vmatpush.bf16.xpose.msra.mxu1 %v10250_v51  ;;  %v10381_v51 = vld [vmem:[#allocation3 + $0x440] sm:$0xf] }
 0x759   : > { %7277 = vmatpush.bf16.xpose.msra.mxu0 %v10254_v40  ;;  %v10158_v40 = vor.u32 %v11095_v37, %v10157_v38  ;;  %v10382_v62 = vor.u32 %v11151_v11, %v10381_v51  ;;  %v10046_v51 = vor.u32 %v11067_v3, %v10045_v31  ;;  %v11119_v11 = vld [vmem:[#allocation3 + $0x35c] sm:$0xf]  ;;  %v11132_v3 = vld [vmem:[#allocation3 + $0x3c4] sm:$0xf] }
 0x75c   : > { %7186 = vmatpush.bf16.xpose.msrb.mxu2 %v10030_v49  ;;  %v10410_v49 = vor.u32 %v11158_v4, %v10409_v28  ;;  %v11127_v28 = vld [vmem:[#allocation3 + $0x398] sm:$0xf0]  ;;  %v11126_v4 = vld [vmem:[#allocation3 + $0x394] sm:$0xf] }
 0x75e   : > { %7199 = vmatpush.bf16.xpose.msrb.mxu3 %v10034_v18  ;;  %v10375_v18 = vld [vmem:[#allocation3 + $0x454] sm:$0xf0] }
 0x75f   : > { %v10378_v45 = vor.u32 %v11147_v26, %v10375_v18  ;;  %v10245_v26 = vld [vmem:[#allocation3 + $0x348] sm:$0xf]  ;;  %v11120_v18 = vld [vmem:[#allocation3 + $0x360] sm:$0xf0] }
 0x760   : > { %7265 = vmatpush.bf16.xpose.msra.mxu1 %v10222_v30 }
 0x761   : > { %7278 = vmatpush.bf16.xpose.msra.mxu0 %v10226_v0  ;;  %v10319_v0 = vld [vmem:[#allocation3 + $0x3e4] sm:$0xf0] }
 0x764   : > { %7187 = vmatpush.bf16.xpose.msrb.mxu2 %v10002_v61  ;;  %v10353_v61 = vld [vmem:[#allocation3 + $0x408] sm:$0xf] }
 0x765   : > { %v10354_v20 = vor.u32 %v11144_v23, %v10353_v61  ;;  %v9990_v61 = vld [vmem:[%s12475_s4 + $0xc0] sm:$0xf]  ;;  %v10217_v23 = vld [vmem:[#allocation3 + $0x310] sm:$0xf] }
 0x766   : > { %7200 = vmatpush.bf16.xpose.msrb.mxu3 %v10006_v42 }
 0x767   : > { %7266 = vmatmul.bf16.vlgmr.msra.gmra.mxu1 %v12361_v53  ;;  %v11088_v53 = vld [vmem:[#allocation3 + $0x260] sm:$0xf0] }
 0x768   : > { %7310 = vmatpush.bf16.xpose.msrb.mxu1 %v10434_v15  ;;  %7279 = vmatmul.bf16.vlgmr.msra.gmra.mxu0 %v6566_v19  ;;  %v10130_v5 = vor.u32 %v11088_v53, %v10129_v33  ;;  %v10301_v15 = vld [vmem:[#allocation3 + $0x3b8] sm:$0xf]  ;;  %v11160_v53 = vld [vmem:[#allocation3 + $0x4a4] sm:$0xf] }
 0x769   : > { %7323 = vmatpush.bf16.xpose.msrb.mxu0 %v10438_v2  ;;  %v10102_v2 = vor.u32 %v11081_v32, %v10101_v60  ;;  %v10302_v8 = vor.u32 %v11134_v52, %v10301_v15  ;;  %v6563_v32 = vunpack.c.l.b16 %v9990_v61  ;;  %v11116_v15 = vld [vmem:[#allocation3 + $0x340] sm:$0xf0] }
 0x76b   : > { %7188 = vmatmul.bf16.vlgmr.msrb.gmra.mxu2 %v6566_v19  ;;  %v10325_v19 = vld [vmem:[#allocation3 + $0x3d0] sm:$0xf] }
 0x76c   : > { %7232 = vmatpush.bf16.xpose.msra.mxu2 %v10214_v46  ;;  %v10350_v46 = vor.u32 %v11140_v13, %v10347_v47  ;;  %v10326_v34 = vor.u32 %v11137_v9, %v10325_v19  ;;  %v11060_v13 = vld [vmem:[#allocation3 + $0x180] sm:$0xf0]  ;;  %v10429_v47 = vld [vmem:[#allocation3 + $0x4a8] sm:$0xf]  ;;  %v6570_v9 = vpack.c.b16 %v6563_v32, %v6563_v32 }
 0x76d   : > { %7201 = vmatmul.bf16.vlgmr.msrb.gmra.mxu3 %v12409_v25 }
 0x76e   : > { %7245 = vmatpush.bf16.xpose.msra.mxu3 %v10414_v22  ;;  %v6349_v57 = vpop.f32.mrf.mxu2 }
 0x76f   : > { %v6350_v7 = vadd.f32 %v6349_v57, %v12391_v12  ;;  %v11133_v12 = vld [vmem:[#allocation3 + $0x3cc] sm:$0xf]  ;;  %v11164_v57 = vld [vmem:[#allocation3 + $0x4c0] sm:$0xf0] }
 0x770   : > { %7311 = vmatpush.bf16.xpose.msrb.mxu1 %v10406_v14  ;;  %v6362_v44 = vpop.f32.mrf.mxu3  ;;  %v10322_v21 = vor.u32 %v11133_v12, %v10319_v0  ;;  %v11130_v14 = vld [vmem:[#allocation3 + $0x3b0] sm:$0xf0]  ;;  %v10430_v60 = vor.u32 %v11164_v57, %v10429_v47  ;;  %v11153_v12 = vld [vmem:[#allocation3 + $0x46c] sm:$0xf]  ;;  %v10395_v0 = vld [vmem:[#allocation3 + $0x484] sm:$0xf0] }
 0x771   : > { %7324 = vmatpush.bf16.xpose.msrb.mxu0 %v10410_v49  ;;  %v6363_v22 = vadd.f32 %v6362_v44, %v6350_v7  ;;  %v10274_v49 = vor.u32 %v11127_v28, %v10273_v17  ;;  %v11113_v7 = vld [vmem:[#allocation3 + $0x328] sm:$0xf0]  ;;  %v7338_v44 = vld [vmem:[%s12476_s5] sm:$0xff]  ;;  %v11150_v17 = vld [vmem:[#allocation3 + $0x450] sm:$0xf0] }
 0x772   : > { %7341 = vperm.xlu1 %11211, %v7338_v44   ;;  %v10218_v52 = vor.u32 %v11113_v7, %v10217_v23  ;;  %v11118_v23 = vld [vmem:[#allocation3 + $0x354] sm:$0xf]  ;;  %v10255_v7 = vld [vmem:[#allocation3 + $0x36c] sm:$0xf0] }
 0x773   : > { %v6376_v42 = vadd.f32 %v12402_v48, %v6363_v22  ;;  %v11074_v48 = vld [vmem:[#allocation3 + $0x1f0] sm:$0xf0]  ;;  %v11112_v22 = vld [vmem:[#allocation3 + $0x324] sm:$0xf] }
 0x774   : > { %7233 = vmatpush.bf16.xpose.msra.mxu2 %v10186_v56  ;;  %v10291_v56 = vld [vmem:[#allocation3 + $0x3ac] sm:$0xf0]  ;;  %v11122_v44 = vld [vmem:[#allocation3 + $0x370] sm:$0xf0] }
 0x775   : > { %v12416_v30 = vadd.f32 %v12407_v29, %v6376_v42  ;;  %v10074_v29 = vor.u32 %v11074_v48, %v10073_v6  ;;  %v10294_v38 = vor.u32 %v11126_v4, %v10291_v56  ;;  %v10241_v42 = vld [vmem:[#allocation3 + $0x328] sm:$0xf]  ;;  %v10367_v6 = vld [vmem:[#allocation3 + $0x44c] sm:$0xf0]  ;;  %v10373_v48 = vld [vmem:[#allocation3 + $0x438] sm:$0xf] }
 0x776   : > { %7246 = vmatpush.bf16.xpose.msra.mxu3 %v10386_v35  ;;  %v6351_v54 = vpop.f32.mrf.mxu2  ;;  %v10297_v35 = vld [vmem:[#allocation3 + $0x398] sm:$0xf]  ;;  %v10242_v19 = vor.u32 %v11116_v15, %v10241_v42  ;;  %v11139_v4 = vld [vmem:[#allocation3 + $0x3fc] sm:$0xf]  ;;  %v10233_v42 = vld [vmem:[#allocation3 + $0x320] sm:$0xf] }
 0x777   : > { %v10298_v37 = vor.u32 %v11130_v14, %v10297_v35  ;;  %v10401_v54 = vld [vmem:[#allocation3 + $0x470] sm:$0xf]  ;;  %v10339_v56 = vld [vmem:[#allocation3 + $0x414] sm:$0xf0]  ;;  %v10345_v35 = vld [vmem:[#allocation3 + $0x400] sm:$0xf] }
 0x778   : > { %7312 = vmatpush.bf16.xpose.msrb.mxu1 %v10378_v45  ;;  %v6364_v63 = vpop.f32.mrf.mxu3  ;;  %v11123_v45 = vld [vmem:[#allocation3 + $0x378] sm:$0xf0] }
 0x779   : > { %7325 = vmatpush.bf16.xpose.msrb.mxu0 %v10382_v62  ;;  %v10246_v62 = vor.u32 %v11120_v18, %v10245_v26  ;;  %v11143_v14 = vld [vmem:[#allocation3 + $0x418] sm:$0xf0]  ;;  %v10311_v26 = vld [vmem:[#allocation3 + $0x3dc] sm:$0xf0] }
 0x77a   : > { %v11115_v15 = vld [vmem:[#allocation3 + $0x338] sm:$0xf0] }
 0x77c   : > { %7234 = vmatpush.bf16.xpose.msra.mxu2 %v10158_v40  ;;  %v10263_v40 = vld [vmem:[#allocation3 + $0x374] sm:$0xf0] }
 0x77d   : > { %v10266_v33 = vor.u32 %v11119_v11, %v10263_v40  ;;  %v11136_v11 = vld [vmem:[#allocation3 + $0x3e0] sm:$0xf0]  ;;  %v10314_v40 = vor.u32 %v11132_v3, %v10311_v26 }
 0x77e   : > { %7247 = vmatpush.bf16.xpose.msra.mxu3 %v10358_v39  ;;  %v10269_v39 = vld [vmem:[#allocation3 + $0x360] sm:$0xf] }
 0x77f   : > { %v10270_v27 = vor.u32 %v11123_v45, %v10269_v39 }
 0x780   : > { %7313 = vmatpush.bf16.xpose.msrb.mxu1 %v10350_v46 }
 0x781   : > { %7326 = vmatpush.bf16.xpose.msrb.mxu0 %v10354_v20  ;;  %v10235_v20 = vld [vmem:[#allocation3 + $0x33c] sm:$0xf0] }
 0x784   : > { %7235 = vmatpush.bf16.xpose.msra.mxu2 %v10130_v5  ;;  %v10017_v5 = vld [vmem:[#allocation3 + $0x168] sm:$0xf] }
 0x785   : > { %v10018_v46 = vor.u32 %v11060_v13, %v10017_v5  ;;  %v10289_v5 = vld [vmem:[#allocation3 + $0x390] sm:$0xf]  ;;  %v11129_v13 = vld [vmem:[#allocation3 + $0x3a8] sm:$0xf0] }
 0x786   : > { %7248 = vmatpush.bf16.xpose.msra.mxu3 %v10330_v16  ;;  %v10426_v16 = vor.u32 %v11160_v53, %v10423_v1  ;;  %v11125_v1 = vld [vmem:[#allocation3 + $0x38c] sm:$0xf]  ;;  %v10290_v57 = vor.u32 %v11129_v13, %v10289_v5 }
 0x788   : > { %7314 = vmatpush.bf16.xpose.msrb.mxu1 %v10322_v21  ;;  %v10398_v21 = vor.u32 %v11153_v12, %v10395_v0  ;;  %v10234_v12 = vor.u32 %v11115_v15, %v10233_v42 }
 0x789   : > { %7327 = vmatpush.bf16.xpose.msrb.mxu0 %v10326_v34  ;;  %v11146_v34 = vld [vmem:[#allocation3 + $0x434] sm:$0xf] }
 0x78a   : > { %v10370_v28 = vor.u32 %v11146_v34, %v10367_v6 }
 0x78c   : > { %7236 = vmatpush.bf16.xpose.msra.mxu2 %v10102_v2  ;;  %v10238_v2 = vor.u32 %v11112_v22, %v10235_v20  ;;  %v11111_v20 = vld [vmem:[#allocation3 + $0x31c] sm:$0xf] }
 0x78e   : > { %7249 = vmatpush.bf16.xpose.msra.mxu3 %v10302_v8  ;;  %v11157_v8 = vld [vmem:[#allocation3 + $0x488] sm:$0xf0] }
 0x78f   : > { %v10402_v63 = vor.u32 %v11157_v8, %v10401_v54 }
 0x790   : > { %7315 = vmatpush.bf16.xpose.msrb.mxu1 %v10294_v38 }
 0x791   : > { %7328 = vmatpush.bf16.xpose.msrb.mxu0 %v10298_v37  ;;  %v10346_v37 = vor.u32 %v11143_v14, %v10345_v35 }
 0x794   : > { %7237 = vmatpush.bf16.xpose.msra.mxu2 %v10074_v29  ;;  %v10374_v29 = vor.u32 %v11150_v17, %v10373_v48 }
 0x796   : > { %7250 = vmatpush.bf16.xpose.msra.mxu3 %v10274_v49  ;;  %v10342_v49 = vor.u32 %v11139_v4, %v10339_v56 }
 0x798   : > { %7316 = vmatpush.bf16.xpose.msrb.mxu1 %v10266_v33  ;;  %v7176_v33 = vpop.f32.mrf.mxu0 }
 0x799   : > { %7329 = vmatpush.bf16.xpose.msrb.mxu0 %v10270_v27  ;;  %v10283_v27 = vld [vmem:[#allocation3 + $0x3a4] sm:$0xf0] }
 0x79a   : > { %v10286_v47 = vor.u32 %v11125_v1, %v10283_v27 }
 0x79c   : > { %7238 = vmatpush.bf16.xpose.msra.mxu2 %v10046_v51  ;;  %v10317_v51 = vld [vmem:[#allocation3 + $0x3c8] sm:$0xf] }
 0x79d   : > { %v10318_v45 = vor.u32 %v11136_v11, %v10317_v51  ;;  %v7385_v11 = vpop.xlane.xlu0 %7384 }
 0x79e   : > { %7251 = vmatpush.bf16.xpose.msra.mxu3 %v10246_v62  ;;  %v7163_v62 = vpop.f32.mrf.mxu1 }
 0x7a0   : > { %7317 = vmatpush.bf16.xpose.msrb.mxu1 %v10238_v2  ;;  %v7178_v61 = vpop.f32.mrf.mxu0 }
 0x7a1   : > { %7330 = vmatpush.bf16.xpose.msrb.mxu0 %v10242_v19 }
 0x7a4   : > { %7239 = vmatpush.bf16.xpose.msra.mxu2 %v10018_v46  ;;  %v10258_v46 = vor.u32 %v11118_v23, %v10255_v7 }
 0x7a6   : > { %7252 = vmatpush.bf16.xpose.msra.mxu3 %v10218_v52 }
 0x7a7   : > { %7318 = vmatmul.bf16.vlgmr.msrb.gmra.mxu1 %v12398_v50 }
 0x7a8   : > { %7331 = vmatmul.bf16.vlgmr.msrb.gmra.mxu0 %v6570_v9 }
 0x7ab   : > { %7240 = vmatmul.bf16.vlgmr.msra.gmra.mxu2 %v6570_v9 }
 0x7ac   : > { %7284 = vmatpush.bf16.xpose.msrb.mxu2 %v10426_v16  ;;  %v10261_v16 = vld [vmem:[#allocation3 + $0x358] sm:$0xf] }
 0x7ad   : > { %7253 = vmatmul.bf16.vlgmr.msra.gmra.mxu3 %v12359_v58  ;;  %v10262_v22 = vor.u32 %v11122_v44, %v10261_v16 }
 0x7ae   : > { %7297 = vmatpush.bf16.xpose.msrb.mxu3 %v10430_v60  ;;  %v6401_v38 = vpop.f32.mrf.mxu2  ;;  %v10227_v60 = vld [vmem:[#allocation3 + $0x334] sm:$0xf0] }
 0x7af   : > { %v6402_v58 = vadd.f32 %v6401_v38, %v12416_v30  ;;  %v7177_v30 = vadd.f32 %v7176_v33, %v7163_v62  ;;  %v10230_v2 = vor.u32 %v11111_v20, %v10227_v60 }
 0x7b0   : > { %v6414_v31 = vpop.f32.mrf.mxu3 }
 0x7b1   : > { %v6415_v50 = vadd.f32 %v6414_v31, %v6402_v58 }
 0x7b3   : > { %v12428_v18 = vadd.f32 %v6415_v50, %v12352_v59  ;;  %v7165_v59 = vpop.f32.mrf.mxu1 }
 0x7b4   : > { %7285 = vmatpush.bf16.xpose.msrb.mxu2 %v10398_v21 }
 0x7b6   : > { %7298 = vmatpush.bf16.xpose.msrb.mxu3 %v10402_v63  ;;  %v6403_v39 = vpop.f32.mrf.mxu2 }
 0x7b7   : > { %v7228_v52 = vpop.f32.mrf.mxu0 }
 0x7b8   : > { %v6416_v53 = vpop.f32.mrf.mxu3 }
 0x7bb   : > { %v7215_v32 = vpop.f32.mrf.mxu1 }
 0x7bc   : > { %7286 = vmatpush.bf16.xpose.msrb.mxu2 %v10370_v28 }
 0x7be   : > { %7299 = vmatpush.bf16.xpose.msrb.mxu3 %v10374_v29 }
 0x7bf   : > { %v7230_v19 = vpop.f32.mrf.mxu0 }
 0x7c3   : > { %v7217_v0 = vpop.f32.mrf.mxu1 }
 0x7c4   : > { %7287 = vmatpush.bf16.xpose.msrb.mxu2 %v10342_v49 }
 0x7c6   : > { %7300 = vmatpush.bf16.xpose.msrb.mxu3 %v10346_v37 }
 0x7cc   : > { %7288 = vmatpush.bf16.xpose.msrb.mxu2 %v10314_v40  ;;  %v7386_v40 = vmul.f32 %v7385_v11, %v12370_v36 }
 0x7ce   : > { %7301 = vmatpush.bf16.xpose.msrb.mxu3 %v10318_v45  ;;  %v7387_v39 = vadd.f32 1e-05, %v7386_v40 }
 0x7d0   : > { %11216 = vrsqrt.f32 %v7387_v39  ;;  %vm7394_vm5 = vweird.f32 %v7387_v39 }
 0x7d4   : > { %7289 = vmatpush.bf16.xpose.msrb.mxu2 %v10286_v47 }
 0x7d6   : > { %7302 = vmatpush.bf16.xpose.msrb.mxu3 %v10290_v57  ;;  %v11217_v45 = vpop.eup %11216 }
 0x7d7   : > { %v7389_v62 = vmul.f32 %v11217_v45, %v7387_v39  ;;  %vm7395_vm6 = vweird.f32 %v11217_v45 }
 0x7d8   : > { %vm7396_vm7 = vmor %vm7394_vm5, %vm7395_vm6 }
 0x7d9   : > { %v7390_v33 = vmul.f32 %v11217_v45, %v7389_v62 }
 0x7dc   : > { %7290 = vmatpush.bf16.xpose.msrb.mxu2 %v10258_v46 }
 0x7de   : > { %7303 = vmatpush.bf16.xpose.msrb.mxu3 %v10262_v22 }
 0x7e4   : > { %7291 = vmatpush.bf16.xpose.msrb.mxu2 %v10230_v2  ;;  %v7267_v17 = vpop.f32.mrf.mxu1  ;;  %v7342_v38 = vpop.permute.xlu1 %7341 }
 0x7e5   : > { %v7280_v28 = vpop.f32.mrf.mxu0 }
 0x7e6   : > { %7304 = vmatpush.bf16.xpose.msrb.mxu3 %v10234_v12 }
 0x7eb   : > { %7292 = vmatmul.bf16.vlgmr.msrb.gmra.mxu2 %v12409_v25 }
 0x7ec   : > { %v7269_v29 = vpop.f32.mrf.mxu1 }
 0x7ed   : > { %7305 = vmatmul.bf16.vlgmr.msrb.gmra.mxu3 %v12396_v24  ;;  %v7282_v4 = vpop.f32.mrf.mxu0 }
 0x7ee   : > { %v7189_v9 = vpop.f32.mrf.mxu2 }
 0x7ef   : > { %v7190_v54 = vadd.f32 %v7189_v9, %v7177_v30  ;;  %v7391_v30 = vmul.f32 0.5, %v7390_v33 }
 0x7f0   : > { %v7202_v8 = vpop.f32.mrf.mxu3 }
 0x7f1   : > { %v7203_v21 = vadd.f32 %v7202_v8, %v7190_v54 }
 0x7f3   : > { %v7216_v63 = vadd.f32 %v7215_v32, %v7203_v21 }
 0x7f5   : > { %v7229_v34 = vadd.f32 %v7228_v52, %v7216_v63 }
 0x7f6   : > { %v7191_v6 = vpop.f32.mrf.mxu2 }
 0x7f8   : > { %v7204_v48 = vpop.f32.mrf.mxu3 }
 0x824   : > { %v7319_v56 = vpop.f32.mrf.mxu1 }
 0x825   : > { %v7332_v35 = vpop.f32.mrf.mxu0 }
 0x82c   : > { %v7321_v50 = vpop.f32.mrf.mxu1 }
 0x82d   : > { %v7334_v3 = vpop.f32.mrf.mxu0 }
 0x82e   : > { %v7241_v14 = vpop.f32.mrf.mxu2 }
 0x82f   : > { %v7242_v49 = vadd.f32 %v7241_v14, %v7229_v34 }
 0x830   : > { %v7254_v25 = vpop.f32.mrf.mxu3 }
 0x831   : > { %v7336_v24 = vadd.f32 %v7242_v49, %v12389_v43  ;;  %v7268_v58 = vadd.f32 %v7267_v17, %v7254_v25  ;;  %v7392_v43 = vsub.f32 1.5, %v7391_v30 }
 0x833   : > { %v7344_v37 = vadd.f32 %v7342_v38, %v7336_v24  ;;  %v7281_v31 = vadd.f32 %v7280_v28, %v7268_v58  ;;  %v7393_v13 = vmul.f32 %v11217_v45, %v7392_v43 }
 0x835   : > { %7415 = vst.sshfl [vmem:[#allocation1] sm:$0xff pattern:$0x75316420] %v7344_v37  ;;  %v7397_v59 = vsel %vm7396_vm7, %v11217_v45, %v7393_v13  ;;  %v7405_v46 = vadd.f32 1.0, %v7344_v37 }
 0x836   : > { %v7243_v26 = vpop.f32.mrf.mxu2  ;;  %v7402_v16 = vperm.slane %v7397_v59, %v7370_v41 }
 0x838   : > { %v7256_v51 = vpop.f32.mrf.mxu3  ;;  %v7404_v20 = vmul.f32 %v7402_v16, %v12378_v55 }
 0x86e   : > { %v7293_v53 = vpop.f32.mrf.mxu2 }
 0x86f   : > { %v7294_v1 = vadd.f32 %v7293_v53, %v7281_v31 }
 0x870   : > { %v7306_v27 = vpop.f32.mrf.mxu3 }
 0x871   : > { %v7307_v5 = vadd.f32 %v7306_v27, %v7294_v1 }
 0x873   : > { %v7320_v47 = vadd.f32 %v7319_v56, %v7307_v5 }
 0x875   : > { %v7333_v57 = vadd.f32 %v7332_v35, %v7320_v47 }
 0x876   : > { %v7295_v36 = vpop.f32.mrf.mxu2 }
 0x877   : > { %v7337_v61 = vadd.f32 %v7333_v57, %v12428_v18 }
 0x878   : > { %v7308_v23 = vpop.f32.mrf.mxu3 }
 0x879   : > { %v7345_v7 = vadd.f32 %v7342_v38, %v7337_v61 }
 0x87b   : > { %v7406_v44 = vadd.f32 1.0, %v7345_v7  ;;  %7416 = vst.sshfl [vmem:[#allocation1 + $0x8] sm:$0xff pattern:$0x75316420] %v7345_v7 }
 0x87d   : > { %v7409_v22 = vrot.slane %v7406_v44, 4 }
 0x87f   : > { %v7410_v18 = vsel %vm7353_vm3, %v7405_v46, %v7409_v22 }
 0x880   : > { %v7412_v60 = vmul.f32 %v7410_v18, %v7404_v20 }
 0x882   : > { %v7418_v10 = vld [vmem:[#allocation1 + $0x1] ss:$2 sm:$0xff] }
 0x883   : > { %v7420_v41 = vadd.f32 %v7418_v10, %v7412_v60 }
 0x885   : > { %7421 = vst [vmem:[%s259_s29] sm:$0xff] %v7420_v41 }
 0x886   : > { %11247 = shalt.err (!%p11244_p3)
}
 0x887   : > { %11167 = dma.vmem_to_hbm [thread:$0]  (%p11362_p5), %s7437_s9, 128, %s7439_s10, %s7423_s25  }
 0x888 PF: > { %p11173_p4 = scmp.ge.s32.totalorder %s11282_s24, 2  ;;  %s7450_s17 = sand.u32 1, %s11270_s21  }
 0x889   : > { %s7451_s18 = scalar_lea.sflag [#allocation5], %s7450_s17 }
 0x88a   : > { %p11170_p7 = pnand %p11173_p4, %p11366_p6 }
 0x88c   : > { %p11171_p8 = pneg %p11170_p7 }
 0x88e   : > { %11265 = dma.done.wait (%p11171_p8), %s7451_s18, 128  }
 0x88f   : > { %11267 = vsyncadd (%p11171_p8), %s7451_s18, 4294967168  ;;  %p16_p9 = scmp.ge.s32.totalorder %s11349_s27, 4   ;;  %s12621_s21 = smov %s11274_s22 }
 0x890   : > { %s12622_s22 = smov %s11278_s23  ;;  %s12623_s23 = smov %s11360_s30 }
 0x891   : > { %s12624_s24 = smov %s11349_s27  ;;  %18 = sbr.rel (!%p16_p9) target bundleno = 3 (0x3), region = 89 }
 0x896   :  { %7457 = vsyncpa [#allocation5], 1 }
 0x897   :  { %7459 = vsyncpa [#allocation5 + $0x1], 1 }

</bundles_post_ra>
